<compile_context>
chip_gen: v7x
topology: tpu7x:2x2x1
jax: 0.10.0
libtpu: 0.0.40
codegen_flags: <defaults>
</compile_context>

<pallas_src>
import functools

import jax
import jax.numpy as jnp
from jax import lax
from jax.experimental import pallas as pl
from jax.experimental.pallas import tpu as pltpu

KSIZE = 4                       # every conv in the Discriminator is 4x4
IN_CHANNELS = 3
FEATURES = (64, 128, 256, 512)  # module defaults


def _pad_to(n, m):
    return -(-n // m) * m


def _layer_specs(in_channels=IN_CHANNELS, features=FEATURES):
    """(cin, cout, stride, has_bn) per layer -- mirrors the PyTorch module."""
    specs = [(2 * in_channels, features[0], 2, False)]          # initial (bias)
    cin = features[0]
    for feat in features[1:]:
        stride = 1 if feat == features[-1] else 2               # CNN_Block rule
        specs.append((cin, feat, stride, True))                 # conv+BN+LeakyReLU
        cin = feat
    specs.append((cin, 1, 1, False))                            # final 1-ch conv (bias)
    return specs


# ---------------------------------------------------------------------------
# Fused Pallas conv kernel: conv (MXU) + folded BN/bias affine + LeakyReLU
# ---------------------------------------------------------------------------
def _conv_kernel(x_ref, w_ref, scale_ref, shift_ref, o_ref, *,
                 kh, kw_g, cg, stride, oh_n, ow_n, cout_p, act):
    """One batch element per grid step.

    x_ref     : (HP, WG, cg) bf16  reflect-padded image; for stride-2 layers the
                columns are pair-packed host-side so WG = WP/2, cg = 2*CinP.
    w_ref     : (kh*kw_g*cg, cout_p) bf16, rows ordered (row-tap, col-group, ch).
    scale_ref : (1, cout_p) f32  folded BatchNorm scale (ones for bias-only layers)
    shift_ref : (1, cout_p) f32  folded BatchNorm shift (or conv bias)
    o_ref     : (oh_n, ow_n, cout_p)
    """
    scale = scale_ref[...]
    shift = shift_ref[...]

    def row_body(oh, carry):
        acc = jnp.zeros((ow_n, cout_p), jnp.float32)
        for di in range(kh):                      # row taps (unrolled)
            r = oh * stride + di                  # dynamic row index (scalar)
            for g in range(kw_g):                 # column-tap groups (unrolled)
                lhs = x_ref[r, pl.ds(g, ow_n), :]                 # (ow_n, cg) bf16
                rhs = w_ref[pl.ds((di * kw_g + g) * cg, cg), :]   # (cg, cout_p) bf16
                acc = acc + jnp.dot(lhs, rhs,
                                    preferred_element_type=jnp.float32)
        y = acc * scale + shift
        if act == "leaky":
            y = jnp.where(y > 0, y, 0.2 * y)
        # act == "none": identity (final PatchGAN logits)
        o_ref[oh] = y.astype(o_ref.dtype)
        return carry

    lax.fori_loop(0, oh_n, row_body, 0)


def conv2d_fused(x, w, scale, shift, *, stride, act, out_dtype):
    """x:(N,H,W,CinP) bf16, w:(16*CinP,CoutP) bf16, scale/shift:(1,CoutP) f32."""
    n, h, wdt, cin_p = x.shape
    kkc, cout_p = w.shape
    assert kkc == KSIZE * KSIZE * cin_p

    # reflect padding (pad=1) == padding_mode='reflect' in the PyTorch module
    xp = jnp.pad(x, ((0, 0), (1, 1), (1, 1), (0, 0)), mode="reflect")
    hp, wp = h + 2, wdt + 2
    oh_n = (hp - KSIZE) // stride + 1
    ow_n = (wp - KSIZE) // stride + 1

    if stride == 2:
        # Free (contiguous) reshape packing column pairs into the channel dim:
        # a k4 s2 conv along W becomes a k2 s1 conv over pairs -> only
        # contiguous vector loads inside the kernel, no strided access.
        assert wp % 2 == 0
        xk = xp.reshape(n, hp, wp // 2, 2 * cin_p)
        kw_g, cg = 2, 2 * cin_p
    else:
        xk = xp
        kw_g, cg = KSIZE, cin_p
    wg = xk.shape[2]

    kernel = functools.partial(
        _conv_kernel, kh=KSIZE, kw_g=kw_g, cg=cg, stride=stride,
        oh_n=oh_n, ow_n=ow_n, cout_p=cout_p, act=act)

    return pl.pallas_call(
        kernel,
        out_shape=jax.ShapeDtypeStruct((n, oh_n, ow_n, cout_p), out_dtype),
        grid_spec=pltpu.PrefetchScalarGridSpec(
            num_scalar_prefetch=0,
            grid=(n,),                                  # one batch elem / step
            in_specs=[
                pl.BlockSpec((None, hp, wg, cg), lambda b: (b, 0, 0, 0)),
                pl.BlockSpec((kkc, cout_p), lambda b: (0, 0)),
                pl.BlockSpec((1, cout_p), lambda b: (0, 0)),
                pl.BlockSpec((1, cout_p), lambda b: (0, 0)),
            ],
            out_specs=pl.BlockSpec((None, oh_n, ow_n, cout_p),
                                   lambda b: (b, 0, 0, 0)),
        ),
        compiler_params=pltpu.CompilerParams(
            dimension_semantics=("parallel",)),         # batch -> both TCs (v7x)
    )(xk, w, scale, shift)


# ---------------------------------------------------------------------------
# Deterministic parameters (synthetic; shapes match the module). Weight layout
# and BN folding are precomputed here ONCE (bf16), not per forward call.
# ---------------------------------------------------------------------------
def _bn_affine(key, c):
    kg, kb, km, kv = jax.random.split(key, 4)
    gamma = 1.0 + 0.1 * jax.random.normal(kg, (c,), jnp.float32)
    beta = 0.1 * jax.random.normal(kb, (c,), jnp.float32)
    mean = 0.1 * jax.random.normal(km, (c,), jnp.float32)
    var = 1.0 + 0.1 * jax.random.uniform(kv, (c,), dtype=jnp.float32)
    scale = gamma / jnp.sqrt(var + 1e-5)
    shift = beta - mean * scale
    return scale, shift


def make_params(key, in_channels=IN_CHANNELS, features=FEATURES):
    specs = _layer_specs(in_channels, features)
    keys = jax.random.split(key, 2 * len(specs))

    kernel_params = {}                       # arrays only (jit-friendly pytree)
    ref_params = {"specs": specs}            # raw params for the pure-JAX reference

    cin_p = _pad_to(specs[0][0], 8)          # pad concat input 6 -> 8 channels
    for li, (cin, cout, stride, has_bn) in enumerate(specs):
        del stride
        kw_key, kb_key = keys[2 * li], keys[2 * li + 1]
        cout_p = _pad_to(cout, 128)          # lane-dense (128-multiple) outputs

        w = 0.05 * jax.random.normal(kw_key, (cout, cin, KSIZE, KSIZE), jnp.float32)
        ref_params[f"w{li}"] = w
        if has_bn:
            scale, shift = _bn_affine(kb_key, cout)           # eval-mode BN, folded
            ref_params[f"s{li}"], ref_params[f"t{li}"] = scale, shift
        else:
            bias = 0.05 * jax.random.normal(kb_key, (cout,), jnp.float32)
            ref_params[f"b{li}"] = bias
            scale, shift = jnp.ones((cout,), jnp.float32), bias

        # kernel layout: OIHW -> (KH, KW, CinP, CoutP) -> (16*CinP, CoutP) bf16;
        # this row ordering works unchanged for the column-pair-packed stride-2 path.
        w_hwio = jnp.transpose(w, (2, 3, 1, 0))
        w_hwio = jnp.pad(w_hwio, ((0, 0), (0, 0),
                                  (0, cin_p - cin), (0, cout_p - cout)))
        kernel_params[f"w{li}"] = (
            w_hwio.reshape(KSIZE * KSIZE * cin_p, cout_p).astype(jnp.bfloat16))
        # padded channels get scale=0, shift=0 -> stay exactly zero downstream
        kernel_params[f"s{li}"] = jnp.pad(scale, (0, cout_p - cout)).reshape(1, cout_p)
        kernel_params[f"t{li}"] = jnp.pad(shift, (0, cout_p - cout)).reshape(1, cout_p)
        cin_p = cout_p
    return kernel_params, ref_params


# ---------------------------------------------------------------------------
# Discriminator forward (inference): matches Discriminator.forward(x, y)
# ---------------------------------------------------------------------------
def discriminator_forward(x_nchw, y_nchw, params):
    specs = _layer_specs()
    h = jnp.concatenate([x_nchw, y_nchw], axis=1)            # torch.cat(dim=1)
    h = jnp.transpose(h, (0, 2, 3, 1))                       # NCHW -> NHWC
    cin0_p = params["w0"].shape[0] // (KSIZE * KSIZE)
    h = jnp.pad(h, ((0, 0), (0, 0), (0, 0), (0, cin0_p - h.shape[-1])))
    h = h.astype(jnp.bfloat16)

    for li, (_, _, stride, _) in enumerate(specs):
        last = li == len(specs) - 1
        h = conv2d_fused(
            h, params[f"w{li}"], params[f"s{li}"], params[f"t{li}"],
            stride=stride, act="none" if last else "leaky",
            out_dtype=jnp.float32 if last else jnp.bfloat16)

    out = h[..., :1]                                         # drop Cout lane padding
    return jnp.transpose(out, (0, 3, 1, 2))                  # NHWC -> NCHW (N,1,oh,ow)


# ---------------------------------------------------------------------------
# Pure-JAX f32 reference (independent path) for a numerical cross-check
# ---------------------------------------------------------------------------
def _conv_ref(h, w_oihw, stride):
    hp = jnp.pad(h, ((0, 0), (1, 1), (1, 1), (0, 0)), mode="reflect")
    return lax.conv_general_dilated(
        hp, jnp.transpose(w_oihw, (2, 3, 1, 0)),
        window_strides=(stride, stride), padding="VALID",
        dimension_numbers=("NHWC", "HWIO", "NHWC"))


def discriminator_reference(x_nchw, y_nchw, rp):
    leaky = lambda v: jnp.where(v > 0, v, 0.2 * v)
    h = jnp.concatenate([x_nchw, y_nchw], axis=1)
    h = jnp.transpose(h, (0, 2, 3, 1)).astype(jnp.float32)
    specs = rp["specs"]
    for li, (_, _, stride, has_bn) in enumerate(specs):
        h = _conv_ref(h, rp[f"w{li}"], stride)
        if has_bn:
            h = h * rp[f"s{li}"] + rp[f"t{li}"]
        else:
            h = h + rp[f"b{li}"]
        if li < len(specs) - 1:
            h = leaky(h)
    return jnp.transpose(h, (0, 3, 1, 2))


if __name__ == "__main__":
    key = jax.random.PRNGKey(0)
    k_x, k_y, k_p = jax.random.split(key, 3)

    # Small shapes consistent with the module: three stride-2 + two stride-1
    # 4x4 convs need H = W >= 32; 64 gives a 6x6 PatchGAN output map.
    N, C, H, W = 2, IN_CHANNELS, 64, 64
    x = jax.random.normal(k_x, (N, C, H, W), jnp.float32)
    y = jax.random.normal(k_y, (N, C, H, W), jnp.float32)
    params, ref_params = make_params(k_p)

    fwd = jax.jit(discriminator_forward)
    out = fwd(x, y, params)
    jax.block_until_ready(out)

    assert out.shape == (N, 1, 6, 6), out.shape
    assert bool(jnp.all(jnp.isfinite(out)))

    # cross-check vs. the pure-JAX f32 reference (bf16-MXU tolerance)
    ref = discriminator_reference(x, y, ref_params)
    err = float(jnp.max(jnp.abs(out - ref)))
    mag = float(jnp.max(jnp.abs(ref)))
    assert err <= 5e-2 * mag + 1e-1, (err, mag)

    print("KERNEL_OK")
</pallas_src>

<mosaic_0001>
module attributes {stable_mosaic.version = 11 : i64} {
  func.func @_conv_kernel(%arg0: i32, %arg1: memref<1x66x33x16xbf16, #tpu.memory_space<vmem>>, %arg2: memref<128x128xbf16, #tpu.memory_space<vmem>>, %arg3: memref<1x128xf32, #tpu.memory_space<vmem>>, %arg4: memref<1x128xf32, #tpu.memory_space<vmem>>, %arg5: memref<1x32x32x128xbf16, #tpu.memory_space<vmem>>) attributes {dimension_semantics = [#tpu.dimension_semantics<parallel>], iteration_bounds = array<i64: 2>, scalar_prefetch = 0 : i64, scratch_operands = 0 : i64, tpu.core_type = #tpu.core_type<tc>, window_params = [{transform_indices = @transform_0, window_bounds = array<i64: 1, 66, 33, 16>}, {pipeline_mode = #tpu.pipeline_mode<synchronous>, transform_indices = @transform_1, window_bounds = array<i64: 128, 128>}, {pipeline_mode = #tpu.pipeline_mode<synchronous>, transform_indices = @transform_2, window_bounds = array<i64: 1, 128>}, {pipeline_mode = #tpu.pipeline_mode<synchronous>, transform_indices = @transform_3, window_bounds = array<i64: 1, 128>}, {transform_indices = @transform_4, window_bounds = array<i64: 1, 32, 32, 128>}]} {
    %c0 = arith.constant 0 : index
    %c0_0 = arith.constant 0 : index
    %0 = vector.load %arg3[%c0, %c0_0] : memref<1x128xf32, #tpu.memory_space<vmem>>, vector<1x128xf32>
    %c0_1 = arith.constant 0 : index
    %c0_2 = arith.constant 0 : index
    %1 = vector.load %arg4[%c0_1, %c0_2] : memref<1x128xf32, #tpu.memory_space<vmem>>, vector<1x128xf32>
    %c0_i32 = arith.constant 0 : i32
    %c32_i32 = arith.constant 32 : i32
    %2 = arith.addi %c0_i32, %c32_i32 : i32
    %c1_i32 = arith.constant 1 : i32
    scf.for %arg6 = %c0_i32 to %2 step %c1_i32  : i32 {
      %cst = arith.constant 0.000000e+00 : f32
      %3 = vector.broadcast %cst : f32 to vector<32x128xf32>
      %c2_i32 = arith.constant 2 : i32
      %4 = arith.muli %arg6, %c2_i32 : i32
      %c0_i32_4 = arith.constant 0 : i32
      %5 = arith.addi %4, %c0_i32_4 : i32
      %c0_5 = arith.constant 0 : index
      %6 = arith.index_cast %5 : i32 to index
      %c0_6 = arith.constant 0 : index
      %c0_7 = arith.constant 0 : index
      %7 = vector.load %arg1[%c0_5, %6, %c0_6, %c0_7] : memref<1x66x33x16xbf16, #tpu.memory_space<vmem>>, vector<1x1x32x16xbf16>
      %8 = vector.shape_cast %7 : vector<1x1x32x16xbf16> to vector<32x16xbf16>
      %c0_8 = arith.constant 0 : index
      %c0_9 = arith.constant 0 : index
      %9 = vector.load %arg2[%c0_8, %c0_9] : memref<128x128xbf16, #tpu.memory_space<vmem>>, vector<16x128xbf16>
      %cst_10 = arith.constant dense<0.000000e+00> : vector<32x128xf32>
      %10 = tpu.matmul %8, %9, %cst_10 {dimension_numbers = #tpu.dot_dimension_numbers<[1], [0], [0], [1], [0, 0, 1, 1], [], []>} : vector<32x16xbf16>, vector<16x128xbf16>, vector<32x128xf32> -> vector<32x128xf32>
      %11 = arith.addf %3, %10 : vector<32x128xf32>
      %c0_11 = arith.constant 0 : index
      %12 = arith.index_cast %5 : i32 to index
      %c1 = arith.constant 1 : index
      %c0_12 = arith.constant 0 : index
      %13 = vector.load %arg1[%c0_11, %12, %c1, %c0_12] : memref<1x66x33x16xbf16, #tpu.memory_space<vmem>>, vector<1x1x32x16xbf16>
      %14 = vector.shape_cast %13 : vector<1x1x32x16xbf16> to vector<32x16xbf16>
      %c16 = arith.constant 16 : index
      %c0_13 = arith.constant 0 : index
      %15 = vector.load %arg2[%c16, %c0_13] : memref<128x128xbf16, #tpu.memory_space<vmem>>, vector<16x128xbf16>
      %cst_14 = arith.constant dense<0.000000e+00> : vector<32x128xf32>
      %16 = tpu.matmul %14, %15, %cst_14 {dimension_numbers = #tpu.dot_dimension_numbers<[1], [0], [0], [1], [0, 0, 1, 1], [], []>} : vector<32x16xbf16>, vector<16x128xbf16>, vector<32x128xf32> -> vector<32x128xf32>
      %17 = arith.addf %11, %16 : vector<32x128xf32>
      %c2_i32_15 = arith.constant 2 : i32
      %18 = arith.muli %arg6, %c2_i32_15 : i32
      %c1_i32_16 = arith.constant 1 : i32
      %19 = arith.addi %18, %c1_i32_16 : i32
      %c0_17 = arith.constant 0 : index
      %20 = arith.index_cast %19 : i32 to index
      %c0_18 = arith.constant 0 : index
      %c0_19 = arith.constant 0 : index
      %21 = vector.load %arg1[%c0_17, %20, %c0_18, %c0_19] : memref<1x66x33x16xbf16, #tpu.memory_space<vmem>>, vector<1x1x32x16xbf16>
      %22 = vector.shape_cast %21 : vector<1x1x32x16xbf16> to vector<32x16xbf16>
      %c32 = arith.constant 32 : index
      %c0_20 = arith.constant 0 : index
      %23 = vector.load %arg2[%c32, %c0_20] : memref<128x128xbf16, #tpu.memory_space<vmem>>, vector<16x128xbf16>
      %cst_21 = arith.constant dense<0.000000e+00> : vector<32x128xf32>
      %24 = tpu.matmul %22, %23, %cst_21 {dimension_numbers = #tpu.dot_dimension_numbers<[1], [0], [0], [1], [0, 0, 1, 1], [], []>} : vector<32x16xbf16>, vector<16x128xbf16>, vector<32x128xf32> -> vector<32x128xf32>
      %25 = arith.addf %17, %24 : vector<32x128xf32>
      %c0_22 = arith.constant 0 : index
      %26 = arith.index_cast %19 : i32 to index
      %c1_23 = arith.constant 1 : index
      %c0_24 = arith.constant 0 : index
      %27 = vector.load %arg1[%c0_22, %26, %c1_23, %c0_24] : memref<1x66x33x16xbf16, #tpu.memory_space<vmem>>, vector<1x1x32x16xbf16>
      %28 = vector.shape_cast %27 : vector<1x1x32x16xbf16> to vector<32x16xbf16>
      %c48 = arith.constant 48 : index
      %c0_25 = arith.constant 0 : index
      %29 = vector.load %arg2[%c48, %c0_25] : memref<128x128xbf16, #tpu.memory_space<vmem>>, vector<16x128xbf16>
      %cst_26 = arith.constant dense<0.000000e+00> : vector<32x128xf32>
      %30 = tpu.matmul %28, %29, %cst_26 {dimension_numbers = #tpu.dot_dimension_numbers<[1], [0], [0], [1], [0, 0, 1, 1], [], []>} : vector<32x16xbf16>, vector<16x128xbf16>, vector<32x128xf32> -> vector<32x128xf32>
      %31 = arith.addf %25, %30 : vector<32x128xf32>
      %c2_i32_27 = arith.constant 2 : i32
      %32 = arith.muli %arg6, %c2_i32_27 : i32
      %c2_i32_28 = arith.constant 2 : i32
      %33 = arith.addi %32, %c2_i32_28 : i32
      %c0_29 = arith.constant 0 : index
      %34 = arith.index_cast %33 : i32 to index
      %c0_30 = arith.constant 0 : index
      %c0_31 = arith.constant 0 : index
      %35 = vector.load %arg1[%c0_29, %34, %c0_30, %c0_31] : memref<1x66x33x16xbf16, #tpu.memory_space<vmem>>, vector<1x1x32x16xbf16>
      %36 = vector.shape_cast %35 : vector<1x1x32x16xbf16> to vector<32x16xbf16>
      %c64 = arith.constant 64 : index
      %c0_32 = arith.constant 0 : index
      %37 = vector.load %arg2[%c64, %c0_32] : memref<128x128xbf16, #tpu.memory_space<vmem>>, vector<16x128xbf16>
      %cst_33 = arith.constant dense<0.000000e+00> : vector<32x128xf32>
      %38 = tpu.matmul %36, %37, %cst_33 {dimension_numbers = #tpu.dot_dimension_numbers<[1], [0], [0], [1], [0, 0, 1, 1], [], []>} : vector<32x16xbf16>, vector<16x128xbf16>, vector<32x128xf32> -> vector<32x128xf32>
      %39 = arith.addf %31, %38 : vector<32x128xf32>
      %c0_34 = arith.constant 0 : index
      %40 = arith.index_cast %33 : i32 to index
      %c1_35 = arith.constant 1 : index
      %c0_36 = arith.constant 0 : index
      %41 = vector.load %arg1[%c0_34, %40, %c1_35, %c0_36] : memref<1x66x33x16xbf16, #tpu.memory_space<vmem>>, vector<1x1x32x16xbf16>
      %42 = vector.shape_cast %41 : vector<1x1x32x16xbf16> to vector<32x16xbf16>
      %c80 = arith.constant 80 : index
      %c0_37 = arith.constant 0 : index
      %43 = vector.load %arg2[%c80, %c0_37] : memref<128x128xbf16, #tpu.memory_space<vmem>>, vector<16x128xbf16>
      %cst_38 = arith.constant dense<0.000000e+00> : vector<32x128xf32>
      %44 = tpu.matmul %42, %43, %cst_38 {dimension_numbers = #tpu.dot_dimension_numbers<[1], [0], [0], [1], [0, 0, 1, 1], [], []>} : vector<32x16xbf16>, vector<16x128xbf16>, vector<32x128xf32> -> vector<32x128xf32>
      %45 = arith.addf %39, %44 : vector<32x128xf32>
      %c2_i32_39 = arith.constant 2 : i32
      %46 = arith.muli %arg6, %c2_i32_39 : i32
      %c3_i32 = arith.constant 3 : i32
      %47 = arith.addi %46, %c3_i32 : i32
      %c0_40 = arith.constant 0 : index
      %48 = arith.index_cast %47 : i32 to index
      %c0_41 = arith.constant 0 : index
      %c0_42 = arith.constant 0 : index
      %49 = vector.load %arg1[%c0_40, %48, %c0_41, %c0_42] : memref<1x66x33x16xbf16, #tpu.memory_space<vmem>>, vector<1x1x32x16xbf16>
      %50 = vector.shape_cast %49 : vector<1x1x32x16xbf16> to vector<32x16xbf16>
      %c96 = arith.constant 96 : index
      %c0_43 = arith.constant 0 : index
      %51 = vector.load %arg2[%c96, %c0_43] : memref<128x128xbf16, #tpu.memory_space<vmem>>, vector<16x128xbf16>
      %cst_44 = arith.constant dense<0.000000e+00> : vector<32x128xf32>
      %52 = tpu.matmul %50, %51, %cst_44 {dimension_numbers = #tpu.dot_dimension_numbers<[1], [0], [0], [1], [0, 0, 1, 1], [], []>} : vector<32x16xbf16>, vector<16x128xbf16>, vector<32x128xf32> -> vector<32x128xf32>
      %53 = arith.addf %45, %52 : vector<32x128xf32>
      %c0_45 = arith.constant 0 : index
      %54 = arith.index_cast %47 : i32 to index
      %c1_46 = arith.constant 1 : index
      %c0_47 = arith.constant 0 : index
      %55 = vector.load %arg1[%c0_45, %54, %c1_46, %c0_47] : memref<1x66x33x16xbf16, #tpu.memory_space<vmem>>, vector<1x1x32x16xbf16>
      %56 = vector.shape_cast %55 : vector<1x1x32x16xbf16> to vector<32x16xbf16>
      %c112 = arith.constant 112 : index
      %c0_48 = arith.constant 0 : index
      %57 = vector.load %arg2[%c112, %c0_48] : memref<128x128xbf16, #tpu.memory_space<vmem>>, vector<16x128xbf16>
      %cst_49 = arith.constant dense<0.000000e+00> : vector<32x128xf32>
      %58 = tpu.matmul %56, %57, %cst_49 {dimension_numbers = #tpu.dot_dimension_numbers<[1], [0], [0], [1], [0, 0, 1, 1], [], []>} : vector<32x16xbf16>, vector<16x128xbf16>, vector<32x128xf32> -> vector<32x128xf32>
      %59 = arith.addf %53, %58 : vector<32x128xf32>
      %60 = vector.broadcast %0 : vector<1x128xf32> to vector<32x128xf32>
      %61 = arith.mulf %59, %60 : vector<32x128xf32>
      %62 = vector.broadcast %1 : vector<1x128xf32> to vector<32x128xf32>
      %63 = arith.addf %61, %62 : vector<32x128xf32>
      %cst_50 = arith.constant 0.000000e+00 : f32
      %64 = vector.broadcast %cst_50 : f32 to vector<32x128xf32>
      %65 = arith.cmpf ogt, %63, %64 : vector<32x128xf32>
      %cst_51 = arith.constant 2.000000e-01 : f32
      %66 = vector.broadcast %cst_51 : f32 to vector<32x128xf32>
      %67 = arith.mulf %66, %63 : vector<32x128xf32>
      %68 = arith.select %65, %63, %67 : vector<32x128xi1>, vector<32x128xf32>
      %69 = arith.truncf %68 : vector<32x128xf32> to vector<32x128xbf16>
      %c0_52 = arith.constant 0 : index
      %70 = arith.index_cast %arg6 : i32 to index
      %c0_53 = arith.constant 0 : index
      %c0_54 = arith.constant 0 : index
      %71 = vector.load %arg5[%c0_52, %70, %c0_53, %c0_54] : memref<1x32x32x128xbf16, #tpu.memory_space<vmem>>, vector<1x1x32x128xbf16>
      %72 = vector.shape_cast %71 : vector<1x1x32x128xbf16> to vector<32x128xbf16>
      %73 = vector.shape_cast %69 : vector<32x128xbf16> to vector<1x1x32x128xbf16>
      tpu.vector_store %arg5[%c0_52, %70, %c0_53, %c0_54], %73 {strides = array<i32>} : memref<1x32x32x128xbf16, #tpu.memory_space<vmem>>, vector<1x1x32x128xbf16>,
    }
    %c32_i32_3 = arith.constant 32 : i32
    return
  }
  func.func @transform_0(%arg0: i32) -> (i32, i32, i32, i32) {
    %c0_i32 = arith.constant 0 : i32
    %c0_i32_0 = arith.constant 0 : i32
    %c0_i32_1 = arith.constant 0 : i32
    %c0_i32_2 = arith.constant 0 : i32
    return %arg0, %c0_i32, %c0_i32_0, %c0_i32_1 : i32, i32, i32, i32
  }
  func.func @transform_1(%arg0: i32) -> (i32, i32) {
    %c0_i32 = arith.constant 0 : i32
    %c0_i32_0 = arith.constant 0 : i32
    %c0_i32_1 = arith.constant 0 : i32
    return %c0_i32, %c0_i32_0 : i32, i32
  }
  func.func @transform_2(%arg0: i32) -> (i32, i32) {
    %c0_i32 = arith.constant 0 : i32
    %c0_i32_0 = arith.constant 0 : i32
    %c0_i32_1 = arith.constant 0 : i32
    return %c0_i32, %c0_i32_0 : i32, i32
  }
  func.func @transform_3(%arg0: i32) -> (i32, i32) {
    %c0_i32 = arith.constant 0 : i32
    %c0_i32_0 = arith.constant 0 : i32
    %c0_i32_1 = arith.constant 0 : i32
    return %c0_i32, %c0_i32_0 : i32, i32
  }
  func.func @transform_4(%arg0: i32) -> (i32, i32, i32, i32) {
    %c0_i32 = arith.constant 0 : i32
    %c0_i32_0 = arith.constant 0 : i32
    %c0_i32_1 = arith.constant 0 : i32
    %c0_i32_2 = arith.constant 0 : i32
    return %arg0, %c0_i32, %c0_i32_0, %c0_i32_1 : i32, i32, i32, i32
  }
}

module attributes {stable_mosaic.version = 11 : i64} {
  func.func @_conv_kernel(%arg0: i32, %arg1: memref<1x34x17x256xbf16, #tpu.memory_space<vmem>>, %arg2: memref<2048x128xbf16, #tpu.memory_space<vmem>>, %arg3: memref<1x128xf32, #tpu.memory_space<vmem>>, %arg4: memref<1x128xf32, #tpu.memory_space<vmem>>, %arg5: memref<1x16x16x128xbf16, #tpu.memory_space<vmem>>) attributes {dimension_semantics = [#tpu.dimension_semantics<parallel>], iteration_bounds = array<i64: 2>, scalar_prefetch = 0 : i64, scratch_operands = 0 : i64, tpu.core_type = #tpu.core_type<tc>, window_params = [{transform_indices = @transform_0, window_bounds = array<i64: 1, 34, 17, 256>}, {pipeline_mode = #tpu.pipeline_mode<synchronous>, transform_indices = @transform_1, window_bounds = array<i64: 2048, 128>}, {pipeline_mode = #tpu.pipeline_mode<synchronous>, transform_indices = @transform_2, window_bounds = array<i64: 1, 128>}, {pipeline_mode = #tpu.pipeline_mode<synchronous>, transform_indices = @transform_3, window_bounds = array<i64: 1, 128>}, {transform_indices = @transform_4, window_bounds = array<i64: 1, 16, 16, 128>}]} {
    %c0 = arith.constant 0 : index
    %c0_0 = arith.constant 0 : index
    %0 = vector.load %arg3[%c0, %c0_0] : memref<1x128xf32, #tpu.memory_space<vmem>>, vector<1x128xf32>
    %c0_1 = arith.constant 0 : index
    %c0_2 = arith.constant 0 : index
    %1 = vector.load %arg4[%c0_1, %c0_2] : memref<1x128xf32, #tpu.memory_space<vmem>>, vector<1x128xf32>
    %c0_i32 = arith.constant 0 : i32
    %c16_i32 = arith.constant 16 : i32
    %2 = arith.addi %c0_i32, %c16_i32 : i32
    %c1_i32 = arith.constant 1 : i32
    scf.for %arg6 = %c0_i32 to %2 step %c1_i32  : i32 {
      %cst = arith.constant 0.000000e+00 : f32
      %3 = vector.broadcast %cst : f32 to vector<16x128xf32>
      %c2_i32 = arith.constant 2 : i32
      %4 = arith.muli %arg6, %c2_i32 : i32
      %c0_i32_4 = arith.constant 0 : i32
      %5 = arith.addi %4, %c0_i32_4 : i32
      %c0_5 = arith.constant 0 : index
      %6 = arith.index_cast %5 : i32 to index
      %c0_6 = arith.constant 0 : index
      %c0_7 = arith.constant 0 : index
      %7 = vector.load %arg1[%c0_5, %6, %c0_6, %c0_7] : memref<1x34x17x256xbf16, #tpu.memory_space<vmem>>, vector<1x1x16x256xbf16>
      %8 = vector.shape_cast %7 : vector<1x1x16x256xbf16> to vector<16x256xbf16>
      %c0_8 = arith.constant 0 : index
      %c0_9 = arith.constant 0 : index
      %9 = vector.load %arg2[%c0_8, %c0_9] : memref<2048x128xbf16, #tpu.memory_space<vmem>>, vector<256x128xbf16>
      %cst_10 = arith.constant dense<0.000000e+00> : vector<16x128xf32>
      %10 = tpu.matmul %8, %9, %cst_10 {dimension_numbers = #tpu.dot_dimension_numbers<[1], [0], [0], [1], [0, 0, 1, 1], [], []>} : vector<16x256xbf16>, vector<256x128xbf16>, vector<16x128xf32> -> vector<16x128xf32>
      %11 = arith.addf %3, %10 : vector<16x128xf32>
      %c0_11 = arith.constant 0 : index
      %12 = arith.index_cast %5 : i32 to index
      %c1 = arith.constant 1 : index
      %c0_12 = arith.constant 0 : index
      %13 = vector.load %arg1[%c0_11, %12, %c1, %c0_12] : memref<1x34x17x256xbf16, #tpu.memory_space<vmem>>, vector<1x1x16x256xbf16>
      %14 = vector.shape_cast %13 : vector<1x1x16x256xbf16> to vector<16x256xbf16>
      %c256 = arith.constant 256 : index
      %c0_13 = arith.constant 0 : index
      %15 = vector.load %arg2[%c256, %c0_13] : memref<2048x128xbf16, #tpu.memory_space<vmem>>, vector<256x128xbf16>
      %cst_14 = arith.constant dense<0.000000e+00> : vector<16x128xf32>
      %16 = tpu.matmul %14, %15, %cst_14 {dimension_numbers = #tpu.dot_dimension_numbers<[1], [0], [0], [1], [0, 0, 1, 1], [], []>} : vector<16x256xbf16>, vector<256x128xbf16>, vector<16x128xf32> -> vector<16x128xf32>
      %17 = arith.addf %11, %16 : vector<16x128xf32>
      %c2_i32_15 = arith.constant 2 : i32
      %18 = arith.muli %arg6, %c2_i32_15 : i32
      %c1_i32_16 = arith.constant 1 : i32
      %19 = arith.addi %18, %c1_i32_16 : i32
      %c0_17 = arith.constant 0 : index
      %20 = arith.index_cast %19 : i32 to index
      %c0_18 = arith.constant 0 : index
      %c0_19 = arith.constant 0 : index
      %21 = vector.load %arg1[%c0_17, %20, %c0_18, %c0_19] : memref<1x34x17x256xbf16, #tpu.memory_space<vmem>>, vector<1x1x16x256xbf16>
      %22 = vector.shape_cast %21 : vector<1x1x16x256xbf16> to vector<16x256xbf16>
      %c512 = arith.constant 512 : index
      %c0_20 = arith.constant 0 : index
      %23 = vector.load %arg2[%c512, %c0_20] : memref<2048x128xbf16, #tpu.memory_space<vmem>>, vector<256x128xbf16>
      %cst_21 = arith.constant dense<0.000000e+00> : vector<16x128xf32>
      %24 = tpu.matmul %22, %23, %cst_21 {dimension_numbers = #tpu.dot_dimension_numbers<[1], [0], [0], [1], [0, 0, 1, 1], [], []>} : vector<16x256xbf16>, vector<256x128xbf16>, vector<16x128xf32> -> vector<16x128xf32>
      %25 = arith.addf %17, %24 : vector<16x128xf32>
      %c0_22 = arith.constant 0 : index
      %26 = arith.index_cast %19 : i32 to index
      %c1_23 = arith.constant 1 : index
      %c0_24 = arith.constant 0 : index
      %27 = vector.load %arg1[%c0_22, %26, %c1_23, %c0_24] : memref<1x34x17x256xbf16, #tpu.memory_space<vmem>>, vector<1x1x16x256xbf16>
      %28 = vector.shape_cast %27 : vector<1x1x16x256xbf16> to vector<16x256xbf16>
      %c768 = arith.constant 768 : index
      %c0_25 = arith.constant 0 : index
      %29 = vector.load %arg2[%c768, %c0_25] : memref<2048x128xbf16, #tpu.memory_space<vmem>>, vector<256x128xbf16>
      %cst_26 = arith.constant dense<0.000000e+00> : vector<16x128xf32>
      %30 = tpu.matmul %28, %29, %cst_26 {dimension_numbers = #tpu.dot_dimension_numbers<[1], [0], [0], [1], [0, 0, 1, 1], [], []>} : vector<16x256xbf16>, vector<256x128xbf16>, vector<16x128xf32> -> vector<16x128xf32>
      %31 = arith.addf %25, %30 : vector<16x128xf32>
      %c2_i32_27 = arith.constant 2 : i32
      %32 = arith.muli %arg6, %c2_i32_27 : i32
      %c2_i32_28 = arith.constant 2 : i32
      %33 = arith.addi %32, %c2_i32_28 : i32
      %c0_29 = arith.constant 0 : index
      %34 = arith.index_cast %33 : i32 to index
      %c0_30 = arith.constant 0 : index
      %c0_31 = arith.constant 0 : index
      %35 = vector.load %arg1[%c0_29, %34, %c0_30, %c0_31] : memref<1x34x17x256xbf16, #tpu.memory_space<vmem>>, vector<1x1x16x256xbf16>
      %36 = vector.shape_cast %35 : vector<1x1x16x256xbf16> to vector<16x256xbf16>
      %c1024 = arith.constant 1024 : index
      %c0_32 = arith.constant 0 : index
      %37 = vector.load %arg2[%c1024, %c0_32] : memref<2048x128xbf16, #tpu.memory_space<vmem>>, vector<256x128xbf16>
      %cst_33 = arith.constant dense<0.000000e+00> : vector<16x128xf32>
      %38 = tpu.matmul %36, %37, %cst_33 {dimension_numbers = #tpu.dot_dimension_numbers<[1], [0], [0], [1], [0, 0, 1, 1], [], []>} : vector<16x256xbf16>, vector<256x128xbf16>, vector<16x128xf32> -> vector<16x128xf32>
      %39 = arith.addf %31, %38 : vector<16x128xf32>
      %c0_34 = arith.constant 0 : index
      %40 = arith.index_cast %33 : i32 to index
      %c1_35 = arith.constant 1 : index
      %c0_36 = arith.constant 0 : index
      %41 = vector.load %arg1[%c0_34, %40, %c1_35, %c0_36] : memref<1x34x17x256xbf16, #tpu.memory_space<vmem>>, vector<1x1x16x256xbf16>
      %42 = vector.shape_cast %41 : vector<1x1x16x256xbf16> to vector<16x256xbf16>
      %c1280 = arith.constant 1280 : index
      %c0_37 = arith.constant 0 : index
      %43 = vector.load %arg2[%c1280, %c0_37] : memref<2048x128xbf16, #tpu.memory_space<vmem>>, vector<256x128xbf16>
      %cst_38 = arith.constant dense<0.000000e+00> : vector<16x128xf32>
      %44 = tpu.matmul %42, %43, %cst_38 {dimension_numbers = #tpu.dot_dimension_numbers<[1], [0], [0], [1], [0, 0, 1, 1], [], []>} : vector<16x256xbf16>, vector<256x128xbf16>, vector<16x128xf32> -> vector<16x128xf32>
      %45 = arith.addf %39, %44 : vector<16x128xf32>
      %c2_i32_39 = arith.constant 2 : i32
      %46 = arith.muli %arg6, %c2_i32_39 : i32
      %c3_i32 = arith.constant 3 : i32
      %47 = arith.addi %46, %c3_i32 : i32
      %c0_40 = arith.constant 0 : index
      %48 = arith.index_cast %47 : i32 to index
      %c0_41 = arith.constant 0 : index
      %c0_42 = arith.constant 0 : index
      %49 = vector.load %arg1[%c0_40, %48, %c0_41, %c0_42] : memref<1x34x17x256xbf16, #tpu.memory_space<vmem>>, vector<1x1x16x256xbf16>
      %50 = vector.shape_cast %49 : vector<1x1x16x256xbf16> to vector<16x256xbf16>
      %c1536 = arith.constant 1536 : index
      %c0_43 = arith.constant 0 : index
      %51 = vector.load %arg2[%c1536, %c0_43] : memref<2048x128xbf16, #tpu.memory_space<vmem>>, vector<256x128xbf16>
      %cst_44 = arith.constant dense<0.000000e+00> : vector<16x128xf32>
      %52 = tpu.matmul %50, %51, %cst_44 {dimension_numbers = #tpu.dot_dimension_numbers<[1], [0], [0], [1], [0, 0, 1, 1], [], []>} : vector<16x256xbf16>, vector<256x128xbf16>, vector<16x128xf32> -> vector<16x128xf32>
      %53 = arith.addf %45, %52 : vector<16x128xf32>
      %c0_45 = arith.constant 0 : index
      %54 = arith.index_cast %47 : i32 to index
      %c1_46 = arith.constant 1 : index
      %c0_47 = arith.constant 0 : index
      %55 = vector.load %arg1[%c0_45, %54, %c1_46, %c0_47] : memref<1x34x17x256xbf16, #tpu.memory_space<vmem>>, vector<1x1x16x256xbf16>
      %56 = vector.shape_cast %55 : vector<1x1x16x256xbf16> to vector<16x256xbf16>
      %c1792 = arith.constant 1792 : index
      %c0_48 = arith.constant 0 : index
      %57 = vector.load %arg2[%c1792, %c0_48] : memref<2048x128xbf16, #tpu.memory_space<vmem>>, vector<256x128xbf16>
      %cst_49 = arith.constant dense<0.000000e+00> : vector<16x128xf32>
      %58 = tpu.matmul %56, %57, %cst_49 {dimension_numbers = #tpu.dot_dimension_numbers<[1], [0], [0], [1], [0, 0, 1, 1], [], []>} : vector<16x256xbf16>, vector<256x128xbf16>, vector<16x128xf32> -> vector<16x128xf32>
      %59 = arith.addf %53, %58 : vector<16x128xf32>
      %60 = vector.broadcast %0 : vector<1x128xf32> to vector<16x128xf32>
      %61 = arith.mulf %59, %60 : vector<16x128xf32>
      %62 = vector.broadcast %1 : vector<1x128xf32> to vector<16x128xf32>
      %63 = arith.addf %61, %62 : vector<16x128xf32>
      %cst_50 = arith.constant 0.000000e+00 : f32
      %64 = vector.broadcast %cst_50 : f32 to vector<16x128xf32>
      %65 = arith.cmpf ogt, %63, %64 : vector<16x128xf32>
      %cst_51 = arith.constant 2.000000e-01 : f32
      %66 = vector.broadcast %cst_51 : f32 to vector<16x128xf32>
      %67 = arith.mulf %66, %63 : vector<16x128xf32>
      %68 = arith.select %65, %63, %67 : vector<16x128xi1>, vector<16x128xf32>
      %69 = arith.truncf %68 : vector<16x128xf32> to vector<16x128xbf16>
      %c0_52 = arith.constant 0 : index
      %70 = arith.index_cast %arg6 : i32 to index
      %c0_53 = arith.constant 0 : index
      %c0_54 = arith.constant 0 : index
      %71 = vector.load %arg5[%c0_52, %70, %c0_53, %c0_54] : memref<1x16x16x128xbf16, #tpu.memory_space<vmem>>, vector<1x1x16x128xbf16>
      %72 = vector.shape_cast %71 : vector<1x1x16x128xbf16> to vector<16x128xbf16>
      %73 = vector.shape_cast %69 : vector<16x128xbf16> to vector<1x1x16x128xbf16>
      tpu.vector_store %arg5[%c0_52, %70, %c0_53, %c0_54], %73 {strides = array<i32>} : memref<1x16x16x128xbf16, #tpu.memory_space<vmem>>, vector<1x1x16x128xbf16>,
    }
    %c16_i32_3 = arith.constant 16 : i32
    return
  }
  func.func @transform_0(%arg0: i32) -> (i32, i32, i32, i32) {
    %c0_i32 = arith.constant 0 : i32
    %c0_i32_0 = arith.constant 0 : i32
    %c0_i32_1 = arith.constant 0 : i32
    %c0_i32_2 = arith.constant 0 : i32
    return %arg0, %c0_i32, %c0_i32_0, %c0_i32_1 : i32, i32, i32, i32
  }
  func.func @transform_1(%arg0: i32) -> (i32, i32) {
    %c0_i32 = arith.constant 0 : i32
    %c0_i32_0 = arith.constant 0 : i32
    %c0_i32_1 = arith.constant 0 : i32
    return %c0_i32, %c0_i32_0 : i32, i32
  }
  func.func @transform_2(%arg0: i32) -> (i32, i32) {
    %c0_i32 = arith.constant 0 : i32
    %c0_i32_0 = arith.constant 0 : i32
    %c0_i32_1 = arith.constant 0 : i32
    return %c0_i32, %c0_i32_0 : i32, i32
  }
  func.func @transform_3(%arg0: i32) -> (i32, i32) {
    %c0_i32 = arith.constant 0 : i32
    %c0_i32_0 = arith.constant 0 : i32
    %c0_i32_1 = arith.constant 0 : i32
    return %c0_i32, %c0_i32_0 : i32, i32
  }
  func.func @transform_4(%arg0: i32) -> (i32, i32, i32, i32) {
    %c0_i32 = arith.constant 0 : i32
    %c0_i32_0 = arith.constant 0 : i32
    %c0_i32_1 = arith.constant 0 : i32
    %c0_i32_2 = arith.constant 0 : i32
    return %arg0, %c0_i32, %c0_i32_0, %c0_i32_1 : i32, i32, i32, i32
  }
}

module attributes {stable_mosaic.version = 11 : i64} {
  func.func @_conv_kernel(%arg0: i32, %arg1: memref<1x18x9x256xbf16, #tpu.memory_space<vmem>>, %arg2: memref<2048x256xbf16, #tpu.memory_space<vmem>>, %arg3: memref<1x256xf32, #tpu.memory_space<vmem>>, %arg4: memref<1x256xf32, #tpu.memory_space<vmem>>, %arg5: memref<1x8x8x256xbf16, #tpu.memory_space<vmem>>) attributes {dimension_semantics = [#tpu.dimension_semantics<parallel>], iteration_bounds = array<i64: 2>, scalar_prefetch = 0 : i64, scratch_operands = 0 : i64, tpu.core_type = #tpu.core_type<tc>, window_params = [{transform_indices = @transform_0, window_bounds = array<i64: 1, 18, 9, 256>}, {pipeline_mode = #tpu.pipeline_mode<synchronous>, transform_indices = @transform_1, window_bounds = array<i64: 2048, 256>}, {pipeline_mode = #tpu.pipeline_mode<synchronous>, transform_indices = @transform_2, window_bounds = array<i64: 1, 256>}, {pipeline_mode = #tpu.pipeline_mode<synchronous>, transform_indices = @transform_3, window_bounds = array<i64: 1, 256>}, {transform_indices = @transform_4, window_bounds = array<i64: 1, 8, 8, 256>}]} {
    %c0 = arith.constant 0 : index
    %c0_0 = arith.constant 0 : index
    %0 = vector.load %arg3[%c0, %c0_0] : memref<1x256xf32, #tpu.memory_space<vmem>>, vector<1x256xf32>
    %c0_1 = arith.constant 0 : index
    %c0_2 = arith.constant 0 : index
    %1 = vector.load %arg4[%c0_1, %c0_2] : memref<1x256xf32, #tpu.memory_space<vmem>>, vector<1x256xf32>
    %c0_i32 = arith.constant 0 : i32
    %c8_i32 = arith.constant 8 : i32
    %2 = arith.addi %c0_i32, %c8_i32 : i32
    %c1_i32 = arith.constant 1 : i32
    scf.for %arg6 = %c0_i32 to %2 step %c1_i32  : i32 {
      %cst = arith.constant 0.000000e+00 : f32
      %3 = vector.broadcast %cst : f32 to vector<8x256xf32>
      %c2_i32 = arith.constant 2 : i32
      %4 = arith.muli %arg6, %c2_i32 : i32
      %c0_i32_4 = arith.constant 0 : i32
      %5 = arith.addi %4, %c0_i32_4 : i32
      %c0_5 = arith.constant 0 : index
      %6 = arith.index_cast %5 : i32 to index
      %c0_6 = arith.constant 0 : index
      %c0_7 = arith.constant 0 : index
      %7 = vector.load %arg1[%c0_5, %6, %c0_6, %c0_7] : memref<1x18x9x256xbf16, #tpu.memory_space<vmem>>, vector<1x1x8x256xbf16>
      %8 = vector.shape_cast %7 : vector<1x1x8x256xbf16> to vector<8x256xbf16>
      %c0_8 = arith.constant 0 : index
      %c0_9 = arith.constant 0 : index
      %9 = vector.load %arg2[%c0_8, %c0_9] : memref<2048x256xbf16, #tpu.memory_space<vmem>>, vector<256x256xbf16>
      %cst_10 = arith.constant dense<0.000000e+00> : vector<8x256xf32>
      %10 = tpu.matmul %8, %9, %cst_10 {dimension_numbers = #tpu.dot_dimension_numbers<[1], [0], [0], [1], [0, 0, 1, 1], [], []>} : vector<8x256xbf16>, vector<256x256xbf16>, vector<8x256xf32> -> vector<8x256xf32>
      %11 = arith.addf %3, %10 : vector<8x256xf32>
      %c0_11 = arith.constant 0 : index
      %12 = arith.index_cast %5 : i32 to index
      %c1 = arith.constant 1 : index
      %c0_12 = arith.constant 0 : index
      %13 = vector.load %arg1[%c0_11, %12, %c1, %c0_12] : memref<1x18x9x256xbf16, #tpu.memory_space<vmem>>, vector<1x1x8x256xbf16>
      %14 = vector.shape_cast %13 : vector<1x1x8x256xbf16> to vector<8x256xbf16>
      %c256 = arith.constant 256 : index
      %c0_13 = arith.constant 0 : index
      %15 = vector.load %arg2[%c256, %c0_13] : memref<2048x256xbf16, #tpu.memory_space<vmem>>, vector<256x256xbf16>
      %cst_14 = arith.constant dense<0.000000e+00> : vector<8x256xf32>
      %16 = tpu.matmul %14, %15, %cst_14 {dimension_numbers = #tpu.dot_dimension_numbers<[1], [0], [0], [1], [0, 0, 1, 1], [], []>} : vector<8x256xbf16>, vector<256x256xbf16>, vector<8x256xf32> -> vector<8x256xf32>
      %17 = arith.addf %11, %16 : vector<8x256xf32>
      %c2_i32_15 = arith.constant 2 : i32
      %18 = arith.muli %arg6, %c2_i32_15 : i32
      %c1_i32_16 = arith.constant 1 : i32
      %19 = arith.addi %18, %c1_i32_16 : i32
      %c0_17 = arith.constant 0 : index
      %20 = arith.index_cast %19 : i32 to index
      %c0_18 = arith.constant 0 : index
      %c0_19 = arith.constant 0 : index
      %21 = vector.load %arg1[%c0_17, %20, %c0_18, %c0_19] : memref<1x18x9x256xbf16, #tpu.memory_space<vmem>>, vector<1x1x8x256xbf16>
      %22 = vector.shape_cast %21 : vector<1x1x8x256xbf16> to vector<8x256xbf16>
      %c512 = arith.constant 512 : index
      %c0_20 = arith.constant 0 : index
      %23 = vector.load %arg2[%c512, %c0_20] : memref<2048x256xbf16, #tpu.memory_space<vmem>>, vector<256x256xbf16>
      %cst_21 = arith.constant dense<0.000000e+00> : vector<8x256xf32>
      %24 = tpu.matmul %22, %23, %cst_21 {dimension_numbers = #tpu.dot_dimension_numbers<[1], [0], [0], [1], [0, 0, 1, 1], [], []>} : vector<8x256xbf16>, vector<256x256xbf16>, vector<8x256xf32> -> vector<8x256xf32>
      %25 = arith.addf %17, %24 : vector<8x256xf32>
      %c0_22 = arith.constant 0 : index
      %26 = arith.index_cast %19 : i32 to index
      %c1_23 = arith.constant 1 : index
      %c0_24 = arith.constant 0 : index
      %27 = vector.load %arg1[%c0_22, %26, %c1_23, %c0_24] : memref<1x18x9x256xbf16, #tpu.memory_space<vmem>>, vector<1x1x8x256xbf16>
      %28 = vector.shape_cast %27 : vector<1x1x8x256xbf16> to vector<8x256xbf16>
      %c768 = arith.constant 768 : index
      %c0_25 = arith.constant 0 : index
      %29 = vector.load %arg2[%c768, %c0_25] : memref<2048x256xbf16, #tpu.memory_space<vmem>>, vector<256x256xbf16>
      %cst_26 = arith.constant dense<0.000000e+00> : vector<8x256xf32>
      %30 = tpu.matmul %28, %29, %cst_26 {dimension_numbers = #tpu.dot_dimension_numbers<[1], [0], [0], [1], [0, 0, 1, 1], [], []>} : vector<8x256xbf16>, vector<256x256xbf16>, vector<8x256xf32> -> vector<8x256xf32>
      %31 = arith.addf %25, %30 : vector<8x256xf32>
      %c2_i32_27 = arith.constant 2 : i32
      %32 = arith.muli %arg6, %c2_i32_27 : i32
      %c2_i32_28 = arith.constant 2 : i32
      %33 = arith.addi %32, %c2_i32_28 : i32
      %c0_29 = arith.constant 0 : index
      %34 = arith.index_cast %33 : i32 to index
      %c0_30 = arith.constant 0 : index
      %c0_31 = arith.constant 0 : index
      %35 = vector.load %arg1[%c0_29, %34, %c0_30, %c0_31] : memref<1x18x9x256xbf16, #tpu.memory_space<vmem>>, vector<1x1x8x256xbf16>
      %36 = vector.shape_cast %35 : vector<1x1x8x256xbf16> to vector<8x256xbf16>
      %c1024 = arith.constant 1024 : index
      %c0_32 = arith.constant 0 : index
      %37 = vector.load %arg2[%c1024, %c0_32] : memref<2048x256xbf16, #tpu.memory_space<vmem>>, vector<256x256xbf16>
      %cst_33 = arith.constant dense<0.000000e+00> : vector<8x256xf32>
      %38 = tpu.matmul %36, %37, %cst_33 {dimension_numbers = #tpu.dot_dimension_numbers<[1], [0], [0], [1], [0, 0, 1, 1], [], []>} : vector<8x256xbf16>, vector<256x256xbf16>, vector<8x256xf32> -> vector<8x256xf32>
      %39 = arith.addf %31, %38 : vector<8x256xf32>
      %c0_34 = arith.constant 0 : index
      %40 = arith.index_cast %33 : i32 to index
      %c1_35 = arith.constant 1 : index
      %c0_36 = arith.constant 0 : index
      %41 = vector.load %arg1[%c0_34, %40, %c1_35, %c0_36] : memref<1x18x9x256xbf16, #tpu.memory_space<vmem>>, vector<1x1x8x256xbf16>
      %42 = vector.shape_cast %41 : vector<1x1x8x256xbf16> to vector<8x256xbf16>
      %c1280 = arith.constant 1280 : index
      %c0_37 = arith.constant 0 : index
      %43 = vector.load %arg2[%c1280, %c0_37] : memref<2048x256xbf16, #tpu.memory_space<vmem>>, vector<256x256xbf16>
      %cst_38 = arith.constant dense<0.000000e+00> : vector<8x256xf32>
      %44 = tpu.matmul %42, %43, %cst_38 {dimension_numbers = #tpu.dot_dimension_numbers<[1], [0], [0], [1], [0, 0, 1, 1], [], []>} : vector<8x256xbf16>, vector<256x256xbf16>, vector<8x256xf32> -> vector<8x256xf32>
      %45 = arith.addf %39, %44 : vector<8x256xf32>
      %c2_i32_39 = arith.constant 2 : i32
      %46 = arith.muli %arg6, %c2_i32_39 : i32
      %c3_i32 = arith.constant 3 : i32
      %47 = arith.addi %46, %c3_i32 : i32
      %c0_40 = arith.constant 0 : index
      %48 = arith.index_cast %47 : i32 to index
      %c0_41 = arith.constant 0 : index
      %c0_42 = arith.constant 0 : index
      %49 = vector.load %arg1[%c0_40, %48, %c0_41, %c0_42] : memref<1x18x9x256xbf16, #tpu.memory_space<vmem>>, vector<1x1x8x256xbf16>
      %50 = vector.shape_cast %49 : vector<1x1x8x256xbf16> to vector<8x256xbf16>
      %c1536 = arith.constant 1536 : index
      %c0_43 = arith.constant 0 : index
      %51 = vector.load %arg2[%c1536, %c0_43] : memref<2048x256xbf16, #tpu.memory_space<vmem>>, vector<256x256xbf16>
      %cst_44 = arith.constant dense<0.000000e+00> : vector<8x256xf32>
      %52 = tpu.matmul %50, %51, %cst_44 {dimension_numbers = #tpu.dot_dimension_numbers<[1], [0], [0], [1], [0, 0, 1, 1], [], []>} : vector<8x256xbf16>, vector<256x256xbf16>, vector<8x256xf32> -> vector<8x256xf32>
      %53 = arith.addf %45, %52 : vector<8x256xf32>
      %c0_45 = arith.constant 0 : index
      %54 = arith.index_cast %47 : i32 to index
      %c1_46 = arith.constant 1 : index
      %c0_47 = arith.constant 0 : index
      %55 = vector.load %arg1[%c0_45, %54, %c1_46, %c0_47] : memref<1x18x9x256xbf16, #tpu.memory_space<vmem>>, vector<1x1x8x256xbf16>
      %56 = vector.shape_cast %55 : vector<1x1x8x256xbf16> to vector<8x256xbf16>
      %c1792 = arith.constant 1792 : index
      %c0_48 = arith.constant 0 : index
      %57 = vector.load %arg2[%c1792, %c0_48] : memref<2048x256xbf16, #tpu.memory_space<vmem>>, vector<256x256xbf16>
      %cst_49 = arith.constant dense<0.000000e+00> : vector<8x256xf32>
      %58 = tpu.matmul %56, %57, %cst_49 {dimension_numbers = #tpu.dot_dimension_numbers<[1], [0], [0], [1], [0, 0, 1, 1], [], []>} : vector<8x256xbf16>, vector<256x256xbf16>, vector<8x256xf32> -> vector<8x256xf32>
      %59 = arith.addf %53, %58 : vector<8x256xf32>
      %60 = vector.broadcast %0 : vector<1x256xf32> to vector<8x256xf32>
      %61 = arith.mulf %59, %60 : vector<8x256xf32>
      %62 = vector.broadcast %1 : vector<1x256xf32> to vector<8x256xf32>
      %63 = arith.addf %61, %62 : vector<8x256xf32>
      %cst_50 = arith.constant 0.000000e+00 : f32
      %64 = vector.broadcast %cst_50 : f32 to vector<8x256xf32>
      %65 = arith.cmpf ogt, %63, %64 : vector<8x256xf32>
      %cst_51 = arith.constant 2.000000e-01 : f32
      %66 = vector.broadcast %cst_51 : f32 to vector<8x256xf32>
      %67 = arith.mulf %66, %63 : vector<8x256xf32>
      %68 = arith.select %65, %63, %67 : vector<8x256xi1>, vector<8x256xf32>
      %69 = arith.truncf %68 : vector<8x256xf32> to vector<8x256xbf16>
      %c0_52 = arith.constant 0 : index
      %70 = arith.index_cast %arg6 : i32 to index
      %c0_53 = arith.constant 0 : index
      %c0_54 = arith.constant 0 : index
      %71 = vector.load %arg5[%c0_52, %70, %c0_53, %c0_54] : memref<1x8x8x256xbf16, #tpu.memory_space<vmem>>, vector<1x1x8x256xbf16>
      %72 = vector.shape_cast %71 : vector<1x1x8x256xbf16> to vector<8x256xbf16>
      %73 = vector.shape_cast %69 : vector<8x256xbf16> to vector<1x1x8x256xbf16>
      tpu.vector_store %arg5[%c0_52, %70, %c0_53, %c0_54], %73 {strides = array<i32>} : memref<1x8x8x256xbf16, #tpu.memory_space<vmem>>, vector<1x1x8x256xbf16>,
    }
    %c8_i32_3 = arith.constant 8 : i32
    return
  }
  func.func @transform_0(%arg0: i32) -> (i32, i32, i32, i32) {
    %c0_i32 = arith.constant 0 : i32
    %c0_i32_0 = arith.constant 0 : i32
    %c0_i32_1 = arith.constant 0 : i32
    %c0_i32_2 = arith.constant 0 : i32
    return %arg0, %c0_i32, %c0_i32_0, %c0_i32_1 : i32, i32, i32, i32
  }
  func.func @transform_1(%arg0: i32) -> (i32, i32) {
    %c0_i32 = arith.constant 0 : i32
    %c0_i32_0 = arith.constant 0 : i32
    %c0_i32_1 = arith.constant 0 : i32
    return %c0_i32, %c0_i32_0 : i32, i32
  }
  func.func @transform_2(%arg0: i32) -> (i32, i32) {
    %c0_i32 = arith.constant 0 : i32
    %c0_i32_0 = arith.constant 0 : i32
    %c0_i32_1 = arith.constant 0 : i32
    return %c0_i32, %c0_i32_0 : i32, i32
  }
  func.func @transform_3(%arg0: i32) -> (i32, i32) {
    %c0_i32 = arith.constant 0 : i32
    %c0_i32_0 = arith.constant 0 : i32
    %c0_i32_1 = arith.constant 0 : i32
    return %c0_i32, %c0_i32_0 : i32, i32
  }
  func.func @transform_4(%arg0: i32) -> (i32, i32, i32, i32) {
    %c0_i32 = arith.constant 0 : i32
    %c0_i32_0 = arith.constant 0 : i32
    %c0_i32_1 = arith.constant 0 : i32
    %c0_i32_2 = arith.constant 0 : i32
    return %arg0, %c0_i32, %c0_i32_0, %c0_i32_1 : i32, i32, i32, i32
  }
}

module attributes {stable_mosaic.version = 11 : i64} {
  func.func @_conv_kernel(%arg0: i32, %arg1: memref<1x10x10x256xbf16, #tpu.memory_space<vmem>>, %arg2: memref<4096x512xbf16, #tpu.memory_space<vmem>>, %arg3: memref<1x512xf32, #tpu.memory_space<vmem>>, %arg4: memref<1x512xf32, #tpu.memory_space<vmem>>, %arg5: memref<1x7x7x512xbf16, #tpu.memory_space<vmem>>) attributes {dimension_semantics = [#tpu.dimension_semantics<parallel>], iteration_bounds = array<i64: 2>, scalar_prefetch = 0 : i64, scratch_operands = 0 : i64, tpu.core_type = #tpu.core_type<tc>, window_params = [{transform_indices = @transform_0, window_bounds = array<i64: 1, 10, 10, 256>}, {pipeline_mode = #tpu.pipeline_mode<synchronous>, transform_indices = @transform_1, window_bounds = array<i64: 4096, 512>}, {pipeline_mode = #tpu.pipeline_mode<synchronous>, transform_indices = @transform_2, window_bounds = array<i64: 1, 512>}, {pipeline_mode = #tpu.pipeline_mode<synchronous>, transform_indices = @transform_3, window_bounds = array<i64: 1, 512>}, {transform_indices = @transform_4, window_bounds = array<i64: 1, 7, 7, 512>}]} {
    %c0 = arith.constant 0 : index
    %c0_0 = arith.constant 0 : index
    %0 = vector.load %arg3[%c0, %c0_0] : memref<1x512xf32, #tpu.memory_space<vmem>>, vector<1x512xf32>
    %c0_1 = arith.constant 0 : index
    %c0_2 = arith.constant 0 : index
    %1 = vector.load %arg4[%c0_1, %c0_2] : memref<1x512xf32, #tpu.memory_space<vmem>>, vector<1x512xf32>
    %c0_i32 = arith.constant 0 : i32
    %c7_i32 = arith.constant 7 : i32
    %2 = arith.addi %c0_i32, %c7_i32 : i32
    %c1_i32 = arith.constant 1 : i32
    scf.for %arg6 = %c0_i32 to %2 step %c1_i32  : i32 {
      %cst = arith.constant 0.000000e+00 : f32
      %3 = vector.broadcast %cst : f32 to vector<7x512xf32>
      %c1_i32_4 = arith.constant 1 : i32
      %4 = arith.muli %arg6, %c1_i32_4 : i32
      %c0_i32_5 = arith.constant 0 : i32
      %5 = arith.addi %4, %c0_i32_5 : i32
      %c0_6 = arith.constant 0 : index
      %6 = arith.index_cast %5 : i32 to index
      %c0_7 = arith.constant 0 : index
      %c0_8 = arith.constant 0 : index
      %7 = vector.load %arg1[%c0_6, %6, %c0_7, %c0_8] : memref<1x10x10x256xbf16, #tpu.memory_space<vmem>>, vector<1x1x7x256xbf16>
      %8 = vector.shape_cast %7 : vector<1x1x7x256xbf16> to vector<7x256xbf16>
      %c0_9 = arith.constant 0 : index
      %c0_10 = arith.constant 0 : index
      %9 = vector.load %arg2[%c0_9, %c0_10] : memref<4096x512xbf16, #tpu.memory_space<vmem>>, vector<256x512xbf16>
      %cst_11 = arith.constant dense<0.000000e+00> : vector<7x512xf32>
      %10 = tpu.matmul %8, %9, %cst_11 {dimension_numbers = #tpu.dot_dimension_numbers<[1], [0], [0], [1], [0, 0, 1, 1], [], []>} : vector<7x256xbf16>, vector<256x512xbf16>, vector<7x512xf32> -> vector<7x512xf32>
      %11 = arith.addf %3, %10 : vector<7x512xf32>
      %c0_12 = arith.constant 0 : index
      %12 = arith.index_cast %5 : i32 to index
      %c1 = arith.constant 1 : index
      %c0_13 = arith.constant 0 : index
      %13 = vector.load %arg1[%c0_12, %12, %c1, %c0_13] : memref<1x10x10x256xbf16, #tpu.memory_space<vmem>>, vector<1x1x7x256xbf16>
      %14 = vector.shape_cast %13 : vector<1x1x7x256xbf16> to vector<7x256xbf16>
      %c256 = arith.constant 256 : index
      %c0_14 = arith.constant 0 : index
      %15 = vector.load %arg2[%c256, %c0_14] : memref<4096x512xbf16, #tpu.memory_space<vmem>>, vector<256x512xbf16>
      %cst_15 = arith.constant dense<0.000000e+00> : vector<7x512xf32>
      %16 = tpu.matmul %14, %15, %cst_15 {dimension_numbers = #tpu.dot_dimension_numbers<[1], [0], [0], [1], [0, 0, 1, 1], [], []>} : vector<7x256xbf16>, vector<256x512xbf16>, vector<7x512xf32> -> vector<7x512xf32>
      %17 = arith.addf %11, %16 : vector<7x512xf32>
      %c0_16 = arith.constant 0 : index
      %18 = arith.index_cast %5 : i32 to index
      %c2 = arith.constant 2 : index
      %c0_17 = arith.constant 0 : index
      %19 = vector.load %arg1[%c0_16, %18, %c2, %c0_17] : memref<1x10x10x256xbf16, #tpu.memory_space<vmem>>, vector<1x1x7x256xbf16>
      %20 = vector.shape_cast %19 : vector<1x1x7x256xbf16> to vector<7x256xbf16>
      %c512 = arith.constant 512 : index
      %c0_18 = arith.constant 0 : index
      %21 = vector.load %arg2[%c512, %c0_18] : memref<4096x512xbf16, #tpu.memory_space<vmem>>, vector<256x512xbf16>
      %cst_19 = arith.constant dense<0.000000e+00> : vector<7x512xf32>
      %22 = tpu.matmul %20, %21, %cst_19 {dimension_numbers = #tpu.dot_dimension_numbers<[1], [0], [0], [1], [0, 0, 1, 1], [], []>} : vector<7x256xbf16>, vector<256x512xbf16>, vector<7x512xf32> -> vector<7x512xf32>
      %23 = arith.addf %17, %22 : vector<7x512xf32>
      %c0_20 = arith.constant 0 : index
      %24 = arith.index_cast %5 : i32 to index
      %c3 = arith.constant 3 : index
      %c0_21 = arith.constant 0 : index
      %25 = vector.load %arg1[%c0_20, %24, %c3, %c0_21] : memref<1x10x10x256xbf16, #tpu.memory_space<vmem>>, vector<1x1x7x256xbf16>
      %26 = vector.shape_cast %25 : vector<1x1x7x256xbf16> to vector<7x256xbf16>
      %c768 = arith.constant 768 : index
      %c0_22 = arith.constant 0 : index
      %27 = vector.load %arg2[%c768, %c0_22] : memref<4096x512xbf16, #tpu.memory_space<vmem>>, vector<256x512xbf16>
      %cst_23 = arith.constant dense<0.000000e+00> : vector<7x512xf32>
      %28 = tpu.matmul %26, %27, %cst_23 {dimension_numbers = #tpu.dot_dimension_numbers<[1], [0], [0], [1], [0, 0, 1, 1], [], []>} : vector<7x256xbf16>, vector<256x512xbf16>, vector<7x512xf32> -> vector<7x512xf32>
      %29 = arith.addf %23, %28 : vector<7x512xf32>
      %c1_i32_24 = arith.constant 1 : i32
      %30 = arith.muli %arg6, %c1_i32_24 : i32
      %c1_i32_25 = arith.constant 1 : i32
      %31 = arith.addi %30, %c1_i32_25 : i32
      %c0_26 = arith.constant 0 : index
      %32 = arith.index_cast %31 : i32 to index
      %c0_27 = arith.constant 0 : index
      %c0_28 = arith.constant 0 : index
      %33 = vector.load %arg1[%c0_26, %32, %c0_27, %c0_28] : memref<1x10x10x256xbf16, #tpu.memory_space<vmem>>, vector<1x1x7x256xbf16>
      %34 = vector.shape_cast %33 : vector<1x1x7x256xbf16> to vector<7x256xbf16>
      %c1024 = arith.constant 1024 : index
      %c0_29 = arith.constant 0 : index
      %35 = vector.load %arg2[%c1024, %c0_29] : memref<4096x512xbf16, #tpu.memory_space<vmem>>, vector<256x512xbf16>
      %cst_30 = arith.constant dense<0.000000e+00> : vector<7x512xf32>
      %36 = tpu.matmul %34, %35, %cst_30 {dimension_numbers = #tpu.dot_dimension_numbers<[1], [0], [0], [1], [0, 0, 1, 1], [], []>} : vector<7x256xbf16>, vector<256x512xbf16>, vector<7x512xf32> -> vector<7x512xf32>
      %37 = arith.addf %29, %36 : vector<7x512xf32>
      %c0_31 = arith.constant 0 : index
      %38 = arith.index_cast %31 : i32 to index
      %c1_32 = arith.constant 1 : index
      %c0_33 = arith.constant 0 : index
      %39 = vector.load %arg1[%c0_31, %38, %c1_32, %c0_33] : memref<1x10x10x256xbf16, #tpu.memory_space<vmem>>, vector<1x1x7x256xbf16>
      %40 = vector.shape_cast %39 : vector<1x1x7x256xbf16> to vector<7x256xbf16>
      %c1280 = arith.constant 1280 : index
      %c0_34 = arith.constant 0 : index
      %41 = vector.load %arg2[%c1280, %c0_34] : memref<4096x512xbf16, #tpu.memory_space<vmem>>, vector<256x512xbf16>
      %cst_35 = arith.constant dense<0.000000e+00> : vector<7x512xf32>
      %42 = tpu.matmul %40, %41, %cst_35 {dimension_numbers = #tpu.dot_dimension_numbers<[1], [0], [0], [1], [0, 0, 1, 1], [], []>} : vector<7x256xbf16>, vector<256x512xbf16>, vector<7x512xf32> -> vector<7x512xf32>
      %43 = arith.addf %37, %42 : vector<7x512xf32>
      %c0_36 = arith.constant 0 : index
      %44 = arith.index_cast %31 : i32 to index
      %c2_37 = arith.constant 2 : index
      %c0_38 = arith.constant 0 : index
      %45 = vector.load %arg1[%c0_36, %44, %c2_37, %c0_38] : memref<1x10x10x256xbf16, #tpu.memory_space<vmem>>, vector<1x1x7x256xbf16>
      %46 = vector.shape_cast %45 : vector<1x1x7x256xbf16> to vector<7x256xbf16>
      %c1536 = arith.constant 1536 : index
      %c0_39 = arith.constant 0 : index
      %47 = vector.load %arg2[%c1536, %c0_39] : memref<4096x512xbf16, #tpu.memory_space<vmem>>, vector<256x512xbf16>
      %cst_40 = arith.constant dense<0.000000e+00> : vector<7x512xf32>
      %48 = tpu.matmul %46, %47, %cst_40 {dimension_numbers = #tpu.dot_dimension_numbers<[1], [0], [0], [1], [0, 0, 1, 1], [], []>} : vector<7x256xbf16>, vector<256x512xbf16>, vector<7x512xf32> -> vector<7x512xf32>
      %49 = arith.addf %43, %48 : vector<7x512xf32>
      %c0_41 = arith.constant 0 : index
      %50 = arith.index_cast %31 : i32 to index
      %c3_42 = arith.constant 3 : index
      %c0_43 = arith.constant 0 : index
      %51 = vector.load %arg1[%c0_41, %50, %c3_42, %c0_43] : memref<1x10x10x256xbf16, #tpu.memory_space<vmem>>, vector<1x1x7x256xbf16>
      %52 = vector.shape_cast %51 : vector<1x1x7x256xbf16> to vector<7x256xbf16>
      %c1792 = arith.constant 1792 : index
      %c0_44 = arith.constant 0 : index
      %53 = vector.load %arg2[%c1792, %c0_44] : memref<4096x512xbf16, #tpu.memory_space<vmem>>, vector<256x512xbf16>
      %cst_45 = arith.constant dense<0.000000e+00> : vector<7x512xf32>
      %54 = tpu.matmul %52, %53, %cst_45 {dimension_numbers = #tpu.dot_dimension_numbers<[1], [0], [0], [1], [0, 0, 1, 1], [], []>} : vector<7x256xbf16>, vector<256x512xbf16>, vector<7x512xf32> -> vector<7x512xf32>
      %55 = arith.addf %49, %54 : vector<7x512xf32>
      %c1_i32_46 = arith.constant 1 : i32
      %56 = arith.muli %arg6, %c1_i32_46 : i32
      %c2_i32 = arith.constant 2 : i32
      %57 = arith.addi %56, %c2_i32 : i32
      %c0_47 = arith.constant 0 : index
      %58 = arith.index_cast %57 : i32 to index
      %c0_48 = arith.constant 0 : index
      %c0_49 = arith.constant 0 : index
      %59 = vector.load %arg1[%c0_47, %58, %c0_48, %c0_49] : memref<1x10x10x256xbf16, #tpu.memory_space<vmem>>, vector<1x1x7x256xbf16>
      %60 = vector.shape_cast %59 : vector<1x1x7x256xbf16> to vector<7x256xbf16>
      %c2048 = arith.constant 2048 : index
      %c0_50 = arith.constant 0 : index
      %61 = vector.load %arg2[%c2048, %c0_50] : memref<4096x512xbf16, #tpu.memory_space<vmem>>, vector<256x512xbf16>
      %cst_51 = arith.constant dense<0.000000e+00> : vector<7x512xf32>
      %62 = tpu.matmul %60, %61, %cst_51 {dimension_numbers = #tpu.dot_dimension_numbers<[1], [0], [0], [1], [0, 0, 1, 1], [], []>} : vector<7x256xbf16>, vector<256x512xbf16>, vector<7x512xf32> -> vector<7x512xf32>
      %63 = arith.addf %55, %62 : vector<7x512xf32>
      %c0_52 = arith.constant 0 : index
      %64 = arith.index_cast %57 : i32 to index
      %c1_53 = arith.constant 1 : index
      %c0_54 = arith.constant 0 : index
      %65 = vector.load %arg1[%c0_52, %64, %c1_53, %c0_54] : memref<1x10x10x256xbf16, #tpu.memory_space<vmem>>, vector<1x1x7x256xbf16>
      %66 = vector.shape_cast %65 : vector<1x1x7x256xbf16> to vector<7x256xbf16>
      %c2304 = arith.constant 2304 : index
      %c0_55 = arith.constant 0 : index
      %67 = vector.load %arg2[%c2304, %c0_55] : memref<4096x512xbf16, #tpu.memory_space<vmem>>, vector<256x512xbf16>
      %cst_56 = arith.constant dense<0.000000e+00> : vector<7x512xf32>
      %68 = tpu.matmul %66, %67, %cst_56 {dimension_numbers = #tpu.dot_dimension_numbers<[1], [0], [0], [1], [0, 0, 1, 1], [], []>} : vector<7x256xbf16>, vector<256x512xbf16>, vector<7x512xf32> -> vector<7x512xf32>
      %69 = arith.addf %63, %68 : vector<7x512xf32>
      %c0_57 = arith.constant 0 : index
      %70 = arith.index_cast %57 : i32 to index
      %c2_58 = arith.constant 2 : index
      %c0_59 = arith.constant 0 : index
      %71 = vector.load %arg1[%c0_57, %70, %c2_58, %c0_59] : memref<1x10x10x256xbf16, #tpu.memory_space<vmem>>, vector<1x1x7x256xbf16>
      %72 = vector.shape_cast %71 : vector<1x1x7x256xbf16> to vector<7x256xbf16>
      %c2560 = arith.constant 2560 : index
      %c0_60 = arith.constant 0 : index
      %73 = vector.load %arg2[%c2560, %c0_60] : memref<4096x512xbf16, #tpu.memory_space<vmem>>, vector<256x512xbf16>
      %cst_61 = arith.constant dense<0.000000e+00> : vector<7x512xf32>
      %74 = tpu.matmul %72, %73, %cst_61 {dimension_numbers = #tpu.dot_dimension_numbers<[1], [0], [0], [1], [0, 0, 1, 1], [], []>} : vector<7x256xbf16>, vector<256x512xbf16>, vector<7x512xf32> -> vector<7x512xf32>
      %75 = arith.addf %69, %74 : vector<7x512xf32>
      %c0_62 = arith.constant 0 : index
      %76 = arith.index_cast %57 : i32 to index
      %c3_63 = arith.constant 3 : index
      %c0_64 = arith.constant 0 : index
      %77 = vector.load %arg1[%c0_62, %76, %c3_63, %c0_64] : memref<1x10x10x256xbf16, #tpu.memory_space<vmem>>, vector<1x1x7x256xbf16>
      %78 = vector.shape_cast %77 : vector<1x1x7x256xbf16> to vector<7x256xbf16>
      %c2816 = arith.constant 2816 : index
      %c0_65 = arith.constant 0 : index
      %79 = vector.load %arg2[%c2816, %c0_65] : memref<4096x512xbf16, #tpu.memory_space<vmem>>, vector<256x512xbf16>
      %cst_66 = arith.constant dense<0.000000e+00> : vector<7x512xf32>
      %80 = tpu.matmul %78, %79, %cst_66 {dimension_numbers = #tpu.dot_dimension_numbers<[1], [0], [0], [1], [0, 0, 1, 1], [], []>} : vector<7x256xbf16>, vector<256x512xbf16>, vector<7x512xf32> -> vector<7x512xf32>
      %81 = arith.addf %75, %80 : vector<7x512xf32>
      %c1_i32_67 = arith.constant 1 : i32
      %82 = arith.muli %arg6, %c1_i32_67 : i32
      %c3_i32 = arith.constant 3 : i32
      %83 = arith.addi %82, %c3_i32 : i32
      %c0_68 = arith.constant 0 : index
      %84 = arith.index_cast %83 : i32 to index
      %c0_69 = arith.constant 0 : index
      %c0_70 = arith.constant 0 : index
      %85 = vector.load %arg1[%c0_68, %84, %c0_69, %c0_70] : memref<1x10x10x256xbf16, #tpu.memory_space<vmem>>, vector<1x1x7x256xbf16>
      %86 = vector.shape_cast %85 : vector<1x1x7x256xbf16> to vector<7x256xbf16>
      %c3072 = arith.constant 3072 : index
      %c0_71 = arith.constant 0 : index
      %87 = vector.load %arg2[%c3072, %c0_71] : memref<4096x512xbf16, #tpu.memory_space<vmem>>, vector<256x512xbf16>
      %cst_72 = arith.constant dense<0.000000e+00> : vector<7x512xf32>
      %88 = tpu.matmul %86, %87, %cst_72 {dimension_numbers = #tpu.dot_dimension_numbers<[1], [0], [0], [1], [0, 0, 1, 1], [], []>} : vector<7x256xbf16>, vector<256x512xbf16>, vector<7x512xf32> -> vector<7x512xf32>
      %89 = arith.addf %81, %88 : vector<7x512xf32>
      %c0_73 = arith.constant 0 : index
      %90 = arith.index_cast %83 : i32 to index
      %c1_74 = arith.constant 1 : index
      %c0_75 = arith.constant 0 : index
      %91 = vector.load %arg1[%c0_73, %90, %c1_74, %c0_75] : memref<1x10x10x256xbf16, #tpu.memory_space<vmem>>, vector<1x1x7x256xbf16>
      %92 = vector.shape_cast %91 : vector<1x1x7x256xbf16> to vector<7x256xbf16>
      %c3328 = arith.constant 3328 : index
      %c0_76 = arith.constant 0 : index
      %93 = vector.load %arg2[%c3328, %c0_76] : memref<4096x512xbf16, #tpu.memory_space<vmem>>, vector<256x512xbf16>
      %cst_77 = arith.constant dense<0.000000e+00> : vector<7x512xf32>
      %94 = tpu.matmul %92, %93, %cst_77 {dimension_numbers = #tpu.dot_dimension_numbers<[1], [0], [0], [1], [0, 0, 1, 1], [], []>} : vector<7x256xbf16>, vector<256x512xbf16>, vector<7x512xf32> -> vector<7x512xf32>
      %95 = arith.addf %89, %94 : vector<7x512xf32>
      %c0_78 = arith.constant 0 : index
      %96 = arith.index_cast %83 : i32 to index
      %c2_79 = arith.constant 2 : index
      %c0_80 = arith.constant 0 : index
      %97 = vector.load %arg1[%c0_78, %96, %c2_79, %c0_80] : memref<1x10x10x256xbf16, #tpu.memory_space<vmem>>, vector<1x1x7x256xbf16>
      %98 = vector.shape_cast %97 : vector<1x1x7x256xbf16> to vector<7x256xbf16>
      %c3584 = arith.constant 3584 : index
      %c0_81 = arith.constant 0 : index
      %99 = vector.load %arg2[%c3584, %c0_81] : memref<4096x512xbf16, #tpu.memory_space<vmem>>, vector<256x512xbf16>
      %cst_82 = arith.constant dense<0.000000e+00> : vector<7x512xf32>
      %100 = tpu.matmul %98, %99, %cst_82 {dimension_numbers = #tpu.dot_dimension_numbers<[1], [0], [0], [1], [0, 0, 1, 1], [], []>} : vector<7x256xbf16>, vector<256x512xbf16>, vector<7x512xf32> -> vector<7x512xf32>
      %101 = arith.addf %95, %100 : vector<7x512xf32>
      %c0_83 = arith.constant 0 : index
      %102 = arith.index_cast %83 : i32 to index
      %c3_84 = arith.constant 3 : index
      %c0_85 = arith.constant 0 : index
      %103 = vector.load %arg1[%c0_83, %102, %c3_84, %c0_85] : memref<1x10x10x256xbf16, #tpu.memory_space<vmem>>, vector<1x1x7x256xbf16>
      %104 = vector.shape_cast %103 : vector<1x1x7x256xbf16> to vector<7x256xbf16>
      %c3840 = arith.constant 3840 : index
      %c0_86 = arith.constant 0 : index
      %105 = vector.load %arg2[%c3840, %c0_86] : memref<4096x512xbf16, #tpu.memory_space<vmem>>, vector<256x512xbf16>
      %cst_87 = arith.constant dense<0.000000e+00> : vector<7x512xf32>
      %106 = tpu.matmul %104, %105, %cst_87 {dimension_numbers = #tpu.dot_dimension_numbers<[1], [0], [0], [1], [0, 0, 1, 1], [], []>} : vector<7x256xbf16>, vector<256x512xbf16>, vector<7x512xf32> -> vector<7x512xf32>
      %107 = arith.addf %101, %106 : vector<7x512xf32>
      %108 = vector.broadcast %0 : vector<1x512xf32> to vector<7x512xf32>
      %109 = arith.mulf %107, %108 : vector<7x512xf32>
      %110 = vector.broadcast %1 : vector<1x512xf32> to vector<7x512xf32>
      %111 = arith.addf %109, %110 : vector<7x512xf32>
      %cst_88 = arith.constant 0.000000e+00 : f32
      %112 = vector.broadcast %cst_88 : f32 to vector<7x512xf32>
      %113 = arith.cmpf ogt, %111, %112 : vector<7x512xf32>
      %cst_89 = arith.constant 2.000000e-01 : f32
      %114 = vector.broadcast %cst_89 : f32 to vector<7x512xf32>
      %115 = arith.mulf %114, %111 : vector<7x512xf32>
      %116 = arith.select %113, %111, %115 : vector<7x512xi1>, vector<7x512xf32>
      %117 = arith.truncf %116 : vector<7x512xf32> to vector<7x512xbf16>
      %c0_90 = arith.constant 0 : index
      %118 = arith.index_cast %arg6 : i32 to index
      %c0_91 = arith.constant 0 : index
      %c0_92 = arith.constant 0 : index
      %119 = vector.load %arg5[%c0_90, %118, %c0_91, %c0_92] : memref<1x7x7x512xbf16, #tpu.memory_space<vmem>>, vector<1x1x7x512xbf16>
      %120 = vector.shape_cast %119 : vector<1x1x7x512xbf16> to vector<7x512xbf16>
      %121 = vector.shape_cast %117 : vector<7x512xbf16> to vector<1x1x7x512xbf16>
      tpu.vector_store %arg5[%c0_90, %118, %c0_91, %c0_92], %121 {strides = array<i32>} : memref<1x7x7x512xbf16, #tpu.memory_space<vmem>>, vector<1x1x7x512xbf16>,
    }
    %c7_i32_3 = arith.constant 7 : i32
    return
  }
  func.func @transform_0(%arg0: i32) -> (i32, i32, i32, i32) {
    %c0_i32 = arith.constant 0 : i32
    %c0_i32_0 = arith.constant 0 : i32
    %c0_i32_1 = arith.constant 0 : i32
    %c0_i32_2 = arith.constant 0 : i32
    return %arg0, %c0_i32, %c0_i32_0, %c0_i32_1 : i32, i32, i32, i32
  }
  func.func @transform_1(%arg0: i32) -> (i32, i32) {
    %c0_i32 = arith.constant 0 : i32
    %c0_i32_0 = arith.constant 0 : i32
    %c0_i32_1 = arith.constant 0 : i32
    return %c0_i32, %c0_i32_0 : i32, i32
  }
  func.func @transform_2(%arg0: i32) -> (i32, i32) {
    %c0_i32 = arith.constant 0 : i32
    %c0_i32_0 = arith.constant 0 : i32
    %c0_i32_1 = arith.constant 0 : i32
    return %c0_i32, %c0_i32_0 : i32, i32
  }
  func.func @transform_3(%arg0: i32) -> (i32, i32) {
    %c0_i32 = arith.constant 0 : i32
    %c0_i32_0 = arith.constant 0 : i32
    %c0_i32_1 = arith.constant 0 : i32
    return %c0_i32, %c0_i32_0 : i32, i32
  }
  func.func @transform_4(%arg0: i32) -> (i32, i32, i32, i32) {
    %c0_i32 = arith.constant 0 : i32
    %c0_i32_0 = arith.constant 0 : i32
    %c0_i32_1 = arith.constant 0 : i32
    %c0_i32_2 = arith.constant 0 : i32
    return %arg0, %c0_i32, %c0_i32_0, %c0_i32_1 : i32, i32, i32, i32
  }
}

module attributes {stable_mosaic.version = 11 : i64} {
  func.func @_conv_kernel(%arg0: i32, %arg1: memref<1x9x9x512xbf16, #tpu.memory_space<vmem>>, %arg2: memref<8192x128xbf16, #tpu.memory_space<vmem>>, %arg3: memref<1x128xf32, #tpu.memory_space<vmem>>, %arg4: memref<1x128xf32, #tpu.memory_space<vmem>>, %arg5: memref<1x6x6x128xf32, #tpu.memory_space<vmem>>) attributes {dimension_semantics = [#tpu.dimension_semantics<parallel>], iteration_bounds = array<i64: 2>, scalar_prefetch = 0 : i64, scratch_operands = 0 : i64, tpu.core_type = #tpu.core_type<tc>, window_params = [{transform_indices = @transform_0, window_bounds = array<i64: 1, 9, 9, 512>}, {pipeline_mode = #tpu.pipeline_mode<synchronous>, transform_indices = @transform_1, window_bounds = array<i64: 8192, 128>}, {pipeline_mode = #tpu.pipeline_mode<synchronous>, transform_indices = @transform_2, window_bounds = array<i64: 1, 128>}, {pipeline_mode = #tpu.pipeline_mode<synchronous>, transform_indices = @transform_3, window_bounds = array<i64: 1, 128>}, {transform_indices = @transform_4, window_bounds = array<i64: 1, 6, 6, 128>}]} {
    %c0 = arith.constant 0 : index
    %c0_0 = arith.constant 0 : index
    %0 = vector.load %arg3[%c0, %c0_0] : memref<1x128xf32, #tpu.memory_space<vmem>>, vector<1x128xf32>
    %c0_1 = arith.constant 0 : index
    %c0_2 = arith.constant 0 : index
    %1 = vector.load %arg4[%c0_1, %c0_2] : memref<1x128xf32, #tpu.memory_space<vmem>>, vector<1x128xf32>
    %c0_i32 = arith.constant 0 : i32
    %c6_i32 = arith.constant 6 : i32
    %2 = arith.addi %c0_i32, %c6_i32 : i32
    %c1_i32 = arith.constant 1 : i32
    scf.for %arg6 = %c0_i32 to %2 step %c1_i32  : i32 {
      %cst = arith.constant 0.000000e+00 : f32
      %3 = vector.broadcast %cst : f32 to vector<6x128xf32>
      %c1_i32_4 = arith.constant 1 : i32
      %4 = arith.muli %arg6, %c1_i32_4 : i32
      %c0_i32_5 = arith.constant 0 : i32
      %5 = arith.addi %4, %c0_i32_5 : i32
      %c0_6 = arith.constant 0 : index
      %6 = arith.index_cast %5 : i32 to index
      %c0_7 = arith.constant 0 : index
      %c0_8 = arith.constant 0 : index
      %7 = vector.load %arg1[%c0_6, %6, %c0_7, %c0_8] : memref<1x9x9x512xbf16, #tpu.memory_space<vmem>>, vector<1x1x6x512xbf16>
      %8 = vector.shape_cast %7 : vector<1x1x6x512xbf16> to vector<6x512xbf16>
      %c0_9 = arith.constant 0 : index
      %c0_10 = arith.constant 0 : index
      %9 = vector.load %arg2[%c0_9, %c0_10] : memref<8192x128xbf16, #tpu.memory_space<vmem>>, vector<512x128xbf16>
      %cst_11 = arith.constant dense<0.000000e+00> : vector<6x128xf32>
      %10 = tpu.matmul %8, %9, %cst_11 {dimension_numbers = #tpu.dot_dimension_numbers<[1], [0], [0], [1], [0, 0, 1, 1], [], []>} : vector<6x512xbf16>, vector<512x128xbf16>, vector<6x128xf32> -> vector<6x128xf32>
      %11 = arith.addf %3, %10 : vector<6x128xf32>
      %c0_12 = arith.constant 0 : index
      %12 = arith.index_cast %5 : i32 to index
      %c1 = arith.constant 1 : index
      %c0_13 = arith.constant 0 : index
      %13 = vector.load %arg1[%c0_12, %12, %c1, %c0_13] : memref<1x9x9x512xbf16, #tpu.memory_space<vmem>>, vector<1x1x6x512xbf16>
      %14 = vector.shape_cast %13 : vector<1x1x6x512xbf16> to vector<6x512xbf16>
      %c512 = arith.constant 512 : index
      %c0_14 = arith.constant 0 : index
      %15 = vector.load %arg2[%c512, %c0_14] : memref<8192x128xbf16, #tpu.memory_space<vmem>>, vector<512x128xbf16>
      %cst_15 = arith.constant dense<0.000000e+00> : vector<6x128xf32>
      %16 = tpu.matmul %14, %15, %cst_15 {dimension_numbers = #tpu.dot_dimension_numbers<[1], [0], [0], [1], [0, 0, 1, 1], [], []>} : vector<6x512xbf16>, vector<512x128xbf16>, vector<6x128xf32> -> vector<6x128xf32>
      %17 = arith.addf %11, %16 : vector<6x128xf32>
      %c0_16 = arith.constant 0 : index
      %18 = arith.index_cast %5 : i32 to index
      %c2 = arith.constant 2 : index
      %c0_17 = arith.constant 0 : index
      %19 = vector.load %arg1[%c0_16, %18, %c2, %c0_17] : memref<1x9x9x512xbf16, #tpu.memory_space<vmem>>, vector<1x1x6x512xbf16>
      %20 = vector.shape_cast %19 : vector<1x1x6x512xbf16> to vector<6x512xbf16>
      %c1024 = arith.constant 1024 : index
      %c0_18 = arith.constant 0 : index
      %21 = vector.load %arg2[%c1024, %c0_18] : memref<8192x128xbf16, #tpu.memory_space<vmem>>, vector<512x128xbf16>
      %cst_19 = arith.constant dense<0.000000e+00> : vector<6x128xf32>
      %22 = tpu.matmul %20, %21, %cst_19 {dimension_numbers = #tpu.dot_dimension_numbers<[1], [0], [0], [1], [0, 0, 1, 1], [], []>} : vector<6x512xbf16>, vector<512x128xbf16>, vector<6x128xf32> -> vector<6x128xf32>
      %23 = arith.addf %17, %22 : vector<6x128xf32>
      %c0_20 = arith.constant 0 : index
      %24 = arith.index_cast %5 : i32 to index
      %c3 = arith.constant 3 : index
      %c0_21 = arith.constant 0 : index
      %25 = vector.load %arg1[%c0_20, %24, %c3, %c0_21] : memref<1x9x9x512xbf16, #tpu.memory_space<vmem>>, vector<1x1x6x512xbf16>
      %26 = vector.shape_cast %25 : vector<1x1x6x512xbf16> to vector<6x512xbf16>
      %c1536 = arith.constant 1536 : index
      %c0_22 = arith.constant 0 : index
      %27 = vector.load %arg2[%c1536, %c0_22] : memref<8192x128xbf16, #tpu.memory_space<vmem>>, vector<512x128xbf16>
      %cst_23 = arith.constant dense<0.000000e+00> : vector<6x128xf32>
      %28 = tpu.matmul %26, %27, %cst_23 {dimension_numbers = #tpu.dot_dimension_numbers<[1], [0], [0], [1], [0, 0, 1, 1], [], []>} : vector<6x512xbf16>, vector<512x128xbf16>, vector<6x128xf32> -> vector<6x128xf32>
      %29 = arith.addf %23, %28 : vector<6x128xf32>
      %c1_i32_24 = arith.constant 1 : i32
      %30 = arith.muli %arg6, %c1_i32_24 : i32
      %c1_i32_25 = arith.constant 1 : i32
      %31 = arith.addi %30, %c1_i32_25 : i32
      %c0_26 = arith.constant 0 : index
      %32 = arith.index_cast %31 : i32 to index
      %c0_27 = arith.constant 0 : index
      %c0_28 = arith.constant 0 : index
      %33 = vector.load %arg1[%c0_26, %32, %c0_27, %c0_28] : memref<1x9x9x512xbf16, #tpu.memory_space<vmem>>, vector<1x1x6x512xbf16>
      %34 = vector.shape_cast %33 : vector<1x1x6x512xbf16> to vector<6x512xbf16>
      %c2048 = arith.constant 2048 : index
      %c0_29 = arith.constant 0 : index
      %35 = vector.load %arg2[%c2048, %c0_29] : memref<8192x128xbf16, #tpu.memory_space<vmem>>, vector<512x128xbf16>
      %cst_30 = arith.constant dense<0.000000e+00> : vector<6x128xf32>
      %36 = tpu.matmul %34, %35, %cst_30 {dimension_numbers = #tpu.dot_dimension_numbers<[1], [0], [0], [1], [0, 0, 1, 1], [], []>} : vector<6x512xbf16>, vector<512x128xbf16>, vector<6x128xf32> -> vector<6x128xf32>
      %37 = arith.addf %29, %36 : vector<6x128xf32>
      %c0_31 = arith.constant 0 : index
      %38 = arith.index_cast %31 : i32 to index
      %c1_32 = arith.constant 1 : index
      %c0_33 = arith.constant 0 : index
      %39 = vector.load %arg1[%c0_31, %38, %c1_32, %c0_33] : memref<1x9x9x512xbf16, #tpu.memory_space<vmem>>, vector<1x1x6x512xbf16>
      %40 = vector.shape_cast %39 : vector<1x1x6x512xbf16> to vector<6x512xbf16>
      %c2560 = arith.constant 2560 : index
      %c0_34 = arith.constant 0 : index
      %41 = vector.load %arg2[%c2560, %c0_34] : memref<8192x128xbf16, #tpu.memory_space<vmem>>, vector<512x128xbf16>
      %cst_35 = arith.constant dense<0.000000e+00> : vector<6x128xf32>
      %42 = tpu.matmul %40, %41, %cst_35 {dimension_numbers = #tpu.dot_dimension_numbers<[1], [0], [0], [1], [0, 0, 1, 1], [], []>} : vector<6x512xbf16>, vector<512x128xbf16>, vector<6x128xf32> -> vector<6x128xf32>
      %43 = arith.addf %37, %42 : vector<6x128xf32>
      %c0_36 = arith.constant 0 : index
      %44 = arith.index_cast %31 : i32 to index
      %c2_37 = arith.constant 2 : index
      %c0_38 = arith.constant 0 : index
      %45 = vector.load %arg1[%c0_36, %44, %c2_37, %c0_38] : memref<1x9x9x512xbf16, #tpu.memory_space<vmem>>, vector<1x1x6x512xbf16>
      %46 = vector.shape_cast %45 : vector<1x1x6x512xbf16> to vector<6x512xbf16>
      %c3072 = arith.constant 3072 : index
      %c0_39 = arith.constant 0 : index
      %47 = vector.load %arg2[%c3072, %c0_39] : memref<8192x128xbf16, #tpu.memory_space<vmem>>, vector<512x128xbf16>
      %cst_40 = arith.constant dense<0.000000e+00> : vector<6x128xf32>
      %48 = tpu.matmul %46, %47, %cst_40 {dimension_numbers = #tpu.dot_dimension_numbers<[1], [0], [0], [1], [0, 0, 1, 1], [], []>} : vector<6x512xbf16>, vector<512x128xbf16>, vector<6x128xf32> -> vector<6x128xf32>
      %49 = arith.addf %43, %48 : vector<6x128xf32>
      %c0_41 = arith.constant 0 : index
      %50 = arith.index_cast %31 : i32 to index
      %c3_42 = arith.constant 3 : index
      %c0_43 = arith.constant 0 : index
      %51 = vector.load %arg1[%c0_41, %50, %c3_42, %c0_43] : memref<1x9x9x512xbf16, #tpu.memory_space<vmem>>, vector<1x1x6x512xbf16>
      %52 = vector.shape_cast %51 : vector<1x1x6x512xbf16> to vector<6x512xbf16>
      %c3584 = arith.constant 3584 : index
      %c0_44 = arith.constant 0 : index
      %53 = vector.load %arg2[%c3584, %c0_44] : memref<8192x128xbf16, #tpu.memory_space<vmem>>, vector<512x128xbf16>
      %cst_45 = arith.constant dense<0.000000e+00> : vector<6x128xf32>
      %54 = tpu.matmul %52, %53, %cst_45 {dimension_numbers = #tpu.dot_dimension_numbers<[1], [0], [0], [1], [0, 0, 1, 1], [], []>} : vector<6x512xbf16>, vector<512x128xbf16>, vector<6x128xf32> -> vector<6x128xf32>
      %55 = arith.addf %49, %54 : vector<6x128xf32>
      %c1_i32_46 = arith.constant 1 : i32
      %56 = arith.muli %arg6, %c1_i32_46 : i32
      %c2_i32 = arith.constant 2 : i32
      %57 = arith.addi %56, %c2_i32 : i32
      %c0_47 = arith.constant 0 : index
      %58 = arith.index_cast %57 : i32 to index
      %c0_48 = arith.constant 0 : index
      %c0_49 = arith.constant 0 : index
      %59 = vector.load %arg1[%c0_47, %58, %c0_48, %c0_49] : memref<1x9x9x512xbf16, #tpu.memory_space<vmem>>, vector<1x1x6x512xbf16>
      %60 = vector.shape_cast %59 : vector<1x1x6x512xbf16> to vector<6x512xbf16>
      %c4096 = arith.constant 4096 : index
      %c0_50 = arith.constant 0 : index
      %61 = vector.load %arg2[%c4096, %c0_50] : memref<8192x128xbf16, #tpu.memory_space<vmem>>, vector<512x128xbf16>
      %cst_51 = arith.constant dense<0.000000e+00> : vector<6x128xf32>
      %62 = tpu.matmul %60, %61, %cst_51 {dimension_numbers = #tpu.dot_dimension_numbers<[1], [0], [0], [1], [0, 0, 1, 1], [], []>} : vector<6x512xbf16>, vector<512x128xbf16>, vector<6x128xf32> -> vector<6x128xf32>
      %63 = arith.addf %55, %62 : vector<6x128xf32>
      %c0_52 = arith.constant 0 : index
      %64 = arith.index_cast %57 : i32 to index
      %c1_53 = arith.constant 1 : index
      %c0_54 = arith.constant 0 : index
      %65 = vector.load %arg1[%c0_52, %64, %c1_53, %c0_54] : memref<1x9x9x512xbf16, #tpu.memory_space<vmem>>, vector<1x1x6x512xbf16>
      %66 = vector.shape_cast %65 : vector<1x1x6x512xbf16> to vector<6x512xbf16>
      %c4608 = arith.constant 4608 : index
      %c0_55 = arith.constant 0 : index
      %67 = vector.load %arg2[%c4608, %c0_55] : memref<8192x128xbf16, #tpu.memory_space<vmem>>, vector<512x128xbf16>
      %cst_56 = arith.constant dense<0.000000e+00> : vector<6x128xf32>
      %68 = tpu.matmul %66, %67, %cst_56 {dimension_numbers = #tpu.dot_dimension_numbers<[1], [0], [0], [1], [0, 0, 1, 1], [], []>} : vector<6x512xbf16>, vector<512x128xbf16>, vector<6x128xf32> -> vector<6x128xf32>
      %69 = arith.addf %63, %68 : vector<6x128xf32>
      %c0_57 = arith.constant 0 : index
      %70 = arith.index_cast %57 : i32 to index
      %c2_58 = arith.constant 2 : index
      %c0_59 = arith.constant 0 : index
      %71 = vector.load %arg1[%c0_57, %70, %c2_58, %c0_59] : memref<1x9x9x512xbf16, #tpu.memory_space<vmem>>, vector<1x1x6x512xbf16>
      %72 = vector.shape_cast %71 : vector<1x1x6x512xbf16> to vector<6x512xbf16>
      %c5120 = arith.constant 5120 : index
      %c0_60 = arith.constant 0 : index
      %73 = vector.load %arg2[%c5120, %c0_60] : memref<8192x128xbf16, #tpu.memory_space<vmem>>, vector<512x128xbf16>
      %cst_61 = arith.constant dense<0.000000e+00> : vector<6x128xf32>
      %74 = tpu.matmul %72, %73, %cst_61 {dimension_numbers = #tpu.dot_dimension_numbers<[1], [0], [0], [1], [0, 0, 1, 1], [], []>} : vector<6x512xbf16>, vector<512x128xbf16>, vector<6x128xf32> -> vector<6x128xf32>
      %75 = arith.addf %69, %74 : vector<6x128xf32>
      %c0_62 = arith.constant 0 : index
      %76 = arith.index_cast %57 : i32 to index
      %c3_63 = arith.constant 3 : index
      %c0_64 = arith.constant 0 : index
      %77 = vector.load %arg1[%c0_62, %76, %c3_63, %c0_64] : memref<1x9x9x512xbf16, #tpu.memory_space<vmem>>, vector<1x1x6x512xbf16>
      %78 = vector.shape_cast %77 : vector<1x1x6x512xbf16> to vector<6x512xbf16>
      %c5632 = arith.constant 5632 : index
      %c0_65 = arith.constant 0 : index
      %79 = vector.load %arg2[%c5632, %c0_65] : memref<8192x128xbf16, #tpu.memory_space<vmem>>, vector<512x128xbf16>
      %cst_66 = arith.constant dense<0.000000e+00> : vector<6x128xf32>
      %80 = tpu.matmul %78, %79, %cst_66 {dimension_numbers = #tpu.dot_dimension_numbers<[1], [0], [0], [1], [0, 0, 1, 1], [], []>} : vector<6x512xbf16>, vector<512x128xbf16>, vector<6x128xf32> -> vector<6x128xf32>
      %81 = arith.addf %75, %80 : vector<6x128xf32>
      %c1_i32_67 = arith.constant 1 : i32
      %82 = arith.muli %arg6, %c1_i32_67 : i32
      %c3_i32 = arith.constant 3 : i32
      %83 = arith.addi %82, %c3_i32 : i32
      %c0_68 = arith.constant 0 : index
      %84 = arith.index_cast %83 : i32 to index
      %c0_69 = arith.constant 0 : index
      %c0_70 = arith.constant 0 : index
      %85 = vector.load %arg1[%c0_68, %84, %c0_69, %c0_70] : memref<1x9x9x512xbf16, #tpu.memory_space<vmem>>, vector<1x1x6x512xbf16>
      %86 = vector.shape_cast %85 : vector<1x1x6x512xbf16> to vector<6x512xbf16>
      %c6144 = arith.constant 6144 : index
      %c0_71 = arith.constant 0 : index
      %87 = vector.load %arg2[%c6144, %c0_71] : memref<8192x128xbf16, #tpu.memory_space<vmem>>, vector<512x128xbf16>
      %cst_72 = arith.constant dense<0.000000e+00> : vector<6x128xf32>
      %88 = tpu.matmul %86, %87, %cst_72 {dimension_numbers = #tpu.dot_dimension_numbers<[1], [0], [0], [1], [0, 0, 1, 1], [], []>} : vector<6x512xbf16>, vector<512x128xbf16>, vector<6x128xf32> -> vector<6x128xf32>
      %89 = arith.addf %81, %88 : vector<6x128xf32>
      %c0_73 = arith.constant 0 : index
      %90 = arith.index_cast %83 : i32 to index
      %c1_74 = arith.constant 1 : index
      %c0_75 = arith.constant 0 : index
      %91 = vector.load %arg1[%c0_73, %90, %c1_74, %c0_75] : memref<1x9x9x512xbf16, #tpu.memory_space<vmem>>, vector<1x1x6x512xbf16>
      %92 = vector.shape_cast %91 : vector<1x1x6x512xbf16> to vector<6x512xbf16>
      %c6656 = arith.constant 6656 : index
      %c0_76 = arith.constant 0 : index
      %93 = vector.load %arg2[%c6656, %c0_76] : memref<8192x128xbf16, #tpu.memory_space<vmem>>, vector<512x128xbf16>
      %cst_77 = arith.constant dense<0.000000e+00> : vector<6x128xf32>
      %94 = tpu.matmul %92, %93, %cst_77 {dimension_numbers = #tpu.dot_dimension_numbers<[1], [0], [0], [1], [0, 0, 1, 1], [], []>} : vector<6x512xbf16>, vector<512x128xbf16>, vector<6x128xf32> -> vector<6x128xf32>
      %95 = arith.addf %89, %94 : vector<6x128xf32>
      %c0_78 = arith.constant 0 : index
      %96 = arith.index_cast %83 : i32 to index
      %c2_79 = arith.constant 2 : index
      %c0_80 = arith.constant 0 : index
      %97 = vector.load %arg1[%c0_78, %96, %c2_79, %c0_80] : memref<1x9x9x512xbf16, #tpu.memory_space<vmem>>, vector<1x1x6x512xbf16>
      %98 = vector.shape_cast %97 : vector<1x1x6x512xbf16> to vector<6x512xbf16>
      %c7168 = arith.constant 7168 : index
      %c0_81 = arith.constant 0 : index
      %99 = vector.load %arg2[%c7168, %c0_81] : memref<8192x128xbf16, #tpu.memory_space<vmem>>, vector<512x128xbf16>
      %cst_82 = arith.constant dense<0.000000e+00> : vector<6x128xf32>
      %100 = tpu.matmul %98, %99, %cst_82 {dimension_numbers = #tpu.dot_dimension_numbers<[1], [0], [0], [1], [0, 0, 1, 1], [], []>} : vector<6x512xbf16>, vector<512x128xbf16>, vector<6x128xf32> -> vector<6x128xf32>
      %101 = arith.addf %95, %100 : vector<6x128xf32>
      %c0_83 = arith.constant 0 : index
      %102 = arith.index_cast %83 : i32 to index
      %c3_84 = arith.constant 3 : index
      %c0_85 = arith.constant 0 : index
      %103 = vector.load %arg1[%c0_83, %102, %c3_84, %c0_85] : memref<1x9x9x512xbf16, #tpu.memory_space<vmem>>, vector<1x1x6x512xbf16>
      %104 = vector.shape_cast %103 : vector<1x1x6x512xbf16> to vector<6x512xbf16>
      %c7680 = arith.constant 7680 : index
      %c0_86 = arith.constant 0 : index
      %105 = vector.load %arg2[%c7680, %c0_86] : memref<8192x128xbf16, #tpu.memory_space<vmem>>, vector<512x128xbf16>
      %cst_87 = arith.constant dense<0.000000e+00> : vector<6x128xf32>
      %106 = tpu.matmul %104, %105, %cst_87 {dimension_numbers = #tpu.dot_dimension_numbers<[1], [0], [0], [1], [0, 0, 1, 1], [], []>} : vector<6x512xbf16>, vector<512x128xbf16>, vector<6x128xf32> -> vector<6x128xf32>
      %107 = arith.addf %101, %106 : vector<6x128xf32>
      %108 = vector.broadcast %0 : vector<1x128xf32> to vector<6x128xf32>
      %109 = arith.mulf %107, %108 : vector<6x128xf32>
      %110 = vector.broadcast %1 : vector<1x128xf32> to vector<6x128xf32>
      %111 = arith.addf %109, %110 : vector<6x128xf32>
      %c0_88 = arith.constant 0 : index
      %112 = arith.index_cast %arg6 : i32 to index
      %c0_89 = arith.constant 0 : index
      %c0_90 = arith.constant 0 : index
      %113 = vector.load %arg5[%c0_88, %112, %c0_89, %c0_90] : memref<1x6x6x128xf32, #tpu.memory_space<vmem>>, vector<1x1x6x128xf32>
      %114 = vector.shape_cast %113 : vector<1x1x6x128xf32> to vector<6x128xf32>
      %115 = vector.shape_cast %111 : vector<6x128xf32> to vector<1x1x6x128xf32>
      tpu.vector_store %arg5[%c0_88, %112, %c0_89, %c0_90], %115 {strides = array<i32>} : memref<1x6x6x128xf32, #tpu.memory_space<vmem>>, vector<1x1x6x128xf32>,
    }
    %c6_i32_3 = arith.constant 6 : i32
    return
  }
  func.func @transform_0(%arg0: i32) -> (i32, i32, i32, i32) {
    %c0_i32 = arith.constant 0 : i32
    %c0_i32_0 = arith.constant 0 : i32
    %c0_i32_1 = arith.constant 0 : i32
    %c0_i32_2 = arith.constant 0 : i32
    return %arg0, %c0_i32, %c0_i32_0, %c0_i32_1 : i32, i32, i32, i32
  }
  func.func @transform_1(%arg0: i32) -> (i32, i32) {
    %c0_i32 = arith.constant 0 : i32
    %c0_i32_0 = arith.constant 0 : i32
    %c0_i32_1 = arith.constant 0 : i32
    return %c0_i32, %c0_i32_0 : i32, i32
  }
  func.func @transform_2(%arg0: i32) -> (i32, i32) {
    %c0_i32 = arith.constant 0 : i32
    %c0_i32_0 = arith.constant 0 : i32
    %c0_i32_1 = arith.constant 0 : i32
    return %c0_i32, %c0_i32_0 : i32, i32
  }
  func.func @transform_3(%arg0: i32) -> (i32, i32) {
    %c0_i32 = arith.constant 0 : i32
    %c0_i32_0 = arith.constant 0 : i32
    %c0_i32_1 = arith.constant 0 : i32
    return %c0_i32, %c0_i32_0 : i32, i32
  }
  func.func @transform_4(%arg0: i32) -> (i32, i32, i32, i32) {
    %c0_i32 = arith.constant 0 : i32
    %c0_i32_0 = arith.constant 0 : i32
    %c0_i32_1 = arith.constant 0 : i32
    %c0_i32_2 = arith.constant 0 : i32
    return %arg0, %c0_i32, %c0_i32_0, %c0_i32_1 : i32, i32, i32, i32
  }
}

</mosaic_0001>

<bundles_post_ra>
// kernel: discriminator_forward.5
= control target key start
LH: loop header
LB: loop body
LE: loop exit
PB: predicated region body
PF: predicated region fallthrough
CT: control target
= control target key end

     0   :  { %s1374_s15 = smov 0   ;;  %s1493_s0 = inlined_call_operand.vmem [shape: bf16[2,66,33,16], index: 0, kind: input, shape index: {}]   ;;  %s1494_s1 = inlined_call_operand.vmem [shape: bf16[128,128], index: 1, kind: input, shape index: {}]   ;;  %s1495_s2 = inlined_call_operand.vmem [shape: f32[1,128], index: 2, kind: input, shape index: {}]   ;;  %s1496_s3 = inlined_call_operand.vmem [shape: f32[1,128], index: 3, kind: input, shape index: {}]   ;;  %s1497_s4 = inlined_call_operand.vmem [shape: bf16[2,32,32,128], index: 4, kind: output, shape index: {}]  }
   0x1 LB: > { %s1076_s16 = sadd.s32 4294967295, %s1343_s15   ;;  %p1080_p0 = scmp.ge.s32.totalorder %s1343_s15, 1  ;;  %s1343_s15 = sphi %s1374_s15, %s14_s15  }
   0x2   : > { %p162_p1 = scmp.lt.s32.totalorder %s1343_s15, 3 }
   0x4   : > { %p163_p2 = pnand %p1080_p0, %p162_p1 }
   0x5   : > { %p188_p3 = scmp.lt.s32.totalorder (!%p163_p2), %s1076_s16, 1  ;;  %v1385_v0 = vld [vmem:[%s1495_s2] ss:$0 sm:$0xff] (!%p163_p2)  ;;  %s1402_s29 = smov (!%p163_p2), 0  }
   0x6   : > { %166 = sbr.rel (%p163_p2) target bundleno = 292 (0x124), region = 36  ;;  %v1390_v1 = vld [vmem:[%s1496_s3] ss:$0 sm:$0xff] (!%p163_p2) }
   0xd   : > { %s1499_s16 = smov (!%p188_p3, %s1076_s16), 1 }
   0xe   : > { %s1290_s21 = smul.u32 1320, %s1499_s16  ;;  %s1172_s22 = sshll.u32 %s1499_s16, 9 }
   0xf   : > { %s1395_s25 = scalar_lea.vmem %s1497_s4, %s1172_s22 }
  0x10   : > { %s1400_s28 = scalar_lea.vmem %s1493_s0, %s1290_s21 }
  0x11 LB: >> { %v1307_v2 = vld [vmem:[%s1494_s1 + $0x20] sm:$0xff]   ;;  %v1310_v3 = vld [vmem:[%s1494_s1 + $0x8] sm:$0xff]   ;;  %s1173_s8 = smul.u32 40, %s1347_s29  ;;  %vm260_vm0 = vcmask 130048   ;;  %vm233_vm1 = vsmask.f32 7424  ;;  %s1347_s29 = sphi %s1402_s29, %s206_s29  }
  0x12   : >> { %1238 = vmatprep.subr.bf16.mxu0 %v1307_v2  ;;  %v1313_v4 = vld [vmem:[%s1494_s1] sm:$0xff]   ;;  %1214 = vmatprep.subr.bf16.mxu1 %v1310_v3  ;;  %v1314_v5 = vld [vmem:[%s1494_s1 + $0x28] sm:$0xff]   ;;  %v1320_v30 = vld [vmem:[%s1494_s1 + $0x30] sm:$0xff]   ;;  %s1178_s23 = sshll.u32 %s1347_s29, 4  ;;  %s206_s29 = sadd.s32 1, %s1347_s29  }
  0x13   : >> { %1239 = vmatpush3.bf16.msra.mxu0 %v1307_v2  ;;  %s1418_s11 = scalar_lea.vmem %s1400_s28, %s1173_s8  ;;  %1215 = vmatpush3.bf16.msra.mxu1 %v1310_v3  ;;  %v1319_v35 = vld [vmem:[%s1494_s1 + $0x10] sm:$0xff]   ;;  %v1325_v41 = vld [vmem:[%s1494_s1 + $0x38] sm:$0xff]   ;;  %s995_s24 = scalar_lea.vmem %s1395_s25, %s1178_s23 }
  0x14   : >> { %v1308_v6 = vld [vmem:[%s1418_s11 + $0x28] sm:$0xff]   ;;  %1220 = vmatprep.subr.bf16.mxu1 %v1313_v4  ;;  %v1309_v7 = vld [vmem:[%s1418_s11 + $0x30] sm:$0xff]   ;;  %1244 = vmatprep.subr.bf16.mxu0 %v1314_v5  ;;  %v1311_v8 = vld [vmem:[%s1418_s11] sm:$0xff]   ;;  %p203_p4 = scmp.ge.s32.totalorder %s206_s29, 32  }
  0x15   : >> { %1240 = vmatprep.mubr.msk.bf16.mxu0 %vm260_vm0, %v1308_v6  ;;  %v1312_v9 = vld [vmem:[%s1418_s11 + $0x8] sm:$0xff]   ;;  %v1315_v10 = vld [vmem:[%s1418_s11 + $0x10] ss:$0 sps:$4 sm:$0x11]   ;;  %v235_v12 = vshrl.u32 %v1311_v8, 16  ;;  %v237_v13 = vshll.u32 %v1311_v8, 16 }
  0x16   : >> { %1241 = vmatmul.mubr.msk.bf16.vlgmr.msra.gmra.mrb[0].mxu0 %vm260_vm0, %v1309_v7  ;;  %v1316_v11 = vld [vmem:[%s1418_s11 + $0x28] sm:$0xff]   ;;  %v242_v14 = vshll.u32 %v1312_v9, 16  ;;  %v246_v15 = vshrl.u32 %v1312_v9, 16  ;;  %v250_v16 = vshll.u32 %v1315_v10, 16  ;;  %v1317_v17 = vld [vmem:[%s1418_s11 + $0x30] sm:$0xff]   ;;  %v1321_v39 = vld [vmem:[%s1418_s11 + $0x3c] sm:$0xff]  }
  0x17   : >> { %1245 = vmatpush3.bf16.msra.mxu0 %v1314_v5  ;;  %v239_v18 = vrot.slane %v237_v13, 1  ;;  %v671_v20 = vshrl.u32 %v1316_v11, 16  ;;  %v673_v21 = vshll.u32 %v1316_v11, 16  ;;  %v678_v23 = vshll.u32 %v1317_v17, 16  ;;  %v1327_v42 = vld [vmem:[%s1418_s11 + $0x3c] sm:$0xff]   ;;  %v1328_v43 = vld [vmem:[%s1418_s11 + $0x44] sm:$0xff]  }
  0x18   : >> { %v244_v19 = vrot.slane %v242_v14, 1  ;;  %v252_v22 = vrot.slane %v250_v16, 1  ;;  %v682_v24 = vshrl.u32 %v1317_v17, 16  ;;  %v1318_v28 = vld [vmem:[%s1418_s11 + $0x38] ss:$0 sps:$4 sm:$0x11]   ;;  %1250 = vmatprep.subr.bf16.mxu0 %v1320_v30 }
  0x19   : >> { %v240_v25 = vor.u32 %v239_v18, %v235_v12  ;;  %v675_v27 = vrot.slane %v673_v21, 1  ;;  %v680_v29 = vrot.slane %v678_v23, 1  ;;  %v686_v34 = vshll.u32 %v1318_v28, 16  ;;  %v1330_v44 = vld [vmem:[%s1418_s11 + $0x14] sm:$0xff]   ;;  %v1331_v52 = vld [vmem:[%s1418_s11 + $0x1c] sm:$0xff]   ;;  %v1322_v54 = vld [vmem:[%s1418_s11 + $0x44] sm:$0xff]  }
  0x1a   : >> { %v248_v26 = vor.u32 %v246_v15, %v244_v19  ;;  %v861_v45 = vshrl.u32 %v1327_v42, 16  ;;  %v863_v46 = vshll.u32 %v1327_v42, 16  ;;  %v868_v47 = vshll.u32 %v1328_v43, 16  ;;  %v1323_v48 = vld [vmem:[%s1418_s11 + $0x14] sm:$0xff]   ;;  %v1326_v3 = vld [vmem:[%s1418_s11 + $0x1c] sm:$0xff]  }
  0x1b   : >> { %v245_v31 = vsel %vm233_vm1, %v240_v25, %v244_v19  ;;  %v676_v33 = vor.u32 %v675_v27, %v671_v20  ;;  %v684_v36 = vor.u32 %v682_v24, %v680_v29  ;;  %v688_v38 = vrot.slane %v686_v34, 1  ;;  %v1324_v51 = vld [vmem:[%s1494_s1 + $0x18] sm:$0xff]   ;;  %v1329_v56 = vld [vmem:[%s1418_s11 + $0x4c] ss:$0 sps:$4 sm:$0x11]  }
  0x1c   : >> { %v253_v32 = vsel %vm233_vm1, %v248_v26, %v252_v22  ;;  %1216 = vmatprep.mubr.msk.bf16.mxu1 %vm260_vm0, %v245_v31  ;;  %v865_v49 = vrot.slane %v863_v46, 1  ;;  %v870_v50 = vrot.slane %v868_v47, 1  ;;  %v483_v53 = vshll.u32 %v1330_v44, 16  ;;  %v1332_v6 = vld [vmem:[%s1418_s11 + $0x24] ss:$0 sps:$4 sm:$0x11]  }
  0x1d   : >> { %1217 = vmatmul.mubr.msk.bf16.vlgmr.msra.gmra.mrb[0].mxu1 %vm260_vm0, %v253_v32  ;;  %v681_v37 = vsel %vm233_vm1, %v676_v33, %v680_v29  ;;  %v689_v40 = vsel %vm233_vm1, %v684_v36, %v688_v38  ;;  %v481_v58 = vshrl.u32 %v1330_v44, 16  ;;  %v488_v60 = vshll.u32 %v1331_v52, 16 }
  0x1e   : >> { %1221 = vmatpush3.bf16.msra.mxu1 %v1313_v4  ;;  %1246 = vmatprep.mubr.msk.bf16.mxu0 %vm260_vm0, %v681_v37  ;;  %v866_v55 = vor.u32 %v865_v49, %v861_v45  ;;  %v485_v59 = vrot.slane %v483_v53, 1  ;;  %v872_v61 = vshrl.u32 %v1328_v43, 16  ;;  %v876_v62 = vshll.u32 %v1329_v56, 16 }
  0x1f   : >> { %1222 = vmatprep.mubr.msk.bf16.mxu1 %vm260_vm0, %v1311_v8  ;;  %1226 = vmatprep.subr.bf16.mxu1 %v1319_v35  ;;  %v490_v2 = vrot.slane %v488_v60, 1  ;;  %v496_v10 = vshll.u32 %v1332_v6, 16 }
  0x20   : >> { %v871_v57 = vsel %vm233_vm1, %v866_v55, %v870_v50  ;;  %v486_v63 = vor.u32 %v485_v59, %v481_v58  ;;  %v874_v4 = vor.u32 %v872_v61, %v870_v50  ;;  %v878_v5 = vrot.slane %v876_v62, 1 }
  0x21   : >> { %v498_v12 = vrot.slane %v496_v10, 1 }
  0x22   : >> { %1247 = vmatmul.mubr.msk.bf16.vlgmr.msra.gmra.mrb[0].mxu0 %vm260_vm0, %v689_v40  ;;  %v491_v7 = vsel %vm233_vm1, %v486_v63, %v490_v2  ;;  %v879_v8 = vsel %vm233_vm1, %v874_v4, %v878_v5 }
  0x23   : >> { %1251 = vmatpush3.bf16.msra.mxu0 %v1320_v30  ;;  %1252 = vmatprep.mubr.msk.bf16.mxu0 %vm260_vm0, %v1321_v39 }
  0x24   : >> { %1256 = vmatprep.subr.bf16.mxu0 %v1325_v41 }
  0x29   : >> { %1223 = vmatmul.mubr.msk.bf16.vlgmr.msra.gmra.mrb[0].mxu1 %vm260_vm0, %v1312_v9  ;;  %v492_v9 = vshrl.u32 %v1331_v52, 16 }
  0x2a   : >> { %1227 = vmatpush3.bf16.msra.mxu1 %v1319_v35  ;;  %1228 = vmatprep.mubr.msk.bf16.mxu1 %vm260_vm0, %v1323_v48 }
  0x2b   : >> { %1232 = vmatprep.subr.bf16.mxu1 %v1324_v51  ;;  %v494_v11 = vor.u32 %v492_v9, %v490_v2 }
  0x2d   : >> { %v499_v13 = vsel %vm233_vm1, %v494_v11, %v498_v12 }
  0x2e   : >> { %1253 = vmatmul.mubr.msk.bf16.vlgmr.msra.gmra.mrb[0].mxu0 %vm260_vm0, %v1322_v54 }
  0x2f   : >> { %1257 = vmatpush3.bf16.msra.mxu0 %v1325_v41  ;;  %1258 = vmatprep.mubr.msk.bf16.mxu0 %vm260_vm0, %v871_v57 }
  0x35   : >> { %1229 = vmatmul.mubr.msk.bf16.vlgmr.msra.gmra.mrb[0].mxu1 %vm260_vm0, %v1326_v3 }
  0x36   : >> { %1233 = vmatpush3.bf16.msra.mxu1 %v1324_v51  ;;  %1234 = vmatprep.mubr.msk.bf16.mxu1 %vm260_vm0, %v491_v7 }
  0x3a   : >> { %1259 = vmatmul.mubr.msk.bf16.vlgmr.msra.gmra.mrb[0].mxu0 %vm260_vm0, %v879_v8 }
  0x41   : >> { %1235 = vmatmul.mubr.msk.bf16.vlgmr.msra.gmra.mrb[0].mxu1 %vm260_vm0, %v499_v13 }
 0x10d   : >> { %v1260_v14 = vpop.f32.mrb[0].mxu0 }
 0x10e   : >> { %v926_v15 = vpop.f32.mrb[1].mxu0 }
 0x10f   : >> { %v1261_v16 = vpop.f32.mrb[2].mxu0 }
 0x110   : >> { %v929_v17 = vpop.f32.mrb[3].mxu0 }
 0x114   : >> { %v1236_v18 = vpop.f32.mrb[0].mxu1 }
 0x115   : >> { %v1262_v19 = vadd.f32 %v1260_v14, %v1236_v18  ;;  %v546_v20 = vpop.f32.mrb[1].mxu1 }
 0x116   : >> { %v1263_v21 = vadd.f32 %v926_v15, %v546_v20  ;;  %v1237_v22 = vpop.f32.mrb[2].mxu1 }
 0x117   : >> { %v953_v23 = vmul.f32 %v1262_v19, %v1385_v0  ;;  %v1264_v24 = vadd.f32 %v1261_v16, %v1237_v22  ;;  %v549_v25 = vpop.f32.mrb[3].mxu1 }
 0x118   : >> { %v951_v26 = vmul.f32 %v1263_v21, %v1385_v0  ;;  %v1265_v27 = vadd.f32 %v929_v17, %v549_v25 }
 0x119   : >> { %v963_v28 = vadd.f32 %v1390_v1, %v953_v23  ;;  %v954_v29 = vmul.f32 %v1264_v24, %v1385_v0 }
 0x11a   : >> { %v961_v30 = vadd.f32 %v1390_v1, %v951_v26  ;;  %v952_v31 = vmul.f32 %v1265_v27, %v1385_v0 }
 0x11b   : >> { %v971_v32 = vmul.f32 0.2, %v963_v28  ;;  %v964_v33 = vadd.f32 %v1390_v1, %v954_v29  ;;  %vm967_vm2 = vcmp.gt.f32.partialorder %v963_v28, 0.0 }
 0x11c   : >> { %v969_v34 = vmul.f32 0.2, %v961_v30  ;;  %v962_v35 = vadd.f32 %v1390_v1, %v952_v31  ;;  %vm965_vm3 = vcmp.gt.f32.partialorder %v961_v30, 0.0 }
 0x11d   : >> { %vm968_vm4 = vcmp.gt.f32.partialorder %v964_v33, 0.0  ;;  %v972_v36 = vmul.f32 0.2, %v964_v33  ;;  %v975_v38 = vsel %vm967_vm2, %v963_v28, %v971_v32  ;;  %205 = sbr.rel (!%p203_p4) target bundleno = 17 (0x11), region = 78 }
 0x11e   : >> { %vm966_vm5 = vcmp.gt.f32.partialorder %v962_v35, 0.0  ;;  %v970_v37 = vmul.f32 0.2, %v962_v35  ;;  %v973_v40 = vsel %vm965_vm3, %v961_v30, %v969_v34 }
 0x11f   : >> { %v976_v39 = vsel %vm968_vm4, %v964_v33, %v972_v36 }
 0x120   : >> { %v1187_v41 = vpack.c.bf16 %v976_v39, %v975_v38  ;;  %v974_v42 = vsel %vm966_vm5, %v962_v35, %v970_v37 }
 0x121   : >> { %v1182_v43 = vpack.c.bf16 %v974_v42, %v973_v40 }
 0x122   : >> { %1189 = vst [vmem:[%s995_s24 + $0x8] sm:$0xff] %v1187_v41  }
 0x123   : >> { %1183 = vst [vmem:[%s995_s24] sm:$0xff] %v1182_v43  }
 0x124 PF: > { %s14_s15 = sadd.s32 1, %s1343_s15  }
 0x125   : > { %p11_p5 = scmp.ge.s32.totalorder %s14_s15, 4  }
 0x127   :  { %13 = sbr.rel (!%p11_p5) target bundleno = 1 (0x1), region = 89 }

// kernel: discriminator_forward.6
= control target key start
LH: loop header
LB: loop body
LE: loop exit
PB: predicated region body
PF: predicated region fallthrough
CT: control target
= control target key end

     0   :  { %s2485_s15 = smov 0   ;;  %s2938_s0 = inlined_call_operand.vmem [shape: bf16[2,34,17,256], index: 0, kind: input, shape index: {}]   ;;  %s2939_s1 = inlined_call_operand.vmem [shape: bf16[2048,128], index: 1, kind: input, shape index: {}]   ;;  %s2940_s2 = inlined_call_operand.vmem [shape: f32[1,128], index: 2, kind: input, shape index: {}]   ;;  %s2941_s3 = inlined_call_operand.vmem [shape: f32[1,128], index: 3, kind: input, shape index: {}]   ;;  %s2942_s4 = inlined_call_operand.vmem [shape: bf16[2,16,16,128], index: 4, kind: output, shape index: {}]  }
   0x1 LB: > { %s1904_s16 = sadd.s32 4294967295, %s2454_s15   ;;  %p1908_p0 = scmp.ge.s32.totalorder %s2454_s15, 1  ;;  %s2454_s15 = sphi %s2485_s15, %s14_s15  }
   0x2   : > { %p162_p1 = scmp.lt.s32.totalorder %s2454_s15, 3 }
   0x4   : > { %p163_p2 = pnand %p1908_p0, %p162_p1 }
   0x5   : > { %p188_p3 = scmp.lt.s32.totalorder (!%p163_p2), %s1904_s16, 1  ;;  %v2496_v0 = vld [vmem:[%s2940_s2] ss:$0 sm:$0xff] (!%p163_p2)  ;;  %s2513_s29 = smov (!%p163_p2), 0  }
   0x6   : > { %166 = sbr.rel (%p163_p2) target bundleno = 378 (0x17a), region = 36  ;;  %v2501_v1 = vld [vmem:[%s2941_s3] ss:$0 sm:$0xff] (!%p163_p2) }
   0xd   : > { %s2944_s16 = smov (!%p188_p3, %s1904_s16), 1 }
   0xe   : > { %s2279_s21 = smul.u32 816, %s2944_s16  ;;  %s2093_s22 = sshll.u32 %s2944_s16, 7 }
   0xf   : > { %s2506_s25 = scalar_lea.vmem %s2942_s4, %s2093_s22 }
  0x10   : > { %s2511_s28 = scalar_lea.vmem %s2938_s0, %s2279_s21 }
  0x11 LB: >> { %v2296_v2 = vld [vmem:[%s2939_s1 + $0xc0] sm:$0xff]   ;;  %v2300_v6 = vld [vmem:[%s2939_s1 + $0xc8] sm:$0xff]   ;;  %v2304_v10 = vld [vmem:[%s2939_s1 + $0xd0] sm:$0xff]   ;;  %s2094_s12 = smul.u32 48, %s2458_s29  ;;  %vm291_vm0 = vsmask.f32 7424  ;;  %s2458_s29 = sphi %s2513_s29, %s206_s29  }
  0x12   : >> { %v2297_v3 = vld [vmem:[%s2939_s1 + $0x40] sm:$0xff]   ;;  %2103 = vmatprep.subr.bf16.mxu0 %v2296_v2  ;;  %v2301_v7 = vld [vmem:[%s2939_s1 + $0x48] sm:$0xff]   ;;  %v2305_v11 = vld [vmem:[%s2939_s1 + $0x50] sm:$0xff]  }
  0x13   : >> { %v2298_v4 = vld [vmem:[%s2939_s1 + $0x80] sm:$0xff]   ;;  %2125 = vmatprep.subr.bf16.mxu1 %v2297_v3  ;;  %v2302_v8 = vld [vmem:[%s2939_s1 + $0x88] sm:$0xff]   ;;  %v2306_v12 = vld [vmem:[%s2939_s1 + $0x90] sm:$0xff]   ;;  %s2610_s22 = scalar_lea.vmem %s2511_s28, %s2094_s12 }
  0x14   : >> { %v2299_v5 = vld [vmem:[%s2939_s1] sm:$0xff]   ;;  %2104 = vmatpush3.bf16.msra.mxu0 %v2298_v4  ;;  %v2303_v9 = vld [vmem:[%s2939_s1 + $0x8] sm:$0xff]   ;;  %v2307_v13 = vld [vmem:[%s2939_s1 + $0x10] sm:$0xff]  }
  0x15   : >> { %2126 = vmatpush3.bf16.msra.mxu1 %v2299_v5  ;;  %2105 = vmatprep.subr.bf16.mxu0 %v2300_v6  ;;  %v2308_v14 = vld [vmem:[%s2939_s1 + $0xd8] sm:$0xff]   ;;  %v2312_v18 = vld [vmem:[%s2939_s1 + $0xe0] sm:$0xff]   ;;  %v2316_v22 = vld [vmem:[%s2939_s1 + $0xe8] sm:$0xff]  }
  0x16   : >> { %2127 = vmatprep.subr.bf16.mxu1 %v2301_v7  ;;  %v2309_v15 = vld [vmem:[%s2939_s1 + $0x58] sm:$0xff]   ;;  %v2313_v19 = vld [vmem:[%s2939_s1 + $0x60] sm:$0xff]   ;;  %v2317_v23 = vld [vmem:[%s2939_s1 + $0x68] sm:$0xff]  }
  0x17   : >> { %v2310_v16 = vld [vmem:[%s2939_s1 + $0x98] sm:$0xff]   ;;  %v2314_v20 = vld [vmem:[%s2939_s1 + $0xa0] sm:$0xff]   ;;  %v2318_v24 = vld [vmem:[%s2939_s1 + $0xa8] sm:$0xff]  }
  0x18   : >> { %2106 = vmatpush3.bf16.msra.mxu0 %v2302_v8  ;;  %v2311_v17 = vld [vmem:[%s2939_s1 + $0x18] sm:$0xff]   ;;  %v2315_v21 = vld [vmem:[%s2939_s1 + $0x20] sm:$0xff]   ;;  %v2319_v25 = vld [vmem:[%s2939_s1 + $0x28] sm:$0xff]  }
  0x19   : >> { %2128 = vmatpush3.bf16.msra.mxu1 %v2303_v9  ;;  %2107 = vmatprep.subr.bf16.mxu0 %v2304_v10  ;;  %v2320_v26 = vld [vmem:[%s2939_s1 + $0xf0] sm:$0xff]   ;;  %v2324_v30 = vld [vmem:[%s2939_s1 + $0xf8] sm:$0xff]   ;;  %v2328_v35 = vld [vmem:[%s2610_s22 + $0x4] ss:$8 sps:$4 sm:$0xff]  }
  0x1a   : >> { %2129 = vmatprep.subr.bf16.mxu1 %v2305_v11  ;;  %v2321_v27 = vld [vmem:[%s2939_s1 + $0x70] sm:$0xff]   ;;  %v2325_v31 = vld [vmem:[%s2939_s1 + $0x78] sm:$0xff]   ;;  %v2331_v37 = vld [vmem:[%s2610_s22] ss:$8 sps:$4 sm:$0xff]   ;;  %v305_v40 = vshrl.u32 %v2328_v35, 16  ;;  %v307_v41 = vshll.u32 %v2328_v35, 16  ;;  %585 = vmatprep.mubr.bf16.mxu1 %v2328_v35 }
  0x1b   : >> { %v2322_v28 = vld [vmem:[%s2939_s1 + $0xb0] sm:$0xff]   ;;  %v2326_v32 = vld [vmem:[%s2939_s1 + $0xb8] sm:$0xff]   ;;  %v2333_v39 = vld [vmem:[%s2939_s1 + $0x140] sm:$0xff]   ;;  %v293_v43 = vshrl.u32 %v2331_v37, 16  ;;  %v295_v44 = vshll.u32 %v2331_v37, 16 }
  0x1c   : >> { %2108 = vmatpush3.bf16.msra.mxu0 %v2306_v12  ;;  %v2323_v29 = vld [vmem:[%s2939_s1 + $0x30] sm:$0xff]   ;;  %v2327_v33 = vld [vmem:[%s2939_s1 + $0x38] sm:$0xff]   ;;  %v2334_v46 = vld [vmem:[%s2939_s1 + $0x1c0] sm:$0xff]   ;;  %v309_v47 = vrot.slane %v307_v41, 1 }
  0x1d   : >> { %2130 = vmatpush3.bf16.msra.mxu1 %v2307_v13  ;;  %2109 = vmatprep.subr.bf16.mxu0 %v2308_v14  ;;  %v245_v34 = vld [vmem:[%s2610_s22 + $0x10] sm:$0x11]  ;;  %v297_v49 = vrot.slane %v295_v44, 1  ;;  %v2335_v51 = vld [vmem:[%s2939_s1 + $0x100] sm:$0xff]   ;;  %v2338_v55 = vld [vmem:[%s2939_s1 + $0x1c8] sm:$0xff]  }
  0x1e   : >> { %2131 = vmatprep.subr.bf16.mxu1 %v2309_v15  ;;  %v1918_v36 = vcombine.high %v245_v34, %v245_v34  ;;  %v1917_v38 = vcombine.low %v245_v34, %v245_v34  ;;  %v2336_v52 = vld [vmem:[%s2939_s1 + $0x180] sm:$0xff]   ;;  %v310_v53 = vor.u32 %v309_v47, %v305_v40  ;;  %v2337_v57 = vld [vmem:[%s2939_s1 + $0x148] sm:$0xff]   ;;  %v2342_v61 = vld [vmem:[%s2939_s1 + $0x1d0] sm:$0xff]  }
  0x1f   : >> { %v298_v54 = vor.u32 %v297_v49, %v293_v43  ;;  %v2340_v59 = vld [vmem:[%s2939_s1 + $0x188] sm:$0xff]   ;;  %v2341_v62 = vld [vmem:[%s2939_s1 + $0x150] sm:$0xff]   ;;  %v2346_v3 = vld [vmem:[%s2939_s1 + $0x1d8] sm:$0xff]  }
  0x20   : >> { %2110 = vmatpush3.bf16.msra.mxu0 %v2310_v16  ;;  %v312_v42 = vshll.u32 %v1918_v36, 16  ;;  %v300_v45 = vshll.u32 %v1917_v38, 16  ;;  %v2339_v60 = vld [vmem:[%s2939_s1 + $0x108] sm:$0xff]   ;;  %v2344_v63 = vld [vmem:[%s2939_s1 + $0x190] sm:$0xff]   ;;  %v2345_v4 = vld [vmem:[%s2939_s1 + $0x158] sm:$0xff]  }
  0x21   : >> { %2132 = vmatpush3.bf16.msra.mxu1 %v2311_v17  ;;  %2111 = vmatprep.subr.bf16.mxu0 %v2312_v18  ;;  %v2343_v2 = vld [vmem:[%s2939_s1 + $0x110] sm:$0xff]   ;;  %v2348_v5 = vld [vmem:[%s2939_s1 + $0x198] sm:$0xff]   ;;  %v2350_v7 = vld [vmem:[%s2939_s1 + $0x1e0] sm:$0xff]  }
  0x22   : >> { %2133 = vmatprep.subr.bf16.mxu1 %v2313_v19  ;;  %v314_v48 = vrot.slane %v312_v42, 1  ;;  %v302_v50 = vrot.slane %v300_v45, 1  ;;  %v2347_v6 = vld [vmem:[%s2939_s1 + $0x118] sm:$0xff]   ;;  %v2349_v8 = vld [vmem:[%s2939_s1 + $0x160] sm:$0xff]   ;;  %v2354_v11 = vld [vmem:[%s2939_s1 + $0x1e8] sm:$0xff]  }
  0x23   : >> { %v2352_v9 = vld [vmem:[%s2939_s1 + $0x1a0] sm:$0xff]   ;;  %v2353_v12 = vld [vmem:[%s2939_s1 + $0x168] sm:$0xff]   ;;  %v2358_v15 = vld [vmem:[%s2939_s1 + $0x1f0] sm:$0xff]  }
  0x24   : >> { %2112 = vmatpush3.bf16.msra.mxu0 %v2314_v20  ;;  %v315_v56 = vsel %vm291_vm0, %v310_v53, %v314_v48  ;;  %v303_v58 = vsel %vm291_vm0, %v298_v54, %v302_v50  ;;  %v2351_v10 = vld [vmem:[%s2939_s1 + $0x120] sm:$0xff]   ;;  %v2356_v13 = vld [vmem:[%s2939_s1 + $0x1a8] sm:$0xff]   ;;  %v2357_v16 = vld [vmem:[%s2939_s1 + $0x170] sm:$0xff]  }
  0x25   : >> { %2134 = vmatpush3.bf16.msra.mxu1 %v2315_v21  ;;  %2113 = vmatprep.subr.bf16.mxu0 %v2316_v22  ;;  %v2355_v14 = vld [vmem:[%s2939_s1 + $0x128] sm:$0xff]   ;;  %v2360_v17 = vld [vmem:[%s2939_s1 + $0x1b0] sm:$0xff]   ;;  %v2362_v19 = vld [vmem:[%s2939_s1 + $0x1f8] sm:$0xff]  }
  0x26   : >> { %2135 = vmatprep.subr.bf16.mxu1 %v2317_v23  ;;  %446 = vmatprep.mubr.bf16.mxu0 %v315_v56  ;;  %v2359_v18 = vld [vmem:[%s2939_s1 + $0x130] sm:$0xff]   ;;  %v2361_v20 = vld [vmem:[%s2939_s1 + $0x178] sm:$0xff]   ;;  %v2374_v44 = vld [vmem:[%s2939_s1 + $0x248] sm:$0xff]  }
  0x27   : >> { %v2363_v21 = vld [vmem:[%s2939_s1 + $0x138] sm:$0xff]   ;;  %v2376_v48 = vld [vmem:[%s2939_s1 + $0x208] sm:$0xff]   ;;  %v2378_v50 = vld [vmem:[%s2939_s1 + $0x250] sm:$0xff]  }
  0x28   : >> { %2114 = vmatpush3.bf16.msra.mxu0 %v2318_v24  ;;  %v2364_v22 = vld [vmem:[%s2939_s1 + $0x1b8] sm:$0xff]   ;;  %v2377_v49 = vld [vmem:[%s2939_s1 + $0x288] sm:$0xff]   ;;  %v2381_v53 = vld [vmem:[%s2939_s1 + $0x290] sm:$0xff]  }
  0x29   : >> { %2136 = vmatpush3.bf16.msra.mxu1 %v2319_v25  ;;  %2115 = vmatprep.subr.bf16.mxu0 %v2320_v26  ;;  %v2365_v23 = vld [vmem:[%s2610_s22 + $0x18] ss:$8 sps:$4 sm:$0xff]   ;;  %v2367_v24 = vld [vmem:[%s2610_s22 + $0x1c] ss:$8 sps:$4 sm:$0xff]   ;;  %v1975_v25 = vld [vmem:[%s2610_s22 + $0x28] sm:$0x11] }
  0x2a   : >> { %2137 = vmatprep.subr.bf16.mxu1 %v2321_v27  ;;  %v1979_v26 = vcombine.high %v1975_v25, %v1975_v25  ;;  %v842_v27 = vshrl.u32 %v2367_v24, 16  ;;  %v2382_v54 = vld [vmem:[%s2939_s1 + $0x258] sm:$0xff]  }
  0x2b   : >> { %v2384_v56 = vld [vmem:[%s2939_s1 + $0x218] sm:$0xff]  }
  0x2c   : >> { %2116 = vmatpush3.bf16.msra.mxu0 %v2322_v28  ;;  %v844_v28 = vshll.u32 %v2367_v24, 16  ;;  %v849_v35 = vshll.u32 %v1979_v26, 16 }
  0x2d   : >> { %2138 = vmatpush3.bf16.msra.mxu1 %v2323_v29  ;;  %2117 = vmatprep.subr.bf16.mxu0 %v2324_v30  ;;  %v1978_v29 = vcombine.low %v1975_v25, %v1975_v25  ;;  %v2370_v30 = vld [vmem:[%s2939_s1 + $0x240] sm:$0xff]  }
  0x2e   : >> { %2139 = vmatprep.subr.bf16.mxu1 %v2325_v31  ;;  %v2371_v31 = vld [vmem:[%s2939_s1 + $0x2c0] sm:$0xff]   ;;  %v846_v34 = vrot.slane %v844_v28, 1  ;;  %v851_v41 = vrot.slane %v849_v35, 1 }
  0x2f   : >> { %v837_v36 = vshll.u32 %v1978_v29, 16  ;;  %v2409_v25 = vld [vmem:[%s2939_s1 + $0x300] sm:$0xff]  }
  0x30   : >> { %2118 = vmatpush3.bf16.msra.mxu0 %v2326_v32  ;;  %v830_v32 = vshrl.u32 %v2365_v23, 16  ;;  %v847_v40 = vor.u32 %v846_v34, %v842_v27 }
  0x31   : >> { %2140 = vmatpush3.bf16.msra.mxu1 %v2327_v33  ;;  %2147 = vmatprep.subr.bf16.mxu0 %v2333_v39  ;;  %v832_v33 = vshll.u32 %v2365_v23, 16  ;;  %v2373_v39 = vld [vmem:[%s2939_s1 + $0x280] sm:$0xff]   ;;  %v839_v42 = vrot.slane %v837_v36, 1  ;;  %v2412_v36 = vld [vmem:[%s2939_s1 + $0x3c8] sm:$0xff]  }
  0x32   : >> { %2169 = vmatprep.subr.bf16.mxu1 %v2334_v46  ;;  %v852_v45 = vsel %vm291_vm0, %v847_v40, %v851_v41  ;;  %v2375_v46 = vld [vmem:[%s2939_s1 + $0x2c8] sm:$0xff]   ;;  %v2416_v40 = vld [vmem:[%s2939_s1 + $0x3d0] sm:$0xff]  }
  0x33   : >> { %447 = vmatmul.mubr.bf16.vlgmr.msra.gmra.mrb[0].mxu0 %v303_v58  ;;  %v834_v38 = vrot.slane %v832_v33, 1  ;;  %v2386_v58 = vld [vmem:[%s2939_s1 + $0x260] sm:$0xff]   ;;  %v2411_v33 = vld [vmem:[%s2939_s1 + $0x348] sm:$0xff]   ;;  %v2417_v41 = vld [vmem:[%s2939_s1 + $0x310] sm:$0xff]  }
  0x34   : >> { %586 = vmatmul.mubr.bf16.vlgmr.msra.gmra.mrb[0].mxu1 %v2331_v37  ;;  %2148 = vmatpush3.bf16.msra.mxu0 %v2335_v51  ;;  %v2372_v37 = vld [vmem:[%s2939_s1 + $0x200] sm:$0xff]   ;;  %v2379_v51 = vld [vmem:[%s2939_s1 + $0x2d0] sm:$0xff]  }
  0x35   : >> { %2170 = vmatpush3.bf16.msra.mxu1 %v2336_v52  ;;  %2149 = vmatprep.subr.bf16.mxu0 %v2337_v57  ;;  %v835_v43 = vor.u32 %v834_v38, %v830_v32  ;;  %v2380_v52 = vld [vmem:[%s2939_s1 + $0x210] sm:$0xff]   ;;  %v2385_v57 = vld [vmem:[%s2939_s1 + $0x298] sm:$0xff]   ;;  %v2410_v32 = vld [vmem:[%s2939_s1 + $0x380] sm:$0xff]  }
  0x36   : >> { %2171 = vmatprep.subr.bf16.mxu1 %v2338_v55  ;;  %770 = vmatprep.mubr.bf16.mxu0 %v2367_v24  ;;  %v2383_v55 = vld [vmem:[%s2939_s1 + $0x2d8] sm:$0xff]   ;;  %v2408_v24 = vld [vmem:[%s2939_s1 + $0x3c0] sm:$0xff]   ;;  %v2414_v38 = vld [vmem:[%s2939_s1 + $0x388] sm:$0xff]  }
  0x37   : >> { %983 = vmatprep.mubr.bf16.mxu1 %v852_v45  ;;  %v840_v47 = vsel %vm291_vm0, %v835_v43, %v839_v42  ;;  %v2418_v42 = vld [vmem:[%s2939_s1 + $0x390] sm:$0xff]   ;;  %v2419_v43 = vld [vmem:[%s2939_s1 + $0x358] sm:$0xff]  }
  0x38   : >> { %2150 = vmatpush3.bf16.msra.mxu0 %v2339_v60  ;;  %v2388_v60 = vld [vmem:[%s2939_s1 + $0x220] sm:$0xff]   ;;  %v2421_v45 = vld [vmem:[%s2939_s1 + $0x318] sm:$0xff]  }
  0x39   : >> { %2172 = vmatpush3.bf16.msra.mxu1 %v2340_v59  ;;  %2151 = vmatprep.subr.bf16.mxu0 %v2341_v62  ;;  %v2387_v59 = vld [vmem:[%s2939_s1 + $0x2e0] sm:$0xff]   ;;  %v2390_v62 = vld [vmem:[%s2939_s1 + $0x268] sm:$0xff]  }
  0x3a   : >> { %2173 = vmatprep.subr.bf16.mxu1 %v2342_v61  ;;  %v2389_v61 = vld [vmem:[%s2939_s1 + $0x2a0] sm:$0xff]  }
  0x3c   : >> { %2152 = vmatpush3.bf16.msra.mxu0 %v2343_v2  ;;  %v2392_v2 = vld [vmem:[%s2939_s1 + $0x228] sm:$0xff]  }
  0x3d   : >> { %2174 = vmatpush3.bf16.msra.mxu1 %v2344_v63  ;;  %2153 = vmatprep.subr.bf16.mxu0 %v2345_v4  ;;  %v2391_v63 = vld [vmem:[%s2939_s1 + $0x2e8] sm:$0xff]   ;;  %v2394_v4 = vld [vmem:[%s2939_s1 + $0x270] sm:$0xff]  }
  0x3e   : >> { %2175 = vmatprep.subr.bf16.mxu1 %v2346_v3  ;;  %v2393_v3 = vld [vmem:[%s2939_s1 + $0x2a8] sm:$0xff]  }
  0x40   : >> { %2154 = vmatpush3.bf16.msra.mxu0 %v2347_v6  ;;  %v2396_v6 = vld [vmem:[%s2939_s1 + $0x230] sm:$0xff]  }
  0x41   : >> { %2176 = vmatpush3.bf16.msra.mxu1 %v2348_v5  ;;  %2155 = vmatprep.subr.bf16.mxu0 %v2349_v8  ;;  %v2395_v5 = vld [vmem:[%s2939_s1 + $0x2f0] sm:$0xff]   ;;  %v2398_v8 = vld [vmem:[%s2939_s1 + $0x278] sm:$0xff]  }
  0x42   : >> { %2177 = vmatprep.subr.bf16.mxu1 %v2350_v7  ;;  %v2397_v7 = vld [vmem:[%s2939_s1 + $0x2b0] sm:$0xff]  }
  0x44   : >> { %2156 = vmatpush3.bf16.msra.mxu0 %v2351_v10  ;;  %v2400_v10 = vld [vmem:[%s2939_s1 + $0x238] sm:$0xff]  }
  0x45   : >> { %2178 = vmatpush3.bf16.msra.mxu1 %v2352_v9  ;;  %2157 = vmatprep.subr.bf16.mxu0 %v2353_v12  ;;  %v2399_v9 = vld [vmem:[%s2939_s1 + $0x2f8] sm:$0xff]  }
  0x46   : >> { %2179 = vmatprep.subr.bf16.mxu1 %v2354_v11  ;;  %v2401_v11 = vld [vmem:[%s2939_s1 + $0x2b8] sm:$0xff]  }
  0x47   : >> { %v2402_v12 = vld [vmem:[%s2610_s22 + $0x30] ss:$8 sps:$4 sm:$0xff]  }
  0x48   : >> { %2158 = vmatpush3.bf16.msra.mxu0 %v2355_v14  ;;  %v2020_v14 = vld [vmem:[%s2610_s22 + $0x40] sm:$0x11] }
  0x49   : >> { %2180 = vmatpush3.bf16.msra.mxu1 %v2356_v13  ;;  %2159 = vmatprep.subr.bf16.mxu0 %v2357_v16  ;;  %v2404_v13 = vld [vmem:[%s2610_s22 + $0x34] ss:$8 sps:$4 sm:$0xff]   ;;  %v2023_v16 = vcombine.low %v2020_v14, %v2020_v14 }
  0x4a   : >> { %2181 = vmatprep.subr.bf16.mxu1 %v2358_v15  ;;  %v2024_v15 = vcombine.high %v2020_v14, %v2020_v14 }
  0x4c   : >> { %2160 = vmatpush3.bf16.msra.mxu0 %v2359_v18  ;;  %v1242_v18 = vshrl.u32 %v2404_v13, 16 }
  0x4d   : >> { %2182 = vmatpush3.bf16.msra.mxu1 %v2360_v17  ;;  %2161 = vmatprep.subr.bf16.mxu0 %v2361_v20  ;;  %v2407_v17 = vld [vmem:[%s2939_s1 + $0x340] sm:$0xff]   ;;  %v1230_v20 = vshrl.u32 %v2402_v12, 16 }
  0x4e   : >> { %2183 = vmatprep.subr.bf16.mxu1 %v2362_v19  ;;  %v1244_v19 = vshll.u32 %v2404_v13, 16 }
  0x50   : >> { %2162 = vmatpush3.bf16.msra.mxu0 %v2363_v21  ;;  %v1232_v21 = vshll.u32 %v2402_v12, 16  ;;  %v1246_v26 = vrot.slane %v1244_v19, 1 }
  0x51   : >> { %2184 = vmatpush3.bf16.msra.mxu1 %v2364_v22  ;;  %2191 = vmatprep.subr.bf16.mxu0 %v2370_v30  ;;  %v1249_v22 = vshll.u32 %v2024_v15, 16 }
  0x52   : >> { %2213 = vmatprep.subr.bf16.mxu1 %v2371_v31  ;;  %v1234_v27 = vrot.slane %v1232_v21, 1  ;;  %v1247_v30 = vor.u32 %v1246_v26, %v1242_v18 }
  0x53   : >> { %771 = vmatmul.mubr.bf16.vlgmr.msra.gmra.mrb[4].mxu0 %v2365_v23  ;;  %v1237_v23 = vshll.u32 %v2023_v16, 16  ;;  %v1251_v28 = vrot.slane %v1249_v22, 1 }
  0x54   : >> { %2192 = vmatpush3.bf16.msra.mxu0 %v2372_v37  ;;  %984 = vmatmul.mubr.bf16.vlgmr.msra.gmra.mrb[4].mxu1 %v840_v47  ;;  %v1235_v31 = vor.u32 %v1234_v27, %v1230_v20  ;;  %v2413_v37 = vld [vmem:[%s2939_s1 + $0x308] sm:$0xff]   ;;  %v2423_v47 = vld [vmem:[%s2939_s1 + $0x360] sm:$0xff]  }
  0x55   : >> { %2193 = vmatprep.subr.bf16.mxu0 %v2374_v44  ;;  %2214 = vmatpush3.bf16.msra.mxu1 %v2373_v39  ;;  %v1239_v29 = vrot.slane %v1237_v23, 1  ;;  %v1252_v34 = vsel %vm291_vm0, %v1247_v30, %v1251_v28  ;;  %v2415_v39 = vld [vmem:[%s2939_s1 + $0x350] sm:$0xff]   ;;  %v2420_v44 = vld [vmem:[%s2939_s1 + $0x3d8] sm:$0xff]  }
  0x56   : >> { %2215 = vmatprep.subr.bf16.mxu1 %v2375_v46  ;;  %1170 = vmatprep.mubr.bf16.mxu0 %v2404_v13  ;;  %v2422_v46 = vld [vmem:[%s2939_s1 + $0x398] sm:$0xff]  }
  0x57   : >> { %v1240_v35 = vsel %vm291_vm0, %v1235_v31, %v1239_v29  ;;  %1383 = vmatprep.mubr.bf16.mxu1 %v1252_v34 }
  0x58   : >> { %2194 = vmatpush3.bf16.msra.mxu0 %v2376_v48  ;;  %v2424_v48 = vld [vmem:[%s2939_s1 + $0x3e0] sm:$0xff]  }
  0x59   : >> { %2195 = vmatprep.subr.bf16.mxu0 %v2378_v50  ;;  %2216 = vmatpush3.bf16.msra.mxu1 %v2377_v49  ;;  %v2425_v49 = vld [vmem:[%s2939_s1 + $0x320] sm:$0xff]  }
  0x5a   : >> { %2217 = vmatprep.subr.bf16.mxu1 %v2379_v51  ;;  %v2426_v50 = vld [vmem:[%s2939_s1 + $0x3a0] sm:$0xff]   ;;  %v2427_v51 = vld [vmem:[%s2939_s1 + $0x368] sm:$0xff]  }
  0x5c   : >> { %2196 = vmatpush3.bf16.msra.mxu0 %v2380_v52  ;;  %v2428_v52 = vld [vmem:[%s2939_s1 + $0x3e8] sm:$0xff]  }
  0x5d   : >> { %2197 = vmatprep.subr.bf16.mxu0 %v2382_v54  ;;  %2218 = vmatpush3.bf16.msra.mxu1 %v2381_v53  ;;  %v2429_v53 = vld [vmem:[%s2939_s1 + $0x328] sm:$0xff]  }
  0x5e   : >> { %2219 = vmatprep.subr.bf16.mxu1 %v2383_v55  ;;  %v2430_v54 = vld [vmem:[%s2939_s1 + $0x3a8] sm:$0xff]   ;;  %v2431_v55 = vld [vmem:[%s2939_s1 + $0x370] sm:$0xff]  }
  0x60   : >> { %2198 = vmatpush3.bf16.msra.mxu0 %v2384_v56  ;;  %v2432_v56 = vld [vmem:[%s2939_s1 + $0x3f0] sm:$0xff]  }
  0x61   : >> { %2199 = vmatprep.subr.bf16.mxu0 %v2386_v58  ;;  %2220 = vmatpush3.bf16.msra.mxu1 %v2385_v57  ;;  %v2433_v57 = vld [vmem:[%s2939_s1 + $0x330] sm:$0xff]  }
  0x62   : >> { %2221 = vmatprep.subr.bf16.mxu1 %v2387_v59  ;;  %v2434_v58 = vld [vmem:[%s2939_s1 + $0x3b0] sm:$0xff]   ;;  %v2435_v59 = vld [vmem:[%s2939_s1 + $0x378] sm:$0xff]  }
  0x64   : >> { %2200 = vmatpush3.bf16.msra.mxu0 %v2388_v60  ;;  %v2436_v60 = vld [vmem:[%s2939_s1 + $0x3f8] sm:$0xff]  }
  0x65   : >> { %2201 = vmatprep.subr.bf16.mxu0 %v2390_v62  ;;  %2222 = vmatpush3.bf16.msra.mxu1 %v2389_v61  ;;  %v2437_v61 = vld [vmem:[%s2939_s1 + $0x338] sm:$0xff]  }
  0x66   : >> { %2223 = vmatprep.subr.bf16.mxu1 %v2391_v63  ;;  %v2438_v62 = vld [vmem:[%s2939_s1 + $0x3b8] sm:$0xff]   ;;  %v2439_v63 = vld [vmem:[%s2610_s22 + $0x48] ss:$8 sps:$4 sm:$0xff]  }
  0x68   : >> { %2202 = vmatpush3.bf16.msra.mxu0 %v2392_v2  ;;  %v2441_v2 = vld [vmem:[%s2610_s22 + $0x4c] ss:$8 sps:$4 sm:$0xff]  }
  0x69   : >> { %2203 = vmatprep.subr.bf16.mxu0 %v2394_v4  ;;  %2224 = vmatpush3.bf16.msra.mxu1 %v2393_v3  ;;  %v2065_v3 = vld [vmem:[%s2610_s22 + $0x58] sm:$0x11]  ;;  %s2097_s22 = sshll.u32 %s2458_s29, 3  ;;  %s206_s29 = sadd.s32 1, %s2458_s29  }
  0x6a   : >> { %2225 = vmatprep.subr.bf16.mxu1 %v2395_v5  ;;  %v2069_v4 = vcombine.high %v2065_v3, %v2065_v3  ;;  %v2068_v5 = vcombine.low %v2065_v3, %v2065_v3  ;;  %s1825_s7 = scalar_lea.vmem %s2506_s25, %s2097_s22  ;;  %p203_p4 = scmp.ge.s32.totalorder %s206_s29, 16  }
  0x6c   : >> { %2204 = vmatpush3.bf16.msra.mxu0 %v2396_v6  ;;  %v1642_v6 = vshrl.u32 %v2441_v2, 16 }
  0x6d   : >> { %2205 = vmatprep.subr.bf16.mxu0 %v2398_v8  ;;  %2226 = vmatpush3.bf16.msra.mxu1 %v2397_v7  ;;  %v1644_v7 = vshll.u32 %v2441_v2, 16  ;;  %v1630_v8 = vshrl.u32 %v2439_v63, 16 }
  0x6e   : >> { %2227 = vmatprep.subr.bf16.mxu1 %v2399_v9  ;;  %v1632_v9 = vshll.u32 %v2439_v63, 16 }
  0x70   : >> { %2206 = vmatpush3.bf16.msra.mxu0 %v2400_v10  ;;  %v1649_v10 = vshll.u32 %v2069_v4, 16  ;;  %v1634_v13 = vrot.slane %v1632_v9, 1 }
  0x71   : >> { %2235 = vmatprep.subr.bf16.mxu0 %v2407_v17  ;;  %2228 = vmatpush3.bf16.msra.mxu1 %v2401_v11  ;;  %v1637_v11 = vshll.u32 %v2068_v5, 16 }
  0x72   : >> { %2257 = vmatprep.subr.bf16.mxu1 %v2408_v24  ;;  %v1651_v14 = vrot.slane %v1649_v10, 1  ;;  %v1635_v17 = vor.u32 %v1634_v13, %v1630_v8 }
  0x73   : >> { %1171 = vmatmul.mubr.bf16.vlgmr.msra.gmra.mrb[8].mxu0 %v2402_v12  ;;  %v1646_v12 = vrot.slane %v1644_v7, 1  ;;  %v1639_v15 = vrot.slane %v1637_v11, 1 }
  0x74   : >> { %2236 = vmatpush3.bf16.msra.mxu0 %v2409_v25  ;;  %1384 = vmatmul.mubr.bf16.vlgmr.msra.gmra.mrb[8].mxu1 %v1240_v35 }
  0x75   : >> { %2237 = vmatprep.subr.bf16.mxu0 %v2411_v33  ;;  %2258 = vmatpush3.bf16.msra.mxu1 %v2410_v32  ;;  %v1647_v16 = vor.u32 %v1646_v12, %v1642_v6  ;;  %v1640_v19 = vsel %vm291_vm0, %v1635_v17, %v1639_v15 }
  0x76   : >> { %2259 = vmatprep.subr.bf16.mxu1 %v2412_v36  ;;  %1570 = vmatprep.mubr.bf16.mxu0 %v2441_v2 }
  0x77   : >> { %v1652_v18 = vsel %vm291_vm0, %v1647_v16, %v1651_v14 }
  0x78   : >> { %2238 = vmatpush3.bf16.msra.mxu0 %v2413_v37  ;;  %1783 = vmatprep.mubr.bf16.mxu1 %v1652_v18 }
  0x79   : >> { %2239 = vmatprep.subr.bf16.mxu0 %v2415_v39  ;;  %2260 = vmatpush3.bf16.msra.mxu1 %v2414_v38 }
  0x7a   : >> { %2261 = vmatprep.subr.bf16.mxu1 %v2416_v40 }
  0x7c   : >> { %2240 = vmatpush3.bf16.msra.mxu0 %v2417_v41 }
  0x7d   : >> { %2241 = vmatprep.subr.bf16.mxu0 %v2419_v43  ;;  %2262 = vmatpush3.bf16.msra.mxu1 %v2418_v42 }
  0x7e   : >> { %2263 = vmatprep.subr.bf16.mxu1 %v2420_v44 }
  0x80   : >> { %2242 = vmatpush3.bf16.msra.mxu0 %v2421_v45 }
  0x81   : >> { %2243 = vmatprep.subr.bf16.mxu0 %v2423_v47  ;;  %2264 = vmatpush3.bf16.msra.mxu1 %v2422_v46 }
  0x82   : >> { %2265 = vmatprep.subr.bf16.mxu1 %v2424_v48 }
  0x84   : >> { %2244 = vmatpush3.bf16.msra.mxu0 %v2425_v49 }
  0x85   : >> { %2245 = vmatprep.subr.bf16.mxu0 %v2427_v51  ;;  %2266 = vmatpush3.bf16.msra.mxu1 %v2426_v50 }
  0x86   : >> { %2267 = vmatprep.subr.bf16.mxu1 %v2428_v52 }
  0x88   : >> { %2246 = vmatpush3.bf16.msra.mxu0 %v2429_v53 }
  0x89   : >> { %2247 = vmatprep.subr.bf16.mxu0 %v2431_v55  ;;  %2268 = vmatpush3.bf16.msra.mxu1 %v2430_v54 }
  0x8a   : >> { %2269 = vmatprep.subr.bf16.mxu1 %v2432_v56 }
  0x8c   : >> { %2248 = vmatpush3.bf16.msra.mxu0 %v2433_v57 }
  0x8d   : >> { %2249 = vmatprep.subr.bf16.mxu0 %v2435_v59  ;;  %2270 = vmatpush3.bf16.msra.mxu1 %v2434_v58 }
  0x8e   : >> { %2271 = vmatprep.subr.bf16.mxu1 %v2436_v60 }
  0x90   : >> { %2250 = vmatpush3.bf16.msra.mxu0 %v2437_v61 }
  0x91   : >> { %2272 = vmatpush3.bf16.msra.mxu1 %v2438_v62 }
  0x93   : >> { %1571 = vmatmul.mubr.bf16.vlgmr.msra.gmra.mrb[12].mxu0 %v2439_v63 }
  0x94   : >> { %1784 = vmatmul.mubr.bf16.vlgmr.msra.gmra.mrb[12].mxu1 %v1640_v19 }
 0x106   : >> { %v2119_v26 = vpop.f32.mrb[0].mxu0 }
 0x107   : >> { %v2141_v20 = vpop.f32.mrb[0].mxu1  ;;  %v2120_v27 = vpop.f32.mrb[1].mxu0 }
 0x108   : >> { %v2142_v21 = vpop.f32.mrb[1].mxu1  ;;  %v2121_v28 = vadd.f32 %v2120_v27, %v2119_v26  ;;  %v2122_v29 = vpop.f32.mrb[2].mxu0 }
 0x109   : >> { %v2143_v22 = vadd.f32 %v2142_v21, %v2141_v20  ;;  %v2144_v23 = vpop.f32.mrb[2].mxu1  ;;  %v2123_v30 = vpop.f32.mrb[3].mxu0 }
 0x10a   : >> { %v2145_v24 = vpop.f32.mrb[3].mxu1  ;;  %v2124_v32 = vadd.f32 %v2123_v30, %v2122_v29 }
 0x10b   : >> { %v2146_v25 = vadd.f32 %v2145_v24, %v2144_v23  ;;  %v588_v31 = vadd.f32 %v2143_v22, %v2121_v28 }
 0x10d   : >> { %v591_v33 = vadd.f32 %v2146_v25, %v2124_v32 }
 0x126   : >> { %v2163_v34 = vpop.f32.mrb[4].mxu0 }
 0x127   : >> { %v2164_v35 = vpop.f32.mrb[5].mxu0  ;;  %v2185_v36 = vpop.f32.mrb[4].mxu1 }
 0x128   : >> { %v2165_v37 = vadd.f32 %v2164_v35, %v2163_v34  ;;  %v2166_v38 = vpop.f32.mrb[6].mxu0  ;;  %v2186_v39 = vpop.f32.mrb[5].mxu1 }
 0x129   : >> { %v2167_v40 = vpop.f32.mrb[7].mxu0  ;;  %v2187_v42 = vadd.f32 %v2186_v39, %v2185_v36  ;;  %v2188_v43 = vpop.f32.mrb[6].mxu1 }
 0x12a   : >> { %v779_v41 = vadd.f32 %v2165_v37, %v588_v31  ;;  %v2168_v44 = vadd.f32 %v2167_v40, %v2166_v38  ;;  %v2189_v45 = vpop.f32.mrb[7].mxu1 }
 0x12b   : >> { %v2190_v48 = vadd.f32 %v2189_v45, %v2188_v43 }
 0x12c   : >> { %v992_v46 = vadd.f32 %v2187_v42, %v779_v41  ;;  %v780_v47 = vadd.f32 %v2168_v44, %v591_v33 }
 0x12e   : >> { %v993_v49 = vadd.f32 %v2190_v48, %v780_v47 }
 0x146   : >> { %v2207_v50 = vpop.f32.mrb[8].mxu0 }
 0x147   : >> { %v2208_v51 = vpop.f32.mrb[9].mxu0  ;;  %v2229_v57 = vpop.f32.mrb[8].mxu1 }
 0x148   : >> { %v2209_v52 = vadd.f32 %v2208_v51, %v2207_v50  ;;  %v2210_v53 = vpop.f32.mrb[10].mxu0  ;;  %v2230_v58 = vpop.f32.mrb[9].mxu1 }
 0x149   : >> { %v2211_v54 = vpop.f32.mrb[11].mxu0  ;;  %v2231_v60 = vadd.f32 %v2230_v58, %v2229_v57  ;;  %v2232_v61 = vpop.f32.mrb[10].mxu1 }
 0x14a   : >> { %v1179_v55 = vadd.f32 %v2209_v52, %v992_v46  ;;  %v2212_v56 = vadd.f32 %v2211_v54, %v2210_v53  ;;  %v2233_v62 = vpop.f32.mrb[11].mxu1 }
 0x14b   : >> { %v2234_v2 = vadd.f32 %v2233_v62, %v2232_v61 }
 0x14c   : >> { %v1180_v59 = vadd.f32 %v2212_v56, %v993_v49  ;;  %v1392_v63 = vadd.f32 %v2231_v60, %v1179_v55 }
 0x14e   : >> { %v1393_v3 = vadd.f32 %v2234_v2, %v1180_v59 }
 0x166   : >> { %v2251_v4 = vpop.f32.mrb[12].mxu0 }
 0x167   : >> { %v2252_v5 = vpop.f32.mrb[13].mxu0  ;;  %v2273_v12 = vpop.f32.mrb[12].mxu1 }
 0x168   : >> { %v2253_v6 = vadd.f32 %v2252_v5, %v2251_v4  ;;  %v2254_v7 = vpop.f32.mrb[14].mxu0  ;;  %v2274_v13 = vpop.f32.mrb[13].mxu1 }
 0x169   : >> { %v2255_v8 = vpop.f32.mrb[15].mxu0  ;;  %v2275_v14 = vadd.f32 %v2274_v13, %v2273_v12  ;;  %v2276_v15 = vpop.f32.mrb[14].mxu1 }
 0x16a   : >> { %v1579_v9 = vadd.f32 %v2253_v6, %v1392_v63  ;;  %v2256_v10 = vadd.f32 %v2255_v8, %v2254_v7  ;;  %v2277_v16 = vpop.f32.mrb[15].mxu1 }
 0x16b   : >> { %v2278_v18 = vadd.f32 %v2277_v16, %v2276_v15 }
 0x16c   : >> { %v1580_v11 = vadd.f32 %v2256_v10, %v1393_v3  ;;  %v1792_v17 = vadd.f32 %v2275_v14, %v1579_v9 }
 0x16e   : >> { %v1800_v19 = vmul.f32 %v2496_v0, %v1792_v17  ;;  %v1793_v20 = vadd.f32 %v2278_v18, %v1580_v11 }
 0x170   : >> { %v1808_v21 = vadd.f32 %v2501_v1, %v1800_v19  ;;  %v1801_v22 = vmul.f32 %v2496_v0, %v1793_v20 }
 0x172   : >> { %v1812_v23 = vmul.f32 0.2, %v1808_v21  ;;  %v1809_v24 = vadd.f32 %v2501_v1, %v1801_v22  ;;  %vm1810_vm1 = vcmp.gt.f32.partialorder %v1808_v21, 0.0 }
 0x173   : > { %205 = sbr.rel (!%p203_p4) target bundleno = 17 (0x11), region = 78 }
 0x174   : >> { %vm1811_vm2 = vcmp.gt.f32.partialorder %v1809_v24, 0.0  ;;  %v1813_v25 = vmul.f32 0.2, %v1809_v24  ;;  %v1814_v26 = vsel %vm1810_vm1, %v1808_v21, %v1812_v23 }
 0x176   : >> { %v1815_v27 = vsel %vm1811_vm2, %v1809_v24, %v1813_v25 }
 0x177   : >> { %v2101_v28 = vpack.c.bf16 %v1815_v27, %v1814_v26 }
 0x179   : >> { %2102 = vst [vmem:[%s1825_s7] sm:$0xff] %v2101_v28  }
 0x17a PF: > { %s14_s15 = sadd.s32 1, %s2454_s15  }
 0x17b   : > { %p11_p5 = scmp.ge.s32.totalorder %s14_s15, 4  }
 0x17d   :  { %13 = sbr.rel (!%p11_p5) target bundleno = 1 (0x1), region = 89 }

// kernel: discriminator_forward.7
= control target key start
LH: loop header
LB: loop body
LE: loop exit
PB: predicated region body
PF: predicated region fallthrough
CT: control target
= control target key end

     0   :  { %s3143_s15 = smov 0   ;;  %s4008_s0 = inlined_call_operand.vmem [shape: bf16[2,18,9,256], index: 0, kind: input, shape index: {}]   ;;  %s4009_s1 = inlined_call_operand.vmem [shape: bf16[2048,256], index: 1, kind: input, shape index: {}]   ;;  %s4010_s2 = inlined_call_operand.vmem [shape: f32[1,256], index: 2, kind: input, shape index: {}]   ;;  %s4011_s3 = inlined_call_operand.vmem [shape: f32[1,256], index: 3, kind: input, shape index: {}]   ;;  %s4012_s4 = inlined_call_operand.vmem [shape: bf16[2,8,8,256], index: 4, kind: output, shape index: {}]  }
   0x1 LB: > { %s2349_s16 = sadd.s32 4294967295, %s3112_s15   ;;  %p2353_p0 = scmp.ge.s32.totalorder %s3112_s15, 1  ;;  %s3112_s15 = sphi %s3143_s15, %s14_s15  }
   0x2   : > { %p162_p1 = scmp.lt.s32.totalorder %s3112_s15, 3 }
   0x4   : > { %p163_p2 = pnand %p2353_p0, %p162_p1 }
   0x5   : > { %p188_p3 = scmp.lt.s32.totalorder (!%p163_p2), %s2349_s16, 1  ;;  %v3154_v0 = vld [vmem:[%s4010_s2] sm:$0x3] (!%p163_p2)  ;;  %s3171_s29 = smov (!%p163_p2), 0  }
   0x6   : > { %166 = sbr.rel (%p163_p2) target bundleno = 500 (0x1f4), region = 36  ;;  %v3159_v1 = vld [vmem:[%s4011_s3] sm:$0x3] (!%p163_p2) }
   0xd   : > { %s4014_s16 = smov (!%p188_p3, %s2349_s16), 1 }
   0xe   : > { %s2685_s21 = smul.u32 288, %s4014_s16  ;;  %s2651_s22 = sshll.u32 %s4014_s16, 6 }
   0xf   : > { %s3164_s25 = scalar_lea.vmem %s4012_s4, %s2651_s22 }
  0x10   : > { %s3169_s28 = scalar_lea.vmem %s4008_s0, %s2685_s21 }
  0x11 LB: >> { %v2702_v2 = vld [vmem:[%s4009_s1 + $0x104] ss:$8 sps:$4 sm:$0xff]   ;;  %v2706_v4 = vld [vmem:[%s4009_s1 + $0x100] ss:$8 sps:$4 sm:$0xff]   ;;  %v2708_v6 = vld [vmem:[%s4009_s1 + $0x114] ss:$8 sps:$4 sm:$0xff]   ;;  %s3116_s29 = sphi %s3171_s29, %s205_s29  }
  0x12   : >> { %v2704_v3 = vld [vmem:[%s4009_s1 + $0x404] ss:$8 sps:$4 sm:$0xff]   ;;  %460 = vmatprep.subr.bf16.mxu1 %v2702_v2  ;;  %v2707_v5 = vld [vmem:[%s4009_s1 + $0x400] ss:$8 sps:$4 sm:$0xff]   ;;  %v2710_v7 = vld [vmem:[%s4009_s1 + $0x414] ss:$8 sps:$4 sm:$0xff]  }
  0x13   : >> { %1418 = vmatprep.subr.bf16.mxu0 %v2704_v3  ;;  %461 = vmatpush1.bf16.msra.mxu1 %v2706_v4  ;;  %v2712_v8 = vld [vmem:[%s4009_s1 + $0x110] ss:$8 sps:$4 sm:$0xff]   ;;  %v2714_v10 = vld [vmem:[%s4009_s1 + $0x124] ss:$8 sps:$4 sm:$0xff]   ;;  %v2718_v12 = vld [vmem:[%s4009_s1 + $0x120] ss:$8 sps:$4 sm:$0xff]  }
  0x14   : >> { %1419 = vmatpush1.bf16.msra.mxu0 %v2707_v5  ;;  %462 = vmatprep.subr.bf16.mxu1 %v2708_v6  ;;  %v2713_v9 = vld [vmem:[%s4009_s1 + $0x410] ss:$8 sps:$4 sm:$0xff]   ;;  %v2716_v11 = vld [vmem:[%s4009_s1 + $0x424] ss:$8 sps:$4 sm:$0xff]   ;;  %v2719_v13 = vld [vmem:[%s4009_s1 + $0x420] ss:$8 sps:$4 sm:$0xff]  }
  0x15   : >> { %1420 = vmatprep.subr.bf16.mxu0 %v2710_v7  ;;  %v2720_v14 = vld [vmem:[%s4009_s1 + $0x134] ss:$8 sps:$4 sm:$0xff]   ;;  %v2724_v16 = vld [vmem:[%s4009_s1 + $0x130] ss:$8 sps:$4 sm:$0xff]   ;;  %v2726_v18 = vld [vmem:[%s4009_s1 + $0x144] ss:$8 sps:$4 sm:$0xff]  }
  0x16   : >> { %v2722_v15 = vld [vmem:[%s4009_s1 + $0x434] ss:$8 sps:$4 sm:$0xff]   ;;  %v2725_v17 = vld [vmem:[%s4009_s1 + $0x430] ss:$8 sps:$4 sm:$0xff]   ;;  %v2728_v19 = vld [vmem:[%s4009_s1 + $0x444] ss:$8 sps:$4 sm:$0xff]  }
  0x17   : >> { %463 = vmatpush1.bf16.msra.mxu1 %v2712_v8  ;;  %v2730_v20 = vld [vmem:[%s4009_s1 + $0x140] ss:$8 sps:$4 sm:$0xff]   ;;  %v2732_v22 = vld [vmem:[%s4009_s1 + $0x154] ss:$8 sps:$4 sm:$0xff]   ;;  %v2736_v24 = vld [vmem:[%s4009_s1 + $0x150] ss:$8 sps:$4 sm:$0xff]  }
  0x18   : >> { %1421 = vmatpush1.bf16.msra.mxu0 %v2713_v9  ;;  %464 = vmatprep.subr.bf16.mxu1 %v2714_v10  ;;  %v2731_v21 = vld [vmem:[%s4009_s1 + $0x440] ss:$8 sps:$4 sm:$0xff]   ;;  %v2734_v23 = vld [vmem:[%s4009_s1 + $0x454] ss:$8 sps:$4 sm:$0xff]   ;;  %v2737_v25 = vld [vmem:[%s4009_s1 + $0x450] ss:$8 sps:$4 sm:$0xff]  }
  0x19   : >> { %1422 = vmatprep.subr.bf16.mxu0 %v2716_v11  ;;  %v2738_v26 = vld [vmem:[%s4009_s1 + $0x164] ss:$8 sps:$4 sm:$0xff]   ;;  %v2742_v28 = vld [vmem:[%s4009_s1 + $0x160] ss:$8 sps:$4 sm:$0xff]   ;;  %v2744_v30 = vld [vmem:[%s4009_s1 + $0x174] ss:$8 sps:$4 sm:$0xff]  }
  0x1a   : >> { %v2740_v27 = vld [vmem:[%s4009_s1 + $0x464] ss:$8 sps:$4 sm:$0xff]   ;;  %v2743_v29 = vld [vmem:[%s4009_s1 + $0x460] ss:$8 sps:$4 sm:$0xff]   ;;  %v2746_v31 = vld [vmem:[%s4009_s1 + $0x474] ss:$8 sps:$4 sm:$0xff]  }
  0x1b   : >> { %465 = vmatpush1.bf16.msra.mxu1 %v2718_v12  ;;  %v2748_v32 = vld [vmem:[%s4009_s1 + $0x170] ss:$8 sps:$4 sm:$0xff]   ;;  %v2750_v34 = vld [vmem:[%s4009_s1 + $0x184] ss:$8 sps:$4 sm:$0xff]   ;;  %v2754_v36 = vld [vmem:[%s4009_s1 + $0x180] ss:$8 sps:$4 sm:$0xff]  }
  0x1c   : >> { %1423 = vmatpush1.bf16.msra.mxu0 %v2719_v13  ;;  %466 = vmatprep.subr.bf16.mxu1 %v2720_v14  ;;  %v2749_v33 = vld [vmem:[%s4009_s1 + $0x470] ss:$8 sps:$4 sm:$0xff]   ;;  %v2752_v35 = vld [vmem:[%s4009_s1 + $0x484] ss:$8 sps:$4 sm:$0xff]   ;;  %v2755_v37 = vld [vmem:[%s4009_s1 + $0x480] ss:$8 sps:$4 sm:$0xff]  }
  0x1d   : >> { %1424 = vmatprep.subr.bf16.mxu0 %v2722_v15  ;;  %v2756_v38 = vld [vmem:[%s4009_s1 + $0x194] ss:$8 sps:$4 sm:$0xff]   ;;  %v2760_v40 = vld [vmem:[%s4009_s1 + $0x190] ss:$8 sps:$4 sm:$0xff]   ;;  %v2762_v42 = vld [vmem:[%s4009_s1 + $0x1a4] ss:$8 sps:$4 sm:$0xff]  }
  0x1e   : >> { %v2758_v39 = vld [vmem:[%s4009_s1 + $0x494] ss:$8 sps:$4 sm:$0xff]   ;;  %v2761_v41 = vld [vmem:[%s4009_s1 + $0x490] ss:$8 sps:$4 sm:$0xff]   ;;  %s2653_s21 = sshll.u32 %s3116_s29, 5  ;;  %s2658_s26 = sshll.u32 %s3116_s29, 3 }
  0x1f   : >> { %467 = vmatpush1.bf16.msra.mxu1 %v2724_v16  ;;  %v2764_v43 = vld [vmem:[%s4009_s1 + $0x4a4] ss:$8 sps:$4 sm:$0xff]   ;;  %v2766_v44 = vld [vmem:[%s4009_s1 + $0x1a0] ss:$8 sps:$4 sm:$0xff]   ;;  %s3310_s5 = scalar_lea.vmem %s3169_s28, %s2653_s21  ;;  %v2768_v46 = vld [vmem:[%s4009_s1 + $0x1b4] ss:$8 sps:$4 sm:$0xff]   ;;  %s2271_s27 = scalar_lea.vmem %s3164_s25, %s2658_s26 }
  0x20   : >> { %1425 = vmatpush1.bf16.msra.mxu0 %v2725_v17  ;;  %468 = vmatprep.subr.bf16.mxu1 %v2726_v18  ;;  %v2767_v45 = vld [vmem:[%s4009_s1 + $0x4a0] ss:$8 sps:$4 sm:$0xff]   ;;  %v2770_v47 = vld [vmem:[%s4009_s1 + $0x4b4] ss:$8 sps:$4 sm:$0xff]   ;;  %v2772_v48 = vld [vmem:[%s4009_s1 + $0x1b0] ss:$8 sps:$4 sm:$0xff]  }
  0x21   : >> { %1426 = vmatprep.subr.bf16.mxu0 %v2728_v19  ;;  %v3322_v49 = vld [vmem:[%s3310_s5] sm:$0xff]  ;;  %v243_v50 = vld [vmem:[%s3310_s5 + $0x8] sm:$0x11]  ;;  %v2773_v51 = vld [vmem:[%s4009_s1 + $0x4b0] ss:$8 sps:$4 sm:$0xff]   ;;  %s205_s29 = sadd.s32 1, %s3116_s29  }
  0x22   : >> { %v2774_v52 = vld [vmem:[%s4009_s1 + $0x1c4] ss:$8 sps:$4 sm:$0xff]   ;;  %v2361_v53 = vcombine.high %v3322_v49, %v243_v50  ;;  %v2778_v59 = vld [vmem:[%s4009_s1 + $0x1c0] ss:$8 sps:$4 sm:$0xff]   ;;  %v2780_v62 = vld [vmem:[%s4009_s1 + $0x1d4] ss:$8 sps:$4 sm:$0xff]   ;;  %v2360_v4 = vcombine.low %v3322_v49, %v243_v50 }
  0x23   : >> { %469 = vmatpush1.bf16.msra.mxu1 %v2730_v20  ;;  %v3333_v54 = vld [vmem:[%s3310_s5 + $0x20] sm:$0xff]  ;;  %v2782_v63 = vld [vmem:[%s4009_s1 + $0x4d4] ss:$8 sps:$4 sm:$0xff]   ;;  %v2784_v3 = vld [vmem:[%s4009_s1 + $0x1d0] ss:$8 sps:$4 sm:$0xff]   ;;  %p202_p4 = scmp.ge.s32.totalorder %s205_s29, 8  }
  0x24   : >> { %1427 = vmatpush1.bf16.msra.mxu0 %v2731_v21  ;;  %470 = vmatprep.subr.bf16.mxu1 %v2732_v22  ;;  %v2776_v55 = vld [vmem:[%s4009_s1 + $0x4c4] ss:$8 sps:$4 sm:$0xff]   ;;  %v2505_v56 = vcombine.high %v3333_v54, %v3333_v54  ;;  %v292_v57 = vshrl.u32 %v2361_v53, 16  ;;  %v294_v58 = vshll.u32 %v2361_v53, 16  ;;  %v2779_v60 = vld [vmem:[%s4009_s1 + $0x4c0] ss:$8 sps:$4 sm:$0xff]   ;;  %v2504_v20 = vcombine.low %v3333_v54, %v3333_v54 }
  0x25   : >> { %1428 = vmatprep.subr.bf16.mxu0 %v2734_v23  ;;  %v2785_v5 = vld [vmem:[%s4009_s1 + $0x4d0] ss:$8 sps:$4 sm:$0xff]   ;;  %v2786_v6 = vld [vmem:[%s4009_s1 + $0x1e4] ss:$8 sps:$4 sm:$0xff]   ;;  %v2790_v8 = vld [vmem:[%s4009_s1 + $0x1e0] ss:$8 sps:$4 sm:$0xff]  }
  0x26   : >> { %1450 = vmatprep.mubr.bf16.mxu0 %v2505_v56  ;;  %v296_v61 = vrot.slane %v294_v58, 1  ;;  %v2788_v7 = vld [vmem:[%s4009_s1 + $0x4e4] ss:$8 sps:$4 sm:$0xff]   ;;  %v287_v9 = vshll.u32 %v2360_v4, 16  ;;  %v2791_v10 = vld [vmem:[%s4009_s1 + $0x4e0] ss:$8 sps:$4 sm:$0xff]  }
  0x27   : >> { %471 = vmatpush1.bf16.msra.mxu1 %v2736_v24  ;;  %v2792_v11 = vld [vmem:[%s4009_s1 + $0x1f4] ss:$8 sps:$4 sm:$0xff]   ;;  %v2796_v13 = vld [vmem:[%s4009_s1 + $0x1f0] ss:$8 sps:$4 sm:$0xff]   ;;  %v285_v14 = vshrl.u32 %v2360_v4, 16 }
  0x28   : >> { %1429 = vmatpush1.bf16.msra.mxu0 %v2737_v25  ;;  %472 = vmatprep.subr.bf16.mxu1 %v2738_v26  ;;  %v297_v2 = vor.u32 %v296_v61, %v292_v57  ;;  %v2794_v12 = vld [vmem:[%s4009_s1 + $0x4f4] ss:$8 sps:$4 sm:$0xff]   ;;  %v289_v15 = vrot.slane %v287_v9, 1  ;;  %v2797_v16 = vld [vmem:[%s4009_s1 + $0x4f0] ss:$8 sps:$4 sm:$0xff]   ;;  %v2395_v25 = vcombine.high %v3322_v49, %v3322_v49 }
  0x29   : >> { %1430 = vmatprep.subr.bf16.mxu0 %v2740_v27  ;;  %v2802_v17 = vld [vmem:[%s4009_s1 + $0x4] ss:$8 sps:$4 sm:$0xff]   ;;  %v2800_v19 = vld [vmem:[%s4009_s1] ss:$8 sps:$4 sm:$0xff]   ;;  %v2810_v23 = vld [vmem:[%s4009_s1 + $0x14] ss:$8 sps:$4 sm:$0xff]  }
  0x2a   : >> { %492 = vmatprep.mubr.bf16.mxu1 %v297_v2  ;;  %v2807_v18 = vld [vmem:[%s4009_s1 + $0x504] ss:$8 sps:$4 sm:$0xff]   ;;  %v290_v21 = vor.u32 %v289_v15, %v285_v14  ;;  %v2805_v22 = vld [vmem:[%s4009_s1 + $0x500] ss:$8 sps:$4 sm:$0xff]   ;;  %v2813_v24 = vld [vmem:[%s4009_s1 + $0x514] ss:$8 sps:$4 sm:$0xff]  }
  0x2b   : >> { %473 = vmatpush1.bf16.msra.mxu1 %v2742_v28  ;;  %v2808_v26 = vld [vmem:[%s4009_s1 + $0x10] ss:$8 sps:$4 sm:$0xff]   ;;  %v2816_v28 = vld [vmem:[%s4009_s1 + $0x24] ss:$8 sps:$4 sm:$0xff]   ;;  %v2846_v50 = vld [vmem:[%s4009_s1 + $0x74] ss:$8 sps:$4 sm:$0xff]  }
  0x2c   : >> { %1431 = vmatpush1.bf16.msra.mxu0 %v2743_v29  ;;  %474 = vmatprep.subr.bf16.mxu1 %v2744_v30  ;;  %v2811_v27 = vld [vmem:[%s4009_s1 + $0x510] ss:$8 sps:$4 sm:$0xff]   ;;  %v2819_v29 = vld [vmem:[%s4009_s1 + $0x524] ss:$8 sps:$4 sm:$0xff]   ;;  %v2814_v30 = vld [vmem:[%s4009_s1 + $0x20] ss:$8 sps:$4 sm:$0xff]  }
  0x2d   : >> { %1432 = vmatprep.subr.bf16.mxu0 %v2746_v31  ;;  %v2817_v31 = vld [vmem:[%s4009_s1 + $0x520] ss:$8 sps:$4 sm:$0xff]   ;;  %v2844_v53 = vld [vmem:[%s4009_s1 + $0x70] ss:$8 sps:$4 sm:$0xff]   ;;  %v2852_v58 = vld [vmem:[%s4009_s1 + $0x84] ss:$8 sps:$4 sm:$0xff]  }
  0x2e   : >> { %v2850_v61 = vld [vmem:[%s4009_s1 + $0x80] ss:$8 sps:$4 sm:$0xff]   ;;  %v2858_v2 = vld [vmem:[%s4009_s1 + $0x94] ss:$8 sps:$4 sm:$0xff]   ;;  %v2856_v4 = vld [vmem:[%s4009_s1 + $0x90] ss:$8 sps:$4 sm:$0xff]  }
  0x2f   : >> { %475 = vmatpush1.bf16.msra.mxu1 %v2748_v32  ;;  %v2822_v32 = vld [vmem:[%s4009_s1 + $0x34] ss:$8 sps:$4 sm:$0xff]   ;;  %v2865_v9 = vld [vmem:[%s4009_s1 + $0x5a0] ss:$8 sps:$4 sm:$0xff]   ;;  %v2876_v14 = vld [vmem:[%s4009_s1 + $0xc4] ss:$8 sps:$4 sm:$0xff]  }
  0x30   : >> { %1433 = vmatpush1.bf16.msra.mxu0 %v2749_v33  ;;  %476 = vmatprep.subr.bf16.mxu1 %v2750_v34  ;;  %v2825_v33 = vld [vmem:[%s4009_s1 + $0x534] ss:$8 sps:$4 sm:$0xff]   ;;  %v2820_v34 = vld [vmem:[%s4009_s1 + $0x30] ss:$8 sps:$4 sm:$0xff]   ;;  %v2879_v15 = vld [vmem:[%s4009_s1 + $0x5c4] ss:$8 sps:$4 sm:$0xff]  }
  0x31   : >> { %1434 = vmatprep.subr.bf16.mxu0 %v2752_v35  ;;  %v2823_v35 = vld [vmem:[%s4009_s1 + $0x530] ss:$8 sps:$4 sm:$0xff]  }
  0x33   : >> { %477 = vmatpush1.bf16.msra.mxu1 %v2754_v36  ;;  %v2828_v36 = vld [vmem:[%s4009_s1 + $0x44] ss:$8 sps:$4 sm:$0xff]  }
  0x34   : >> { %1435 = vmatpush1.bf16.msra.mxu0 %v2755_v37  ;;  %478 = vmatprep.subr.bf16.mxu1 %v2756_v38  ;;  %v2831_v37 = vld [vmem:[%s4009_s1 + $0x544] ss:$8 sps:$4 sm:$0xff]   ;;  %v2826_v38 = vld [vmem:[%s4009_s1 + $0x40] ss:$8 sps:$4 sm:$0xff]  }
  0x35   : >> { %1436 = vmatprep.subr.bf16.mxu0 %v2758_v39  ;;  %v2829_v39 = vld [vmem:[%s4009_s1 + $0x540] ss:$8 sps:$4 sm:$0xff]  }
  0x37   : >> { %479 = vmatpush1.bf16.msra.mxu1 %v2760_v40  ;;  %v2834_v40 = vld [vmem:[%s4009_s1 + $0x54] ss:$8 sps:$4 sm:$0xff]  }
  0x38   : >> { %1437 = vmatpush1.bf16.msra.mxu0 %v2761_v41  ;;  %480 = vmatprep.subr.bf16.mxu1 %v2762_v42  ;;  %v2837_v41 = vld [vmem:[%s4009_s1 + $0x554] ss:$8 sps:$4 sm:$0xff]   ;;  %v2832_v42 = vld [vmem:[%s4009_s1 + $0x50] ss:$8 sps:$4 sm:$0xff]  }
  0x39   : >> { %1438 = vmatprep.subr.bf16.mxu0 %v2764_v43  ;;  %v2835_v43 = vld [vmem:[%s4009_s1 + $0x550] ss:$8 sps:$4 sm:$0xff]  }
  0x3b   : >> { %481 = vmatpush1.bf16.msra.mxu1 %v2766_v44  ;;  %v2840_v44 = vld [vmem:[%s4009_s1 + $0x64] ss:$8 sps:$4 sm:$0xff]  }
  0x3c   : >> { %1439 = vmatpush1.bf16.msra.mxu0 %v2767_v45  ;;  %482 = vmatprep.subr.bf16.mxu1 %v2768_v46  ;;  %v2843_v45 = vld [vmem:[%s4009_s1 + $0x564] ss:$8 sps:$4 sm:$0xff]   ;;  %v2838_v46 = vld [vmem:[%s4009_s1 + $0x60] ss:$8 sps:$4 sm:$0xff]  }
  0x3d   : >> { %1440 = vmatprep.subr.bf16.mxu0 %v2770_v47  ;;  %v2841_v47 = vld [vmem:[%s4009_s1 + $0x560] ss:$8 sps:$4 sm:$0xff]  }
  0x3f   : >> { %483 = vmatpush1.bf16.msra.mxu1 %v2772_v48  ;;  %v2539_v48 = vld [vmem:[%s3310_s5 + $0x28] sm:$0x11] }
  0x40   : >> { %1441 = vmatpush1.bf16.msra.mxu0 %v2773_v51  ;;  %484 = vmatprep.subr.bf16.mxu1 %v2774_v52  ;;  %v2849_v51 = vld [vmem:[%s4009_s1 + $0x574] ss:$8 sps:$4 sm:$0xff]   ;;  %v2541_v52 = vcombine.high %v3333_v54, %v2539_v48 }
  0x41   : >> { %1442 = vmatprep.subr.bf16.mxu0 %v2776_v55  ;;  %v2847_v55 = vld [vmem:[%s4009_s1 + $0x570] ss:$8 sps:$4 sm:$0xff]  }
  0x42   : >> { %v1511_v56 = vshrl.u32 %v2541_v52, 16  ;;  %v1513_v57 = vshll.u32 %v2541_v52, 16  ;;  %v2925_v52 = vld [vmem:[%s4009_s1 + $0x634] ss:$8 sps:$4 sm:$0xff]  }
  0x43   : >> { %485 = vmatpush1.bf16.msra.mxu1 %v2778_v59  ;;  %v2855_v59 = vld [vmem:[%s4009_s1 + $0x584] ss:$8 sps:$4 sm:$0xff]  }
  0x44   : >> { %1443 = vmatpush1.bf16.msra.mxu0 %v2779_v60  ;;  %486 = vmatprep.subr.bf16.mxu1 %v2780_v62  ;;  %v1515_v60 = vrot.slane %v1513_v57, 1  ;;  %v2853_v62 = vld [vmem:[%s4009_s1 + $0x580] ss:$8 sps:$4 sm:$0xff]   ;;  %v2931_v57 = vld [vmem:[%s4009_s1 + $0x644] ss:$8 sps:$4 sm:$0xff]  }
  0x45   : >> { %1444 = vmatprep.subr.bf16.mxu0 %v2782_v63 }
  0x46   : >> { %v1516_v63 = vor.u32 %v1515_v60, %v1511_v56  ;;  %v2928_v56 = vld [vmem:[%s4009_s1 + $0x244] ss:$8 sps:$4 sm:$0xff]   ;;  %v2934_v60 = vld [vmem:[%s4009_s1 + $0x254] ss:$8 sps:$4 sm:$0xff]  }
  0x47   : >> { %487 = vmatpush1.bf16.msra.mxu1 %v2784_v3  ;;  %v2861_v3 = vld [vmem:[%s4009_s1 + $0x594] ss:$8 sps:$4 sm:$0xff]  }
  0x48   : >> { %1445 = vmatpush1.bf16.msra.mxu0 %v2785_v5  ;;  %488 = vmatprep.subr.bf16.mxu1 %v2786_v6  ;;  %v2859_v5 = vld [vmem:[%s4009_s1 + $0x590] ss:$8 sps:$4 sm:$0xff]   ;;  %v2864_v6 = vld [vmem:[%s4009_s1 + $0xa4] ss:$8 sps:$4 sm:$0xff]  }
  0x49   : >> { %1446 = vmatprep.subr.bf16.mxu0 %v2788_v7  ;;  %v2867_v7 = vld [vmem:[%s4009_s1 + $0x5a4] ss:$8 sps:$4 sm:$0xff]  }
  0x4b   : >> { %489 = vmatpush1.bf16.msra.mxu1 %v2790_v8  ;;  %v2862_v8 = vld [vmem:[%s4009_s1 + $0xa0] ss:$8 sps:$4 sm:$0xff]  }
  0x4c   : >> { %1447 = vmatpush1.bf16.msra.mxu0 %v2791_v10  ;;  %490 = vmatprep.subr.bf16.mxu1 %v2792_v11  ;;  %v2870_v10 = vld [vmem:[%s4009_s1 + $0xb4] ss:$8 sps:$4 sm:$0xff]  }
  0x4d   : >> { %1448 = vmatprep.subr.bf16.mxu0 %v2794_v12  ;;  %v2873_v11 = vld [vmem:[%s4009_s1 + $0x5b4] ss:$8 sps:$4 sm:$0xff]   ;;  %v2868_v12 = vld [vmem:[%s4009_s1 + $0xb0] ss:$8 sps:$4 sm:$0xff]  }
  0x4f   : >> { %491 = vmatpush1.bf16.msra.mxu1 %v2796_v13  ;;  %v2871_v13 = vld [vmem:[%s4009_s1 + $0x5b0] ss:$8 sps:$4 sm:$0xff]  }
  0x50   : >> { %1449 = vmatpush1.bf16.msra.mxu0 %v2797_v16  ;;  %665 = vmatprep.subr.bf16.mxu1 %v2802_v17  ;;  %v2874_v16 = vld [vmem:[%s4009_s1 + $0xc0] ss:$8 sps:$4 sm:$0xff]  }
  0x51   : >> { %1679 = vmatprep.subr.bf16.mxu0 %v2807_v18  ;;  %v2877_v17 = vld [vmem:[%s4009_s1 + $0x5c0] ss:$8 sps:$4 sm:$0xff]   ;;  %v2882_v18 = vld [vmem:[%s4009_s1 + $0xd4] ss:$8 sps:$4 sm:$0xff]  }
  0x52   : >> { %493 = vmatmul.mubr.bf16.vlgmr.msra.gmra.mrb[0].mxu1 %v290_v21  ;;  %v2883_v21 = vld [vmem:[%s4009_s1 + $0x5d0] ss:$8 sps:$4 sm:$0xff]  }
  0x53   : >> { %1451 = vmatmul.mubr.bf16.vlgmr.msra.gmra.mrb[0].mxu0 %v2504_v20  ;;  %666 = vmatpush1.bf16.msra.mxu1 %v2800_v19  ;;  %v2885_v19 = vld [vmem:[%s4009_s1 + $0x5d4] ss:$8 sps:$4 sm:$0xff]   ;;  %v2880_v20 = vld [vmem:[%s4009_s1 + $0xd0] ss:$8 sps:$4 sm:$0xff]  }
  0x54   : >> { %1680 = vmatpush1.bf16.msra.mxu0 %v2805_v22  ;;  %667 = vmatprep.subr.bf16.mxu1 %v2810_v23  ;;  %v2540_v22 = vcombine.low %v3333_v54, %v2539_v48  ;;  %v2888_v23 = vld [vmem:[%s4009_s1 + $0xe4] ss:$8 sps:$4 sm:$0xff]   ;;  %v2889_v54 = vld [vmem:[%s4009_s1 + $0x5e0] ss:$8 sps:$4 sm:$0xff]  }
  0x55   : >> { %1681 = vmatprep.subr.bf16.mxu0 %v2813_v24  ;;  %697 = vmatprep.mubr.bf16.mxu1 %v2395_v25  ;;  %v2891_v24 = vld [vmem:[%s4009_s1 + $0x5e4] ss:$8 sps:$4 sm:$0xff]   ;;  %v2886_v25 = vld [vmem:[%s4009_s1 + $0xe0] ss:$8 sps:$4 sm:$0xff]  }
  0x56   : >> { %1711 = vmatprep.mubr.bf16.mxu0 %v1516_v63  ;;  %v2914_v48 = vld [vmem:[%s4009_s1 + $0x220] ss:$8 sps:$4 sm:$0xff]   ;;  %v2935_v63 = vld [vmem:[%s4009_s1 + $0x650] ss:$8 sps:$4 sm:$0xff]  }
  0x57   : >> { %668 = vmatpush1.bf16.msra.mxu1 %v2808_v26  ;;  %v1506_v26 = vshll.u32 %v2540_v22, 16 }
  0x58   : >> { %1682 = vmatpush1.bf16.msra.mxu0 %v2811_v27  ;;  %669 = vmatprep.subr.bf16.mxu1 %v2816_v28  ;;  %v2894_v27 = vld [vmem:[%s4009_s1 + $0xf4] ss:$8 sps:$4 sm:$0xff]  }
  0x59   : >> { %1683 = vmatprep.subr.bf16.mxu0 %v2819_v29  ;;  %v2897_v28 = vld [vmem:[%s4009_s1 + $0x5f4] ss:$8 sps:$4 sm:$0xff]   ;;  %v2892_v29 = vld [vmem:[%s4009_s1 + $0xf0] ss:$8 sps:$4 sm:$0xff]  }
  0x5b   : >> { %670 = vmatpush1.bf16.msra.mxu1 %v2814_v30  ;;  %v2895_v30 = vld [vmem:[%s4009_s1 + $0x5f0] ss:$8 sps:$4 sm:$0xff]  }
  0x5c   : >> { %1684 = vmatpush1.bf16.msra.mxu0 %v2817_v31  ;;  %671 = vmatprep.subr.bf16.mxu1 %v2822_v32  ;;  %v1504_v31 = vshrl.u32 %v2540_v22, 16  ;;  %v1508_v32 = vrot.slane %v1506_v26, 1  ;;  %v2970_v22 = vld [vmem:[%s4009_s1 + $0x2b4] ss:$8 sps:$4 sm:$0xff]   ;;  %v2979_v26 = vld [vmem:[%s4009_s1 + $0x6c4] ss:$8 sps:$4 sm:$0xff]  }
  0x5d   : >> { %1685 = vmatprep.subr.bf16.mxu0 %v2825_v33  ;;  %v2901_v33 = vld [vmem:[%s4009_s1 + $0x204] ss:$8 sps:$4 sm:$0xff]  }
  0x5f   : >> { %672 = vmatpush1.bf16.msra.mxu1 %v2820_v34  ;;  %v2906_v34 = vld [vmem:[%s4009_s1 + $0x604] ss:$8 sps:$4 sm:$0xff]  }
  0x60   : >> { %1686 = vmatpush1.bf16.msra.mxu0 %v2823_v35  ;;  %673 = vmatprep.subr.bf16.mxu1 %v2828_v36  ;;  %v2899_v35 = vld [vmem:[%s4009_s1 + $0x200] ss:$8 sps:$4 sm:$0xff]  }
  0x61   : >> { %1687 = vmatprep.subr.bf16.mxu0 %v2831_v37  ;;  %v2904_v36 = vld [vmem:[%s4009_s1 + $0x600] ss:$8 sps:$4 sm:$0xff]   ;;  %v2394_v37 = vcombine.low %v3322_v49, %v3322_v49  ;;  %v2908_v49 = vld [vmem:[%s4009_s1 + $0x210] ss:$8 sps:$4 sm:$0xff]  }
  0x63   : >> { %674 = vmatpush1.bf16.msra.mxu1 %v2826_v38  ;;  %v1509_v38 = vor.u32 %v1508_v32, %v1504_v31  ;;  %v3757_v31 = vld [vmem:[%s3310_s5 + $0x18] sm:$0x11] }
  0x64   : >> { %1688 = vmatpush1.bf16.msra.mxu0 %v2829_v39  ;;  %675 = vmatprep.subr.bf16.mxu1 %v2834_v40  ;;  %v2910_v39 = vld [vmem:[%s4009_s1 + $0x214] ss:$8 sps:$4 sm:$0xff]  }
  0x65   : >> { %1689 = vmatprep.subr.bf16.mxu0 %v2837_v41  ;;  %v2913_v40 = vld [vmem:[%s4009_s1 + $0x614] ss:$8 sps:$4 sm:$0xff]  }
  0x66   : >> { %v3603_v41 = vld [vmem:[%s3310_s5 + $0x10] sm:$0xff]  ;;  %v3760_v32 = vld [vmem:[%s3310_s5 + $0x38] sm:$0x11] }
  0x67   : >> { %676 = vmatpush1.bf16.msra.mxu1 %v2832_v42  ;;  %v2432_v42 = vcombine.high %v3603_v41, %v3603_v41 }
  0x68   : >> { %1690 = vmatpush1.bf16.msra.mxu0 %v2835_v43  ;;  %677 = vmatprep.subr.bf16.mxu1 %v2840_v44  ;;  %v2911_v43 = vld [vmem:[%s4009_s1 + $0x610] ss:$8 sps:$4 sm:$0xff]  }
  0x69   : >> { %1691 = vmatprep.subr.bf16.mxu0 %v2843_v45  ;;  %v3614_v44 = vld [vmem:[%s3310_s5 + $0x30] sm:$0xff]  ;;  %v2916_v45 = vld [vmem:[%s4009_s1 + $0x224] ss:$8 sps:$4 sm:$0xff]  }
  0x6b   : >> { %678 = vmatpush1.bf16.msra.mxu1 %v2838_v46  ;;  %v2919_v46 = vld [vmem:[%s4009_s1 + $0x624] ss:$8 sps:$4 sm:$0xff]  }
  0x6c   : >> { %1692 = vmatpush1.bf16.msra.mxu0 %v2841_v47  ;;  %679 = vmatprep.subr.bf16.mxu1 %v2846_v50  ;;  %v2578_v47 = vcombine.high %v3614_v44, %v3614_v44  ;;  %v2917_v50 = vld [vmem:[%s4009_s1 + $0x620] ss:$8 sps:$4 sm:$0xff]  }
  0x6d   : >> { %1693 = vmatprep.subr.bf16.mxu0 %v2849_v51  ;;  %v2922_v51 = vld [vmem:[%s4009_s1 + $0x234] ss:$8 sps:$4 sm:$0xff]  }
  0x6f   : >> { %680 = vmatpush1.bf16.msra.mxu1 %v2844_v53  ;;  %v2920_v53 = vld [vmem:[%s4009_s1 + $0x230] ss:$8 sps:$4 sm:$0xff]  }
  0x70   : >> { %1694 = vmatpush1.bf16.msra.mxu0 %v2847_v55  ;;  %681 = vmatprep.subr.bf16.mxu1 %v2852_v58  ;;  %v2923_v55 = vld [vmem:[%s4009_s1 + $0x630] ss:$8 sps:$4 sm:$0xff]   ;;  %v2926_v58 = vld [vmem:[%s4009_s1 + $0x240] ss:$8 sps:$4 sm:$0xff]  }
  0x71   : >> { %1695 = vmatprep.subr.bf16.mxu0 %v2855_v59  ;;  %v2929_v59 = vld [vmem:[%s4009_s1 + $0x640] ss:$8 sps:$4 sm:$0xff]  }
  0x73   : >> { %682 = vmatpush1.bf16.msra.mxu1 %v2850_v61  ;;  %v2937_v61 = vld [vmem:[%s4009_s1 + $0x654] ss:$8 sps:$4 sm:$0xff]  }
  0x74   : >> { %1696 = vmatpush1.bf16.msra.mxu0 %v2853_v62  ;;  %683 = vmatprep.subr.bf16.mxu1 %v2858_v2  ;;  %v2932_v62 = vld [vmem:[%s4009_s1 + $0x250] ss:$8 sps:$4 sm:$0xff]   ;;  %v2940_v2 = vld [vmem:[%s4009_s1 + $0x264] ss:$8 sps:$4 sm:$0xff]  }
  0x75   : >> { %1697 = vmatprep.subr.bf16.mxu0 %v2861_v3  ;;  %v2943_v3 = vld [vmem:[%s4009_s1 + $0x664] ss:$8 sps:$4 sm:$0xff]  }
  0x77   : >> { %684 = vmatpush1.bf16.msra.mxu1 %v2856_v4  ;;  %v2938_v4 = vld [vmem:[%s4009_s1 + $0x260] ss:$8 sps:$4 sm:$0xff]  }
  0x78   : >> { %1698 = vmatpush1.bf16.msra.mxu0 %v2859_v5  ;;  %685 = vmatprep.subr.bf16.mxu1 %v2864_v6  ;;  %v2941_v5 = vld [vmem:[%s4009_s1 + $0x660] ss:$8 sps:$4 sm:$0xff]   ;;  %v2946_v6 = vld [vmem:[%s4009_s1 + $0x274] ss:$8 sps:$4 sm:$0xff]  }
  0x79   : >> { %1699 = vmatprep.subr.bf16.mxu0 %v2867_v7  ;;  %v2949_v7 = vld [vmem:[%s4009_s1 + $0x674] ss:$8 sps:$4 sm:$0xff]  }
  0x7b   : >> { %686 = vmatpush1.bf16.msra.mxu1 %v2862_v8  ;;  %v2944_v8 = vld [vmem:[%s4009_s1 + $0x270] ss:$8 sps:$4 sm:$0xff]  }
  0x7c   : >> { %1700 = vmatpush1.bf16.msra.mxu0 %v2865_v9  ;;  %687 = vmatprep.subr.bf16.mxu1 %v2870_v10  ;;  %v2947_v9 = vld [vmem:[%s4009_s1 + $0x670] ss:$8 sps:$4 sm:$0xff]   ;;  %v2952_v10 = vld [vmem:[%s4009_s1 + $0x284] ss:$8 sps:$4 sm:$0xff]  }
  0x7d   : >> { %1701 = vmatprep.subr.bf16.mxu0 %v2873_v11  ;;  %v2955_v11 = vld [vmem:[%s4009_s1 + $0x684] ss:$8 sps:$4 sm:$0xff]  }
  0x7f   : >> { %688 = vmatpush1.bf16.msra.mxu1 %v2868_v12  ;;  %v2950_v12 = vld [vmem:[%s4009_s1 + $0x280] ss:$8 sps:$4 sm:$0xff]  }
  0x80   : >> { %1702 = vmatpush1.bf16.msra.mxu0 %v2871_v13  ;;  %689 = vmatprep.subr.bf16.mxu1 %v2876_v14  ;;  %v2953_v13 = vld [vmem:[%s4009_s1 + $0x680] ss:$8 sps:$4 sm:$0xff]   ;;  %v2958_v14 = vld [vmem:[%s4009_s1 + $0x294] ss:$8 sps:$4 sm:$0xff]  }
  0x81   : >> { %1703 = vmatprep.subr.bf16.mxu0 %v2879_v15  ;;  %v2961_v15 = vld [vmem:[%s4009_s1 + $0x694] ss:$8 sps:$4 sm:$0xff]  }
  0x83   : >> { %690 = vmatpush1.bf16.msra.mxu1 %v2874_v16  ;;  %v2956_v16 = vld [vmem:[%s4009_s1 + $0x290] ss:$8 sps:$4 sm:$0xff]  }
  0x84   : >> { %1704 = vmatpush1.bf16.msra.mxu0 %v2877_v17  ;;  %691 = vmatprep.subr.bf16.mxu1 %v2882_v18  ;;  %v2959_v17 = vld [vmem:[%s4009_s1 + $0x690] ss:$8 sps:$4 sm:$0xff]   ;;  %v2964_v18 = vld [vmem:[%s4009_s1 + $0x2a4] ss:$8 sps:$4 sm:$0xff]  }
  0x85   : >> { %1705 = vmatprep.subr.bf16.mxu0 %v2885_v19  ;;  %v2967_v19 = vld [vmem:[%s4009_s1 + $0x6a4] ss:$8 sps:$4 sm:$0xff]  }
  0x87   : >> { %692 = vmatpush1.bf16.msra.mxu1 %v2880_v20  ;;  %v2962_v20 = vld [vmem:[%s4009_s1 + $0x2a0] ss:$8 sps:$4 sm:$0xff]  }
  0x88   : >> { %1706 = vmatpush1.bf16.msra.mxu0 %v2883_v21  ;;  %693 = vmatprep.subr.bf16.mxu1 %v2888_v23  ;;  %v2965_v21 = vld [vmem:[%s4009_s1 + $0x6a0] ss:$8 sps:$4 sm:$0xff]   ;;  %v2973_v23 = vld [vmem:[%s4009_s1 + $0x6b4] ss:$8 sps:$4 sm:$0xff]  }
  0x89   : >> { %1707 = vmatprep.subr.bf16.mxu0 %v2891_v24  ;;  %v2968_v24 = vld [vmem:[%s4009_s1 + $0x2b0] ss:$8 sps:$4 sm:$0xff]  }
  0x8b   : >> { %694 = vmatpush1.bf16.msra.mxu1 %v2886_v25  ;;  %v2971_v25 = vld [vmem:[%s4009_s1 + $0x6b0] ss:$8 sps:$4 sm:$0xff]  }
  0x8c   : >> { %1708 = vmatpush1.bf16.msra.mxu0 %v2889_v54  ;;  %695 = vmatprep.subr.bf16.mxu1 %v2894_v27  ;;  %v2976_v54 = vld [vmem:[%s4009_s1 + $0x2c4] ss:$8 sps:$4 sm:$0xff]   ;;  %v2974_v27 = vld [vmem:[%s4009_s1 + $0x2c0] ss:$8 sps:$4 sm:$0xff]  }
  0x8d   : >> { %1709 = vmatprep.subr.bf16.mxu0 %v2897_v28  ;;  %v2977_v28 = vld [vmem:[%s4009_s1 + $0x6c0] ss:$8 sps:$4 sm:$0xff]  }
  0x8f   : >> { %696 = vmatpush1.bf16.msra.mxu1 %v2892_v29  ;;  %v2982_v29 = vld [vmem:[%s4009_s1 + $0x2d4] ss:$8 sps:$4 sm:$0xff]  }
  0x90   : >> { %1710 = vmatpush1.bf16.msra.mxu0 %v2895_v30  ;;  %910 = vmatprep.subr.bf16.mxu1 %v2901_v33  ;;  %v2985_v30 = vld [vmem:[%s4009_s1 + $0x6d4] ss:$8 sps:$4 sm:$0xff]   ;;  %v2980_v33 = vld [vmem:[%s4009_s1 + $0x2d0] ss:$8 sps:$4 sm:$0xff]  }
  0x91   : >> { %1926 = vmatprep.subr.bf16.mxu0 %v2906_v34  ;;  %v2983_v34 = vld [vmem:[%s4009_s1 + $0x6d0] ss:$8 sps:$4 sm:$0xff]  }
  0x92   : >> { %698 = vmatmul.mubr.bf16.vlgmr.msra.gmra.mrb[0].mxu1 %v2394_v37  ;;  %v2468_v37 = vcombine.high %v3603_v41, %v3757_v31 }
  0x93   : >> { %1712 = vmatmul.mubr.bf16.vlgmr.msra.gmra.mrb[0].mxu0 %v1509_v38  ;;  %911 = vmatpush1.bf16.msra.mxu1 %v2899_v35  ;;  %v2988_v35 = vld [vmem:[%s4009_s1 + $0x2e4] ss:$8 sps:$4 sm:$0xff]   ;;  %v2614_v38 = vcombine.high %v3614_v44, %v3760_v32 }
  0x94   : >> { %1927 = vmatpush1.bf16.msra.mxu0 %v2904_v36  ;;  %912 = vmatprep.subr.bf16.mxu1 %v2910_v39  ;;  %v2991_v36 = vld [vmem:[%s4009_s1 + $0x6e4] ss:$8 sps:$4 sm:$0xff]   ;;  %v2986_v39 = vld [vmem:[%s4009_s1 + $0x2e0] ss:$8 sps:$4 sm:$0xff]  }
  0x95   : >> { %1928 = vmatprep.subr.bf16.mxu0 %v2913_v40  ;;  %942 = vmatprep.mubr.bf16.mxu1 %v2432_v42  ;;  %v2989_v40 = vld [vmem:[%s4009_s1 + $0x6e0] ss:$8 sps:$4 sm:$0xff]   ;;  %v2997_v42 = vld [vmem:[%s4009_s1 + $0x6f4] ss:$8 sps:$4 sm:$0xff]  }
  0x96   : >> { %1958 = vmatprep.mubr.bf16.mxu0 %v2578_v47  ;;  %v2995_v47 = vld [vmem:[%s4009_s1 + $0x6f0] ss:$8 sps:$4 sm:$0xff]  }
  0x97   : >> { %913 = vmatpush1.bf16.msra.mxu1 %v2908_v49  ;;  %v2994_v49 = vld [vmem:[%s4009_s1 + $0x2f4] ss:$8 sps:$4 sm:$0xff]  }
  0x98   : >> { %1929 = vmatpush1.bf16.msra.mxu0 %v2911_v43  ;;  %914 = vmatprep.subr.bf16.mxu1 %v2916_v45  ;;  %v1005_v43 = vshll.u32 %v2468_v37, 16  ;;  %v2021_v45 = vshll.u32 %v2614_v38, 16 }
  0x99   : >> { %1930 = vmatprep.subr.bf16.mxu0 %v2919_v46  ;;  %v2992_v46 = vld [vmem:[%s4009_s1 + $0x2f0] ss:$8 sps:$4 sm:$0xff]  }
  0x9b   : >> { %915 = vmatpush1.bf16.msra.mxu1 %v2914_v48  ;;  %v3002_v48 = vld [vmem:[%s4009_s1 + $0x304] ss:$8 sps:$4 sm:$0xff]  }
  0x9c   : >> { %1931 = vmatpush1.bf16.msra.mxu0 %v2917_v50  ;;  %916 = vmatprep.subr.bf16.mxu1 %v2922_v51  ;;  %v3007_v50 = vld [vmem:[%s4009_s1 + $0x704] ss:$8 sps:$4 sm:$0xff]   ;;  %v1003_v51 = vshrl.u32 %v2468_v37, 16 }
  0x9d   : >> { %1932 = vmatprep.subr.bf16.mxu0 %v2925_v52  ;;  %v1007_v52 = vrot.slane %v1005_v43, 1  ;;  %v3064_v37 = vld [vmem:[%s4009_s1 + $0x3a4] ss:$8 sps:$4 sm:$0xff]   ;;  %v3068_v43 = vld [vmem:[%s4009_s1 + $0x3b0] ss:$8 sps:$4 sm:$0xff]  }
  0x9f   : >> { %917 = vmatpush1.bf16.msra.mxu1 %v2920_v53  ;;  %v2019_v53 = vshrl.u32 %v2614_v38, 16  ;;  %v3067_v38 = vld [vmem:[%s4009_s1 + $0x7a4] ss:$8 sps:$4 sm:$0xff]  }
  0xa0   : >> { %1933 = vmatpush1.bf16.msra.mxu0 %v2923_v55  ;;  %918 = vmatprep.subr.bf16.mxu1 %v2928_v56  ;;  %v2023_v55 = vrot.slane %v2021_v45, 1  ;;  %v2431_v56 = vcombine.low %v3603_v41, %v3603_v41  ;;  %v3071_v45 = vld [vmem:[%s4009_s1 + $0x7b0] ss:$8 sps:$4 sm:$0xff]  }
  0xa1   : >> { %1934 = vmatprep.subr.bf16.mxu0 %v2931_v57  ;;  %v2577_v57 = vcombine.low %v3614_v44, %v3614_v44 }
  0xa3   : >> { %919 = vmatpush1.bf16.msra.mxu1 %v2926_v58  ;;  %v3000_v58 = vld [vmem:[%s4009_s1 + $0x300] ss:$8 sps:$4 sm:$0xff]  }
  0xa4   : >> { %1935 = vmatpush1.bf16.msra.mxu0 %v2929_v59  ;;  %920 = vmatprep.subr.bf16.mxu1 %v2934_v60  ;;  %v3005_v59 = vld [vmem:[%s4009_s1 + $0x700] ss:$8 sps:$4 sm:$0xff]   ;;  %v3010_v60 = vld [vmem:[%s4009_s1 + $0x314] ss:$8 sps:$4 sm:$0xff]  }
  0xa5   : >> { %1936 = vmatprep.subr.bf16.mxu0 %v2937_v61  ;;  %v3013_v61 = vld [vmem:[%s4009_s1 + $0x714] ss:$8 sps:$4 sm:$0xff]  }
  0xa7   : >> { %921 = vmatpush1.bf16.msra.mxu1 %v2932_v62  ;;  %v1008_v62 = vor.u32 %v1007_v52, %v1003_v51  ;;  %v3082_v51 = vld [vmem:[%s4009_s1 + $0x3d4] ss:$8 sps:$4 sm:$0xff]  }
  0xa8   : >> { %1937 = vmatpush1.bf16.msra.mxu0 %v2935_v63  ;;  %922 = vmatprep.subr.bf16.mxu1 %v2940_v2  ;;  %v2024_v63 = vor.u32 %v2023_v55, %v2019_v53  ;;  %v3008_v2 = vld [vmem:[%s4009_s1 + $0x310] ss:$8 sps:$4 sm:$0xff]   ;;  %v3085_v52 = vld [vmem:[%s4009_s1 + $0x7d4] ss:$8 sps:$4 sm:$0xff]   ;;  %v2467_v53 = vcombine.low %v3603_v41, %v3757_v31  ;;  %v2613_v55 = vcombine.low %v3614_v44, %v3760_v32  ;;  %v3091_v41 = vld [vmem:[%s4009_s1 + $0x7e4] ss:$8 sps:$4 sm:$0xff]  }
  0xa9   : >> { %1938 = vmatprep.subr.bf16.mxu0 %v2943_v3  ;;  %v3011_v3 = vld [vmem:[%s4009_s1 + $0x710] ss:$8 sps:$4 sm:$0xff]   ;;  %v3086_v32 = vld [vmem:[%s4009_s1 + $0x3e0] ss:$8 sps:$4 sm:$0xff]  }
  0xaa   : >> { %v998_v44 = vshll.u32 %v2467_v53, 16  ;;  %v2014_v31 = vshll.u32 %v2613_v55, 16 }
  0xab   : >> { %923 = vmatpush1.bf16.msra.mxu1 %v2938_v4  ;;  %v3016_v4 = vld [vmem:[%s4009_s1 + $0x324] ss:$8 sps:$4 sm:$0xff]  }
  0xac   : >> { %1939 = vmatpush1.bf16.msra.mxu0 %v2941_v5  ;;  %924 = vmatprep.subr.bf16.mxu1 %v2946_v6  ;;  %v3019_v5 = vld [vmem:[%s4009_s1 + $0x724] ss:$8 sps:$4 sm:$0xff]   ;;  %v3014_v6 = vld [vmem:[%s4009_s1 + $0x320] ss:$8 sps:$4 sm:$0xff]  }
  0xad   : >> { %1940 = vmatprep.subr.bf16.mxu0 %v2949_v7  ;;  %v3017_v7 = vld [vmem:[%s4009_s1 + $0x720] ss:$8 sps:$4 sm:$0xff]  }
  0xaf   : >> { %925 = vmatpush1.bf16.msra.mxu1 %v2944_v8  ;;  %v3022_v8 = vld [vmem:[%s4009_s1 + $0x334] ss:$8 sps:$4 sm:$0xff]  }
  0xb0   : >> { %1941 = vmatpush1.bf16.msra.mxu0 %v2947_v9  ;;  %926 = vmatprep.subr.bf16.mxu1 %v2952_v10  ;;  %v3025_v9 = vld [vmem:[%s4009_s1 + $0x734] ss:$8 sps:$4 sm:$0xff]   ;;  %v3020_v10 = vld [vmem:[%s4009_s1 + $0x330] ss:$8 sps:$4 sm:$0xff]  }
  0xb1   : >> { %1942 = vmatprep.subr.bf16.mxu0 %v2955_v11  ;;  %v3023_v11 = vld [vmem:[%s4009_s1 + $0x730] ss:$8 sps:$4 sm:$0xff]  }
  0xb3   : >> { %927 = vmatpush1.bf16.msra.mxu1 %v2950_v12  ;;  %v3028_v12 = vld [vmem:[%s4009_s1 + $0x344] ss:$8 sps:$4 sm:$0xff]  }
  0xb4   : >> { %1943 = vmatpush1.bf16.msra.mxu0 %v2953_v13  ;;  %928 = vmatprep.subr.bf16.mxu1 %v2958_v14  ;;  %v3031_v13 = vld [vmem:[%s4009_s1 + $0x744] ss:$8 sps:$4 sm:$0xff]   ;;  %v3026_v14 = vld [vmem:[%s4009_s1 + $0x340] ss:$8 sps:$4 sm:$0xff]  }
  0xb5   : >> { %1944 = vmatprep.subr.bf16.mxu0 %v2961_v15  ;;  %v3029_v15 = vld [vmem:[%s4009_s1 + $0x740] ss:$8 sps:$4 sm:$0xff]  }
  0xb7   : >> { %929 = vmatpush1.bf16.msra.mxu1 %v2956_v16  ;;  %v3034_v16 = vld [vmem:[%s4009_s1 + $0x354] ss:$8 sps:$4 sm:$0xff]  }
  0xb8   : >> { %1945 = vmatpush1.bf16.msra.mxu0 %v2959_v17  ;;  %930 = vmatprep.subr.bf16.mxu1 %v2964_v18  ;;  %v3037_v17 = vld [vmem:[%s4009_s1 + $0x754] ss:$8 sps:$4 sm:$0xff]   ;;  %v3032_v18 = vld [vmem:[%s4009_s1 + $0x350] ss:$8 sps:$4 sm:$0xff]  }
  0xb9   : >> { %1946 = vmatprep.subr.bf16.mxu0 %v2967_v19  ;;  %v3035_v19 = vld [vmem:[%s4009_s1 + $0x750] ss:$8 sps:$4 sm:$0xff]  }
  0xbb   : >> { %931 = vmatpush1.bf16.msra.mxu1 %v2962_v20  ;;  %v3040_v20 = vld [vmem:[%s4009_s1 + $0x364] ss:$8 sps:$4 sm:$0xff]  }
  0xbc   : >> { %1947 = vmatpush1.bf16.msra.mxu0 %v2965_v21  ;;  %932 = vmatprep.subr.bf16.mxu1 %v2970_v22  ;;  %v3043_v21 = vld [vmem:[%s4009_s1 + $0x764] ss:$8 sps:$4 sm:$0xff]   ;;  %v3038_v22 = vld [vmem:[%s4009_s1 + $0x360] ss:$8 sps:$4 sm:$0xff]  }
  0xbd   : >> { %1948 = vmatprep.subr.bf16.mxu0 %v2973_v23  ;;  %v3041_v23 = vld [vmem:[%s4009_s1 + $0x760] ss:$8 sps:$4 sm:$0xff]  }
  0xbf   : >> { %933 = vmatpush1.bf16.msra.mxu1 %v2968_v24  ;;  %v3046_v24 = vld [vmem:[%s4009_s1 + $0x374] ss:$8 sps:$4 sm:$0xff]  }
  0xc0   : >> { %1949 = vmatpush1.bf16.msra.mxu0 %v2971_v25  ;;  %934 = vmatprep.subr.bf16.mxu1 %v2976_v54  ;;  %v3049_v25 = vld [vmem:[%s4009_s1 + $0x774] ss:$8 sps:$4 sm:$0xff]   ;;  %v3044_v54 = vld [vmem:[%s4009_s1 + $0x370] ss:$8 sps:$4 sm:$0xff]  }
  0xc1   : >> { %1950 = vmatprep.subr.bf16.mxu0 %v2979_v26  ;;  %v3047_v26 = vld [vmem:[%s4009_s1 + $0x770] ss:$8 sps:$4 sm:$0xff]  }
  0xc3   : >> { %935 = vmatpush1.bf16.msra.mxu1 %v2974_v27  ;;  %v3052_v27 = vld [vmem:[%s4009_s1 + $0x384] ss:$8 sps:$4 sm:$0xff]  }
  0xc4   : >> { %1951 = vmatpush1.bf16.msra.mxu0 %v2977_v28  ;;  %936 = vmatprep.subr.bf16.mxu1 %v2982_v29  ;;  %v3055_v28 = vld [vmem:[%s4009_s1 + $0x784] ss:$8 sps:$4 sm:$0xff]   ;;  %v3050_v29 = vld [vmem:[%s4009_s1 + $0x380] ss:$8 sps:$4 sm:$0xff]  }
  0xc5   : >> { %1952 = vmatprep.subr.bf16.mxu0 %v2985_v30  ;;  %v3053_v30 = vld [vmem:[%s4009_s1 + $0x780] ss:$8 sps:$4 sm:$0xff]  }
  0xc7   : >> { %937 = vmatpush1.bf16.msra.mxu1 %v2980_v33  ;;  %v3058_v33 = vld [vmem:[%s4009_s1 + $0x394] ss:$8 sps:$4 sm:$0xff]  }
  0xc8   : >> { %1953 = vmatpush1.bf16.msra.mxu0 %v2983_v34  ;;  %938 = vmatprep.subr.bf16.mxu1 %v2988_v35  ;;  %v3061_v34 = vld [vmem:[%s4009_s1 + $0x794] ss:$8 sps:$4 sm:$0xff]   ;;  %v3056_v35 = vld [vmem:[%s4009_s1 + $0x390] ss:$8 sps:$4 sm:$0xff]  }
  0xc9   : >> { %1954 = vmatprep.subr.bf16.mxu0 %v2991_v36  ;;  %v3059_v36 = vld [vmem:[%s4009_s1 + $0x790] ss:$8 sps:$4 sm:$0xff]  }
  0xcb   : >> { %939 = vmatpush1.bf16.msra.mxu1 %v2986_v39  ;;  %v3062_v39 = vld [vmem:[%s4009_s1 + $0x3a0] ss:$8 sps:$4 sm:$0xff]  }
  0xcc   : >> { %1955 = vmatpush1.bf16.msra.mxu0 %v2989_v40  ;;  %940 = vmatprep.subr.bf16.mxu1 %v2994_v49  ;;  %v3065_v40 = vld [vmem:[%s4009_s1 + $0x7a0] ss:$8 sps:$4 sm:$0xff]   ;;  %v3070_v49 = vld [vmem:[%s4009_s1 + $0x3b4] ss:$8 sps:$4 sm:$0xff]  }
  0xcd   : >> { %1956 = vmatprep.subr.bf16.mxu0 %v2997_v42  ;;  %v3073_v42 = vld [vmem:[%s4009_s1 + $0x7b4] ss:$8 sps:$4 sm:$0xff]  }
  0xcf   : >> { %941 = vmatpush1.bf16.msra.mxu1 %v2992_v46  ;;  %v3076_v46 = vld [vmem:[%s4009_s1 + $0x3c4] ss:$8 sps:$4 sm:$0xff]  }
  0xd0   : >> { %1957 = vmatpush1.bf16.msra.mxu0 %v2995_v47  ;;  %1171 = vmatprep.subr.bf16.mxu1 %v3002_v48  ;;  %v3079_v47 = vld [vmem:[%s4009_s1 + $0x7c4] ss:$8 sps:$4 sm:$0xff]   ;;  %v3074_v48 = vld [vmem:[%s4009_s1 + $0x3c0] ss:$8 sps:$4 sm:$0xff]  }
  0xd1   : >> { %2187 = vmatprep.subr.bf16.mxu0 %v3007_v50  ;;  %v3077_v50 = vld [vmem:[%s4009_s1 + $0x7c0] ss:$8 sps:$4 sm:$0xff]  }
  0xd2   : >> { %943 = vmatmul.mubr.bf16.vlgmr.msra.gmra.mrb[0].mxu1 %v2431_v56  ;;  %v3080_v56 = vld [vmem:[%s4009_s1 + $0x3d0] ss:$8 sps:$4 sm:$0xff]  }
  0xd3   : >> { %1959 = vmatmul.mubr.bf16.vlgmr.msra.gmra.mrb[0].mxu0 %v2577_v57  ;;  %1172 = vmatpush1.bf16.msra.mxu1 %v3000_v58  ;;  %v3083_v57 = vld [vmem:[%s4009_s1 + $0x7d0] ss:$8 sps:$4 sm:$0xff]   ;;  %v3088_v58 = vld [vmem:[%s4009_s1 + $0x3e4] ss:$8 sps:$4 sm:$0xff]  }
  0xd4   : >> { %2188 = vmatpush1.bf16.msra.mxu0 %v3005_v59  ;;  %1173 = vmatprep.subr.bf16.mxu1 %v3010_v60  ;;  %v3089_v59 = vld [vmem:[%s4009_s1 + $0x7e0] ss:$8 sps:$4 sm:$0xff]   ;;  %v3094_v60 = vld [vmem:[%s4009_s1 + $0x3f4] ss:$8 sps:$4 sm:$0xff]  }
  0xd5   : >> { %2189 = vmatprep.subr.bf16.mxu0 %v3013_v61  ;;  %1203 = vmatprep.mubr.bf16.mxu1 %v1008_v62  ;;  %v3097_v61 = vld [vmem:[%s4009_s1 + $0x7f4] ss:$8 sps:$4 sm:$0xff]   ;;  %v996_v62 = vshrl.u32 %v2467_v53, 16 }
  0xd6   : >> { %2219 = vmatprep.mubr.bf16.mxu0 %v2024_v63  ;;  %v1000_v63 = vrot.slane %v998_v44, 1 }
  0xd7   : >> { %1174 = vmatpush1.bf16.msra.mxu1 %v3008_v2  ;;  %v2012_v2 = vshrl.u32 %v2613_v55, 16 }
  0xd8   : >> { %2190 = vmatpush1.bf16.msra.mxu0 %v3011_v3  ;;  %1175 = vmatprep.subr.bf16.mxu1 %v3016_v4  ;;  %v2016_v3 = vrot.slane %v2014_v31, 1  ;;  %v3092_v4 = vld [vmem:[%s4009_s1 + $0x3f0] ss:$8 sps:$4 sm:$0xff]  }
  0xd9   : >> { %2191 = vmatprep.subr.bf16.mxu0 %v3019_v5  ;;  %v3095_v5 = vld [vmem:[%s4009_s1 + $0x7f0] ss:$8 sps:$4 sm:$0xff]  }
  0xdb   : >> { %1176 = vmatpush1.bf16.msra.mxu1 %v3014_v6  ;;  %v1001_v6 = vor.u32 %v1000_v63, %v996_v62 }
  0xdc   : >> { %2192 = vmatpush1.bf16.msra.mxu0 %v3017_v7  ;;  %1177 = vmatprep.subr.bf16.mxu1 %v3022_v8  ;;  %v2017_v7 = vor.u32 %v2016_v3, %v2012_v2  ;;  %v2231_v8 = vlaneseq }
  0xdd   : >> { %2193 = vmatprep.subr.bf16.mxu0 %v3025_v9 }
  0xde   : >> { %v2232_v9 = vshrl.u32 %v2231_v8, 7 }
  0xdf   : >> { %1178 = vmatpush1.bf16.msra.mxu1 %v3020_v10 }
  0xe0   : >> { %2194 = vmatpush1.bf16.msra.mxu0 %v3023_v11  ;;  %1179 = vmatprep.subr.bf16.mxu1 %v3028_v12  ;;  %v2233_v10 = vsub.s32 0, %v2232_v9  ;;  %v2237_v11 = vsub.s32 1, %v2232_v9 }
  0xe1   : >> { %2195 = vmatprep.subr.bf16.mxu0 %v3031_v13 }
  0xe2   : >> { %v2234_v12 = vrot.slane %v3154_v0, %v2233_v10 }
  0xe3   : >> { %1180 = vmatpush1.bf16.msra.mxu1 %v3026_v14 }
  0xe4   : >> { %2196 = vmatpush1.bf16.msra.mxu0 %v3029_v15  ;;  %1181 = vmatprep.subr.bf16.mxu1 %v3034_v16  ;;  %v2238_v15 = vrot.slane %v3154_v0, %v2237_v11 }
  0xe5   : >> { %2197 = vmatprep.subr.bf16.mxu0 %v3037_v17  ;;  %v2247_v17 = vrot.slane %v3159_v1, %v2233_v10 }
  0xe7   : >> { %1182 = vmatpush1.bf16.msra.mxu1 %v3032_v18 }
  0xe8   : >> { %2198 = vmatpush1.bf16.msra.mxu0 %v3035_v19  ;;  %1183 = vmatprep.subr.bf16.mxu1 %v3040_v20 }
  0xe9   : >> { %2199 = vmatprep.subr.bf16.mxu0 %v3043_v21  ;;  %v2251_v21 = vrot.slane %v3159_v1, %v2237_v11 }
  0xeb   : >> { %1184 = vmatpush1.bf16.msra.mxu1 %v3038_v22 }
  0xec   : >> { %2200 = vmatpush1.bf16.msra.mxu0 %v3041_v23  ;;  %1185 = vmatprep.subr.bf16.mxu1 %v3046_v24 }
  0xed   : >> { %2201 = vmatprep.subr.bf16.mxu0 %v3049_v25 }
  0xef   : >> { %1186 = vmatpush1.bf16.msra.mxu1 %v3044_v54 }
  0xf0   : >> { %2202 = vmatpush1.bf16.msra.mxu0 %v3047_v26  ;;  %1187 = vmatprep.subr.bf16.mxu1 %v3052_v27 }
  0xf1   : >> { %2203 = vmatprep.subr.bf16.mxu0 %v3055_v28 }
  0xf3   : >> { %1188 = vmatpush1.bf16.msra.mxu1 %v3050_v29 }
  0xf4   : >> { %2204 = vmatpush1.bf16.msra.mxu0 %v3053_v30  ;;  %1189 = vmatprep.subr.bf16.mxu1 %v3058_v33 }
  0xf5   : >> { %2205 = vmatprep.subr.bf16.mxu0 %v3061_v34 }
  0xf7   : >> { %1190 = vmatpush1.bf16.msra.mxu1 %v3056_v35 }
  0xf8   : >> { %2206 = vmatpush1.bf16.msra.mxu0 %v3059_v36  ;;  %1191 = vmatprep.subr.bf16.mxu1 %v3064_v37 }
  0xf9   : >> { %2207 = vmatprep.subr.bf16.mxu0 %v3067_v38 }
  0xfb   : >> { %1192 = vmatpush1.bf16.msra.mxu1 %v3062_v39 }
  0xfc   : >> { %2208 = vmatpush1.bf16.msra.mxu0 %v3065_v40  ;;  %1193 = vmatprep.subr.bf16.mxu1 %v3070_v49 }
  0xfd   : >> { %2209 = vmatprep.subr.bf16.mxu0 %v3073_v42 }
  0xff   : >> { %1194 = vmatpush1.bf16.msra.mxu1 %v3068_v43 }
 0x100   : >> { %2210 = vmatpush1.bf16.msra.mxu0 %v3071_v45  ;;  %1195 = vmatprep.subr.bf16.mxu1 %v3076_v46 }
 0x101   : >> { %2211 = vmatprep.subr.bf16.mxu0 %v3079_v47 }
 0x103   : >> { %1196 = vmatpush1.bf16.msra.mxu1 %v3074_v48 }
 0x104   : >> { %2212 = vmatpush1.bf16.msra.mxu0 %v3077_v50  ;;  %1197 = vmatprep.subr.bf16.mxu1 %v3082_v51 }
 0x105   : >> { %2213 = vmatprep.subr.bf16.mxu0 %v3085_v52 }
 0x107   : >> { %1198 = vmatpush1.bf16.msra.mxu1 %v3080_v56 }
 0x108   : >> { %2214 = vmatpush1.bf16.msra.mxu0 %v3083_v57  ;;  %1199 = vmatprep.subr.bf16.mxu1 %v3088_v58 }
 0x109   : >> { %2215 = vmatprep.subr.bf16.mxu0 %v3091_v41 }
 0x10b   : >> { %1200 = vmatpush1.bf16.msra.mxu1 %v3086_v32 }
 0x10c   : >> { %2216 = vmatpush1.bf16.msra.mxu0 %v3089_v59  ;;  %1201 = vmatprep.subr.bf16.mxu1 %v3094_v60 }
 0x10d   : >> { %2217 = vmatprep.subr.bf16.mxu0 %v3097_v61 }
 0x10f   : >> { %1202 = vmatpush1.bf16.msra.mxu1 %v3092_v4 }
 0x110   : >> { %2218 = vmatpush1.bf16.msra.mxu0 %v3095_v5 }
 0x112   : >> { %1204 = vmatmul.mubr.bf16.vlgmr.msra.gmra.mrb[0].mxu1 %v1001_v6 }
 0x113   : >> { %2220 = vmatmul.mubr.bf16.vlgmr.msra.gmra.mrb[0].mxu0 %v2017_v7 }
 0x1e5   : >> { %v1205_v13 = vpop.f32.mrb[0].mxu1 }
 0x1e6   : >> { %v2221_v14 = vpop.f32.mrb[0].mxu0  ;;  %v1207_v18 = vpop.f32.mrb[1].mxu1 }
 0x1e7   : >> { %v2659_v16 = vadd.f32 %v2221_v14, %v1205_v13  ;;  %v2223_v19 = vpop.f32.mrb[1].mxu0  ;;  %v1209_v22 = vpop.f32.mrb[2].mxu1 }
 0x1e8   : >> { %v2660_v20 = vadd.f32 %v2223_v19, %v1207_v18  ;;  %v2225_v23 = vpop.f32.mrb[2].mxu0  ;;  %v1210_v25 = vpop.f32.mrb[3].mxu1 }
 0x1e9   : >> { %v2241_v24 = vmul.f32 %v2659_v16, %v2234_v12  ;;  %v2226_v54 = vpop.f32.mrb[3].mxu0 }
 0x1ea   : >> { %v2242_v26 = vmul.f32 %v2660_v20, %v2238_v15 }
 0x1eb   : >> { %v2254_v27 = vadd.f32 %v2247_v17, %v2241_v24 }
 0x1ec   : >> { %v2255_v28 = vadd.f32 %v2251_v21, %v2242_v26 }
 0x1ed   : >> { %vm2256_vm0 = vcmp.gt.f32.partialorder %v2254_v27, 0.0  ;;  %v2258_v29 = vmul.f32 0.2, %v2254_v27  ;;  %204 = sbr.rel (!%p202_p4) target bundleno = 17 (0x11), region = 78 }
 0x1ee   : >> { %vm2257_vm1 = vcmp.gt.f32.partialorder %v2255_v28, 0.0  ;;  %v2259_v30 = vmul.f32 0.2, %v2255_v28 }
 0x1ef   : >> { %v2260_v33 = vsel %vm2256_vm0, %v2254_v27, %v2258_v29 }
 0x1f0   : >> { %v2261_v34 = vsel %vm2257_vm1, %v2255_v28, %v2259_v30 }
 0x1f1   : >> { %v2657_v35 = vpack.c.bf16 %v2261_v34, %v2260_v33 }
 0x1f3   : >> { %2272 = vst [vmem:[%s2271_s27] sm:$0xff] %v2657_v35 }
 0x1f4 PF: > { %s14_s15 = sadd.s32 1, %s3112_s15  }
 0x1f5   : > { %p11_p5 = scmp.ge.s32.totalorder %s14_s15, 4  }
 0x1f7   :  { %13 = sbr.rel (!%p11_p5) target bundleno = 1 (0x1), region = 89 }

// kernel: discriminator_forward.9
= control target key start
LH: loop header
LB: loop body
LE: loop exit
PB: predicated region body
PF: predicated region fallthrough
CT: control target
= control target key end

     0   :  { %s8215_s15 = smov 0   ;;  %s9865_s0 = inlined_call_operand.vmem [shape: bf16[2,9,9,512], index: 0, kind: input, shape index: {}]   ;;  %s9866_s1 = inlined_call_operand.vmem [shape: bf16[8192,128], index: 1, kind: input, shape index: {}]   ;;  %s9867_s2 = inlined_call_operand.vmem [shape: f32[1,128], index: 2, kind: input, shape index: {}]   ;;  %s9868_s3 = inlined_call_operand.vmem [shape: f32[1,128], index: 3, kind: input, shape index: {}]   ;;  %s9869_s4 = inlined_call_operand.vmem [shape: f32[2,6,6,128], index: 4, kind: output, shape index: {}]  }
   0x1 LB: > { %s6245_s16 = sadd.s32 4294967295, %s8184_s15   ;;  %p6249_p0 = scmp.ge.s32.totalorder %s8184_s15, 1  ;;  %s8184_s15 = sphi %s8215_s15, %s14_s15  }
   0x2   : > { %p162_p1 = scmp.lt.s32.totalorder %s8184_s15, 3 }
   0x4   : > { %p163_p2 = pnand %p6249_p0, %p162_p1 }
   0x5   : > { %p188_p3 = scmp.lt.s32.totalorder (!%p163_p2), %s6245_s16, 1  ;;  %v8226_v0 = vld [vmem:[%s9867_s2] ss:$0 sm:$0xff] (!%p163_p2)  ;;  %s8243_s29 = smov (!%p163_p2), 0  }
   0x6   : > { %166 = sbr.rel (%p163_p2) target bundleno = 764 (0x2fc), region = 36  ;;  %v8231_v1 = vld [vmem:[%s9868_s3] ss:$0 sm:$0xff] (!%p163_p2) }
   0xd   : > { %s9871_s16 = smov (!%p188_p3, %s6245_s16), 1 }
   0xe   : > { %s7572_s21 = smul.u32 288, %s9871_s16 }
   0xf   : > { %s7573_s22 = smul.u32 48, %s9871_s16 }
  0x10   : > { %s8236_s25 = scalar_lea.vmem %s9865_s0, %s7572_s21 }
  0x11   : > { %s8241_s28 = scalar_lea.vmem %s9869_s4, %s7573_s22 }
  0x12 LB: >> { %v7590_v2 = vld [vmem:[%s9866_s1 + $0x140] sm:$0xff]   ;;  %v7594_v6 = vld [vmem:[%s9866_s1 + $0x148] sm:$0xff]   ;;  %v7598_v10 = vld [vmem:[%s9866_s1 + $0x150] sm:$0xff]   ;;  %s6867_s14 = sshll.u32 %s8188_s29, 5  ;;  %s8188_s29 = sphi %s8243_s29, %s206_s29  }
  0x13   : >> { %v7591_v3 = vld [vmem:[%s9866_s1 + $0x1c0] sm:$0xff]   ;;  %6868 = vmatprep.subr.bf16.mxu0 %v7590_v2  ;;  %v7595_v7 = vld [vmem:[%s9866_s1 + $0x1c8] sm:$0xff]   ;;  %v7599_v11 = vld [vmem:[%s9866_s1 + $0x1d0] sm:$0xff]   ;;  %s8340_s22 = scalar_lea.vmem %s8236_s25, %s6867_s14 }
  0x14   : >> { %v7592_v4 = vld [vmem:[%s9866_s1 + $0x100] sm:$0xff]   ;;  %6890 = vmatprep.subr.bf16.mxu1 %v7591_v3  ;;  %v7596_v8 = vld [vmem:[%s9866_s1 + $0x108] sm:$0xff]   ;;  %v7600_v12 = vld [vmem:[%s9866_s1 + $0x110] sm:$0xff]  }
  0x15   : >> { %v7593_v5 = vld [vmem:[%s9866_s1 + $0x180] sm:$0xff]   ;;  %6869 = vmatpush3.bf16.msra.mxu0 %v7592_v4  ;;  %v7597_v9 = vld [vmem:[%s9866_s1 + $0x188] sm:$0xff]   ;;  %v7601_v13 = vld [vmem:[%s9866_s1 + $0x190] sm:$0xff]  }
  0x16   : >> { %6891 = vmatpush3.bf16.msra.mxu1 %v7593_v5  ;;  %6870 = vmatprep.subr.bf16.mxu0 %v7594_v6  ;;  %v7602_v14 = vld [vmem:[%s9866_s1 + $0x158] sm:$0xff]   ;;  %v7606_v18 = vld [vmem:[%s9866_s1 + $0x160] sm:$0xff]   ;;  %v7610_v22 = vld [vmem:[%s9866_s1 + $0x168] sm:$0xff]  }
  0x17   : >> { %6892 = vmatprep.subr.bf16.mxu1 %v7595_v7  ;;  %v7603_v15 = vld [vmem:[%s9866_s1 + $0x1d8] sm:$0xff]   ;;  %v7607_v19 = vld [vmem:[%s9866_s1 + $0x1e0] sm:$0xff]   ;;  %v7611_v23 = vld [vmem:[%s9866_s1 + $0x1e8] sm:$0xff]  }
  0x18   : >> { %v7604_v16 = vld [vmem:[%s9866_s1 + $0x118] sm:$0xff]   ;;  %v7608_v20 = vld [vmem:[%s9866_s1 + $0x120] sm:$0xff]   ;;  %v7612_v24 = vld [vmem:[%s9866_s1 + $0x128] sm:$0xff]  }
  0x19   : >> { %6871 = vmatpush3.bf16.msra.mxu0 %v7596_v8  ;;  %v7605_v17 = vld [vmem:[%s9866_s1 + $0x198] sm:$0xff]   ;;  %v7609_v21 = vld [vmem:[%s9866_s1 + $0x1a0] sm:$0xff]   ;;  %v7613_v25 = vld [vmem:[%s9866_s1 + $0x1a8] sm:$0xff]  }
  0x1a   : >> { %6893 = vmatpush3.bf16.msra.mxu1 %v7597_v9  ;;  %6872 = vmatprep.subr.bf16.mxu0 %v7598_v10  ;;  %v7614_v26 = vld [vmem:[%s9866_s1 + $0x170] sm:$0xff]   ;;  %v7618_v30 = vld [vmem:[%s9866_s1 + $0x178] sm:$0xff]   ;;  %v276_v34 = vld [vmem:[%s8340_s22] sm:$0xff] }
  0x1b   : >> { %6894 = vmatprep.subr.bf16.mxu1 %v7599_v11  ;;  %v7615_v27 = vld [vmem:[%s9866_s1 + $0x1f0] sm:$0xff]   ;;  %v7619_v31 = vld [vmem:[%s9866_s1 + $0x1f8] sm:$0xff]   ;;  %v277_v35 = vld [vmem:[%s8340_s22 + $0x8] sm:$0xff]  ;;  %v6254_v36 = vcombine.low %v276_v34, %v276_v34  ;;  %v6255_v37 = vcombine.high %v276_v34, %v276_v34 }
  0x1c   : >> { %v7616_v28 = vld [vmem:[%s9866_s1 + $0x130] sm:$0xff]   ;;  %v7620_v32 = vld [vmem:[%s9866_s1 + $0x138] sm:$0xff]   ;;  %v6256_v38 = vcombine.low %v277_v35, %v277_v35  ;;  %v6257_v39 = vcombine.high %v277_v35, %v277_v35  ;;  %v7626_v40 = vld [vmem:[%s9866_s1 + $0x40] sm:$0xff]  }
  0x1d   : >> { %6873 = vmatpush3.bf16.msra.mxu0 %v7600_v12  ;;  %v7617_v29 = vld [vmem:[%s9866_s1 + $0x1b0] sm:$0xff]   ;;  %v7621_v33 = vld [vmem:[%s9866_s1 + $0x1b8] sm:$0xff]   ;;  %v7627_v41 = vld [vmem:[%s9866_s1 + $0xc0] sm:$0xff]   ;;  %v360_v42 = vshrl.u32 %v6255_v37, 16  ;;  %v362_v43 = vshll.u32 %v6255_v37, 16  ;;  %v353_v46 = vshrl.u32 %v6254_v36, 16 }
  0x1e   : >> { %6895 = vmatpush3.bf16.msra.mxu1 %v7601_v13  ;;  %6874 = vmatprep.subr.bf16.mxu0 %v7602_v14  ;;  %v374_v44 = vshrl.u32 %v6257_v39, 16  ;;  %v376_v45 = vshll.u32 %v6257_v39, 16  ;;  %v355_v47 = vshll.u32 %v6254_v36, 16  ;;  %v367_v48 = vshrl.u32 %v6256_v38, 16  ;;  %v7628_v52 = vld [vmem:[%s9866_s1] sm:$0xff]   ;;  %v7630_v58 = vld [vmem:[%s9866_s1 + $0x48] sm:$0xff]  }
  0x1f   : >> { %6896 = vmatprep.subr.bf16.mxu1 %v7603_v15  ;;  %v369_v49 = vshll.u32 %v6256_v38, 16  ;;  %v364_v50 = vrot.slane %v362_v43, 1  ;;  %v7629_v53 = vld [vmem:[%s9866_s1 + $0x80] sm:$0xff]   ;;  %v7631_v61 = vld [vmem:[%s9866_s1 + $0xc8] sm:$0xff]   ;;  %v7634_v2 = vld [vmem:[%s9866_s1 + $0x50] sm:$0xff]  }
  0x20   : >> { %v378_v51 = vrot.slane %v376_v45, 1  ;;  %v357_v54 = vrot.slane %v355_v47, 1  ;;  %v7632_v62 = vld [vmem:[%s9866_s1 + $0x8] sm:$0xff]   ;;  %v7635_v3 = vld [vmem:[%s9866_s1 + $0xd0] sm:$0xff]   ;;  %v7638_v6 = vld [vmem:[%s9866_s1 + $0x58] sm:$0xff]  }
  0x21   : >> { %6875 = vmatpush3.bf16.msra.mxu0 %v7604_v16  ;;  %v371_v55 = vrot.slane %v369_v49, 1  ;;  %v365_v56 = vor.u32 %v364_v50, %v360_v42  ;;  %v7633_v63 = vld [vmem:[%s9866_s1 + $0x88] sm:$0xff]   ;;  %v7636_v4 = vld [vmem:[%s9866_s1 + $0x10] sm:$0xff]   ;;  %v7639_v7 = vld [vmem:[%s9866_s1 + $0xd8] sm:$0xff]  }
  0x22   : >> { %6897 = vmatpush3.bf16.msra.mxu1 %v7605_v17  ;;  %6876 = vmatprep.subr.bf16.mxu0 %v7606_v18  ;;  %v379_v57 = vor.u32 %v378_v51, %v374_v44  ;;  %v358_v59 = vor.u32 %v357_v54, %v353_v46  ;;  %v7637_v5 = vld [vmem:[%s9866_s1 + $0x90] sm:$0xff]   ;;  %v7640_v8 = vld [vmem:[%s9866_s1 + $0x18] sm:$0xff]   ;;  %v7642_v10 = vld [vmem:[%s9866_s1 + $0x60] sm:$0xff]  }
  0x23   : >> { %6898 = vmatprep.subr.bf16.mxu1 %v7607_v19  ;;  %v372_v60 = vor.u32 %v371_v55, %v367_v48  ;;  %608 = vmatprep.mubr.bf16.mxu0 %v365_v56  ;;  %v7641_v9 = vld [vmem:[%s9866_s1 + $0x98] sm:$0xff]   ;;  %v7643_v11 = vld [vmem:[%s9866_s1 + $0xe0] sm:$0xff]   ;;  %v7646_v14 = vld [vmem:[%s9866_s1 + $0x68] sm:$0xff]  }
  0x24   : >> { %648 = vmatprep.mubr.bf16.mxu1 %v379_v57  ;;  %v7644_v12 = vld [vmem:[%s9866_s1 + $0x20] sm:$0xff]   ;;  %v7647_v15 = vld [vmem:[%s9866_s1 + $0xe8] sm:$0xff]   ;;  %v7650_v18 = vld [vmem:[%s9866_s1 + $0x70] sm:$0xff]  }
  0x25   : >> { %6877 = vmatpush3.bf16.msra.mxu0 %v7608_v20  ;;  %v7645_v13 = vld [vmem:[%s9866_s1 + $0xa0] sm:$0xff]   ;;  %v7648_v16 = vld [vmem:[%s9866_s1 + $0x28] sm:$0xff]   ;;  %v7651_v19 = vld [vmem:[%s9866_s1 + $0xf0] sm:$0xff]  }
  0x26   : >> { %6899 = vmatpush3.bf16.msra.mxu1 %v7609_v21  ;;  %6878 = vmatprep.subr.bf16.mxu0 %v7610_v22  ;;  %v7649_v17 = vld [vmem:[%s9866_s1 + $0xa8] sm:$0xff]   ;;  %v7652_v20 = vld [vmem:[%s9866_s1 + $0x30] sm:$0xff]   ;;  %v7654_v22 = vld [vmem:[%s9866_s1 + $0x78] sm:$0xff]  }
  0x27   : >> { %6900 = vmatprep.subr.bf16.mxu1 %v7611_v23  ;;  %v7653_v21 = vld [vmem:[%s9866_s1 + $0xb0] sm:$0xff]   ;;  %v7655_v23 = vld [vmem:[%s9866_s1 + $0xf8] sm:$0xff]   ;;  %v7665_v35 = vld [vmem:[%s9866_s1 + $0x280] sm:$0xff]  }
  0x28   : >> { %v7666_v36 = vld [vmem:[%s9866_s1 + $0x248] sm:$0xff]   ;;  %v7672_v42 = vld [vmem:[%s9866_s1 + $0x210] sm:$0xff]   ;;  %v7674_v44 = vld [vmem:[%s9866_s1 + $0x258] sm:$0xff]  }
  0x29   : >> { %6879 = vmatpush3.bf16.msra.mxu0 %v7612_v24  ;;  %v7656_v24 = vld [vmem:[%s9866_s1 + $0x38] sm:$0xff]   ;;  %v7667_v37 = vld [vmem:[%s9866_s1 + $0x2c8] sm:$0xff]   ;;  %v7673_v43 = vld [vmem:[%s9866_s1 + $0x290] sm:$0xff]  }
  0x2a   : >> { %6901 = vmatpush3.bf16.msra.mxu1 %v7613_v25  ;;  %6880 = vmatprep.subr.bf16.mxu0 %v7614_v26  ;;  %v7657_v25 = vld [vmem:[%s9866_s1 + $0xb8] sm:$0xff]   ;;  %v210_v26 = vld [vmem:[%s8340_s22] sm:$0x77]  ;;  %v7668_v38 = vld [vmem:[%s9866_s1 + $0x208] sm:$0xff]  }
  0x2b   : >> { %6902 = vmatprep.subr.bf16.mxu1 %v7615_v27  ;;  %v211_v27 = vld [vmem:[%s8340_s22 + $0x8] sm:$0x77]  ;;  %v7675_v45 = vld [vmem:[%s9866_s1 + $0x2d8] sm:$0xff]   ;;  %v7678_v48 = vld [vmem:[%s9866_s1 + $0x260] sm:$0xff]  }
  0x2c   : >> { %v6292_v34 = vcombine.low %v211_v27, %v211_v27  ;;  %v7669_v39 = vld [vmem:[%s9866_s1 + $0x288] sm:$0xff]   ;;  %v7676_v46 = vld [vmem:[%s9866_s1 + $0x218] sm:$0xff]   ;;  %v7679_v49 = vld [vmem:[%s9866_s1 + $0x2e0] sm:$0xff]  }
  0x2d   : >> { %6881 = vmatpush3.bf16.msra.mxu0 %v7616_v28  ;;  %v6291_v28 = vcombine.high %v210_v26, %v210_v26  ;;  %v7677_v47 = vld [vmem:[%s9866_s1 + $0x298] sm:$0xff]   ;;  %v7680_v50 = vld [vmem:[%s9866_s1 + $0x220] sm:$0xff]   ;;  %v7684_v54 = vld [vmem:[%s9866_s1 + $0x228] sm:$0xff]  }
  0x2e   : >> { %6903 = vmatpush3.bf16.msra.mxu1 %v7617_v29  ;;  %6882 = vmatprep.subr.bf16.mxu0 %v7618_v30  ;;  %v7662_v29 = vld [vmem:[%s9866_s1 + $0x240] sm:$0xff]   ;;  %v6293_v30 = vcombine.high %v211_v27, %v211_v27  ;;  %v7685_v55 = vld [vmem:[%s9866_s1 + $0x2a8] sm:$0xff]   ;;  %v7686_v56 = vld [vmem:[%s9866_s1 + $0x270] sm:$0xff]  }
  0x2f   : >> { %6904 = vmatprep.subr.bf16.mxu1 %v7619_v31  ;;  %v7663_v31 = vld [vmem:[%s9866_s1 + $0x2c0] sm:$0xff]   ;;  %v7687_v57 = vld [vmem:[%s9866_s1 + $0x2f0] sm:$0xff]   ;;  %v7713_v27 = vld [vmem:[%s9866_s1 + $0x398] sm:$0xff]  }
  0x30   : >> { %v7681_v51 = vld [vmem:[%s9866_s1 + $0x2a0] sm:$0xff]  }
  0x31   : >> { %6883 = vmatpush3.bf16.msra.mxu0 %v7620_v32  ;;  %v7664_v32 = vld [vmem:[%s9866_s1 + $0x200] sm:$0xff]  }
  0x32   : >> { %6905 = vmatpush3.bf16.msra.mxu1 %v7621_v33  ;;  %6912 = vmatprep.subr.bf16.mxu0 %v7626_v40  ;;  %v6290_v33 = vcombine.low %v210_v26, %v210_v26  ;;  %v7670_v40 = vld [vmem:[%s9866_s1 + $0x250] sm:$0xff]   ;;  %v7712_v26 = vld [vmem:[%s9866_s1 + $0x318] sm:$0xff]  }
  0x33   : >> { %6934 = vmatprep.subr.bf16.mxu1 %v7627_v41  ;;  %v7671_v41 = vld [vmem:[%s9866_s1 + $0x2d0] sm:$0xff]  }
  0x34   : >> { %609 = vmatmul.mubr.bf16.vlgmr.msra.gmra.mrb[0].mxu0 %v358_v59  ;;  %v7689_v59 = vld [vmem:[%s9866_s1 + $0x2b0] sm:$0xff]  }
  0x35   : >> { %649 = vmatmul.mubr.bf16.vlgmr.msra.gmra.mrb[0].mxu1 %v372_v60  ;;  %6913 = vmatpush3.bf16.msra.mxu0 %v7628_v52  ;;  %v7682_v52 = vld [vmem:[%s9866_s1 + $0x268] sm:$0xff]   ;;  %v7690_v60 = vld [vmem:[%s9866_s1 + $0x278] sm:$0xff]  }
  0x36   : >> { %6935 = vmatpush3.bf16.msra.mxu1 %v7629_v53  ;;  %6914 = vmatprep.subr.bf16.mxu0 %v7630_v58  ;;  %v7683_v53 = vld [vmem:[%s9866_s1 + $0x2e8] sm:$0xff]   ;;  %v7688_v58 = vld [vmem:[%s9866_s1 + $0x230] sm:$0xff]  }
  0x37   : >> { %6936 = vmatprep.subr.bf16.mxu1 %v7631_v61  ;;  %894 = vmatprep.mubr.bf16.mxu0 %v6291_v28  ;;  %v7691_v61 = vld [vmem:[%s9866_s1 + $0x2f8] sm:$0xff]   ;;  %v7714_v28 = vld [vmem:[%s9866_s1 + $0x360] sm:$0xff]  }
  0x38   : >> { %934 = vmatprep.mubr.bf16.mxu1 %v6293_v30  ;;  %v7716_v30 = vld [vmem:[%s9866_s1 + $0x320] sm:$0xff]  }
  0x39   : >> { %6915 = vmatpush3.bf16.msra.mxu0 %v7632_v62  ;;  %v7692_v62 = vld [vmem:[%s9866_s1 + $0x238] sm:$0xff]  }
  0x3a   : >> { %6937 = vmatpush3.bf16.msra.mxu1 %v7633_v63  ;;  %6916 = vmatprep.subr.bf16.mxu0 %v7634_v2  ;;  %v7693_v63 = vld [vmem:[%s9866_s1 + $0x2b8] sm:$0xff]   ;;  %v942_v2 = vld [vmem:[%s8340_s22] sm:$0xee] }
  0x3b   : >> { %6938 = vmatprep.subr.bf16.mxu1 %v7635_v3  ;;  %v943_v3 = vld [vmem:[%s8340_s22 + $0x8] sm:$0xee] }
  0x3d   : >> { %6917 = vmatpush3.bf16.msra.mxu0 %v7636_v4  ;;  %v6326_v4 = vcombine.low %v942_v2, %v942_v2 }
  0x3e   : >> { %6939 = vmatpush3.bf16.msra.mxu1 %v7637_v5  ;;  %6918 = vmatprep.subr.bf16.mxu0 %v7638_v6  ;;  %v6327_v5 = vcombine.high %v942_v2, %v942_v2  ;;  %v6328_v6 = vcombine.low %v943_v3, %v943_v3 }
  0x3f   : >> { %6940 = vmatprep.subr.bf16.mxu1 %v7639_v7  ;;  %v7698_v7 = vld [vmem:[%s9866_s1 + $0x340] sm:$0xff]  }
  0x41   : >> { %6919 = vmatpush3.bf16.msra.mxu0 %v7640_v8  ;;  %v6329_v8 = vcombine.high %v943_v3, %v943_v3 }
  0x42   : >> { %6941 = vmatpush3.bf16.msra.mxu1 %v7641_v9  ;;  %6920 = vmatprep.subr.bf16.mxu0 %v7642_v10  ;;  %v7699_v9 = vld [vmem:[%s9866_s1 + $0x3c0] sm:$0xff]   ;;  %v1018_v10 = vrot.slane %v6326_v4, 1 }
  0x43   : >> { %6942 = vmatprep.subr.bf16.mxu1 %v7643_v11  ;;  %v1019_v11 = vrot.slane %v6327_v5, 1 }
  0x45   : >> { %6921 = vmatpush3.bf16.msra.mxu0 %v7644_v12  ;;  %v1020_v12 = vrot.slane %v6328_v6, 1 }
  0x46   : >> { %6943 = vmatpush3.bf16.msra.mxu1 %v7645_v13  ;;  %6922 = vmatprep.subr.bf16.mxu0 %v7646_v14  ;;  %v7700_v13 = vld [vmem:[%s9866_s1 + $0x300] sm:$0xff]   ;;  %v1021_v14 = vrot.slane %v6329_v8, 1 }
  0x47   : >> { %6944 = vmatprep.subr.bf16.mxu1 %v7647_v15  ;;  %v7701_v15 = vld [vmem:[%s9866_s1 + $0x380] sm:$0xff]  }
  0x49   : >> { %6923 = vmatpush3.bf16.msra.mxu0 %v7648_v16  ;;  %v7702_v16 = vld [vmem:[%s9866_s1 + $0x348] sm:$0xff]  }
  0x4a   : >> { %6945 = vmatpush3.bf16.msra.mxu1 %v7649_v17  ;;  %6924 = vmatprep.subr.bf16.mxu0 %v7650_v18  ;;  %v7703_v17 = vld [vmem:[%s9866_s1 + $0x3c8] sm:$0xff]  }
  0x4b   : >> { %6946 = vmatprep.subr.bf16.mxu1 %v7651_v19  ;;  %v7704_v18 = vld [vmem:[%s9866_s1 + $0x308] sm:$0xff]  }
  0x4c   : >> { %v7705_v19 = vld [vmem:[%s9866_s1 + $0x388] sm:$0xff]  }
  0x4d   : >> { %6925 = vmatpush3.bf16.msra.mxu0 %v7652_v20  ;;  %v7706_v20 = vld [vmem:[%s9866_s1 + $0x350] sm:$0xff]  }
  0x4e   : >> { %6947 = vmatpush3.bf16.msra.mxu1 %v7653_v21  ;;  %6926 = vmatprep.subr.bf16.mxu0 %v7654_v22  ;;  %v7707_v21 = vld [vmem:[%s9866_s1 + $0x3d0] sm:$0xff]  }
  0x4f   : >> { %6948 = vmatprep.subr.bf16.mxu1 %v7655_v23  ;;  %v7708_v22 = vld [vmem:[%s9866_s1 + $0x310] sm:$0xff]  }
  0x50   : >> { %v7709_v23 = vld [vmem:[%s9866_s1 + $0x390] sm:$0xff]  }
  0x51   : >> { %6927 = vmatpush3.bf16.msra.mxu0 %v7656_v24  ;;  %v7710_v24 = vld [vmem:[%s9866_s1 + $0x358] sm:$0xff]  }
  0x52   : >> { %6949 = vmatpush3.bf16.msra.mxu1 %v7657_v25  ;;  %6956 = vmatprep.subr.bf16.mxu0 %v7662_v29  ;;  %v7711_v25 = vld [vmem:[%s9866_s1 + $0x3d8] sm:$0xff]   ;;  %v7715_v29 = vld [vmem:[%s9866_s1 + $0x3e0] sm:$0xff]  }
  0x53   : >> { %6978 = vmatprep.subr.bf16.mxu1 %v7663_v31  ;;  %v7717_v31 = vld [vmem:[%s9866_s1 + $0x3a0] sm:$0xff]  }
  0x54   : >> { %895 = vmatmul.mubr.bf16.vlgmr.msra.gmra.mrb[4].mxu0 %v6290_v33  ;;  %v7719_v33 = vld [vmem:[%s9866_s1 + $0x3e8] sm:$0xff]  }
  0x55   : >> { %935 = vmatmul.mubr.bf16.vlgmr.msra.gmra.mrb[4].mxu1 %v6292_v34  ;;  %6957 = vmatpush3.bf16.msra.mxu0 %v7664_v32  ;;  %v7718_v32 = vld [vmem:[%s9866_s1 + $0x368] sm:$0xff]  }
  0x56   : >> { %6979 = vmatpush3.bf16.msra.mxu1 %v7665_v35  ;;  %6958 = vmatprep.subr.bf16.mxu0 %v7666_v36  ;;  %v7720_v34 = vld [vmem:[%s9866_s1 + $0x328] sm:$0xff]   ;;  %v7722_v36 = vld [vmem:[%s9866_s1 + $0x370] sm:$0xff]  }
  0x57   : >> { %6980 = vmatprep.subr.bf16.mxu1 %v7667_v37  ;;  %1250 = vmatprep.mubr.bf16.mxu0 %v1019_v11  ;;  %v7721_v35 = vld [vmem:[%s9866_s1 + $0x3a8] sm:$0xff]   ;;  %v7723_v37 = vld [vmem:[%s9866_s1 + $0x3f0] sm:$0xff]  }
  0x58   : >> { %1290 = vmatprep.mubr.bf16.mxu1 %v1021_v14  ;;  %v7741_v11 = vld [vmem:[%s9866_s1 + $0x4c8] sm:$0xff]   ;;  %v7744_v14 = vld [vmem:[%s9866_s1 + $0x450] sm:$0xff]  }
  0x59   : >> { %6959 = vmatpush3.bf16.msra.mxu0 %v7668_v38  ;;  %v7724_v38 = vld [vmem:[%s9866_s1 + $0x330] sm:$0xff]  }
  0x5a   : >> { %6981 = vmatpush3.bf16.msra.mxu1 %v7669_v39  ;;  %6960 = vmatprep.subr.bf16.mxu0 %v7670_v40  ;;  %v7725_v39 = vld [vmem:[%s9866_s1 + $0x3b0] sm:$0xff]   ;;  %v7726_v40 = vld [vmem:[%s9866_s1 + $0x378] sm:$0xff]  }
  0x5b   : >> { %6982 = vmatprep.subr.bf16.mxu1 %v7671_v41  ;;  %v7727_v41 = vld [vmem:[%s9866_s1 + $0x3f8] sm:$0xff]  }
  0x5d   : >> { %6961 = vmatpush3.bf16.msra.mxu0 %v7672_v42  ;;  %v7728_v42 = vld [vmem:[%s9866_s1 + $0x338] sm:$0xff]  }
  0x5e   : >> { %6983 = vmatpush3.bf16.msra.mxu1 %v7673_v43  ;;  %6962 = vmatprep.subr.bf16.mxu0 %v7674_v44  ;;  %v7729_v43 = vld [vmem:[%s9866_s1 + $0x3b8] sm:$0xff]   ;;  %v7730_v44 = vld [vmem:[%s8340_s22] ss:$16 sps:$4 sm:$0x1e]  }
  0x5f   : >> { %6984 = vmatprep.subr.bf16.mxu1 %v7675_v45  ;;  %v7732_v45 = vld [vmem:[%s8340_s22 + $0x4] ss:$16 sps:$4 sm:$0x1e]  }
  0x61   : >> { %6963 = vmatpush3.bf16.msra.mxu0 %v7676_v46  ;;  %v7733_v46 = vld [vmem:[%s8340_s22 + $0x8] ss:$16 sps:$4 sm:$0x1e]  }
  0x62   : >> { %6985 = vmatpush3.bf16.msra.mxu1 %v7677_v47  ;;  %6964 = vmatprep.subr.bf16.mxu0 %v7678_v48  ;;  %v7736_v47 = vld [vmem:[%s9866_s1 + $0x440] sm:$0xff]   ;;  %v1392_v48 = vshrl.u32 %v7732_v45, 16 }
  0x63   : >> { %6986 = vmatprep.subr.bf16.mxu1 %v7679_v49  ;;  %v1395_v49 = vshll.u32 %v7732_v45, 16  ;;  %v7773_v45 = vld [vmem:[%s9866_s1 + $0x5c0] sm:$0xff]  }
  0x65   : >> { %6965 = vmatpush3.bf16.msra.mxu0 %v7680_v50  ;;  %v7735_v50 = vld [vmem:[%s8340_s22 + $0xc] ss:$16 sps:$4 sm:$0x1e]  }
  0x66   : >> { %6987 = vmatpush3.bf16.msra.mxu1 %v7681_v51  ;;  %6966 = vmatprep.subr.bf16.mxu0 %v7682_v52  ;;  %v1384_v51 = vshrl.u32 %v7730_v44, 16  ;;  %v1387_v52 = vshll.u32 %v7730_v44, 16 }
  0x67   : >> { %6988 = vmatprep.subr.bf16.mxu1 %v7683_v53  ;;  %v1400_v53 = vshrl.u32 %v7733_v46, 16 }
  0x69   : >> { %6967 = vmatpush3.bf16.msra.mxu0 %v7684_v54  ;;  %v1403_v54 = vshll.u32 %v7733_v46, 16  ;;  %v7774_v46 = vld [vmem:[%s9866_s1 + $0x500] sm:$0xff]  }
  0x6a   : >> { %6989 = vmatpush3.bf16.msra.mxu1 %v7685_v55  ;;  %6968 = vmatprep.subr.bf16.mxu0 %v7686_v56  ;;  %v7737_v55 = vld [vmem:[%s9866_s1 + $0x4c0] sm:$0xff]   ;;  %v1394_v56 = vrot.slane %v1392_v48, 1  ;;  %v7776_v48 = vld [vmem:[%s9866_s1 + $0x548] sm:$0xff]  }
  0x6b   : >> { %6990 = vmatprep.subr.bf16.mxu1 %v7687_v57  ;;  %v1397_v57 = vrot.slane %v1395_v49, 2  ;;  %v7777_v49 = vld [vmem:[%s9866_s1 + $0x5c8] sm:$0xff]  }
  0x6d   : >> { %6969 = vmatpush3.bf16.msra.mxu0 %v7688_v58  ;;  %v1408_v58 = vshrl.u32 %v7735_v50, 16  ;;  %v1398_v2 = vor.u32 %v1397_v57, %v1394_v56  ;;  %v7784_v56 = vld [vmem:[%s9866_s1 + $0x558] sm:$0xff]  }
  0x6e   : >> { %6991 = vmatpush3.bf16.msra.mxu1 %v7689_v59  ;;  %6970 = vmatprep.subr.bf16.mxu0 %v7690_v60  ;;  %v1411_v59 = vshll.u32 %v7735_v50, 16  ;;  %v1386_v60 = vrot.slane %v1384_v51, 1  ;;  %v7778_v50 = vld [vmem:[%s9866_s1 + $0x508] sm:$0xff]   ;;  %v7785_v57 = vld [vmem:[%s9866_s1 + $0x5d8] sm:$0xff]  }
  0x6f   : >> { %6992 = vmatprep.subr.bf16.mxu1 %v7691_v61  ;;  %v1389_v61 = vrot.slane %v1387_v52, 2  ;;  %v1410_v3 = vrot.slane %v1408_v58, 1  ;;  %v7779_v51 = vld [vmem:[%s9866_s1 + $0x588] sm:$0xff]   ;;  %v7780_v52 = vld [vmem:[%s9866_s1 + $0x550] sm:$0xff]   ;;  %v7786_v58 = vld [vmem:[%s9866_s1 + $0x518] sm:$0xff]  }
  0x70   : >> { %v1413_v4 = vrot.slane %v1411_v59, 2  ;;  %v7787_v59 = vld [vmem:[%s9866_s1 + $0x598] sm:$0xff]  }
  0x71   : >> { %6971 = vmatpush3.bf16.msra.mxu0 %v7692_v62  ;;  %v1402_v62 = vrot.slane %v1400_v53, 1  ;;  %v1390_v5 = vor.u32 %v1389_v61, %v1386_v60  ;;  %v7781_v53 = vld [vmem:[%s9866_s1 + $0x5d0] sm:$0xff]   ;;  %v7788_v60 = vld [vmem:[%s9866_s1 + $0x560] sm:$0xff]  }
  0x72   : >> { %6993 = vmatpush3.bf16.msra.mxu1 %v7693_v63  ;;  %7000 = vmatprep.subr.bf16.mxu0 %v7698_v7  ;;  %v1405_v63 = vrot.slane %v1403_v54, 2  ;;  %v7738_v7 = vld [vmem:[%s9866_s1 + $0x400] sm:$0xff]   ;;  %v1414_v8 = vor.u32 %v1413_v4, %v1410_v3  ;;  %v7782_v54 = vld [vmem:[%s9866_s1 + $0x510] sm:$0xff]   ;;  %v7793_v3 = vld [vmem:[%s9866_s1 + $0x5e8] sm:$0xff]  }
  0x73   : >> { %7022 = vmatprep.subr.bf16.mxu1 %v7699_v9  ;;  %v7739_v9 = vld [vmem:[%s9866_s1 + $0x480] sm:$0xff]   ;;  %v7794_v4 = vld [vmem:[%s9866_s1 + $0x528] sm:$0xff]  }
  0x74   : >> { %1251 = vmatmul.mubr.bf16.vlgmr.msra.gmra.mrb[8].mxu0 %v1018_v10  ;;  %v1406_v6 = vor.u32 %v1405_v63, %v1402_v62  ;;  %v7740_v10 = vld [vmem:[%s9866_s1 + $0x448] sm:$0xff]   ;;  %v7789_v61 = vld [vmem:[%s9866_s1 + $0x5e0] sm:$0xff]  }
  0x75   : >> { %1291 = vmatmul.mubr.bf16.vlgmr.msra.gmra.mrb[8].mxu1 %v1020_v12  ;;  %7001 = vmatpush3.bf16.msra.mxu0 %v7700_v13  ;;  %v7742_v12 = vld [vmem:[%s9866_s1 + $0x408] sm:$0xff]   ;;  %v7790_v62 = vld [vmem:[%s9866_s1 + $0x520] sm:$0xff]  }
  0x76   : >> { %7023 = vmatpush3.bf16.msra.mxu1 %v7701_v15  ;;  %7002 = vmatprep.subr.bf16.mxu0 %v7702_v16  ;;  %v7743_v13 = vld [vmem:[%s9866_s1 + $0x488] sm:$0xff]   ;;  %v7745_v15 = vld [vmem:[%s9866_s1 + $0x4d0] sm:$0xff]   ;;  %v7791_v63 = vld [vmem:[%s9866_s1 + $0x5a0] sm:$0xff]  }
  0x77   : >> { %7024 = vmatprep.subr.bf16.mxu1 %v7703_v17  ;;  %1643 = vmatprep.mubr.bf16.mxu0 %v1398_v2  ;;  %v7746_v16 = vld [vmem:[%s9866_s1 + $0x410] sm:$0xff]   ;;  %v7792_v2 = vld [vmem:[%s9866_s1 + $0x568] sm:$0xff]  }
  0x78   : >> { %1683 = vmatprep.mubr.bf16.mxu1 %v1414_v8  ;;  %v7747_v17 = vld [vmem:[%s9866_s1 + $0x490] sm:$0xff]  }
  0x79   : >> { %7003 = vmatpush3.bf16.msra.mxu0 %v7704_v18  ;;  %v7748_v18 = vld [vmem:[%s9866_s1 + $0x458] sm:$0xff]   ;;  %v7798_v8 = vld [vmem:[%s9866_s1 + $0x530] sm:$0xff]  }
  0x7a   : >> { %7025 = vmatpush3.bf16.msra.mxu1 %v7705_v19  ;;  %7004 = vmatprep.subr.bf16.mxu0 %v7706_v20  ;;  %v7749_v19 = vld [vmem:[%s9866_s1 + $0x4d8] sm:$0xff]  }
  0x7b   : >> { %7026 = vmatprep.subr.bf16.mxu1 %v7707_v21  ;;  %v7750_v20 = vld [vmem:[%s9866_s1 + $0x418] sm:$0xff]  }
  0x7c   : >> { %v7751_v21 = vld [vmem:[%s9866_s1 + $0x498] sm:$0xff]  }
  0x7d   : >> { %7005 = vmatpush3.bf16.msra.mxu0 %v7708_v22  ;;  %v7752_v22 = vld [vmem:[%s9866_s1 + $0x460] sm:$0xff]  }
  0x7e   : >> { %7027 = vmatpush3.bf16.msra.mxu1 %v7709_v23  ;;  %7006 = vmatprep.subr.bf16.mxu0 %v7710_v24  ;;  %v7753_v23 = vld [vmem:[%s9866_s1 + $0x4e0] sm:$0xff]  }
  0x7f   : >> { %7028 = vmatprep.subr.bf16.mxu1 %v7711_v25  ;;  %v7754_v24 = vld [vmem:[%s9866_s1 + $0x420] sm:$0xff]  }
  0x80   : >> { %v7755_v25 = vld [vmem:[%s9866_s1 + $0x4a0] sm:$0xff]  }
  0x81   : >> { %7007 = vmatpush3.bf16.msra.mxu0 %v7712_v26  ;;  %v7756_v26 = vld [vmem:[%s9866_s1 + $0x468] sm:$0xff]  }
  0x82   : >> { %7029 = vmatpush3.bf16.msra.mxu1 %v7713_v27  ;;  %7008 = vmatprep.subr.bf16.mxu0 %v7714_v28  ;;  %v7757_v27 = vld [vmem:[%s9866_s1 + $0x4e8] sm:$0xff]  }
  0x83   : >> { %7030 = vmatprep.subr.bf16.mxu1 %v7715_v29  ;;  %v7758_v28 = vld [vmem:[%s9866_s1 + $0x428] sm:$0xff]  }
  0x84   : >> { %v7759_v29 = vld [vmem:[%s9866_s1 + $0x4a8] sm:$0xff]  }
  0x85   : >> { %7009 = vmatpush3.bf16.msra.mxu0 %v7716_v30  ;;  %v7760_v30 = vld [vmem:[%s9866_s1 + $0x470] sm:$0xff]  }
  0x86   : >> { %7031 = vmatpush3.bf16.msra.mxu1 %v7717_v31  ;;  %7010 = vmatprep.subr.bf16.mxu0 %v7718_v32  ;;  %v7761_v31 = vld [vmem:[%s9866_s1 + $0x4f0] sm:$0xff]  }
  0x87   : >> { %7032 = vmatprep.subr.bf16.mxu1 %v7719_v33  ;;  %v7762_v32 = vld [vmem:[%s9866_s1 + $0x430] sm:$0xff]  }
  0x88   : >> { %v7763_v33 = vld [vmem:[%s9866_s1 + $0x4b0] sm:$0xff]  }
  0x89   : >> { %7011 = vmatpush3.bf16.msra.mxu0 %v7720_v34  ;;  %v7764_v34 = vld [vmem:[%s9866_s1 + $0x478] sm:$0xff]  }
  0x8a   : >> { %7033 = vmatpush3.bf16.msra.mxu1 %v7721_v35  ;;  %7012 = vmatprep.subr.bf16.mxu0 %v7722_v36  ;;  %v7765_v35 = vld [vmem:[%s9866_s1 + $0x4f8] sm:$0xff]  }
  0x8b   : >> { %7034 = vmatprep.subr.bf16.mxu1 %v7723_v37  ;;  %v7766_v36 = vld [vmem:[%s9866_s1 + $0x438] sm:$0xff]  }
  0x8c   : >> { %v7767_v37 = vld [vmem:[%s9866_s1 + $0x4b8] sm:$0xff]  }
  0x8d   : >> { %7013 = vmatpush3.bf16.msra.mxu0 %v7724_v38  ;;  %v6399_v38 = vld [vmem:[%s8340_s22 + $0x20] sm:$0x77] }
  0x8e   : >> { %7035 = vmatpush3.bf16.msra.mxu1 %v7725_v39  ;;  %7014 = vmatprep.subr.bf16.mxu0 %v7726_v40  ;;  %v6401_v39 = vcombine.low %v6399_v38, %v6399_v38  ;;  %v6402_v40 = vcombine.high %v6399_v38, %v6399_v38  ;;  %v7812_v38 = vld [vmem:[%s9866_s1 + $0x648] sm:$0xff]  }
  0x8f   : >> { %7036 = vmatprep.subr.bf16.mxu1 %v7727_v41  ;;  %v6400_v41 = vld [vmem:[%s8340_s22 + $0x28] sm:$0x77] }
  0x90   : >> { %v6403_v44 = vcombine.low %v6400_v41, %v6400_v41 }
  0x91   : >> { %7015 = vmatpush3.bf16.msra.mxu0 %v7728_v42  ;;  %v6404_v42 = vcombine.high %v6400_v41, %v6400_v41  ;;  %v7813_v41 = vld [vmem:[%s9866_s1 + $0x6c8] sm:$0xff]  }
  0x92   : >> { %7037 = vmatpush3.bf16.msra.mxu1 %v7729_v43  ;;  %7044 = vmatprep.subr.bf16.mxu0 %v7736_v47  ;;  %v7772_v43 = vld [vmem:[%s9866_s1 + $0x540] sm:$0xff]  }
  0x93   : >> { %7066 = vmatprep.subr.bf16.mxu1 %v7737_v55  ;;  %v7775_v47 = vld [vmem:[%s9866_s1 + $0x580] sm:$0xff]   ;;  %v7783_v55 = vld [vmem:[%s9866_s1 + $0x590] sm:$0xff]  }
  0x94   : >> { %1644 = vmatmul.mubr.bf16.vlgmr.msra.gmra.mrb[12].mxu0 %v1390_v5  ;;  %v7795_v5 = vld [vmem:[%s9866_s1 + $0x5a8] sm:$0xff]  }
  0x95   : >> { %7045 = vmatpush3.bf16.msra.mxu0 %v7738_v7  ;;  %1684 = vmatmul.mubr.bf16.vlgmr.msra.gmra.mrb[12].mxu1 %v1406_v6  ;;  %v7796_v6 = vld [vmem:[%s9866_s1 + $0x570] sm:$0xff]  }
  0x96   : >> { %7046 = vmatprep.subr.bf16.mxu0 %v7740_v10  ;;  %7067 = vmatpush3.bf16.msra.mxu1 %v7739_v9  ;;  %v7797_v7 = vld [vmem:[%s9866_s1 + $0x5f0] sm:$0xff]   ;;  %v7800_v10 = vld [vmem:[%s9866_s1 + $0x578] sm:$0xff]  }
  0x97   : >> { %7068 = vmatprep.subr.bf16.mxu1 %v7741_v11  ;;  %2000 = vmatprep.mubr.bf16.mxu0 %v6402_v40  ;;  %v7799_v9 = vld [vmem:[%s9866_s1 + $0x5b0] sm:$0xff]   ;;  %v7801_v11 = vld [vmem:[%s9866_s1 + $0x5f8] sm:$0xff]  }
  0x98   : >> { %2040 = vmatprep.mubr.bf16.mxu1 %v6404_v42  ;;  %v7814_v42 = vld [vmem:[%s9866_s1 + $0x608] sm:$0xff]  }
  0x99   : >> { %7047 = vmatpush3.bf16.msra.mxu0 %v7742_v12  ;;  %v7802_v12 = vld [vmem:[%s9866_s1 + $0x538] sm:$0xff]  }
  0x9a   : >> { %7048 = vmatprep.subr.bf16.mxu0 %v7744_v14  ;;  %7069 = vmatpush3.bf16.msra.mxu1 %v7743_v13  ;;  %v7803_v13 = vld [vmem:[%s9866_s1 + $0x5b8] sm:$0xff]   ;;  %v6437_v14 = vld [vmem:[%s8340_s22 + $0x20] sm:$0xff] }
  0x9b   : >> { %7070 = vmatprep.subr.bf16.mxu1 %v7745_v15  ;;  %v6438_v15 = vld [vmem:[%s8340_s22 + $0x28] sm:$0xff] }
  0x9d   : >> { %7049 = vmatpush3.bf16.msra.mxu0 %v7746_v16  ;;  %v6439_v16 = vcombine.low %v6437_v14, %v6437_v14 }
  0x9e   : >> { %7050 = vmatprep.subr.bf16.mxu0 %v7748_v18  ;;  %7071 = vmatpush3.bf16.msra.mxu1 %v7747_v17  ;;  %v6440_v17 = vcombine.high %v6437_v14, %v6437_v14  ;;  %v6441_v18 = vcombine.low %v6438_v15, %v6438_v15 }
  0x9f   : >> { %7072 = vmatprep.subr.bf16.mxu1 %v7749_v19  ;;  %v6442_v19 = vcombine.high %v6438_v15, %v6438_v15  ;;  %v7845_v15 = vld [vmem:[%s9866_s1 + $0x7c0] sm:$0xff]  }
  0xa1   : >> { %7051 = vmatpush3.bf16.msra.mxu0 %v7750_v20  ;;  %v7808_v20 = vld [vmem:[%s9866_s1 + $0x640] sm:$0xff]  }
  0xa2   : >> { %7052 = vmatprep.subr.bf16.mxu0 %v7752_v22  ;;  %7073 = vmatpush3.bf16.msra.mxu1 %v7751_v21  ;;  %v7809_v21 = vld [vmem:[%s9866_s1 + $0x6c0] sm:$0xff]   ;;  %v2133_v22 = vshrl.u32 %v6440_v17, 16 }
  0xa3   : >> { %7074 = vmatprep.subr.bf16.mxu1 %v7753_v23  ;;  %v2135_v23 = vshll.u32 %v6440_v17, 16 }
  0xa5   : >> { %7053 = vmatpush3.bf16.msra.mxu0 %v7754_v24  ;;  %v2147_v24 = vshrl.u32 %v6442_v19, 16 }
  0xa6   : >> { %7054 = vmatprep.subr.bf16.mxu0 %v7756_v26  ;;  %7075 = vmatpush3.bf16.msra.mxu1 %v7755_v25  ;;  %v2149_v25 = vshll.u32 %v6442_v19, 16  ;;  %v2126_v26 = vshrl.u32 %v6439_v16, 16  ;;  %v7847_v19 = vld [vmem:[%s9866_s1 + $0x780] sm:$0xff]  }
  0xa7   : >> { %7076 = vmatprep.subr.bf16.mxu1 %v7757_v27  ;;  %v2128_v27 = vshll.u32 %v6439_v16, 16  ;;  %v7846_v16 = vld [vmem:[%s9866_s1 + $0x700] sm:$0xff]  }
  0xa9   : >> { %7055 = vmatpush3.bf16.msra.mxu0 %v7758_v28  ;;  %v2140_v28 = vshrl.u32 %v6441_v18, 16 }
  0xaa   : >> { %7056 = vmatprep.subr.bf16.mxu0 %v7760_v30  ;;  %7077 = vmatpush3.bf16.msra.mxu1 %v7759_v29  ;;  %v2142_v29 = vshll.u32 %v6441_v18, 16  ;;  %v2137_v30 = vrot.slane %v2135_v23, 1  ;;  %v7851_v23 = vld [vmem:[%s9866_s1 + $0x788] sm:$0xff]  }
  0xab   : >> { %7078 = vmatprep.subr.bf16.mxu1 %v7761_v31  ;;  %v2151_v31 = vrot.slane %v2149_v25, 1  ;;  %v7853_v25 = vld [vmem:[%s9866_s1 + $0x7d0] sm:$0xff]  }
  0xad   : >> { %7057 = vmatpush3.bf16.msra.mxu0 %v7762_v32  ;;  %v7810_v32 = vld [vmem:[%s9866_s1 + $0x600] sm:$0xff]  }
  0xae   : >> { %7058 = vmatprep.subr.bf16.mxu0 %v7764_v34  ;;  %7079 = vmatpush3.bf16.msra.mxu1 %v7763_v33  ;;  %v7811_v33 = vld [vmem:[%s9866_s1 + $0x680] sm:$0xff]   ;;  %v2130_v34 = vrot.slane %v2128_v27, 1  ;;  %v7855_v27 = vld [vmem:[%s9866_s1 + $0x790] sm:$0xff]  }
  0xaf   : >> { %7080 = vmatprep.subr.bf16.mxu1 %v7765_v35  ;;  %v2144_v35 = vrot.slane %v2142_v29, 1  ;;  %v7857_v29 = vld [vmem:[%s9866_s1 + $0x7d8] sm:$0xff]  }
  0xb1   : >> { %7059 = vmatpush3.bf16.msra.mxu0 %v7766_v36  ;;  %v2138_v36 = vor.u32 %v2137_v30, %v2133_v22  ;;  %v2145_v40 = vor.u32 %v2144_v35, %v2140_v28  ;;  %v7850_v22 = vld [vmem:[%s9866_s1 + $0x708] sm:$0xff]   ;;  %v7856_v28 = vld [vmem:[%s9866_s1 + $0x758] sm:$0xff]   ;;  %v7861_v35 = vld [vmem:[%s9866_s1 + $0x7e0] sm:$0xff]  }
  0xb2   : >> { %7081 = vmatpush3.bf16.msra.mxu1 %v7767_v37  ;;  %7088 = vmatprep.subr.bf16.mxu0 %v7772_v43  ;;  %v2152_v37 = vor.u32 %v2151_v31, %v2147_v24  ;;  %v7815_v43 = vld [vmem:[%s9866_s1 + $0x688] sm:$0xff]   ;;  %v7852_v24 = vld [vmem:[%s9866_s1 + $0x750] sm:$0xff]   ;;  %v7858_v30 = vld [vmem:[%s9866_s1 + $0x718] sm:$0xff]  }
  0xb3   : >> { %7110 = vmatprep.subr.bf16.mxu1 %v7773_v45  ;;  %v7817_v45 = vld [vmem:[%s9866_s1 + $0x6d0] sm:$0xff]   ;;  %v7859_v31 = vld [vmem:[%s9866_s1 + $0x798] sm:$0xff]  }
  0xb4   : >> { %2001 = vmatmul.mubr.bf16.vlgmr.msra.gmra.mrb[16].mxu0 %v6401_v39  ;;  %v2131_v39 = vor.u32 %v2130_v34, %v2126_v26  ;;  %v7854_v26 = vld [vmem:[%s9866_s1 + $0x710] sm:$0xff]  }
  0xb5   : >> { %7089 = vmatpush3.bf16.msra.mxu0 %v7774_v46  ;;  %2041 = vmatmul.mubr.bf16.vlgmr.msra.gmra.mrb[16].mxu1 %v6403_v44  ;;  %v7816_v44 = vld [vmem:[%s9866_s1 + $0x650] sm:$0xff]  }
  0xb6   : >> { %7111 = vmatpush3.bf16.msra.mxu1 %v7775_v47  ;;  %7090 = vmatprep.subr.bf16.mxu0 %v7776_v48  ;;  %v7818_v46 = vld [vmem:[%s9866_s1 + $0x610] sm:$0xff]   ;;  %v7820_v48 = vld [vmem:[%s9866_s1 + $0x658] sm:$0xff]  }
  0xb7   : >> { %7112 = vmatprep.subr.bf16.mxu1 %v7777_v49  ;;  %2381 = vmatprep.mubr.bf16.mxu0 %v2138_v36  ;;  %v7819_v47 = vld [vmem:[%s9866_s1 + $0x690] sm:$0xff]   ;;  %v7821_v49 = vld [vmem:[%s9866_s1 + $0x6d8] sm:$0xff]  }
  0xb8   : >> { %2421 = vmatprep.mubr.bf16.mxu1 %v2152_v37  ;;  %v7862_v37 = vld [vmem:[%s9866_s1 + $0x720] sm:$0xff]  }
  0xb9   : >> { %7091 = vmatpush3.bf16.msra.mxu0 %v7778_v50  ;;  %v7822_v50 = vld [vmem:[%s9866_s1 + $0x618] sm:$0xff]  }
  0xba   : >> { %7113 = vmatpush3.bf16.msra.mxu1 %v7779_v51  ;;  %7092 = vmatprep.subr.bf16.mxu0 %v7780_v52  ;;  %v7823_v51 = vld [vmem:[%s9866_s1 + $0x698] sm:$0xff]   ;;  %v7824_v52 = vld [vmem:[%s9866_s1 + $0x660] sm:$0xff]  }
  0xbb   : >> { %7114 = vmatprep.subr.bf16.mxu1 %v7781_v53  ;;  %v7825_v53 = vld [vmem:[%s9866_s1 + $0x6e0] sm:$0xff]  }
  0xbd   : >> { %7093 = vmatpush3.bf16.msra.mxu0 %v7782_v54  ;;  %v7826_v54 = vld [vmem:[%s9866_s1 + $0x620] sm:$0xff]  }
  0xbe   : >> { %7115 = vmatpush3.bf16.msra.mxu1 %v7783_v55  ;;  %7094 = vmatprep.subr.bf16.mxu0 %v7784_v56  ;;  %v7827_v55 = vld [vmem:[%s9866_s1 + $0x6a0] sm:$0xff]   ;;  %v7828_v56 = vld [vmem:[%s9866_s1 + $0x668] sm:$0xff]  }
  0xbf   : >> { %7116 = vmatprep.subr.bf16.mxu1 %v7785_v57  ;;  %v7829_v57 = vld [vmem:[%s9866_s1 + $0x6e8] sm:$0xff]  }
  0xc1   : >> { %7095 = vmatpush3.bf16.msra.mxu0 %v7786_v58  ;;  %v7830_v58 = vld [vmem:[%s9866_s1 + $0x628] sm:$0xff]  }
  0xc2   : >> { %7117 = vmatpush3.bf16.msra.mxu1 %v7787_v59  ;;  %7096 = vmatprep.subr.bf16.mxu0 %v7788_v60  ;;  %v7831_v59 = vld [vmem:[%s9866_s1 + $0x6a8] sm:$0xff]   ;;  %v7832_v60 = vld [vmem:[%s9866_s1 + $0x670] sm:$0xff]  }
  0xc3   : >> { %7118 = vmatprep.subr.bf16.mxu1 %v7789_v61  ;;  %v7833_v61 = vld [vmem:[%s9866_s1 + $0x6f0] sm:$0xff]  }
  0xc5   : >> { %7097 = vmatpush3.bf16.msra.mxu0 %v7790_v62  ;;  %v7834_v62 = vld [vmem:[%s9866_s1 + $0x630] sm:$0xff]  }
  0xc6   : >> { %7119 = vmatpush3.bf16.msra.mxu1 %v7791_v63  ;;  %7098 = vmatprep.subr.bf16.mxu0 %v7792_v2  ;;  %v7835_v63 = vld [vmem:[%s9866_s1 + $0x6b0] sm:$0xff]   ;;  %v7836_v2 = vld [vmem:[%s9866_s1 + $0x678] sm:$0xff]  }
  0xc7   : >> { %7120 = vmatprep.subr.bf16.mxu1 %v7793_v3  ;;  %v7837_v3 = vld [vmem:[%s9866_s1 + $0x6f8] sm:$0xff]  }
  0xc9   : >> { %7099 = vmatpush3.bf16.msra.mxu0 %v7794_v4  ;;  %v7838_v4 = vld [vmem:[%s9866_s1 + $0x638] sm:$0xff]  }
  0xca   : >> { %7121 = vmatpush3.bf16.msra.mxu1 %v7795_v5  ;;  %7100 = vmatprep.subr.bf16.mxu0 %v7796_v6  ;;  %v7839_v5 = vld [vmem:[%s9866_s1 + $0x6b8] sm:$0xff]   ;;  %v6475_v6 = vld [vmem:[%s8340_s22 + $0x20] sm:$0xee] }
  0xcb   : >> { %7122 = vmatprep.subr.bf16.mxu1 %v7797_v7  ;;  %v6477_v7 = vcombine.low %v6475_v6, %v6475_v6 }
  0xcd   : >> { %7101 = vmatpush3.bf16.msra.mxu0 %v7798_v8  ;;  %v6478_v8 = vcombine.high %v6475_v6, %v6475_v6 }
  0xce   : >> { %7123 = vmatpush3.bf16.msra.mxu1 %v7799_v9  ;;  %7102 = vmatprep.subr.bf16.mxu0 %v7800_v10  ;;  %v6476_v9 = vld [vmem:[%s8340_s22 + $0x28] sm:$0xee] }
  0xcf   : >> { %7124 = vmatprep.subr.bf16.mxu1 %v7801_v11  ;;  %v6479_v10 = vcombine.low %v6476_v9, %v6476_v9  ;;  %v6480_v11 = vcombine.high %v6476_v9, %v6476_v9  ;;  %v2507_v14 = vrot.slane %v6478_v8, 1 }
  0xd1   : >> { %7103 = vmatpush3.bf16.msra.mxu0 %v7802_v12  ;;  %v7844_v12 = vld [vmem:[%s9866_s1 + $0x740] sm:$0xff]   ;;  %v2508_v17 = vrot.slane %v6479_v10, 1  ;;  %v2509_v18 = vrot.slane %v6480_v11, 1 }
  0xd2   : >> { %7125 = vmatpush3.bf16.msra.mxu1 %v7803_v13  ;;  %7132 = vmatprep.subr.bf16.mxu0 %v7808_v20  ;;  %v2506_v13 = vrot.slane %v6477_v7, 1  ;;  %v7848_v20 = vld [vmem:[%s9866_s1 + $0x748] sm:$0xff]  }
  0xd3   : >> { %7154 = vmatprep.subr.bf16.mxu1 %v7809_v21  ;;  %v7849_v21 = vld [vmem:[%s9866_s1 + $0x7c8] sm:$0xff]  }
  0xd4   : >> { %2382 = vmatmul.mubr.bf16.vlgmr.msra.gmra.mrb[20].mxu0 %v2131_v39 }
  0xd5   : >> { %2422 = vmatmul.mubr.bf16.vlgmr.msra.gmra.mrb[20].mxu1 %v2145_v40  ;;  %7133 = vmatpush3.bf16.msra.mxu0 %v7810_v32  ;;  %v7863_v40 = vld [vmem:[%s9866_s1 + $0x7a0] sm:$0xff]  }
  0xd6   : >> { %7155 = vmatpush3.bf16.msra.mxu1 %v7811_v33  ;;  %7134 = vmatprep.subr.bf16.mxu0 %v7812_v38  ;;  %v7860_v33 = vld [vmem:[%s9866_s1 + $0x760] sm:$0xff]  }
  0xd7   : >> { %7156 = vmatprep.subr.bf16.mxu1 %v7813_v41  ;;  %2738 = vmatprep.mubr.bf16.mxu0 %v2507_v14 }
  0xd8   : >> { %2778 = vmatprep.mubr.bf16.mxu1 %v2509_v18 }
  0xd9   : >> { %7135 = vmatpush3.bf16.msra.mxu0 %v7814_v42 }
  0xda   : >> { %7157 = vmatpush3.bf16.msra.mxu1 %v7815_v43  ;;  %7136 = vmatprep.subr.bf16.mxu0 %v7816_v44  ;;  %v7864_v43 = vld [vmem:[%s9866_s1 + $0x768] sm:$0xff]  }
  0xdb   : >> { %7158 = vmatprep.subr.bf16.mxu1 %v7817_v45 }
  0xdd   : >> { %7137 = vmatpush3.bf16.msra.mxu0 %v7818_v46  ;;  %v7865_v46 = vld [vmem:[%s9866_s1 + $0x7e8] sm:$0xff]  }
  0xde   : >> { %7159 = vmatpush3.bf16.msra.mxu1 %v7819_v47  ;;  %7138 = vmatprep.subr.bf16.mxu0 %v7820_v48  ;;  %v7866_v48 = vld [vmem:[%s9866_s1 + $0x728] sm:$0xff]  }
  0xdf   : >> { %7160 = vmatprep.subr.bf16.mxu1 %v7821_v49 }
  0xe1   : >> { %7139 = vmatpush3.bf16.msra.mxu0 %v7822_v50  ;;  %v7867_v50 = vld [vmem:[%s9866_s1 + $0x7a8] sm:$0xff]  }
  0xe2   : >> { %7161 = vmatpush3.bf16.msra.mxu1 %v7823_v51  ;;  %7140 = vmatprep.subr.bf16.mxu0 %v7824_v52  ;;  %v7868_v51 = vld [vmem:[%s9866_s1 + $0x770] sm:$0xff]  }
  0xe3   : >> { %7162 = vmatprep.subr.bf16.mxu1 %v7825_v53  ;;  %v7869_v52 = vld [vmem:[%s9866_s1 + $0x7f0] sm:$0xff]  }
  0xe4   : >> { %v7870_v53 = vld [vmem:[%s9866_s1 + $0x730] sm:$0xff]  }
  0xe5   : >> { %7141 = vmatpush3.bf16.msra.mxu0 %v7826_v54  ;;  %v7871_v54 = vld [vmem:[%s9866_s1 + $0x7b0] sm:$0xff]  }
  0xe6   : >> { %7163 = vmatpush3.bf16.msra.mxu1 %v7827_v55  ;;  %7142 = vmatprep.subr.bf16.mxu0 %v7828_v56  ;;  %v7872_v55 = vld [vmem:[%s9866_s1 + $0x778] sm:$0xff]  }
  0xe7   : >> { %7164 = vmatprep.subr.bf16.mxu1 %v7829_v57  ;;  %v7873_v56 = vld [vmem:[%s9866_s1 + $0x7f8] sm:$0xff]  }
  0xe8   : >> { %v7874_v57 = vld [vmem:[%s9866_s1 + $0x738] sm:$0xff]  }
  0xe9   : >> { %7143 = vmatpush3.bf16.msra.mxu0 %v7830_v58  ;;  %v7875_v58 = vld [vmem:[%s9866_s1 + $0x7b8] sm:$0xff]  }
  0xea   : >> { %7165 = vmatpush3.bf16.msra.mxu1 %v7831_v59  ;;  %7144 = vmatprep.subr.bf16.mxu0 %v7832_v60  ;;  %v7876_v59 = vld [vmem:[%s8340_s22 + $0x20] ss:$16 sps:$4 sm:$0x1e]  }
  0xeb   : >> { %7166 = vmatprep.subr.bf16.mxu1 %v7833_v61  ;;  %v7882_v60 = vld [vmem:[%s9866_s1 + $0x840] sm:$0xff]   ;;  %v2875_v6 = vshll.u32 %v7876_v59, 16 }
  0xec   : >> { %v7878_v61 = vld [vmem:[%s8340_s22 + $0x24] ss:$16 sps:$4 sm:$0x1e]  }
  0xed   : >> { %7145 = vmatpush3.bf16.msra.mxu0 %v7834_v62  ;;  %v7883_v62 = vld [vmem:[%s9866_s1 + $0x8c0] sm:$0xff]   ;;  %v2877_v14 = vrot.slane %v2875_v6, 2 }
  0xee   : >> { %7167 = vmatpush3.bf16.msra.mxu1 %v7835_v63  ;;  %7146 = vmatprep.subr.bf16.mxu0 %v7836_v2  ;;  %v7879_v63 = vld [vmem:[%s8340_s22 + $0x28] ss:$16 sps:$4 sm:$0x1e]   ;;  %v2872_v2 = vshrl.u32 %v7876_v59, 16  ;;  %v7908_v59 = vld [vmem:[%s9866_s1 + $0x830] sm:$0xff]  }
  0xef   : >> { %7168 = vmatprep.subr.bf16.mxu1 %v7837_v3  ;;  %v2880_v3 = vshrl.u32 %v7878_v61, 16  ;;  %v2888_v8 = vshrl.u32 %v7879_v63, 16  ;;  %v2891_v9 = vshll.u32 %v7879_v63, 16  ;;  %v7912_v63 = vld [vmem:[%s9866_s1 + $0x838] sm:$0xff]  }
  0xf0   : >> { %v2874_v7 = vrot.slane %v2872_v2, 1  ;;  %v7913_v2 = vld [vmem:[%s9866_s1 + $0x8b8] sm:$0xff]  }
  0xf1   : >> { %7147 = vmatpush3.bf16.msra.mxu0 %v7838_v4  ;;  %v2883_v4 = vshll.u32 %v7878_v61, 16  ;;  %v2882_v10 = vrot.slane %v2880_v3, 1  ;;  %v7910_v61 = vld [vmem:[%s9866_s1 + $0x878] sm:$0xff]   ;;  %v6554_v3 = vld [vmem:[%s8340_s22 + $0x40] sm:$0x77] }
  0xf2   : >> { %7169 = vmatpush3.bf16.msra.mxu1 %v7839_v5  ;;  %7176 = vmatprep.subr.bf16.mxu0 %v7844_v12  ;;  %v7881_v5 = vld [vmem:[%s8340_s22 + $0x2c] ss:$16 sps:$4 sm:$0x1e]   ;;  %v6557_v6 = vcombine.high %v6554_v3, %v6554_v3 }
  0xf3   : >> { %7198 = vmatprep.subr.bf16.mxu1 %v7845_v15  ;;  %v2885_v11 = vrot.slane %v2883_v4, 2  ;;  %v2896_v12 = vshrl.u32 %v7881_v5, 16  ;;  %v2890_v15 = vrot.slane %v2888_v8, 1  ;;  %v6555_v4 = vld [vmem:[%s8340_s22 + $0x48] sm:$0x77]  ;;  %v7918_v8 = vld [vmem:[%s9866_s1 + $0x940] sm:$0xff]  }
  0xf4   : >> { %2739 = vmatmul.mubr.bf16.vlgmr.msra.gmra.mrb[24].mxu0 %v2506_v13  ;;  %v2899_v13 = vshll.u32 %v7881_v5, 16  ;;  %v6556_v5 = vcombine.low %v6554_v3, %v6554_v3 }
  0xf5   : >> { %2779 = vmatmul.mubr.bf16.vlgmr.msra.gmra.mrb[24].mxu1 %v2508_v17  ;;  %7177 = vmatpush3.bf16.msra.mxu0 %v7846_v16  ;;  %v2893_v16 = vrot.slane %v2891_v9, 2  ;;  %v7884_v17 = vld [vmem:[%s9866_s1 + $0x800] sm:$0xff]   ;;  %v2886_v18 = vor.u32 %v2885_v11, %v2882_v10  ;;  %v6558_v10 = vcombine.low %v6555_v4, %v6555_v4 }
  0xf6   : >> { %7199 = vmatpush3.bf16.msra.mxu1 %v7847_v19  ;;  %7178 = vmatprep.subr.bf16.mxu0 %v7848_v20  ;;  %v2898_v19 = vrot.slane %v2896_v12, 1  ;;  %v2901_v20 = vrot.slane %v2899_v13, 2  ;;  %v7919_v9 = vld [vmem:[%s9866_s1 + $0x9c0] sm:$0xff]   ;;  %v7922_v13 = vld [vmem:[%s9866_s1 + $0x948] sm:$0xff]  }
  0xf7   : >> { %7200 = vmatprep.subr.bf16.mxu1 %v7849_v21  ;;  %v7885_v21 = vld [vmem:[%s9866_s1 + $0x880] sm:$0xff]   ;;  %3131 = vmatprep.mubr.bf16.mxu0 %v2886_v18  ;;  %v7927_v18 = vld [vmem:[%s9866_s1 + $0x9d0] sm:$0xff]  }
  0xf8   : >> { %v7920_v11 = vld [vmem:[%s9866_s1 + $0x900] sm:$0xff]  }
  0xf9   : >> { %7179 = vmatpush3.bf16.msra.mxu0 %v7850_v22  ;;  %v2878_v22 = vor.u32 %v2877_v14, %v2874_v7  ;;  %v6559_v7 = vcombine.high %v6555_v4, %v6555_v4  ;;  %v7921_v12 = vld [vmem:[%s9866_s1 + $0x980] sm:$0xff]   ;;  %v7923_v14 = vld [vmem:[%s9866_s1 + $0x9c8] sm:$0xff]  }
  0xfa   : >> { %7201 = vmatpush3.bf16.msra.mxu1 %v7851_v23  ;;  %7180 = vmatprep.subr.bf16.mxu0 %v7852_v24  ;;  %v2894_v23 = vor.u32 %v2893_v16, %v2890_v15  ;;  %v2902_v24 = vor.u32 %v2901_v20, %v2898_v19  ;;  %v7924_v15 = vld [vmem:[%s9866_s1 + $0x908] sm:$0xff]   ;;  %v7928_v20 = vld [vmem:[%s9866_s1 + $0x910] sm:$0xff]  }
  0xfb   : >> { %7202 = vmatprep.subr.bf16.mxu1 %v7853_v25  ;;  %v7886_v25 = vld [vmem:[%s9866_s1 + $0x848] sm:$0xff]  }
  0xfc   : >> { %3171 = vmatprep.mubr.bf16.mxu1 %v2902_v24  ;;  %v7925_v16 = vld [vmem:[%s9866_s1 + $0x988] sm:$0xff]   ;;  %v7930_v24 = vld [vmem:[%s9866_s1 + $0x958] sm:$0xff]  }
  0xfd   : >> { %7181 = vmatpush3.bf16.msra.mxu0 %v7854_v26  ;;  %v7887_v26 = vld [vmem:[%s9866_s1 + $0x8c8] sm:$0xff]  }
  0xfe   : >> { %7203 = vmatpush3.bf16.msra.mxu1 %v7855_v27  ;;  %7182 = vmatprep.subr.bf16.mxu0 %v7856_v28  ;;  %v7888_v27 = vld [vmem:[%s9866_s1 + $0x808] sm:$0xff]  }
  0xff   : >> { %7204 = vmatprep.subr.bf16.mxu1 %v7857_v29  ;;  %v7889_v28 = vld [vmem:[%s9866_s1 + $0x888] sm:$0xff]   ;;  %v7890_v29 = vld [vmem:[%s9866_s1 + $0x850] sm:$0xff]  }
 0x101   : >> { %7183 = vmatpush3.bf16.msra.mxu0 %v7858_v30  ;;  %v7891_v30 = vld [vmem:[%s9866_s1 + $0x8d0] sm:$0xff]  }
 0x102   : >> { %7205 = vmatpush3.bf16.msra.mxu1 %v7859_v31  ;;  %7184 = vmatprep.subr.bf16.mxu0 %v7860_v33  ;;  %v7892_v31 = vld [vmem:[%s9866_s1 + $0x810] sm:$0xff]  }
 0x103   : >> { %7206 = vmatprep.subr.bf16.mxu1 %v7861_v35  ;;  %v7893_v33 = vld [vmem:[%s9866_s1 + $0x890] sm:$0xff]   ;;  %v7894_v35 = vld [vmem:[%s9866_s1 + $0x858] sm:$0xff]  }
 0x105   : >> { %7185 = vmatpush3.bf16.msra.mxu0 %v7862_v37  ;;  %v7895_v37 = vld [vmem:[%s9866_s1 + $0x8d8] sm:$0xff]  }
 0x106   : >> { %7207 = vmatpush3.bf16.msra.mxu1 %v7863_v40  ;;  %7186 = vmatprep.subr.bf16.mxu0 %v7864_v43  ;;  %v7896_v40 = vld [vmem:[%s9866_s1 + $0x818] sm:$0xff]  }
 0x107   : >> { %v6884_v32 = vpop.f32.mrb[0].mxu0  ;;  %7208 = vmatprep.subr.bf16.mxu1 %v7865_v46  ;;  %v7897_v43 = vld [vmem:[%s9866_s1 + $0x898] sm:$0xff]  }
 0x108   : >> { %v6906_v34 = vpop.f32.mrb[0].mxu1  ;;  %v6885_v36 = vpop.f32.mrb[1].mxu0 }
 0x109   : >> { %v6886_v38 = vadd.f32 %v6885_v36, %v6884_v32  ;;  %v6907_v39 = vpop.f32.mrb[1].mxu1  ;;  %v6887_v42 = vpop.f32.mrb[2].mxu0  ;;  %7187 = vmatpush3.bf16.msra.mxu0 %v7866_v48 }
 0x10a   : >> { %v6908_v41 = vadd.f32 %v6907_v39, %v6906_v34  ;;  %v6909_v44 = vpop.f32.mrb[2].mxu1  ;;  %v6888_v47 = vpop.f32.mrb[3].mxu0  ;;  %7209 = vmatpush3.bf16.msra.mxu1 %v7867_v50  ;;  %7188 = vmatprep.subr.bf16.mxu0 %v7868_v51 }
 0x10b   : >> { %v6910_v49 = vpop.f32.mrb[3].mxu1  ;;  %7210 = vmatprep.subr.bf16.mxu1 %v7869_v52  ;;  %v7898_v47 = vld [vmem:[%s9866_s1 + $0x860] sm:$0xff]  }
 0x10c   : >> { %v9003_v45 = vadd.f32 %v6908_v41, %v6886_v38  ;;  %v7899_v49 = vld [vmem:[%s9866_s1 + $0x8e0] sm:$0xff]  }
 0x10d   : >> { %7189 = vmatpush3.bf16.msra.mxu0 %v7870_v53  ;;  %v7901_v52 = vld [vmem:[%s9866_s1 + $0x8a0] sm:$0xff]   ;;  %v7902_v53 = vld [vmem:[%s9866_s1 + $0x868] sm:$0xff]  }
 0x10e   : >> { %7211 = vmatpush3.bf16.msra.mxu1 %v7871_v54  ;;  %7190 = vmatprep.subr.bf16.mxu0 %v7872_v55  ;;  %v7903_v54 = vld [vmem:[%s9866_s1 + $0x8e8] sm:$0xff]  }
 0x10f   : >> { %7212 = vmatprep.subr.bf16.mxu1 %v7873_v56  ;;  %v7904_v55 = vld [vmem:[%s9866_s1 + $0x828] sm:$0xff]  }
 0x110   : >> { %v7905_v56 = vld [vmem:[%s9866_s1 + $0x8a8] sm:$0xff]  }
 0x111   : >> { %7191 = vmatpush3.bf16.msra.mxu0 %v7874_v57  ;;  %v7906_v57 = vld [vmem:[%s9866_s1 + $0x870] sm:$0xff]  }
 0x112   : >> { %7213 = vmatpush3.bf16.msra.mxu1 %v7875_v58  ;;  %7220 = vmatprep.subr.bf16.mxu0 %v7882_v60  ;;  %v7907_v58 = vld [vmem:[%s9866_s1 + $0x8f0] sm:$0xff]  }
 0x113   : >> { %7242 = vmatprep.subr.bf16.mxu1 %v7883_v62  ;;  %v7909_v60 = vld [vmem:[%s9866_s1 + $0x8b0] sm:$0xff]   ;;  %v7911_v62 = vld [vmem:[%s9866_s1 + $0x8f8] sm:$0xff]  }
 0x114   : >> { %3132 = vmatmul.mubr.bf16.vlgmr.msra.gmra.mrb[28].mxu0 %v2878_v22  ;;  %v7929_v22 = vld [vmem:[%s9866_s1 + $0x990] sm:$0xff]  }
 0x115   : >> { %7221 = vmatpush3.bf16.msra.mxu0 %v7884_v17  ;;  %3172 = vmatmul.mubr.bf16.vlgmr.msra.gmra.mrb[28].mxu1 %v2894_v23  ;;  %v7926_v17 = vld [vmem:[%s9866_s1 + $0x950] sm:$0xff]  }
 0x116   : >> { %7222 = vmatprep.subr.bf16.mxu0 %v7886_v25  ;;  %7243 = vmatpush3.bf16.msra.mxu1 %v7885_v21 }
 0x117   : >> { %7244 = vmatprep.subr.bf16.mxu1 %v7887_v26  ;;  %3488 = vmatprep.mubr.bf16.mxu0 %v6557_v6 }
 0x118   : >> { %3528 = vmatprep.mubr.bf16.mxu1 %v6559_v7 }
 0x119   : >> { %7223 = vmatpush3.bf16.msra.mxu0 %v7888_v27  ;;  %v7931_v27 = vld [vmem:[%s9866_s1 + $0x9d8] sm:$0xff]  }
 0x11a   : >> { %7224 = vmatprep.subr.bf16.mxu0 %v7890_v29  ;;  %7245 = vmatpush3.bf16.msra.mxu1 %v7889_v28 }
 0x11b   : >> { %7246 = vmatprep.subr.bf16.mxu1 %v7891_v30  ;;  %v7932_v30 = vld [vmem:[%s9866_s1 + $0x918] sm:$0xff]  }
 0x11d   : >> { %7225 = vmatpush3.bf16.msra.mxu0 %v7892_v31 }
 0x11e   : >> { %7226 = vmatprep.subr.bf16.mxu0 %v7894_v35  ;;  %7247 = vmatpush3.bf16.msra.mxu1 %v7893_v33  ;;  %v7934_v35 = vld [vmem:[%s9866_s1 + $0x960] sm:$0xff]  }
 0x11f   : >> { %7248 = vmatprep.subr.bf16.mxu1 %v7895_v37  ;;  %v7935_v37 = vld [vmem:[%s9866_s1 + $0x9e0] sm:$0xff]  }
 0x121   : >> { %7227 = vmatpush3.bf16.msra.mxu0 %v7896_v40  ;;  %v7937_v40 = vld [vmem:[%s9866_s1 + $0x9a0] sm:$0xff]  }
 0x122   : >> { %7228 = vmatprep.subr.bf16.mxu0 %v7898_v47  ;;  %7249 = vmatpush3.bf16.msra.mxu1 %v7897_v43  ;;  %v7940_v43 = vld [vmem:[%s9866_s1 + $0x928] sm:$0xff]   ;;  %v7943_v47 = vld [vmem:[%s9866_s1 + $0x9f0] sm:$0xff]  }
 0x123   : >> { %7250 = vmatprep.subr.bf16.mxu1 %v7899_v49  ;;  %v7945_v49 = vld [vmem:[%s9866_s1 + $0x9b0] sm:$0xff]  }
 0x126   : >> { %7251 = vmatpush3.bf16.msra.mxu1 %v7901_v52  ;;  %v7949_v52 = vld [vmem:[%s9866_s1 + $0x9b8] sm:$0xff]  }
 0x127   : >> { %v6928_v32 = vpop.f32.mrb[4].mxu0  ;;  %7252 = vmatprep.subr.bf16.mxu1 %v7903_v54 }
 0x128   : >> { %v6950_v34 = vpop.f32.mrb[4].mxu1  ;;  %v6929_v36 = vpop.f32.mrb[5].mxu0 }
 0x129   : >> { %v6930_v38 = vadd.f32 %v6929_v36, %v6928_v32  ;;  %v6951_v39 = vpop.f32.mrb[5].mxu1  ;;  %v6931_v42 = vpop.f32.mrb[6].mxu0  ;;  %v7933_v32 = vld [vmem:[%s9866_s1 + $0x998] sm:$0xff]  }
 0x12a   : >> { %v6952_v41 = vadd.f32 %v6951_v39, %v6950_v34  ;;  %v6953_v46 = vpop.f32.mrb[6].mxu1  ;;  %v6932_v48 = vpop.f32.mrb[7].mxu0  ;;  %7253 = vmatpush3.bf16.msra.mxu1 %v7905_v56  ;;  %v7936_v39 = vld [vmem:[%s9866_s1 + $0x920] sm:$0xff]   ;;  %v7939_v42 = vld [vmem:[%s9866_s1 + $0x9e8] sm:$0xff]  }
 0x12b   : >> { %v897_v44 = vadd.f32 %v6930_v38, %v9003_v45  ;;  %v6954_v51 = vpop.f32.mrb[7].mxu1  ;;  %v7900_v45 = vld [vmem:[%s9866_s1 + $0x820] sm:$0xff]   ;;  %7254 = vmatprep.subr.bf16.mxu1 %v7907_v58  ;;  %v7942_v46 = vld [vmem:[%s9866_s1 + $0x970] sm:$0xff]   ;;  %v6593_v56 = vld [vmem:[%s8340_s22 + $0x48] sm:$0xff] }
 0x12c   : >> { %7229 = vmatpush3.bf16.msra.mxu0 %v7900_v45  ;;  %v7944_v48 = vld [vmem:[%s9866_s1 + $0x930] sm:$0xff]   ;;  %v7947_v51 = vld [vmem:[%s9866_s1 + $0x9f8] sm:$0xff]   ;;  %v6597_v58 = vcombine.high %v6593_v56, %v6593_v56 }
 0x12d   : >> { %v9097_v50 = vadd.f32 %v6952_v41, %v897_v44  ;;  %7230 = vmatprep.subr.bf16.mxu0 %v7902_v53  ;;  %v7938_v41 = vld [vmem:[%s9866_s1 + $0x968] sm:$0xff]   ;;  %v7948_v45 = vld [vmem:[%s9866_s1 + $0x938] sm:$0xff]   ;;  %v6592_v53 = vld [vmem:[%s8340_s22 + $0x40] sm:$0xff] }
 0x12e   : >> { %7255 = vmatpush3.bf16.msra.mxu1 %v7909_v60  ;;  %v7941_v44 = vld [vmem:[%s9866_s1 + $0x9a8] sm:$0xff]   ;;  %v6594_v54 = vcombine.low %v6592_v53, %v6592_v53  ;;  %v3635_v3 = vshrl.u32 %v6597_v58, 16  ;;  %v3637_v4 = vshll.u32 %v6597_v58, 16 }
 0x12f   : >> { %7256 = vmatprep.subr.bf16.mxu1 %v7911_v62 }
 0x130   : >> { %7231 = vmatpush3.bf16.msra.mxu0 %v7904_v55  ;;  %v6595_v55 = vcombine.high %v6592_v53, %v6592_v53  ;;  %v3614_v62 = vshrl.u32 %v6594_v54, 16  ;;  %v7982_v53 = vld [vmem:[%s9866_s1 + $0xa78] sm:$0xff]  }
 0x131   : >> { %7232 = vmatprep.subr.bf16.mxu0 %v7906_v57  ;;  %v6596_v57 = vcombine.low %v6593_v56, %v6593_v56  ;;  %v6630_v56 = vld [vmem:[%s8340_s22 + $0x40] sm:$0xee] }
 0x132   : >> { %7257 = vmatpush3.bf16.msra.mxu1 %v7913_v2  ;;  %v3621_v60 = vshrl.u32 %v6595_v55, 16  ;;  %v7955_v2 = vld [vmem:[%s9866_s1 + $0xac0] sm:$0xff]   ;;  %v6633_v58 = vcombine.high %v6630_v56, %v6630_v56 }
 0x133   : >> { %7286 = vmatprep.subr.bf16.mxu1 %v7919_v9  ;;  %v3630_v6 = vshll.u32 %v6596_v57, 16  ;;  %v3639_v9 = vrot.slane %v3637_v4, 1  ;;  %v7991_v4 = vld [vmem:[%s9866_s1 + $0xbc0] sm:$0xff]  }
 0x134   : >> { %7233 = vmatpush3.bf16.msra.mxu0 %v7908_v59  ;;  %v7954_v59 = vld [vmem:[%s9866_s1 + $0xa40] sm:$0xff]  }
 0x135   : >> { %7234 = vmatprep.subr.bf16.mxu0 %v7910_v61  ;;  %3529 = vmatmul.mubr.bf16.vlgmr.msra.gmra.mrb[32].mxu1 %v6558_v10  ;;  %v3623_v61 = vshll.u32 %v6595_v55, 16  ;;  %v3632_v10 = vrot.slane %v3630_v6, 1  ;;  %v7984_v55 = vld [vmem:[%s9866_s1 + $0xa38] sm:$0xff]   ;;  %v7992_v6 = vld [vmem:[%s9866_s1 + $0xb00] sm:$0xff]  }
 0x136   : >> { %7287 = vmatpush3.bf16.msra.mxu1 %v7921_v12  ;;  %v7957_v12 = vld [vmem:[%s9866_s1 + $0xa80] sm:$0xff]  }
 0x137   : >> { %7288 = vmatprep.subr.bf16.mxu1 %v7923_v14  ;;  %v3625_v7 = vrot.slane %v3623_v61, 1 }
 0x138   : >> { %7235 = vmatpush3.bf16.msra.mxu0 %v7912_v63  ;;  %v3616_v63 = vshll.u32 %v6594_v54, 16  ;;  %v7983_v54 = vld [vmem:[%s9866_s1 + $0xaf8] sm:$0xff]  }
 0x139   : >> { %7264 = vmatprep.subr.bf16.mxu0 %v7918_v8 }
 0x13a   : >> { %7289 = vmatpush3.bf16.msra.mxu1 %v7925_v16  ;;  %v3618_v8 = vrot.slane %v3616_v63, 1 }
 0x13b   : >> { %3489 = vmatmul.mubr.bf16.vlgmr.msra.gmra.mrb[32].mxu0 %v6556_v5  ;;  %7290 = vmatprep.subr.bf16.mxu1 %v7927_v18  ;;  %v3628_v5 = vshrl.u32 %v6596_v57, 16  ;;  %v7959_v18 = vld [vmem:[%s9866_s1 + $0xac8] sm:$0xff]   ;;  %v6632_v57 = vcombine.low %v6630_v56, %v6630_v56 }
 0x13c   : >> { %7265 = vmatpush3.bf16.msra.mxu0 %v7920_v11  ;;  %v7956_v11 = vld [vmem:[%s9866_s1 + $0xa00] sm:$0xff]   ;;  %v3619_v14 = vor.u32 %v3618_v8, %v3614_v62 }
 0x13d   : >> { %7266 = vmatprep.subr.bf16.mxu0 %v7922_v13  ;;  %v3626_v13 = vor.u32 %v3625_v7, %v3621_v60  ;;  %v3633_v16 = vor.u32 %v3632_v10, %v3628_v5  ;;  %v7985_v60 = vld [vmem:[%s9866_s1 + $0xab8] sm:$0xff]   ;;  %v3994_v63 = vrot.slane %v6632_v57, 1  ;;  %v7993_v8 = vld [vmem:[%s9866_s1 + $0xb80] sm:$0xff]   ;;  %v7995_v10 = vld [vmem:[%s9866_s1 + $0xbc8] sm:$0xff]  }
 0x13e   : >> { %7291 = vmatpush3.bf16.msra.mxu1 %v7929_v22  ;;  %v7963_v22 = vld [vmem:[%s9866_s1 + $0xad0] sm:$0xff]   ;;  %v8027_v57 = vld [vmem:[%s8340_s22 + $0x4c] ss:$16 sps:$4 sm:$0x1e]  }
 0x13f   : >> { %7292 = vmatprep.subr.bf16.mxu1 %v7931_v27  ;;  %3869 = vmatprep.mubr.bf16.mxu0 %v3626_v13  ;;  %v7966_v27 = vld [vmem:[%s9866_s1 + $0xa58] sm:$0xff]   ;;  %v7998_v13 = vld [vmem:[%s9866_s1 + $0xb50] sm:$0xff]  }
 0x140   : >> { %7267 = vmatpush3.bf16.msra.mxu0 %v7924_v15  ;;  %v3640_v15 = vor.u32 %v3639_v9, %v3635_v3  ;;  %v7990_v3 = vld [vmem:[%s9866_s1 + $0xb40] sm:$0xff]   ;;  %v7994_v9 = vld [vmem:[%s9866_s1 + $0xb48] sm:$0xff]  }
 0x141   : >> { %7268 = vmatprep.subr.bf16.mxu0 %v7926_v17  ;;  %v7958_v17 = vld [vmem:[%s9866_s1 + $0xa48] sm:$0xff]  }
 0x142   : >> { %7293 = vmatpush3.bf16.msra.mxu1 %v7933_v32  ;;  %3909 = vmatprep.mubr.bf16.mxu1 %v3640_v15  ;;  %v7968_v32 = vld [vmem:[%s9866_s1 + $0xa18] sm:$0xff]   ;;  %v8000_v15 = vld [vmem:[%s9866_s1 + $0xb10] sm:$0xff]  }
 0x143   : >> { %7294 = vmatprep.subr.bf16.mxu1 %v7935_v37  ;;  %v7970_v37 = vld [vmem:[%s9866_s1 + $0xa60] sm:$0xff]  }
 0x144   : >> { %7269 = vmatpush3.bf16.msra.mxu0 %v7928_v20  ;;  %v7961_v20 = vld [vmem:[%s9866_s1 + $0xa88] sm:$0xff]  }
 0x145   : >> { %7270 = vmatprep.subr.bf16.mxu0 %v7930_v24 }
 0x146   : >> { %7295 = vmatpush3.bf16.msra.mxu1 %v7937_v40 }
 0x147   : >> { %v6972_v19 = vpop.f32.mrb[8].mxu0  ;;  %7296 = vmatprep.subr.bf16.mxu1 %v7939_v42 }
 0x148   : >> { %v6994_v21 = vpop.f32.mrb[8].mxu1  ;;  %v6973_v23 = vpop.f32.mrb[9].mxu0  ;;  %7271 = vmatpush3.bf16.msra.mxu0 %v7932_v30  ;;  %v7967_v30 = vld [vmem:[%s9866_s1 + $0xad8] sm:$0xff]  }
 0x149   : >> { %v6974_v25 = vadd.f32 %v6973_v23, %v6972_v19  ;;  %v6995_v26 = vpop.f32.mrb[9].mxu1  ;;  %v6975_v29 = vpop.f32.mrb[10].mxu0  ;;  %7272 = vmatprep.subr.bf16.mxu0 %v7934_v35  ;;  %v7960_v19 = vld [vmem:[%s9866_s1 + $0xa08] sm:$0xff]   ;;  %v7964_v23 = vld [vmem:[%s9866_s1 + $0xa10] sm:$0xff]   ;;  %v7969_v35 = vld [vmem:[%s9866_s1 + $0xa98] sm:$0xff]  }
 0x14a   : >> { %v6996_v28 = vadd.f32 %v6995_v26, %v6994_v21  ;;  %v6997_v31 = vpop.f32.mrb[10].mxu1  ;;  %v6976_v34 = vpop.f32.mrb[11].mxu0  ;;  %7297 = vmatpush3.bf16.msra.mxu1 %v7941_v44  ;;  %v7962_v21 = vld [vmem:[%s9866_s1 + $0xa50] sm:$0xff]  }
 0x14b   : >> { %v6998_v36 = vpop.f32.mrb[11].mxu1  ;;  %7298 = vmatprep.subr.bf16.mxu1 %v7943_v47  ;;  %v7974_v47 = vld [vmem:[%s9866_s1 + $0xa68] sm:$0xff]  }
 0x14c   : >> { %v1293_v33 = vadd.f32 %v6996_v28, %v6974_v25  ;;  %7273 = vmatpush3.bf16.msra.mxu0 %v7936_v39  ;;  %v7965_v25 = vld [vmem:[%s9866_s1 + $0xa90] sm:$0xff]  }
 0x14d   : >> { %7274 = vmatprep.subr.bf16.mxu0 %v7938_v41  ;;  %v7971_v41 = vld [vmem:[%s9866_s1 + $0xae0] sm:$0xff]  }
 0x14e   : >> { %v9198_v38 = vadd.f32 %v1293_v33, %v9097_v50  ;;  %v7946_v50 = vld [vmem:[%s9866_s1 + $0x978] sm:$0xff]   ;;  %7299 = vmatpush3.bf16.msra.mxu1 %v7945_v49  ;;  %v7977_v49 = vld [vmem:[%s9866_s1 + $0xaa8] sm:$0xff]  }
 0x14f   : >> { %7300 = vmatprep.subr.bf16.mxu1 %v7947_v51  ;;  %v7979_v51 = vld [vmem:[%s9866_s1 + $0xaf0] sm:$0xff]  }
 0x150   : >> { %7275 = vmatpush3.bf16.msra.mxu0 %v7940_v43  ;;  %v7972_v43 = vld [vmem:[%s9866_s1 + $0xa20] sm:$0xff]  }
 0x151   : >> { %7276 = vmatprep.subr.bf16.mxu0 %v7942_v46  ;;  %v7973_v46 = vld [vmem:[%s9866_s1 + $0xaa0] sm:$0xff]  }
 0x152   : >> { %7301 = vmatpush3.bf16.msra.mxu1 %v7949_v52  ;;  %v7981_v52 = vld [vmem:[%s9866_s1 + $0xab0] sm:$0xff]  }
 0x153   : >> { %7330 = vmatprep.subr.bf16.mxu1 %v7955_v2  ;;  %v3995_v2 = vrot.slane %v6633_v58, 1 }
 0x154   : >> { %7277 = vmatpush3.bf16.msra.mxu0 %v7944_v48  ;;  %v7975_v48 = vld [vmem:[%s9866_s1 + $0xae8] sm:$0xff]  }
 0x155   : >> { %7278 = vmatprep.subr.bf16.mxu0 %v7946_v50  ;;  %3910 = vmatmul.mubr.bf16.vlgmr.msra.gmra.mrb[36].mxu1 %v3633_v16  ;;  %v7978_v50 = vld [vmem:[%s9866_s1 + $0xa70] sm:$0xff]  }
 0x156   : >> { %7331 = vmatpush3.bf16.msra.mxu1 %v7957_v12  ;;  %v7997_v12 = vld [vmem:[%s9866_s1 + $0xb88] sm:$0xff]  }
 0x157   : >> { %7332 = vmatprep.subr.bf16.mxu1 %v7959_v18 }
 0x158   : >> { %7279 = vmatpush3.bf16.msra.mxu0 %v7948_v45  ;;  %v7980_v45 = vld [vmem:[%s9866_s1 + $0xa30] sm:$0xff]  }
 0x159   : >> { %7308 = vmatprep.subr.bf16.mxu0 %v7954_v59  ;;  %v6631_v59 = vld [vmem:[%s8340_s22 + $0x48] sm:$0xee] }
 0x15a   : >> { %7333 = vmatpush3.bf16.msra.mxu1 %v7961_v20  ;;  %v6634_v61 = vcombine.low %v6631_v59, %v6631_v59  ;;  %v6635_v62 = vcombine.high %v6631_v59, %v6631_v59 }
 0x15b   : >> { %3870 = vmatmul.mubr.bf16.vlgmr.msra.gmra.mrb[36].mxu0 %v3619_v14  ;;  %7334 = vmatprep.subr.bf16.mxu1 %v7963_v22  ;;  %v7999_v14 = vld [vmem:[%s9866_s1 + $0xbd0] sm:$0xff]   ;;  %v8003_v22 = vld [vmem:[%s9866_s1 + $0xbd8] sm:$0xff]  }
 0x15c   : >> { %7309 = vmatpush3.bf16.msra.mxu0 %v7956_v11  ;;  %v3997_v5 = vrot.slane %v6635_v62, 1  ;;  %4226 = vmatprep.mubr.bf16.mxu0 %v3995_v2  ;;  %v3996_v7 = vrot.slane %v6634_v61, 1  ;;  %v7996_v11 = vld [vmem:[%s9866_s1 + $0xb08] sm:$0xff]   ;;  %v4384_v2 = vshrl.u32 %v8027_v57, 16 }
 0x15d   : >> { %7310 = vmatprep.subr.bf16.mxu0 %v7958_v17  ;;  %v8001_v17 = vld [vmem:[%s9866_s1 + $0xb90] sm:$0xff]  }
 0x15e   : >> { %7335 = vmatpush3.bf16.msra.mxu1 %v7965_v25  ;;  %4266 = vmatprep.mubr.bf16.mxu1 %v3997_v5 }
 0x15f   : >> { %7336 = vmatprep.subr.bf16.mxu1 %v7967_v30 }
 0x160   : >> { %7311 = vmatpush3.bf16.msra.mxu0 %v7960_v19  ;;  %v8002_v19 = vld [vmem:[%s9866_s1 + $0xb58] sm:$0xff]  }
 0x161   : >> { %7312 = vmatprep.subr.bf16.mxu0 %v7962_v21 }
 0x162   : >> { %7337 = vmatpush3.bf16.msra.mxu1 %v7969_v35 }
 0x163   : >> { %7338 = vmatprep.subr.bf16.mxu1 %v7971_v41  ;;  %v8013_v41 = vld [vmem:[%s9866_s1 + $0xba8] sm:$0xff]  }
 0x164   : >> { %7313 = vmatpush3.bf16.msra.mxu0 %v7964_v23 }
 0x165   : >> { %7314 = vmatprep.subr.bf16.mxu0 %v7966_v27  ;;  %v8005_v27 = vld [vmem:[%s9866_s1 + $0xb98] sm:$0xff]  }
 0x166   : >> { %7339 = vmatpush3.bf16.msra.mxu1 %v7973_v46  ;;  %v8017_v46 = vld [vmem:[%s9866_s1 + $0xbb0] sm:$0xff]  }
 0x167   : >> { %v7016_v24 = vpop.f32.mrb[12].mxu0  ;;  %7340 = vmatprep.subr.bf16.mxu1 %v7975_v48  ;;  %v8019_v48 = vld [vmem:[%s9866_s1 + $0xbf8] sm:$0xff]  }
 0x168   : >> { %v7017_v26 = vpop.f32.mrb[13].mxu0  ;;  %v7038_v28 = vpop.f32.mrb[12].mxu1  ;;  %7315 = vmatpush3.bf16.msra.mxu0 %v7968_v32  ;;  %v8007_v32 = vld [vmem:[%s9866_s1 + $0xbe0] sm:$0xff]  }
 0x169   : >> { %v7018_v29 = vadd.f32 %v7017_v26, %v7016_v24  ;;  %v7039_v31 = vpop.f32.mrb[13].mxu1  ;;  %v7019_v34 = vpop.f32.mrb[14].mxu0  ;;  %7316 = vmatprep.subr.bf16.mxu0 %v7970_v37  ;;  %v8004_v24 = vld [vmem:[%s9866_s1 + $0xb18] sm:$0xff]   ;;  %v8010_v37 = vld [vmem:[%s9866_s1 + $0xb68] sm:$0xff]  }
 0x16a   : >> { %v7040_v33 = vadd.f32 %v7039_v31, %v7038_v28  ;;  %v7041_v36 = vpop.f32.mrb[14].mxu1  ;;  %v7020_v40 = vpop.f32.mrb[15].mxu0  ;;  %7341 = vmatpush3.bf16.msra.mxu1 %v7977_v49  ;;  %v8008_v34 = vld [vmem:[%s9866_s1 + $0xb20] sm:$0xff]   ;;  %v8021_v49 = vld [vmem:[%s9866_s1 + $0xbb8] sm:$0xff]  }
 0x16b   : >> { %v7042_v42 = vpop.f32.mrb[15].mxu1  ;;  %7342 = vmatprep.subr.bf16.mxu1 %v7979_v51  ;;  %v8009_v36 = vld [vmem:[%s9866_s1 + $0xba0] sm:$0xff]   ;;  %v8012_v40 = vld [vmem:[%s9866_s1 + $0xb28] sm:$0xff]  }
 0x16c   : >> { %v1686_v39 = vadd.f32 %v7040_v33, %v7018_v29  ;;  %7317 = vmatpush3.bf16.msra.mxu0 %v7972_v43  ;;  %v8006_v29 = vld [vmem:[%s9866_s1 + $0xb60] sm:$0xff]   ;;  %v8014_v42 = vld [vmem:[%s9866_s1 + $0xb70] sm:$0xff]  }
 0x16d   : >> { %7318 = vmatprep.subr.bf16.mxu0 %v7974_v47  ;;  %v8015_v43 = vld [vmem:[%s9866_s1 + $0xbf0] sm:$0xff]   ;;  %v8018_v47 = vld [vmem:[%s9866_s1 + $0xb78] sm:$0xff]   ;;  %v8028_v51 = vld [vmem:[%s9866_s1 + $0xc40] sm:$0xff]  }
 0x16e   : >> { %v9302_v44 = vadd.f32 %v1686_v39, %v9198_v38  ;;  %v7976_v38 = vld [vmem:[%s9866_s1 + $0xa28] sm:$0xff]   ;;  %7343 = vmatpush3.bf16.msra.mxu1 %v7981_v52  ;;  %v8029_v52 = vld [vmem:[%s9866_s1 + $0xcc0] sm:$0xff]  }
 0x16f   : >> { %7344 = vmatprep.subr.bf16.mxu1 %v7983_v54  ;;  %v8011_v39 = vld [vmem:[%s9866_s1 + $0xbe8] sm:$0xff]  }
 0x170   : >> { %7319 = vmatpush3.bf16.msra.mxu0 %v7976_v38  ;;  %v8020_v38 = vld [vmem:[%s9866_s1 + $0xb38] sm:$0xff]  }
 0x171   : >> { %7320 = vmatprep.subr.bf16.mxu0 %v7978_v50  ;;  %v8022_v50 = vld [vmem:[%s8340_s22 + $0x40] ss:$16 sps:$4 sm:$0x1e]  }
 0x172   : >> { %7345 = vmatpush3.bf16.msra.mxu1 %v7985_v60  ;;  %v4360_v54 = vshrl.u32 %v8022_v50, 16  ;;  %v4363_v58 = vshll.u32 %v8022_v50, 16  ;;  %v8054_v50 = vld [vmem:[%s9866_s1 + $0xc30] sm:$0xff]  }
 0x173   : >> { %7374 = vmatprep.subr.bf16.mxu1 %v7991_v4 }
 0x174   : >> { %7321 = vmatpush3.bf16.msra.mxu0 %v7980_v45  ;;  %v8024_v45 = vld [vmem:[%s8340_s22 + $0x44] ss:$16 sps:$4 sm:$0x1e]   ;;  %v4362_v59 = vrot.slane %v4360_v54, 1  ;;  %v4365_v4 = vrot.slane %v4363_v58, 2  ;;  %v8059_v54 = vld [vmem:[%s9866_s1 + $0xcb8] sm:$0xff]  }
 0x175   : >> { %7322 = vmatprep.subr.bf16.mxu0 %v7982_v53  ;;  %4267 = vmatmul.mubr.bf16.vlgmr.msra.gmra.mrb[40].mxu1 %v3996_v7  ;;  %v8025_v53 = vld [vmem:[%s8340_s22 + $0x48] ss:$16 sps:$4 sm:$0x1e]   ;;  %v4371_v56 = vshll.u32 %v8024_v45, 16  ;;  %v8030_v7 = vld [vmem:[%s9866_s1 + $0xc00] sm:$0xff]  }
 0x176   : >> { %7375 = vmatpush3.bf16.msra.mxu1 %v7993_v8  ;;  %v4376_v60 = vshrl.u32 %v8025_v53, 16  ;;  %v4379_v61 = vshll.u32 %v8025_v53, 16  ;;  %v8058_v53 = vld [vmem:[%s9866_s1 + $0xc38] sm:$0xff]  }
 0x177   : >> { %7376 = vmatprep.subr.bf16.mxu1 %v7995_v10 }
 0x178   : >> { %7323 = vmatpush3.bf16.msra.mxu0 %v7984_v55  ;;  %v4368_v55 = vshrl.u32 %v8024_v45, 16  ;;  %v4378_v5 = vrot.slane %v4376_v60, 1  ;;  %v8056_v45 = vld [vmem:[%s9866_s1 + $0xc78] sm:$0xff]   ;;  %v8064_v60 = vld [vmem:[%s9866_s1 + $0xd40] sm:$0xff]  }
 0x179   : >> { %7352 = vmatprep.subr.bf16.mxu0 %v7990_v3  ;;  %v4387_v3 = vshll.u32 %v8027_v57, 16 }
 0x17a   : >> { %7377 = vmatpush3.bf16.msra.mxu1 %v7997_v12  ;;  %v4370_v62 = vrot.slane %v4368_v55, 1  ;;  %v4366_v12 = vor.u32 %v4365_v4, %v4362_v59  ;;  %v6709_v55 = vld [vmem:[%s8340_s22 + $0x60] sm:$0x77]  ;;  %v8069_v4 = vld [vmem:[%s9866_s1 + $0xdc8] sm:$0xff]  }
 0x17b   : >> { %4227 = vmatmul.mubr.bf16.vlgmr.msra.gmra.mrb[40].mxu0 %v3994_v63  ;;  %7378 = vmatprep.subr.bf16.mxu1 %v7999_v14  ;;  %v4373_v63 = vrot.slane %v4371_v56, 2  ;;  %v4389_v10 = vrot.slane %v4387_v3, 2  ;;  %v6710_v56 = vld [vmem:[%s8340_s22 + $0x68] sm:$0x77]  ;;  %v6711_v57 = vcombine.low %v6709_v55, %v6709_v55  ;;  %v6712_v58 = vcombine.high %v6709_v55, %v6709_v55 }
 0x17c   : >> { %7353 = vmatpush3.bf16.msra.mxu0 %v7992_v6  ;;  %v4381_v6 = vrot.slane %v4379_v61, 2  ;;  %v6714_v59 = vcombine.high %v6710_v56, %v6710_v56  ;;  %v8065_v61 = vld [vmem:[%s9866_s1 + $0xdc0] sm:$0xff]   ;;  %v8068_v3 = vld [vmem:[%s9866_s1 + $0xd48] sm:$0xff]  }
 0x17d   : >> { %7354 = vmatprep.subr.bf16.mxu0 %v7994_v9  ;;  %v4374_v8 = vor.u32 %v4373_v63, %v4370_v62  ;;  %v4386_v9 = vrot.slane %v4384_v2, 1  ;;  %v6713_v62 = vcombine.low %v6710_v56, %v6710_v56  ;;  %v8066_v63 = vld [vmem:[%s9866_s1 + $0xd00] sm:$0xff]  }
 0x17e   : >> { %7379 = vmatpush3.bf16.msra.mxu1 %v8001_v17  ;;  %v8034_v17 = vld [vmem:[%s9866_s1 + $0xc08] sm:$0xff]   ;;  %v8067_v2 = vld [vmem:[%s9866_s1 + $0xd80] sm:$0xff]  }
 0x17f   : >> { %7380 = vmatprep.subr.bf16.mxu1 %v8003_v22  ;;  %4619 = vmatprep.mubr.bf16.mxu0 %v4374_v8  ;;  %v4390_v14 = vor.u32 %v4389_v10, %v4386_v9  ;;  %v8039_v22 = vld [vmem:[%s9866_s1 + $0xc90] sm:$0xff]  }
 0x180   : >> { %7355 = vmatpush3.bf16.msra.mxu0 %v7996_v11  ;;  %v8031_v11 = vld [vmem:[%s9866_s1 + $0xc80] sm:$0xff]   ;;  %v8073_v8 = vld [vmem:[%s9866_s1 + $0xdd0] sm:$0xff]  }
 0x181   : >> { %7356 = vmatprep.subr.bf16.mxu0 %v7998_v13  ;;  %v4382_v13 = vor.u32 %v4381_v6, %v4378_v5  ;;  %4659 = vmatprep.mubr.bf16.mxu1 %v4390_v14  ;;  %v8070_v5 = vld [vmem:[%s9866_s1 + $0xd08] sm:$0xff]   ;;  %v8074_v9 = vld [vmem:[%s9866_s1 + $0xd10] sm:$0xff]  }
 0x182   : >> { %7381 = vmatpush3.bf16.msra.mxu1 %v8005_v27  ;;  %v8071_v6 = vld [vmem:[%s9866_s1 + $0xd88] sm:$0xff]  }
 0x183   : >> { %7382 = vmatprep.subr.bf16.mxu1 %v8007_v32 }
 0x184   : >> { %7357 = vmatpush3.bf16.msra.mxu0 %v8000_v15  ;;  %v8032_v15 = vld [vmem:[%s9866_s1 + $0xc48] sm:$0xff]  }
 0x185   : >> { %7358 = vmatprep.subr.bf16.mxu0 %v8002_v19  ;;  %v8036_v19 = vld [vmem:[%s9866_s1 + $0xc50] sm:$0xff]  }
 0x186   : >> { %7383 = vmatpush3.bf16.msra.mxu1 %v8009_v36 }
 0x187   : >> { %v7060_v16 = vpop.f32.mrb[16].mxu0  ;;  %7384 = vmatprep.subr.bf16.mxu1 %v8011_v39 }
 0x188   : >> { %v7061_v18 = vpop.f32.mrb[17].mxu0  ;;  %v7082_v20 = vpop.f32.mrb[16].mxu1  ;;  %7359 = vmatpush3.bf16.msra.mxu0 %v8004_v24  ;;  %v8040_v24 = vld [vmem:[%s9866_s1 + $0xc58] sm:$0xff]  }
 0x189   : >> { %v7062_v21 = vadd.f32 %v7061_v18, %v7060_v16  ;;  %v7083_v23 = vpop.f32.mrb[17].mxu1  ;;  %v7063_v26 = vpop.f32.mrb[18].mxu0  ;;  %7360 = vmatprep.subr.bf16.mxu0 %v8006_v29  ;;  %v8033_v16 = vld [vmem:[%s9866_s1 + $0xcc8] sm:$0xff]  }
 0x18a   : >> { %v7084_v25 = vadd.f32 %v7083_v23, %v7082_v20  ;;  %v7085_v28 = vpop.f32.mrb[18].mxu1  ;;  %v7064_v31 = vpop.f32.mrb[19].mxu0  ;;  %7385 = vmatpush3.bf16.msra.mxu1 %v8013_v41  ;;  %v8035_v18 = vld [vmem:[%s9866_s1 + $0xc88] sm:$0xff]   ;;  %v8037_v20 = vld [vmem:[%s9866_s1 + $0xcd0] sm:$0xff]   ;;  %v8041_v26 = vld [vmem:[%s9866_s1 + $0xcd8] sm:$0xff]  }
 0x18b   : >> { %v7086_v33 = vpop.f32.mrb[19].mxu1  ;;  %7386 = vmatprep.subr.bf16.mxu1 %v8015_v43  ;;  %v8042_v28 = vld [vmem:[%s9866_s1 + $0xc18] sm:$0xff]   ;;  %v8046_v41 = vld [vmem:[%s9866_s1 + $0xc20] sm:$0xff]  }
 0x18c   : >> { %v2043_v30 = vadd.f32 %v7084_v25, %v7062_v21  ;;  %7361 = vmatpush3.bf16.msra.mxu0 %v8008_v34  ;;  %v8038_v21 = vld [vmem:[%s9866_s1 + $0xc10] sm:$0xff]   ;;  %v8043_v31 = vld [vmem:[%s9866_s1 + $0xc98] sm:$0xff]   ;;  %v8044_v34 = vld [vmem:[%s9866_s1 + $0xc60] sm:$0xff]  }
 0x18d   : >> { %7362 = vmatprep.subr.bf16.mxu0 %v8010_v37  ;;  %v8045_v37 = vld [vmem:[%s9866_s1 + $0xce0] sm:$0xff]  }
 0x18e   : >> { %v9403_v35 = vadd.f32 %v2043_v30, %v9302_v44  ;;  %v8016_v44 = vld [vmem:[%s9866_s1 + $0xb30] sm:$0xff]   ;;  %7387 = vmatpush3.bf16.msra.mxu1 %v8017_v46  ;;  %v8047_v43 = vld [vmem:[%s9866_s1 + $0xca0] sm:$0xff]   ;;  %v8048_v46 = vld [vmem:[%s9866_s1 + $0xc68] sm:$0xff]  }
 0x18f   : >> { %7388 = vmatprep.subr.bf16.mxu1 %v8019_v48  ;;  %v8050_v48 = vld [vmem:[%s9866_s1 + $0xc28] sm:$0xff]  }
 0x190   : >> { %7363 = vmatpush3.bf16.msra.mxu0 %v8012_v40 }
 0x191   : >> { %7364 = vmatprep.subr.bf16.mxu0 %v8014_v42 }
 0x192   : >> { %7389 = vmatpush3.bf16.msra.mxu1 %v8021_v49  ;;  %v8053_v49 = vld [vmem:[%s9866_s1 + $0xcf0] sm:$0xff]  }
 0x193   : >> { %7418 = vmatprep.subr.bf16.mxu1 %v8029_v52  ;;  %v8057_v52 = vld [vmem:[%s9866_s1 + $0xcf8] sm:$0xff]  }
 0x194   : >> { %7365 = vmatpush3.bf16.msra.mxu0 %v8016_v44 }
 0x195   : >> { %7366 = vmatprep.subr.bf16.mxu0 %v8018_v47  ;;  %4660 = vmatmul.mubr.bf16.vlgmr.msra.gmra.mrb[44].mxu1 %v4382_v13  ;;  %v8049_v47 = vld [vmem:[%s9866_s1 + $0xce8] sm:$0xff]   ;;  %v8076_v13 = vld [vmem:[%s9866_s1 + $0xd58] sm:$0xff]  }
 0x196   : >> { %7419 = vmatpush3.bf16.msra.mxu1 %v8031_v11  ;;  %5016 = vmatprep.mubr.bf16.mxu1 %v6714_v59  ;;  %v8075_v11 = vld [vmem:[%s9866_s1 + $0xd90] sm:$0xff]  }
 0x197   : >> { %7420 = vmatprep.subr.bf16.mxu1 %v8033_v16 }
 0x198   : >> { %7367 = vmatpush3.bf16.msra.mxu0 %v8020_v38  ;;  %v8052_v38 = vld [vmem:[%s9866_s1 + $0xc70] sm:$0xff]  }
 0x199   : >> { %7396 = vmatprep.subr.bf16.mxu0 %v8028_v51  ;;  %v8055_v51 = vld [vmem:[%s9866_s1 + $0xcb0] sm:$0xff]  }
 0x19a   : >> { %7421 = vmatpush3.bf16.msra.mxu1 %v8035_v18  ;;  %v8078_v18 = vld [vmem:[%s9866_s1 + $0xd18] sm:$0xff]  }
 0x19b   : >> { %4620 = vmatmul.mubr.bf16.vlgmr.msra.gmra.mrb[44].mxu0 %v4366_v12  ;;  %7422 = vmatprep.subr.bf16.mxu1 %v8037_v20 }
 0x19c   : >> { %7397 = vmatpush3.bf16.msra.mxu0 %v8030_v7  ;;  %4976 = vmatprep.mubr.bf16.mxu0 %v6712_v58  ;;  %v8072_v7 = vld [vmem:[%s9866_s1 + $0xd50] sm:$0xff]  }
 0x19d   : >> { %7398 = vmatprep.subr.bf16.mxu0 %v8032_v15  ;;  %v8077_v15 = vld [vmem:[%s9866_s1 + $0xdd8] sm:$0xff]  }
 0x19e   : >> { %7423 = vmatpush3.bf16.msra.mxu1 %v8039_v22 }
 0x19f   : >> { %7424 = vmatprep.subr.bf16.mxu1 %v8041_v26  ;;  %v8081_v26 = vld [vmem:[%s9866_s1 + $0xde0] sm:$0xff]  }
 0x1a0   : >> { %7399 = vmatpush3.bf16.msra.mxu0 %v8034_v17 }
 0x1a1   : >> { %7400 = vmatprep.subr.bf16.mxu0 %v8036_v19 }
 0x1a2   : >> { %7425 = vmatpush3.bf16.msra.mxu1 %v8043_v31  ;;  %v8084_v31 = vld [vmem:[%s9866_s1 + $0xd68] sm:$0xff]  }
 0x1a3   : >> { %7426 = vmatprep.subr.bf16.mxu1 %v8045_v37  ;;  %v8089_v37 = vld [vmem:[%s9866_s1 + $0xdf0] sm:$0xff]  }
 0x1a4   : >> { %7401 = vmatpush3.bf16.msra.mxu0 %v8038_v21  ;;  %v8079_v21 = vld [vmem:[%s9866_s1 + $0xd98] sm:$0xff]  }
 0x1a5   : >> { %7402 = vmatprep.subr.bf16.mxu0 %v8040_v24 }
 0x1a6   : >> { %7427 = vmatpush3.bf16.msra.mxu1 %v8047_v43  ;;  %v8094_v43 = vld [vmem:[%s9866_s1 + $0xd38] sm:$0xff]  }
 0x1a7   : >> { %v7104_v23 = vpop.f32.mrb[20].mxu0  ;;  %7428 = vmatprep.subr.bf16.mxu1 %v8049_v47 }
 0x1a8   : >> { %v7126_v25 = vpop.f32.mrb[20].mxu1  ;;  %v7105_v27 = vpop.f32.mrb[21].mxu0  ;;  %7403 = vmatpush3.bf16.msra.mxu0 %v8042_v28  ;;  %v8082_v28 = vld [vmem:[%s9866_s1 + $0xd20] sm:$0xff]  }
 0x1a9   : >> { %v7106_v29 = vadd.f32 %v7105_v27, %v7104_v23  ;;  %v7127_v30 = vpop.f32.mrb[21].mxu1  ;;  %v7107_v33 = vpop.f32.mrb[22].mxu0  ;;  %7404 = vmatprep.subr.bf16.mxu0 %v8044_v34  ;;  %v8080_v23 = vld [vmem:[%s9866_s1 + $0xd60] sm:$0xff]   ;;  %v8087_v34 = vld [vmem:[%s9866_s1 + $0xda8] sm:$0xff]  }
 0x1aa   : >> { %v7128_v32 = vadd.f32 %v7127_v30, %v7126_v25  ;;  %v7129_v36 = vpop.f32.mrb[22].mxu1  ;;  %v7108_v40 = vpop.f32.mrb[23].mxu0  ;;  %v8083_v30 = vld [vmem:[%s9866_s1 + $0xda0] sm:$0xff]   ;;  %v8086_v33 = vld [vmem:[%s9866_s1 + $0xd28] sm:$0xff]  }
 0x1ab   : >> { %v7130_v42 = vpop.f32.mrb[23].mxu1  ;;  %v8088_v36 = vld [vmem:[%s9866_s1 + $0xd70] sm:$0xff]  }
 0x1ac   : >> { %v2424_v39 = vadd.f32 %v7128_v32, %v7106_v29  ;;  %7405 = vmatpush3.bf16.msra.mxu0 %v8046_v41  ;;  %v8085_v32 = vld [vmem:[%s9866_s1 + $0xde8] sm:$0xff]   ;;  %v8091_v40 = vld [vmem:[%s9866_s1 + $0xdb0] sm:$0xff]   ;;  %v8092_v41 = vld [vmem:[%s9866_s1 + $0xd78] sm:$0xff]  }
 0x1ad   : >> { %7406 = vmatprep.subr.bf16.mxu0 %v8048_v46  ;;  %v8093_v42 = vld [vmem:[%s9866_s1 + $0xdf8] sm:$0xff]   ;;  %v6747_v46 = vld [vmem:[%s8340_s22 + $0x60] sm:$0xff] }
 0x1ae   : >> { %v9509_v44 = vadd.f32 %v2424_v39, %v9403_v35  ;;  %v8051_v35 = vld [vmem:[%s9866_s1 + $0xca8] sm:$0xff]   ;;  %v8090_v39 = vld [vmem:[%s9866_s1 + $0xd30] sm:$0xff]   ;;  %v6749_v47 = vcombine.low %v6747_v46, %v6747_v46 }
 0x1af   : >> { %7429 = vmatpush3.bf16.msra.mxu1 %v8051_v35  ;;  %v6748_v35 = vld [vmem:[%s8340_s22 + $0x68] sm:$0xff] }
 0x1b0   : >> { %7407 = vmatpush3.bf16.msra.mxu0 %v8050_v48  ;;  %7430 = vmatprep.subr.bf16.mxu1 %v8053_v49  ;;  %v6750_v48 = vcombine.high %v6747_v46, %v6747_v46  ;;  %v6752_v49 = vcombine.high %v6748_v35, %v6748_v35  ;;  %v8128_v46 = vld [vmem:[%s9866_s1 + $0xe78] sm:$0xff]  }
 0x1b1   : >> { %7408 = vmatprep.subr.bf16.mxu0 %v8052_v38  ;;  %v6751_v38 = vcombine.low %v6748_v35, %v6748_v35  ;;  %v6785_v35 = vld [vmem:[%s8340_s22 + $0x60] sm:$0xee] }
 0x1b2   : >> { %v5123_v55 = vshrl.u32 %v6752_v49, 16  ;;  %v5125_v56 = vshll.u32 %v6752_v49, 16  ;;  %v6788_v49 = vcombine.high %v6785_v35, %v6785_v35 }
 0x1b3   : >> { %7431 = vmatpush3.bf16.msra.mxu1 %v8055_v51  ;;  %v5109_v51 = vshrl.u32 %v6750_v48, 16  ;;  %v5118_v58 = vshll.u32 %v6751_v38, 16 }
 0x1b4   : >> { %7409 = vmatpush3.bf16.msra.mxu0 %v8054_v50  ;;  %7432 = vmatprep.subr.bf16.mxu1 %v8057_v52  ;;  %v8100_v50 = vld [vmem:[%s9866_s1 + $0xe40] sm:$0xff]   ;;  %v5102_v52 = vshrl.u32 %v6749_v47, 16 }
 0x1b5   : >> { %7410 = vmatprep.subr.bf16.mxu0 %v8056_v45  ;;  %v5111_v45 = vshll.u32 %v6750_v48, 16  ;;  %v8130_v48 = vld [vmem:[%s9866_s1 + $0xe38] sm:$0xff]  }
 0x1b7   : >> { %7433 = vmatpush3.bf16.msra.mxu1 %v8059_v54  ;;  %v8101_v54 = vld [vmem:[%s9866_s1 + $0xec0] sm:$0xff]   ;;  %v5113_v59 = vrot.slane %v5111_v45, 1 }
 0x1b8   : >> { %7411 = vmatpush3.bf16.msra.mxu0 %v8058_v53  ;;  %7462 = vmatprep.subr.bf16.mxu1 %v8065_v61  ;;  %v5104_v53 = vshll.u32 %v6749_v47, 16  ;;  %v5127_v61 = vrot.slane %v5125_v56, 1  ;;  %v8129_v47 = vld [vmem:[%s9866_s1 + $0xef8] sm:$0xff]   ;;  %v8137_v56 = vld [vmem:[%s9866_s1 + $0xfc0] sm:$0xff]  }
 0x1b9   : >> { %7440 = vmatprep.subr.bf16.mxu0 %v8064_v60 }
 0x1ba   : >> { %5017 = vmatmul.mubr.bf16.vlgmr.msra.gmra.mrb[48].mxu1 %v6713_v62  ;;  %v5106_v60 = vrot.slane %v5104_v53, 1  ;;  %v5120_v62 = vrot.slane %v5118_v58, 1  ;;  %v8138_v58 = vld [vmem:[%s9866_s1 + $0xf00] sm:$0xff]  }
 0x1bb   : >> { %4977 = vmatmul.mubr.bf16.vlgmr.msra.gmra.mrb[48].mxu0 %v6711_v57  ;;  %7463 = vmatpush3.bf16.msra.mxu1 %v8067_v2  ;;  %v5116_v57 = vshrl.u32 %v6751_v38, 16  ;;  %v8103_v2 = vld [vmem:[%s9866_s1 + $0xe80] sm:$0xff]   ;;  %v6787_v38 = vcombine.low %v6785_v35, %v6785_v35 }
 0x1bc   : >> { %7441 = vmatpush3.bf16.msra.mxu0 %v8066_v63  ;;  %7464 = vmatprep.subr.bf16.mxu1 %v8069_v4  ;;  %v8102_v63 = vld [vmem:[%s9866_s1 + $0xe00] sm:$0xff]   ;;  %v5107_v4 = vor.u32 %v5106_v60, %v5102_v52 }
 0x1bd   : >> { %7442 = vmatprep.subr.bf16.mxu0 %v8068_v3  ;;  %v5114_v3 = vor.u32 %v5113_v59, %v5109_v51  ;;  %v8131_v51 = vld [vmem:[%s9866_s1 + $0xeb8] sm:$0xff]   ;;  %v5482_v53 = vrot.slane %v6787_v38, 1  ;;  %v8139_v60 = vld [vmem:[%s9866_s1 + $0xf80] sm:$0xff]  }
 0x1bf   : >> { %7465 = vmatpush3.bf16.msra.mxu1 %v8071_v6  ;;  %v5121_v6 = vor.u32 %v5120_v62, %v5116_v57  ;;  %5357 = vmatprep.mubr.bf16.mxu0 %v5114_v3  ;;  %v8141_v62 = vld [vmem:[%s9866_s1 + $0xfc8] sm:$0xff]   ;;  %v8144_v3 = vld [vmem:[%s9866_s1 + $0xf50] sm:$0xff]  }
 0x1c0   : >> { %7443 = vmatpush3.bf16.msra.mxu0 %v8070_v5  ;;  %7466 = vmatprep.subr.bf16.mxu1 %v8073_v8  ;;  %v5128_v5 = vor.u32 %v5127_v61, %v5123_v55  ;;  %v8105_v8 = vld [vmem:[%s9866_s1 + $0xec8] sm:$0xff]   ;;  %v8136_v55 = vld [vmem:[%s9866_s1 + $0xf40] sm:$0xff]  }
 0x1c1   : >> { %7444 = vmatprep.subr.bf16.mxu0 %v8072_v7  ;;  %v8104_v7 = vld [vmem:[%s9866_s1 + $0xe48] sm:$0xff]  }
 0x1c2   : >> { %5397 = vmatprep.mubr.bf16.mxu1 %v5128_v5  ;;  %v8140_v61 = vld [vmem:[%s9866_s1 + $0xf48] sm:$0xff]   ;;  %v8146_v5 = vld [vmem:[%s9866_s1 + $0xf10] sm:$0xff]  }
 0x1c3   : >> { %7467 = vmatpush3.bf16.msra.mxu1 %v8075_v11  ;;  %v8108_v11 = vld [vmem:[%s9866_s1 + $0xe50] sm:$0xff]  }
 0x1c4   : >> { %7445 = vmatpush3.bf16.msra.mxu0 %v8074_v9  ;;  %7468 = vmatprep.subr.bf16.mxu1 %v8077_v15  ;;  %v8106_v9 = vld [vmem:[%s9866_s1 + $0xe08] sm:$0xff]  }
 0x1c5   : >> { %7446 = vmatprep.subr.bf16.mxu0 %v8076_v13  ;;  %v8110_v13 = vld [vmem:[%s9866_s1 + $0xe10] sm:$0xff]  }
 0x1c7   : >> { %v7148_v10 = vpop.f32.mrb[24].mxu0  ;;  %7469 = vmatpush3.bf16.msra.mxu1 %v8079_v21  ;;  %v8114_v21 = vld [vmem:[%s9866_s1 + $0xe18] sm:$0xff]  }
 0x1c8   : >> { %v7170_v12 = vpop.f32.mrb[24].mxu1  ;;  %v7149_v14 = vpop.f32.mrb[25].mxu0  ;;  %7447 = vmatpush3.bf16.msra.mxu0 %v8078_v18  ;;  %7470 = vmatprep.subr.bf16.mxu1 %v8081_v26  ;;  %v8113_v18 = vld [vmem:[%s9866_s1 + $0xed8] sm:$0xff]   ;;  %v8116_v26 = vld [vmem:[%s9866_s1 + $0xe60] sm:$0xff]  }
 0x1c9   : >> { %v7150_v16 = vadd.f32 %v7149_v14, %v7148_v10  ;;  %v7171_v17 = vpop.f32.mrb[25].mxu1  ;;  %v7151_v20 = vpop.f32.mrb[26].mxu0  ;;  %7448 = vmatprep.subr.bf16.mxu0 %v8080_v23  ;;  %v8107_v10 = vld [vmem:[%s9866_s1 + $0xe88] sm:$0xff]   ;;  %v8111_v14 = vld [vmem:[%s9866_s1 + $0xe90] sm:$0xff]   ;;  %v8115_v23 = vld [vmem:[%s9866_s1 + $0xe98] sm:$0xff]  }
 0x1ca   : >> { %v7172_v19 = vadd.f32 %v7171_v17, %v7170_v12  ;;  %v7173_v22 = vpop.f32.mrb[26].mxu1  ;;  %v7152_v25 = vpop.f32.mrb[27].mxu0  ;;  %v8109_v12 = vld [vmem:[%s9866_s1 + $0xed0] sm:$0xff]  }
 0x1cb   : >> { %v7174_v27 = vpop.f32.mrb[27].mxu1  ;;  %7471 = vmatpush3.bf16.msra.mxu1 %v8083_v30 }
 0x1cc   : >> { %v2781_v24 = vadd.f32 %v7172_v19, %v7150_v16  ;;  %7449 = vmatpush3.bf16.msra.mxu0 %v8082_v28  ;;  %7472 = vmatprep.subr.bf16.mxu1 %v8085_v32  ;;  %v8112_v16 = vld [vmem:[%s9866_s1 + $0xe58] sm:$0xff]   ;;  %v8117_v28 = vld [vmem:[%s9866_s1 + $0xee0] sm:$0xff]  }
 0x1cd   : >> { %7450 = vmatprep.subr.bf16.mxu0 %v8084_v31  ;;  %v8118_v32 = vld [vmem:[%s9866_s1 + $0xe20] sm:$0xff]  }
 0x1ce   : >> { %v9607_v29 = vadd.f32 %v2781_v24, %v9509_v44  ;;  %v8095_v44 = vld [vmem:[%s9866_s1 + $0xdb8] sm:$0xff]  }
 0x1cf   : >> { %7473 = vmatpush3.bf16.msra.mxu1 %v8087_v34  ;;  %v8119_v34 = vld [vmem:[%s9866_s1 + $0xea0] sm:$0xff]  }
 0x1d0   : >> { %7451 = vmatpush3.bf16.msra.mxu0 %v8086_v33  ;;  %7474 = vmatprep.subr.bf16.mxu1 %v8089_v37  ;;  %v8120_v37 = vld [vmem:[%s9866_s1 + $0xe68] sm:$0xff]  }
 0x1d1   : >> { %7452 = vmatprep.subr.bf16.mxu0 %v8088_v36 }
 0x1d3   : >> { %7475 = vmatpush3.bf16.msra.mxu1 %v8091_v40  ;;  %v8122_v40 = vld [vmem:[%s9866_s1 + $0xe28] sm:$0xff]  }
 0x1d4   : >> { %7453 = vmatpush3.bf16.msra.mxu0 %v8090_v39  ;;  %7476 = vmatprep.subr.bf16.mxu1 %v8093_v42  ;;  %v8121_v39 = vld [vmem:[%s9866_s1 + $0xee8] sm:$0xff]   ;;  %v8125_v42 = vld [vmem:[%s9866_s1 + $0xef0] sm:$0xff]  }
 0x1d5   : >> { %7454 = vmatprep.subr.bf16.mxu0 %v8092_v41  ;;  %v8124_v41 = vld [vmem:[%s9866_s1 + $0xe70] sm:$0xff]  }
 0x1d7   : >> { %7477 = vmatpush3.bf16.msra.mxu1 %v8095_v44  ;;  %v8127_v44 = vld [vmem:[%s9866_s1 + $0xeb0] sm:$0xff]  }
 0x1d8   : >> { %7455 = vmatpush3.bf16.msra.mxu0 %v8094_v43  ;;  %7506 = vmatprep.subr.bf16.mxu1 %v8101_v54  ;;  %v8126_v43 = vld [vmem:[%s9866_s1 + $0xe30] sm:$0xff]   ;;  %v5483_v54 = vrot.slane %v6788_v49, 1 }
 0x1d9   : >> { %7484 = vmatprep.subr.bf16.mxu0 %v8100_v50  ;;  %v6786_v50 = vld [vmem:[%s8340_s22 + $0x68] sm:$0xee] }
 0x1da   : >> { %5398 = vmatmul.mubr.bf16.vlgmr.msra.gmra.mrb[52].mxu1 %v5121_v6  ;;  %v6789_v45 = vcombine.low %v6786_v50, %v6786_v50  ;;  %v6790_v52 = vcombine.high %v6786_v50, %v6786_v50  ;;  %v8147_v6 = vld [vmem:[%s9866_s1 + $0xf90] sm:$0xff]  }
 0x1db   : >> { %5358 = vmatmul.mubr.bf16.vlgmr.msra.gmra.mrb[52].mxu0 %v5107_v4  ;;  %7507 = vmatpush3.bf16.msra.mxu1 %v8103_v2  ;;  %v8143_v2 = vld [vmem:[%s9866_s1 + $0xf88] sm:$0xff]   ;;  %v8145_v4 = vld [vmem:[%s9866_s1 + $0xfd0] sm:$0xff]  }
 0x1dc   : >> { %7485 = vmatpush3.bf16.msra.mxu0 %v8102_v63  ;;  %7508 = vmatprep.subr.bf16.mxu1 %v8105_v8  ;;  %v5485_v57 = vrot.slane %v6790_v52, 1  ;;  %v5484_v59 = vrot.slane %v6789_v45, 1  ;;  %v8142_v63 = vld [vmem:[%s9866_s1 + $0xf08] sm:$0xff]   ;;  %v8148_v8 = vld [vmem:[%s9866_s1 + $0xf58] sm:$0xff]  }
 0x1dd   : >> { %7486 = vmatprep.subr.bf16.mxu0 %v8104_v7  ;;  %5714 = vmatprep.mubr.bf16.mxu0 %v5483_v54 }
 0x1de   : >> { %5754 = vmatprep.mubr.bf16.mxu1 %v5485_v57 }
 0x1df   : >> { %7509 = vmatpush3.bf16.msra.mxu1 %v8107_v10  ;;  %v8149_v10 = vld [vmem:[%s9866_s1 + $0xfd8] sm:$0xff]  }
 0x1e0   : >> { %7487 = vmatpush3.bf16.msra.mxu0 %v8106_v9  ;;  %7510 = vmatprep.subr.bf16.mxu1 %v8109_v12 }
 0x1e1   : >> { %7488 = vmatprep.subr.bf16.mxu0 %v8108_v11 }
 0x1e3   : >> { %7511 = vmatpush3.bf16.msra.mxu1 %v8111_v14 }
 0x1e4   : >> { %7489 = vmatpush3.bf16.msra.mxu0 %v8110_v13  ;;  %7512 = vmatprep.subr.bf16.mxu1 %v8113_v18  ;;  %v8150_v13 = vld [vmem:[%s9866_s1 + $0xf18] sm:$0xff]   ;;  %v8152_v18 = vld [vmem:[%s9866_s1 + $0xf60] sm:$0xff]  }
 0x1e5   : >> { %7490 = vmatprep.subr.bf16.mxu0 %v8112_v16 }
 0x1e7   : >> { %v7192_v15 = vpop.f32.mrb[28].mxu0  ;;  %7513 = vmatpush3.bf16.msra.mxu1 %v8115_v23  ;;  %v8154_v23 = vld [vmem:[%s9866_s1 + $0xf20] sm:$0xff]  }
 0x1e8   : >> { %v7193_v17 = vpop.f32.mrb[29].mxu0  ;;  %v7214_v19 = vpop.f32.mrb[28].mxu1  ;;  %7491 = vmatpush3.bf16.msra.mxu0 %v8114_v21  ;;  %7514 = vmatprep.subr.bf16.mxu1 %v8117_v28  ;;  %v8157_v28 = vld [vmem:[%s9866_s1 + $0xfe8] sm:$0xff]  }
 0x1e9   : >> { %v7194_v20 = vadd.f32 %v7193_v17, %v7192_v15  ;;  %v7215_v22 = vpop.f32.mrb[29].mxu1  ;;  %v7195_v25 = vpop.f32.mrb[30].mxu0  ;;  %7492 = vmatprep.subr.bf16.mxu0 %v8116_v26  ;;  %v8151_v15 = vld [vmem:[%s9866_s1 + $0xf98] sm:$0xff]  }
 0x1ea   : >> { %v7216_v24 = vadd.f32 %v7215_v22, %v7214_v19  ;;  %v7217_v27 = vpop.f32.mrb[30].mxu1  ;;  %v7196_v31 = vpop.f32.mrb[31].mxu0  ;;  %v8155_v25 = vld [vmem:[%s9866_s1 + $0xfa0] sm:$0xff]  }
 0x1eb   : >> { %v7218_v33 = vpop.f32.mrb[31].mxu1  ;;  %7515 = vmatpush3.bf16.msra.mxu1 %v8119_v34  ;;  %v8156_v27 = vld [vmem:[%s9866_s1 + $0xf68] sm:$0xff]   ;;  %v8162_v34 = vld [vmem:[%s9866_s1 + $0xf30] sm:$0xff]  }
 0x1ec   : >> { %v3174_v30 = vadd.f32 %v7216_v24, %v7194_v20  ;;  %7493 = vmatpush3.bf16.msra.mxu0 %v8118_v32  ;;  %7516 = vmatprep.subr.bf16.mxu1 %v8121_v39  ;;  %v8153_v20 = vld [vmem:[%s9866_s1 + $0xfe0] sm:$0xff]   ;;  %v8159_v31 = vld [vmem:[%s9866_s1 + $0xfa8] sm:$0xff]   ;;  %v8160_v32 = vld [vmem:[%s9866_s1 + $0xf70] sm:$0xff]  }
 0x1ed   : >> { %7494 = vmatprep.subr.bf16.mxu0 %v8120_v37  ;;  %v8161_v33 = vld [vmem:[%s9866_s1 + $0xff0] sm:$0xff]   ;;  %v8164_v37 = vld [vmem:[%s9866_s1 + $0xf78] sm:$0xff]  }
 0x1ee   : >> { %v9711_v36 = vadd.f32 %v3174_v30, %v9607_v29  ;;  %v8123_v29 = vld [vmem:[%s9866_s1 + $0xea8] sm:$0xff]   ;;  %v8165_v39 = vld [vmem:[%s9866_s1 + $0xff8] sm:$0xff]  }
 0x1ef   : >> { %7517 = vmatpush3.bf16.msra.mxu1 %v8123_v29  ;;  %v8158_v30 = vld [vmem:[%s9866_s1 + $0xf28] sm:$0xff]   ;;  %v8167_v29 = vld [vmem:[%s9866_s1 + $0xfb8] sm:$0xff]  }
 0x1f0   : >> { %7495 = vmatpush3.bf16.msra.mxu0 %v8122_v40  ;;  %7518 = vmatprep.subr.bf16.mxu1 %v8125_v42  ;;  %v8166_v40 = vld [vmem:[%s9866_s1 + $0xf38] sm:$0xff]   ;;  %v8170_v42 = vld [vmem:[%s8340_s22 + $0x64] ss:$16 sps:$4 sm:$0x1e]  }
 0x1f1   : >> { %7496 = vmatprep.subr.bf16.mxu0 %v8124_v41  ;;  %v8168_v41 = vld [vmem:[%s8340_s22 + $0x60] ss:$16 sps:$4 sm:$0x1e]  }
 0x1f2   : >> { %v5851_v35 = vshll.u32 %v8168_v41, 16 }
 0x1f3   : >> { %7519 = vmatpush3.bf16.msra.mxu1 %v8127_v44  ;;  %v5848_v44 = vshrl.u32 %v8168_v41, 16 }
 0x1f4   : >> { %7497 = vmatpush3.bf16.msra.mxu0 %v8126_v43  ;;  %7520 = vmatprep.subr.bf16.mxu1 %v8129_v47  ;;  %v8171_v43 = vld [vmem:[%s8340_s22 + $0x68] ss:$16 sps:$4 sm:$0x1e]   ;;  %v5859_v47 = vshll.u32 %v8170_v42, 16  ;;  %v5853_v54 = vrot.slane %v5851_v35, 2 }
 0x1f5   : >> { %7498 = vmatprep.subr.bf16.mxu0 %v8128_v46  ;;  %v5856_v46 = vshrl.u32 %v8170_v42, 16  ;;  %v5850_v38 = vrot.slane %v5848_v44, 1  ;;  %v5864_v49 = vshrl.u32 %v8171_v43, 16  ;;  %v5867_v50 = vshll.u32 %v8171_v43, 16 }
 0x1f6   : >> { %v5861_v45 = vrot.slane %v5859_v47, 2 }
 0x1f7   : >> { %7521 = vmatpush3.bf16.msra.mxu1 %v8131_v51  ;;  %v5858_v51 = vrot.slane %v5856_v46, 1 }
 0x1f8   : >> { %7499 = vmatpush3.bf16.msra.mxu0 %v8130_v48  ;;  %7550 = vmatprep.subr.bf16.mxu1 %v8137_v56  ;;  %v8173_v48 = vld [vmem:[%s8340_s22 + $0x6c] ss:$16 sps:$4 sm:$0x1e]   ;;  %v5869_v56 = vrot.slane %v5867_v50, 2  ;;  %s6252_s22 = sshll.u32 %s8188_s29, 3  ;;  %s206_s29 = sadd.s32 1, %s8188_s29  }
 0x1f9   : >> { %7528 = vmatprep.subr.bf16.mxu0 %v8136_v55  ;;  %v5872_v52 = vshrl.u32 %v8173_v48, 16  ;;  %v5866_v55 = vrot.slane %v5864_v49, 1  ;;  %v5862_v57 = vor.u32 %v5861_v45, %v5858_v51  ;;  %s6170_s20 = scalar_lea.vmem %s8241_s28, %s6252_s22  ;;  %p203_p4 = scmp.ge.s32.totalorder %s206_s29, 6  }
 0x1fa   : >> { %5755 = vmatmul.mubr.bf16.vlgmr.msra.gmra.mrb[56].mxu1 %v5484_v59 }
 0x1fb   : >> { %5715 = vmatmul.mubr.bf16.vlgmr.msra.gmra.mrb[56].mxu0 %v5482_v53  ;;  %7551 = vmatpush3.bf16.msra.mxu1 %v8139_v60  ;;  %v5875_v53 = vshll.u32 %v8173_v48, 16  ;;  %v5854_v60 = vor.u32 %v5853_v54, %v5850_v38 }
 0x1fc   : >> { %7529 = vmatpush3.bf16.msra.mxu0 %v8138_v58  ;;  %7552 = vmatprep.subr.bf16.mxu1 %v8141_v62  ;;  %v5874_v58 = vrot.slane %v5872_v52, 1 }
 0x1fd   : >> { %7530 = vmatprep.subr.bf16.mxu0 %v8140_v61  ;;  %v5877_v59 = vrot.slane %v5875_v53, 2  ;;  %v5870_v61 = vor.u32 %v5869_v56, %v5866_v55  ;;  %6107 = vmatprep.mubr.bf16.mxu0 %v5862_v57 }
 0x1ff   : >> { %7553 = vmatpush3.bf16.msra.mxu1 %v8143_v2  ;;  %v5878_v62 = vor.u32 %v5877_v59, %v5874_v58 }
 0x200   : >> { %7531 = vmatpush3.bf16.msra.mxu0 %v8142_v63  ;;  %7554 = vmatprep.subr.bf16.mxu1 %v8145_v4 }
 0x201   : >> { %7532 = vmatprep.subr.bf16.mxu0 %v8144_v3  ;;  %6147 = vmatprep.mubr.bf16.mxu1 %v5878_v62 }
 0x203   : >> { %7555 = vmatpush3.bf16.msra.mxu1 %v8147_v6 }
 0x204   : >> { %7533 = vmatpush3.bf16.msra.mxu0 %v8146_v5  ;;  %7556 = vmatprep.subr.bf16.mxu1 %v8149_v10 }
 0x205   : >> { %7534 = vmatprep.subr.bf16.mxu0 %v8148_v8 }
 0x207   : >> { %7557 = vmatpush3.bf16.msra.mxu1 %v8151_v15 }
 0x208   : >> { %v7258_v11 = vpop.f32.mrb[32].mxu1  ;;  %7535 = vmatpush3.bf16.msra.mxu0 %v8150_v13  ;;  %7558 = vmatprep.subr.bf16.mxu1 %v8153_v20 }
 0x209   : >> { %v7259_v14 = vpop.f32.mrb[33].mxu1  ;;  %7536 = vmatprep.subr.bf16.mxu0 %v8152_v18 }
 0x20a   : >> { %v7260_v16 = vadd.f32 %v7259_v14, %v7258_v11  ;;  %v7261_v19 = vpop.f32.mrb[34].mxu1 }
 0x20b   : >> { %v7262_v24 = vpop.f32.mrb[35].mxu1  ;;  %7559 = vmatpush3.bf16.msra.mxu1 %v8155_v25 }
 0x20c   : >> { %7537 = vmatpush3.bf16.msra.mxu0 %v8154_v23  ;;  %7560 = vmatprep.subr.bf16.mxu1 %v8157_v28 }
 0x20d   : >> { %7538 = vmatprep.subr.bf16.mxu0 %v8156_v27 }
 0x20e   : >> { %v7236_v7 = vpop.f32.mrb[32].mxu0 }
 0x20f   : >> { %v7237_v9 = vpop.f32.mrb[33].mxu0  ;;  %7561 = vmatpush3.bf16.msra.mxu1 %v8159_v31 }
 0x210   : >> { %v7238_v12 = vadd.f32 %v7237_v9, %v7236_v7  ;;  %v7239_v17 = vpop.f32.mrb[34].mxu0  ;;  %7539 = vmatpush3.bf16.msra.mxu0 %v8158_v30  ;;  %7562 = vmatprep.subr.bf16.mxu1 %v8161_v33 }
 0x211   : >> { %v7240_v22 = vpop.f32.mrb[35].mxu0  ;;  %7540 = vmatprep.subr.bf16.mxu0 %v8160_v32 }
 0x212   : >> { %v3531_v21 = vadd.f32 %v7260_v16, %v7238_v12 }
 0x214   : >> { %v9812_v26 = vadd.f32 %v3531_v21, %v9711_v36  ;;  %v8163_v36 = vld [vmem:[%s9866_s1 + $0xfb0] sm:$0xff]   ;;  %7541 = vmatpush3.bf16.msra.mxu0 %v8162_v34 }
 0x215   : >> { %7563 = vmatpush3.bf16.msra.mxu1 %v8163_v36  ;;  %7542 = vmatprep.subr.bf16.mxu0 %v8164_v37 }
 0x216   : >> { %7564 = vmatprep.subr.bf16.mxu1 %v8165_v39 }
 0x218   : >> { %7543 = vmatpush3.bf16.msra.mxu0 %v8166_v40 }
 0x219   : >> { %7565 = vmatpush3.bf16.msra.mxu1 %v8167_v29 }
 0x21b   : >> { %6108 = vmatmul.mubr.bf16.vlgmr.msra.gmra.mrb[60].mxu0 %v5854_v60 }
 0x21c   : >> { %6148 = vmatmul.mubr.bf16.vlgmr.msra.gmra.mrb[60].mxu1 %v5870_v61 }
 0x228   : >> { %v7302_v2 = vpop.f32.mrb[36].mxu1 }
 0x229   : >> { %v7303_v5 = vpop.f32.mrb[37].mxu1 }
 0x22a   : >> { %v7304_v7 = vadd.f32 %v7303_v5, %v7302_v2  ;;  %v7305_v8 = vpop.f32.mrb[38].mxu1 }
 0x22b   : >> { %v7306_v10 = vpop.f32.mrb[39].mxu1 }
 0x22e   : >> { %v7280_v63 = vpop.f32.mrb[36].mxu0 }
 0x22f   : >> { %v7281_v3 = vpop.f32.mrb[37].mxu0 }
 0x230   : >> { %v7282_v4 = vadd.f32 %v7281_v3, %v7280_v63  ;;  %v7283_v6 = vpop.f32.mrb[38].mxu0 }
 0x231   : >> { %v7284_v9 = vpop.f32.mrb[39].mxu0 }
 0x232   : >> { %v3912_v11 = vadd.f32 %v7304_v7, %v7282_v4 }
 0x234   : >> { %v3917_v12 = vadd.f32 %v3912_v11, %v9812_v26 }
 0x248   : >> { %v7346_v14 = vpop.f32.mrb[40].mxu1 }
 0x249   : >> { %v7347_v17 = vpop.f32.mrb[41].mxu1 }
 0x24a   : >> { %v7348_v19 = vadd.f32 %v7347_v17, %v7346_v14  ;;  %v7349_v20 = vpop.f32.mrb[42].mxu1 }
 0x24b   : >> { %v7350_v22 = vpop.f32.mrb[43].mxu1 }
 0x24e   : >> { %v7324_v13 = vpop.f32.mrb[40].mxu0 }
 0x24f   : >> { %v7325_v15 = vpop.f32.mrb[41].mxu0 }
 0x250   : >> { %v7326_v16 = vadd.f32 %v7325_v15, %v7324_v13  ;;  %v7327_v18 = vpop.f32.mrb[42].mxu0 }
 0x251   : >> { %v7328_v21 = vpop.f32.mrb[43].mxu0 }
 0x252   : >> { %v4269_v23 = vadd.f32 %v7348_v19, %v7326_v16 }
 0x254   : >> { %v4274_v24 = vadd.f32 %v4269_v23, %v3917_v12 }
 0x268   : >> { %v7390_v28 = vpop.f32.mrb[44].mxu1 }
 0x269   : >> { %v7391_v32 = vpop.f32.mrb[45].mxu1 }
 0x26a   : >> { %v7392_v26 = vadd.f32 %v7391_v32, %v7390_v28  ;;  %v7393_v34 = vpop.f32.mrb[46].mxu1 }
 0x26b   : >> { %v7394_v36 = vpop.f32.mrb[47].mxu1 }
 0x26e   : >> { %v7368_v25 = vpop.f32.mrb[44].mxu0 }
 0x26f   : >> { %v7369_v27 = vpop.f32.mrb[45].mxu0 }
 0x270   : >> { %v7370_v30 = vadd.f32 %v7369_v27, %v7368_v25  ;;  %v7371_v31 = vpop.f32.mrb[46].mxu0 }
 0x271   : >> { %v7372_v33 = vpop.f32.mrb[47].mxu0 }
 0x272   : >> { %v4662_v37 = vadd.f32 %v7392_v26, %v7370_v30 }
 0x274   : >> { %v4667_v39 = vadd.f32 %v4662_v37, %v4274_v24 }
 0x28d   : >> { %v7434_v41 = vpop.f32.mrb[48].mxu1 }
 0x28e   : >> { %v7412_v40 = vpop.f32.mrb[48].mxu0  ;;  %v7435_v44 = vpop.f32.mrb[49].mxu1 }
 0x28f   : >> { %v7413_v29 = vpop.f32.mrb[49].mxu0  ;;  %v7436_v47 = vadd.f32 %v7435_v44, %v7434_v41  ;;  %v7437_v48 = vpop.f32.mrb[50].mxu1 }
 0x290   : >> { %v7414_v42 = vadd.f32 %v7413_v29, %v7412_v40  ;;  %v7415_v43 = vpop.f32.mrb[50].mxu0  ;;  %v7438_v35 = vpop.f32.mrb[51].mxu1 }
 0x291   : >> { %v7416_v46 = vpop.f32.mrb[51].mxu0 }
 0x292   : >> { %v5019_v38 = vadd.f32 %v7436_v47, %v7414_v42 }
 0x294   : >> { %v5024_v49 = vadd.f32 %v5019_v38, %v4667_v39 }
 0x2ad   : >> { %v7478_v51 = vpop.f32.mrb[52].mxu1 }
 0x2ae   : >> { %v7456_v50 = vpop.f32.mrb[52].mxu0  ;;  %v7479_v53 = vpop.f32.mrb[53].mxu1 }
 0x2af   : >> { %v7457_v45 = vpop.f32.mrb[53].mxu0  ;;  %v7480_v55 = vadd.f32 %v7479_v53, %v7478_v51  ;;  %v7481_v56 = vpop.f32.mrb[54].mxu1 }
 0x2b0   : >> { %v7458_v52 = vadd.f32 %v7457_v45, %v7456_v50  ;;  %v7459_v54 = vpop.f32.mrb[54].mxu0  ;;  %v7482_v58 = vpop.f32.mrb[55].mxu1 }
 0x2b1   : >> { %v7460_v57 = vpop.f32.mrb[55].mxu0 }
 0x2b2   : >> { %v5400_v59 = vadd.f32 %v7480_v55, %v7458_v52 }
 0x2b4   : >> { %v5405_v60 = vadd.f32 %v5400_v59, %v5024_v49 }
 0x2cd   : >> { %v7522_v62 = vpop.f32.mrb[56].mxu1 }
 0x2ce   : >> { %v7500_v61 = vpop.f32.mrb[56].mxu0  ;;  %v7523_v3 = vpop.f32.mrb[57].mxu1 }
 0x2cf   : >> { %v7501_v63 = vpop.f32.mrb[57].mxu0  ;;  %v7524_v5 = vadd.f32 %v7523_v3, %v7522_v62  ;;  %v7525_v6 = vpop.f32.mrb[58].mxu1 }
 0x2d0   : >> { %v7502_v2 = vadd.f32 %v7501_v63, %v7500_v61  ;;  %v7503_v4 = vpop.f32.mrb[58].mxu0  ;;  %v7526_v8 = vpop.f32.mrb[59].mxu1 }
 0x2d1   : >> { %v7504_v7 = vpop.f32.mrb[59].mxu0 }
 0x2d2   : >> { %v5757_v9 = vadd.f32 %v7524_v5, %v7502_v2 }
 0x2d4   : >> { %v5762_v10 = vadd.f32 %v5757_v9, %v5405_v60 }
 0x2ee   : >> { %v7544_v11 = vpop.f32.mrb[60].mxu0 }
 0x2ef   : >> { %v7545_v12 = vpop.f32.mrb[61].mxu0  ;;  %v7566_v13 = vpop.f32.mrb[60].mxu1 }
 0x2f0   : >> { %v7546_v14 = vadd.f32 %v7545_v12, %v7544_v11  ;;  %v7547_v15 = vpop.f32.mrb[62].mxu0  ;;  %v7567_v16 = vpop.f32.mrb[61].mxu1 }
 0x2f1   : >> { %v7548_v17 = vpop.f32.mrb[63].mxu0  ;;  %v7568_v18 = vadd.f32 %v7567_v16, %v7566_v13  ;;  %v7569_v19 = vpop.f32.mrb[62].mxu1 }
 0x2f2   : >> { %v7570_v20 = vpop.f32.mrb[63].mxu1 }
 0x2f3   : >> { %v6150_v21 = vadd.f32 %v7568_v18, %v7546_v14 }
 0x2f5   : >> { %v6155_v22 = vadd.f32 %v6150_v21, %v5762_v10  ;;  %205 = sbr.rel (!%p203_p4) target bundleno = 18 (0x12), region = 78 }
 0x2f7   : >> { %v6162_v23 = vmul.f32 %v8226_v0, %v6155_v22 }
 0x2f9   : >> { %v6169_v24 = vadd.f32 %v8231_v1, %v6162_v23 }
 0x2fb   : >> { %6171 = vst [vmem:[%s6170_s20] sm:$0x3f] %v6169_v24 }
 0x2fc PF: > { %s14_s15 = sadd.s32 1, %s8184_s15  }
 0x2fd   : > { %p11_p5 = scmp.ge.s32.totalorder %s14_s15, 4  }
 0x2ff   :  { %13 = sbr.rel (!%p11_p5) target bundleno = 1 (0x1), region = 89 }

// kernel: discriminator_forward.8
= control target key start
LH: loop header
LB: loop body
LE: loop exit
PB: predicated region body
PF: predicated region fallthrough
CT: control target
= control target key end

     0   :  { %s10928_s15 = smov 0   ;;  %s14188_s0 = inlined_call_operand.vmem [shape: bf16[2,10,10,256], index: 0, kind: input, shape index: {}]   ;;  %s14189_s1 = inlined_call_operand.vmem [shape: bf16[4096,512], index: 1, kind: input, shape index: {}]   ;;  %s14190_s2 = inlined_call_operand.vmem [shape: f32[1,512], index: 2, kind: input, shape index: {}]   ;;  %s14191_s3 = inlined_call_operand.vmem [shape: f32[1,512], index: 3, kind: input, shape index: {}]   ;;  %s14192_s4 = inlined_call_operand.vmem [shape: bf16[2,7,7,512], index: 4, kind: output, shape index: {}]  }
   0x1 LB: > { %s8123_s16 = sadd.s32 4294967295, %s10897_s15   ;;  %p8127_p0 = scmp.ge.s32.totalorder %s10897_s15, 1  ;;  %s10897_s15 = sphi %s10928_s15, %s14_s15  }
   0x2   : > { %p162_p1 = scmp.lt.s32.totalorder %s10897_s15, 3 }
   0x4   : > { %p163_p2 = pnand %p8127_p0, %p162_p1 }
   0x5   : > { %p188_p3 = scmp.lt.s32.totalorder (!%p163_p2), %s8123_s16, 1  ;;  %v10939_v0 = vld [vmem:[%s14190_s2] sm:$0xf] (!%p163_p2)  ;;  %s10956_s29 = smov (!%p163_p2), 0  }
   0x6   : > { %166 = sbr.rel (%p163_p2) target bundleno = 1268 (0x4f4), region = 36  ;;  %v10944_v1 = vld [vmem:[%s14191_s3] sm:$0xf] (!%p163_p2) }
   0xd   : > { %s14198_s16 = smov (!%p188_p3, %s8123_s16), 1 }
   0xe   : > { %s9313_s21 = smul.u32 160, %s14198_s16 }
   0xf   : > { %s9314_s22 = smul.u32 112, %s14198_s16 }
  0x10   : > { %s10949_s25 = scalar_lea.vmem %s14188_s0, %s9313_s21 }
  0x11   : > { %s10954_s28 = scalar_lea.vmem %s14192_s4, %s9314_s22 }
  0x12 LB: >> { %v9331_v2 = vld [vmem:[%s14189_s1 + $0x204] ss:$16 sps:$4 sm:$0xff]   ;;  %v9333_v3 = vld [vmem:[%s14189_s1 + $0x20c] ss:$16 sps:$4 sm:$0xff]   ;;  %v9335_v4 = vld [vmem:[%s14189_s1 + $0x200] ss:$16 sps:$4 sm:$0xff]   ;;  %s10901_s29 = sphi %s10956_s29, %s205_s29  }
  0x13   : >> { %679 = vmatprep.subr.bf16.mxu0 %v9331_v2  ;;  %v9336_v5 = vld [vmem:[%s14189_s1 + $0x208] ss:$16 sps:$4 sm:$0xff]   ;;  %720 = vmatprep.subr.bf16.mxu1 %v9333_v3  ;;  %v9337_v6 = vld [vmem:[%s14189_s1 + $0x224] ss:$16 sps:$4 sm:$0xff]   ;;  %v9339_v7 = vld [vmem:[%s14189_s1 + $0x22c] ss:$16 sps:$4 sm:$0xff]  }
  0x14   : >> { %680 = vmatpush1.bf16.msra.mxu0 %v9335_v4  ;;  %721 = vmatpush1.bf16.msra.mxu1 %v9336_v5  ;;  %v9341_v8 = vld [vmem:[%s14189_s1 + $0x220] ss:$16 sps:$4 sm:$0xff]   ;;  %v9342_v9 = vld [vmem:[%s14189_s1 + $0x228] ss:$16 sps:$4 sm:$0xff]   ;;  %v9343_v10 = vld [vmem:[%s14189_s1 + $0x244] ss:$16 sps:$4 sm:$0xff]  }
  0x15   : >> { %681 = vmatprep.subr.bf16.mxu0 %v9337_v6  ;;  %722 = vmatprep.subr.bf16.mxu1 %v9339_v7  ;;  %v9345_v11 = vld [vmem:[%s14189_s1 + $0x24c] ss:$16 sps:$4 sm:$0xff]   ;;  %v9347_v12 = vld [vmem:[%s14189_s1 + $0x240] ss:$16 sps:$4 sm:$0xff]   ;;  %v9348_v13 = vld [vmem:[%s14189_s1 + $0x248] ss:$16 sps:$4 sm:$0xff]  }
  0x16   : >> { %v9349_v14 = vld [vmem:[%s14189_s1 + $0x264] ss:$16 sps:$4 sm:$0xff]   ;;  %v9351_v15 = vld [vmem:[%s14189_s1 + $0x26c] ss:$16 sps:$4 sm:$0xff]   ;;  %v9353_v16 = vld [vmem:[%s14189_s1 + $0x260] ss:$16 sps:$4 sm:$0xff]  }
  0x17   : >> { %v9354_v17 = vld [vmem:[%s14189_s1 + $0x268] ss:$16 sps:$4 sm:$0xff]   ;;  %v9355_v18 = vld [vmem:[%s14189_s1 + $0x284] ss:$16 sps:$4 sm:$0xff]   ;;  %v9357_v19 = vld [vmem:[%s14189_s1 + $0x28c] ss:$16 sps:$4 sm:$0xff]  }
  0x18   : >> { %682 = vmatpush1.bf16.msra.mxu0 %v9341_v8  ;;  %723 = vmatpush1.bf16.msra.mxu1 %v9342_v9  ;;  %v9359_v20 = vld [vmem:[%s14189_s1 + $0x280] ss:$16 sps:$4 sm:$0xff]   ;;  %v9360_v21 = vld [vmem:[%s14189_s1 + $0x288] ss:$16 sps:$4 sm:$0xff]   ;;  %v9361_v22 = vld [vmem:[%s14189_s1 + $0x2a4] ss:$16 sps:$4 sm:$0xff]  }
  0x19   : >> { %683 = vmatprep.subr.bf16.mxu0 %v9343_v10  ;;  %724 = vmatprep.subr.bf16.mxu1 %v9345_v11  ;;  %v9363_v23 = vld [vmem:[%s14189_s1 + $0x2ac] ss:$16 sps:$4 sm:$0xff]   ;;  %v9365_v24 = vld [vmem:[%s14189_s1 + $0x2a0] ss:$16 sps:$4 sm:$0xff]   ;;  %v9366_v25 = vld [vmem:[%s14189_s1 + $0x2a8] ss:$16 sps:$4 sm:$0xff]  }
  0x1a   : >> { %v9367_v26 = vld [vmem:[%s14189_s1 + $0x2c4] ss:$16 sps:$4 sm:$0xff]   ;;  %v9369_v27 = vld [vmem:[%s14189_s1 + $0x2cc] ss:$16 sps:$4 sm:$0xff]   ;;  %v9371_v28 = vld [vmem:[%s14189_s1 + $0x2c0] ss:$16 sps:$4 sm:$0xff]  }
  0x1b   : >> { %v9372_v29 = vld [vmem:[%s14189_s1 + $0x2c8] ss:$16 sps:$4 sm:$0xff]   ;;  %v9373_v30 = vld [vmem:[%s14189_s1 + $0x2e4] ss:$16 sps:$4 sm:$0xff]   ;;  %v9375_v31 = vld [vmem:[%s14189_s1 + $0x2ec] ss:$16 sps:$4 sm:$0xff]  }
  0x1c   : >> { %684 = vmatpush1.bf16.msra.mxu0 %v9347_v12  ;;  %725 = vmatpush1.bf16.msra.mxu1 %v9348_v13  ;;  %v9377_v32 = vld [vmem:[%s14189_s1 + $0x2e0] ss:$16 sps:$4 sm:$0xff]   ;;  %v9378_v33 = vld [vmem:[%s14189_s1 + $0x2e8] ss:$16 sps:$4 sm:$0xff]   ;;  %v9379_v34 = vld [vmem:[%s14189_s1 + $0x304] ss:$16 sps:$4 sm:$0xff]  }
  0x1d   : >> { %685 = vmatprep.subr.bf16.mxu0 %v9349_v14  ;;  %726 = vmatprep.subr.bf16.mxu1 %v9351_v15  ;;  %v9381_v35 = vld [vmem:[%s14189_s1 + $0x30c] ss:$16 sps:$4 sm:$0xff]   ;;  %v9383_v36 = vld [vmem:[%s14189_s1 + $0x300] ss:$16 sps:$4 sm:$0xff]   ;;  %v9384_v37 = vld [vmem:[%s14189_s1 + $0x308] ss:$16 sps:$4 sm:$0xff]  }
  0x1e   : >> { %v9385_v38 = vld [vmem:[%s14189_s1 + $0x324] ss:$16 sps:$4 sm:$0xff]   ;;  %v9387_v39 = vld [vmem:[%s14189_s1 + $0x32c] ss:$16 sps:$4 sm:$0xff]   ;;  %v9389_v40 = vld [vmem:[%s14189_s1 + $0x320] ss:$16 sps:$4 sm:$0xff]  }
  0x1f   : >> { %v9390_v41 = vld [vmem:[%s14189_s1 + $0x328] ss:$16 sps:$4 sm:$0xff]   ;;  %v9391_v42 = vld [vmem:[%s14189_s1 + $0x344] ss:$16 sps:$4 sm:$0xff]   ;;  %s9189_s21 = sshll.u32 %s10901_s29, 4  ;;  %vm8037_vm0 = vcmask 1043456  }
  0x20   : >> { %686 = vmatpush1.bf16.msra.mxu0 %v9353_v16  ;;  %727 = vmatpush1.bf16.msra.mxu1 %v9354_v17  ;;  %v9393_v43 = vld [vmem:[%s14189_s1 + $0x34c] ss:$16 sps:$4 sm:$0xff]   ;;  %v9395_v44 = vld [vmem:[%s14189_s1 + $0x340] ss:$16 sps:$4 sm:$0xff]   ;;  %v9396_v45 = vld [vmem:[%s14189_s1 + $0x348] ss:$16 sps:$4 sm:$0xff]   ;;  %s11097_s5 = scalar_lea.vmem %s10949_s25, %s9189_s21  ;;  %s8036_s22 = scalar_lea.vmem %s10954_s28, %s9189_s21 }
  0x21   : >> { %687 = vmatprep.subr.bf16.mxu0 %v9355_v18  ;;  %728 = vmatprep.subr.bf16.mxu1 %v9357_v19  ;;  %v9397_v46 = vld [vmem:[%s14189_s1 + $0x364] ss:$16 sps:$4 sm:$0xff]   ;;  %v9399_v47 = vld [vmem:[%s14189_s1 + $0x36c] ss:$16 sps:$4 sm:$0xff]   ;;  %v9401_v49 = vld [vmem:[%s14189_s1 + $0x360] ss:$16 sps:$4 sm:$0xff]  }
  0x22   : >> { %v209_v48 = vld [vmem:[%s11097_s5] sm:$0xff]  ;;  %v9402_v51 = vld [vmem:[%s14189_s1 + $0x368] ss:$16 sps:$4 sm:$0xff]   ;;  %v9405_v53 = vld [vmem:[%s14189_s1 + $0x38c] ss:$16 sps:$4 sm:$0xff]   ;;  %vm8040_vm2 = vcmask 1047556  }
  0x23   : >> { %v11109_v50 = vcombine.high %v209_v48, %v209_v48  ;;  %v9403_v52 = vld [vmem:[%s14189_s1 + $0x384] ss:$16 sps:$4 sm:$0xff]   ;;  %v9407_v57 = vld [vmem:[%s14189_s1 + $0x380] ss:$16 sps:$4 sm:$0xff]   ;;  %v9408_v58 = vld [vmem:[%s14189_s1 + $0x388] ss:$16 sps:$4 sm:$0xff]   ;;  %v11134_v62 = vcombine.low %v209_v48, %v209_v48 }
  0x24   : >> { %688 = vmatpush1.bf16.msra.mxu0 %v9359_v20  ;;  %729 = vmatpush1.bf16.msra.mxu1 %v9360_v21  ;;  %v9409_v59 = vld [vmem:[%s14189_s1 + $0x3a4] ss:$16 sps:$4 sm:$0xff]   ;;  %v9411_v60 = vld [vmem:[%s14189_s1 + $0x3ac] ss:$16 sps:$4 sm:$0xff]   ;;  %v9413_v63 = vld [vmem:[%s14189_s1 + $0x3a0] ss:$16 sps:$4 sm:$0xff]  }
  0x25   : >> { %689 = vmatprep.subr.bf16.mxu0 %v9361_v22  ;;  %730 = vmatprep.subr.bf16.mxu1 %v9363_v23  ;;  %v351_v54 = vshrl.u32 %v11109_v50, 16  ;;  %v353_v55 = vshll.u32 %v11109_v50, 16  ;;  %v9414_v2 = vld [vmem:[%s14189_s1 + $0x3a8] ss:$16 sps:$4 sm:$0xff]   ;;  %v9415_v3 = vld [vmem:[%s14189_s1 + $0x3c4] ss:$16 sps:$4 sm:$0xff]  }
  0x26   : >> { %v9417_v4 = vld [vmem:[%s14189_s1 + $0x3cc] ss:$16 sps:$4 sm:$0xff]   ;;  %v346_v5 = vshll.u32 %v11134_v62, 16  ;;  %v9419_v6 = vld [vmem:[%s14189_s1 + $0x3c0] ss:$16 sps:$4 sm:$0xff]   ;;  %v344_v10 = vshrl.u32 %v11134_v62, 16 }
  0x27   : >> { %v355_v56 = vrot.slane %v353_v55, 1  ;;  %v9420_v7 = vld [vmem:[%s14189_s1 + $0x3c8] ss:$16 sps:$4 sm:$0xff]   ;;  %v9421_v8 = vld [vmem:[%s14189_s1 + $0x3e4] ss:$16 sps:$4 sm:$0xff]   ;;  %s205_s29 = sadd.s32 1, %s10901_s29  }
  0x28   : >> { %690 = vmatpush1.bf16.msra.mxu0 %v9365_v24  ;;  %731 = vmatpush1.bf16.msra.mxu1 %v9366_v25  ;;  %v9423_v9 = vld [vmem:[%s14189_s1 + $0x3ec] ss:$16 sps:$4 sm:$0xff]   ;;  %v348_v11 = vrot.slane %v346_v5, 1  ;;  %v9425_v12 = vld [vmem:[%s14189_s1 + $0x3e0] ss:$16 sps:$4 sm:$0xff]   ;;  %p202_p4 = scmp.ge.s32.totalorder %s205_s29, 7  }
  0x29   : >> { %691 = vmatprep.subr.bf16.mxu0 %v9367_v26  ;;  %732 = vmatprep.subr.bf16.mxu1 %v9369_v27  ;;  %v356_v61 = vor.u32 %v355_v56, %v351_v54  ;;  %v9426_v13 = vld [vmem:[%s14189_s1 + $0x3e8] ss:$16 sps:$4 sm:$0xff]   ;;  %v9431_v14 = vld [vmem:[%s14189_s1 + $0x4] ss:$16 sps:$4 sm:$0xff]   ;;  %v9434_v15 = vld [vmem:[%s14189_s1 + $0xc] ss:$16 sps:$4 sm:$0xff]  }
  0x2a   : >> { %v349_v16 = vor.u32 %v348_v11, %v344_v10  ;;  %v9429_v17 = vld [vmem:[%s14189_s1] ss:$16 sps:$4 sm:$0xff]   ;;  %v9432_v18 = vld [vmem:[%s14189_s1 + $0x8] ss:$16 sps:$4 sm:$0xff]   ;;  %v9437_v19 = vld [vmem:[%s14189_s1 + $0x24] ss:$16 sps:$4 sm:$0xff]  }
  0x2b   : >> { %711 = vmatprep.mubr.bf16.mxu0 %v356_v61  ;;  %752 = vmatprep.mubr.bf16.mxu1 %v356_v61  ;;  %v9440_v20 = vld [vmem:[%s14189_s1 + $0x2c] ss:$16 sps:$4 sm:$0xff]   ;;  %v9435_v21 = vld [vmem:[%s14189_s1 + $0x20] ss:$16 sps:$4 sm:$0xff]   ;;  %v9438_v22 = vld [vmem:[%s14189_s1 + $0x28] ss:$16 sps:$4 sm:$0xff]  }
  0x2c   : >> { %692 = vmatpush1.bf16.msra.mxu0 %v9371_v28  ;;  %733 = vmatpush1.bf16.msra.mxu1 %v9372_v29  ;;  %v9443_v23 = vld [vmem:[%s14189_s1 + $0x44] ss:$16 sps:$4 sm:$0xff]   ;;  %v9446_v24 = vld [vmem:[%s14189_s1 + $0x4c] ss:$16 sps:$4 sm:$0xff]   ;;  %v9441_v25 = vld [vmem:[%s14189_s1 + $0x40] ss:$16 sps:$4 sm:$0xff]  }
  0x2d   : >> { %693 = vmatprep.subr.bf16.mxu0 %v9373_v30  ;;  %734 = vmatprep.subr.bf16.mxu1 %v9375_v31  ;;  %v9444_v26 = vld [vmem:[%s14189_s1 + $0x48] ss:$16 sps:$4 sm:$0xff]   ;;  %v9449_v27 = vld [vmem:[%s14189_s1 + $0x64] ss:$16 sps:$4 sm:$0xff]   ;;  %v9452_v28 = vld [vmem:[%s14189_s1 + $0x6c] ss:$16 sps:$4 sm:$0xff]  }
  0x2e   : >> { %v9447_v29 = vld [vmem:[%s14189_s1 + $0x60] ss:$16 sps:$4 sm:$0xff]   ;;  %v9450_v30 = vld [vmem:[%s14189_s1 + $0x68] ss:$16 sps:$4 sm:$0xff]   ;;  %v9455_v31 = vld [vmem:[%s14189_s1 + $0x84] ss:$16 sps:$4 sm:$0xff]  }
  0x2f   : >> { %v9482_v48 = vld [vmem:[%s14189_s1 + $0x10c] ss:$16 sps:$4 sm:$0xff]   ;;  %v9486_v54 = vld [vmem:[%s14189_s1 + $0x128] ss:$16 sps:$4 sm:$0xff]   ;;  %v9491_v55 = vld [vmem:[%s14189_s1 + $0x144] ss:$16 sps:$4 sm:$0xff]  }
  0x30   : >> { %694 = vmatpush1.bf16.msra.mxu0 %v9377_v32  ;;  %735 = vmatpush1.bf16.msra.mxu1 %v9378_v33  ;;  %v9458_v32 = vld [vmem:[%s14189_s1 + $0x8c] ss:$16 sps:$4 sm:$0xff]   ;;  %v9453_v33 = vld [vmem:[%s14189_s1 + $0x80] ss:$16 sps:$4 sm:$0xff]   ;;  %v9504_v5 = vld [vmem:[%s14189_s1 + $0x188] ss:$16 sps:$4 sm:$0xff]  }
  0x31   : >> { %695 = vmatprep.subr.bf16.mxu0 %v9379_v34  ;;  %736 = vmatprep.subr.bf16.mxu1 %v9381_v35  ;;  %v9456_v34 = vld [vmem:[%s14189_s1 + $0x88] ss:$16 sps:$4 sm:$0xff]   ;;  %v9461_v35 = vld [vmem:[%s14189_s1 + $0xa4] ss:$16 sps:$4 sm:$0xff]   ;;  %v9494_v56 = vld [vmem:[%s14189_s1 + $0x14c] ss:$16 sps:$4 sm:$0xff]  }
  0x32   : >> { %v9495_v61 = vld [vmem:[%s14189_s1 + $0x160] ss:$16 sps:$4 sm:$0xff]   ;;  %v9515_v10 = vld [vmem:[%s14189_s1 + $0x1c4] ss:$16 sps:$4 sm:$0xff]   ;;  %v9518_v11 = vld [vmem:[%s14189_s1 + $0x1cc] ss:$16 sps:$4 sm:$0xff]  }
  0x33   : >> { %vm8038_vm1 = vsmask.f32 3328  ;;  %vm8041_vm3 = vsmask.f32 7424 }
  0x34   : >> { %696 = vmatpush1.bf16.msra.mxu0 %v9383_v36  ;;  %737 = vmatpush1.bf16.msra.mxu1 %v9384_v37  ;;  %v9464_v36 = vld [vmem:[%s14189_s1 + $0xac] ss:$16 sps:$4 sm:$0xff]   ;;  %v9459_v37 = vld [vmem:[%s14189_s1 + $0xa0] ss:$16 sps:$4 sm:$0xff]   ;;  %vm14165_vm4 = vmand %vm8037_vm0, %vm8038_vm1 }
  0x35   : >> { %697 = vmatprep.subr.bf16.mxu0 %v9385_v38  ;;  %738 = vmatprep.subr.bf16.mxu1 %v9387_v39  ;;  %v9462_v38 = vld [vmem:[%s14189_s1 + $0xa8] ss:$16 sps:$4 sm:$0xff]   ;;  %v9467_v39 = vld [vmem:[%s14189_s1 + $0xc4] ss:$16 sps:$4 sm:$0xff]   ;;  %vm14174_vm7 = vmand %vm8040_vm2, %vm8041_vm3 }
  0x36   : >> { %vm8043_vm10 = vmor %vm14174_vm7, %vm14165_vm4 }
  0x38   : >> { %698 = vmatpush1.bf16.msra.mxu0 %v9389_v40  ;;  %739 = vmatpush1.bf16.msra.mxu1 %v9390_v41  ;;  %v9470_v40 = vld [vmem:[%s14189_s1 + $0xcc] ss:$16 sps:$4 sm:$0xff]   ;;  %v9465_v41 = vld [vmem:[%s14189_s1 + $0xc0] ss:$16 sps:$4 sm:$0xff]  }
  0x39   : >> { %699 = vmatprep.subr.bf16.mxu0 %v9391_v42  ;;  %740 = vmatprep.subr.bf16.mxu1 %v9393_v43  ;;  %v9468_v42 = vld [vmem:[%s14189_s1 + $0xc8] ss:$16 sps:$4 sm:$0xff]   ;;  %v9473_v43 = vld [vmem:[%s14189_s1 + $0xe4] ss:$16 sps:$4 sm:$0xff]  }
  0x3c   : >> { %700 = vmatpush1.bf16.msra.mxu0 %v9395_v44  ;;  %741 = vmatpush1.bf16.msra.mxu1 %v9396_v45  ;;  %v9476_v44 = vld [vmem:[%s14189_s1 + $0xec] ss:$16 sps:$4 sm:$0xff]   ;;  %v9471_v45 = vld [vmem:[%s14189_s1 + $0xe0] ss:$16 sps:$4 sm:$0xff]  }
  0x3d   : >> { %701 = vmatprep.subr.bf16.mxu0 %v9397_v46  ;;  %742 = vmatprep.subr.bf16.mxu1 %v9399_v47  ;;  %v9474_v46 = vld [vmem:[%s14189_s1 + $0xe8] ss:$16 sps:$4 sm:$0xff]   ;;  %v9479_v47 = vld [vmem:[%s14189_s1 + $0x104] ss:$16 sps:$4 sm:$0xff]  }
  0x40   : >> { %702 = vmatpush1.bf16.msra.mxu0 %v9401_v49  ;;  %743 = vmatpush1.bf16.msra.mxu1 %v9402_v51  ;;  %v9477_v49 = vld [vmem:[%s14189_s1 + $0x100] ss:$16 sps:$4 sm:$0xff]   ;;  %v9485_v51 = vld [vmem:[%s14189_s1 + $0x124] ss:$16 sps:$4 sm:$0xff]  }
  0x41   : >> { %703 = vmatprep.subr.bf16.mxu0 %v9403_v52  ;;  %744 = vmatprep.subr.bf16.mxu1 %v9405_v53  ;;  %v9488_v52 = vld [vmem:[%s14189_s1 + $0x12c] ss:$16 sps:$4 sm:$0xff]   ;;  %v9483_v53 = vld [vmem:[%s14189_s1 + $0x120] ss:$16 sps:$4 sm:$0xff]  }
  0x44   : >> { %704 = vmatpush1.bf16.msra.mxu0 %v9407_v57  ;;  %745 = vmatpush1.bf16.msra.mxu1 %v9408_v58  ;;  %v9489_v57 = vld [vmem:[%s14189_s1 + $0x140] ss:$16 sps:$4 sm:$0xff]   ;;  %v9492_v58 = vld [vmem:[%s14189_s1 + $0x148] ss:$16 sps:$4 sm:$0xff]  }
  0x45   : >> { %705 = vmatprep.subr.bf16.mxu0 %v9409_v59  ;;  %746 = vmatprep.subr.bf16.mxu1 %v9411_v60  ;;  %v9497_v59 = vld [vmem:[%s14189_s1 + $0x164] ss:$16 sps:$4 sm:$0xff]   ;;  %v9500_v60 = vld [vmem:[%s14189_s1 + $0x16c] ss:$16 sps:$4 sm:$0xff]  }
  0x48   : >> { %706 = vmatpush1.bf16.msra.mxu0 %v9413_v63  ;;  %747 = vmatpush1.bf16.msra.mxu1 %v9414_v2  ;;  %v9498_v63 = vld [vmem:[%s14189_s1 + $0x168] ss:$16 sps:$4 sm:$0xff]   ;;  %v9503_v2 = vld [vmem:[%s14189_s1 + $0x184] ss:$16 sps:$4 sm:$0xff]  }
  0x49   : >> { %707 = vmatprep.subr.bf16.mxu0 %v9415_v3  ;;  %748 = vmatprep.subr.bf16.mxu1 %v9417_v4  ;;  %v9506_v3 = vld [vmem:[%s14189_s1 + $0x18c] ss:$16 sps:$4 sm:$0xff]   ;;  %v9501_v4 = vld [vmem:[%s14189_s1 + $0x180] ss:$16 sps:$4 sm:$0xff]  }
  0x4c   : >> { %708 = vmatpush1.bf16.msra.mxu0 %v9419_v6  ;;  %749 = vmatpush1.bf16.msra.mxu1 %v9420_v7  ;;  %v9509_v6 = vld [vmem:[%s14189_s1 + $0x1a4] ss:$16 sps:$4 sm:$0xff]   ;;  %v9512_v7 = vld [vmem:[%s14189_s1 + $0x1ac] ss:$16 sps:$4 sm:$0xff]  }
  0x4d   : >> { %709 = vmatprep.subr.bf16.mxu0 %v9421_v8  ;;  %750 = vmatprep.subr.bf16.mxu1 %v9423_v9  ;;  %v9507_v8 = vld [vmem:[%s14189_s1 + $0x1a0] ss:$16 sps:$4 sm:$0xff]   ;;  %v9510_v9 = vld [vmem:[%s14189_s1 + $0x1a8] ss:$16 sps:$4 sm:$0xff]  }
  0x50   : >> { %710 = vmatpush1.bf16.msra.mxu0 %v9425_v12  ;;  %751 = vmatpush1.bf16.msra.mxu1 %v9426_v13  ;;  %v9513_v12 = vld [vmem:[%s14189_s1 + $0x1c0] ss:$16 sps:$4 sm:$0xff]   ;;  %v9516_v13 = vld [vmem:[%s14189_s1 + $0x1c8] ss:$16 sps:$4 sm:$0xff]  }
  0x51   : >> { %1083 = vmatprep.subr.bf16.mxu0 %v9431_v14  ;;  %1124 = vmatprep.subr.bf16.mxu1 %v9434_v15  ;;  %v9521_v14 = vld [vmem:[%s14189_s1 + $0x1e4] ss:$16 sps:$4 sm:$0xff]   ;;  %v9524_v15 = vld [vmem:[%s14189_s1 + $0x1ec] ss:$16 sps:$4 sm:$0xff]  }
  0x53   : >> { %712 = vmatmul.mubr.bf16.vlgmr.msra.gmra.mrb[0].mxu0 %v349_v16  ;;  %753 = vmatmul.mubr.bf16.vlgmr.msra.gmra.mrb[0].mxu1 %v349_v16  ;;  %v9519_v16 = vld [vmem:[%s14189_s1 + $0x1e0] ss:$16 sps:$4 sm:$0xff]  }
  0x54   : >> { %1084 = vmatpush1.bf16.msra.mxu0 %v9429_v17  ;;  %1125 = vmatpush1.bf16.msra.mxu1 %v9432_v18  ;;  %v9522_v17 = vld [vmem:[%s14189_s1 + $0x1e8] ss:$16 sps:$4 sm:$0xff]   ;;  %v9527_v18 = vld [vmem:[%s14189_s1 + $0x404] ss:$16 sps:$4 sm:$0xff]  }
  0x55   : >> { %1085 = vmatprep.subr.bf16.mxu0 %v9437_v19  ;;  %1126 = vmatprep.subr.bf16.mxu1 %v9440_v20  ;;  %v9530_v19 = vld [vmem:[%s14189_s1 + $0x40c] ss:$16 sps:$4 sm:$0xff]   ;;  %v9525_v20 = vld [vmem:[%s14189_s1 + $0x400] ss:$16 sps:$4 sm:$0xff]  }
  0x56   : >> { %1115 = vmatprep.mubr.bf16.mxu0 %v11109_v50  ;;  %1156 = vmatprep.mubr.bf16.mxu1 %v11109_v50  ;;  %v9480_v50 = vld [vmem:[%s14189_s1 + $0x108] ss:$16 sps:$4 sm:$0xff]  }
  0x58   : >> { %1086 = vmatpush1.bf16.msra.mxu0 %v9435_v21  ;;  %1127 = vmatpush1.bf16.msra.mxu1 %v9438_v22  ;;  %v9528_v21 = vld [vmem:[%s14189_s1 + $0x408] ss:$16 sps:$4 sm:$0xff]   ;;  %v9533_v22 = vld [vmem:[%s14189_s1 + $0x424] ss:$16 sps:$4 sm:$0xff]  }
  0x59   : >> { %1087 = vmatprep.subr.bf16.mxu0 %v9443_v23  ;;  %1128 = vmatprep.subr.bf16.mxu1 %v9446_v24  ;;  %v9536_v23 = vld [vmem:[%s14189_s1 + $0x42c] ss:$16 sps:$4 sm:$0xff]  }
  0x5a   : >> { %v11381_v24 = vld [vmem:[%s11097_s5 + $0x4] ss:$8 sps:$4 sm:$0x1e]  }
  0x5c   : >> { %1088 = vmatpush1.bf16.msra.mxu0 %v9441_v25  ;;  %1129 = vmatpush1.bf16.msra.mxu1 %v9444_v26  ;;  %v9531_v25 = vld [vmem:[%s14189_s1 + $0x420] ss:$16 sps:$4 sm:$0xff]   ;;  %v9534_v26 = vld [vmem:[%s14189_s1 + $0x428] ss:$16 sps:$4 sm:$0xff]  }
  0x5d   : >> { %1089 = vmatprep.subr.bf16.mxu0 %v9449_v27  ;;  %1130 = vmatprep.subr.bf16.mxu1 %v9452_v28  ;;  %v1240_v27 = vrot.slane %v11381_v24, 1  ;;  %v9539_v28 = vld [vmem:[%s14189_s1 + $0x444] ss:$16 sps:$4 sm:$0xff]  }
  0x60   : >> { %1090 = vmatpush1.bf16.msra.mxu0 %v9447_v29  ;;  %1131 = vmatpush1.bf16.msra.mxu1 %v9450_v30  ;;  %v9537_v29 = vld [vmem:[%s14189_s1 + $0x440] ss:$16 sps:$4 sm:$0xff]   ;;  %v9540_v30 = vld [vmem:[%s14189_s1 + $0x448] ss:$16 sps:$4 sm:$0xff]  }
  0x61   : >> { %1091 = vmatprep.subr.bf16.mxu0 %v9455_v31  ;;  %1132 = vmatprep.subr.bf16.mxu1 %v9458_v32  ;;  %v9545_v31 = vld [vmem:[%s14189_s1 + $0x464] ss:$16 sps:$4 sm:$0xff]   ;;  %v9548_v32 = vld [vmem:[%s14189_s1 + $0x46c] ss:$16 sps:$4 sm:$0xff]  }
  0x64   : >> { %1092 = vmatpush1.bf16.msra.mxu0 %v9453_v33  ;;  %1133 = vmatpush1.bf16.msra.mxu1 %v9456_v34  ;;  %v9543_v33 = vld [vmem:[%s14189_s1 + $0x460] ss:$16 sps:$4 sm:$0xff]   ;;  %v9546_v34 = vld [vmem:[%s14189_s1 + $0x468] ss:$16 sps:$4 sm:$0xff]  }
  0x65   : >> { %1093 = vmatprep.subr.bf16.mxu0 %v9461_v35  ;;  %1134 = vmatprep.subr.bf16.mxu1 %v9464_v36  ;;  %v9551_v35 = vld [vmem:[%s14189_s1 + $0x484] ss:$16 sps:$4 sm:$0xff]   ;;  %v9554_v36 = vld [vmem:[%s14189_s1 + $0x48c] ss:$16 sps:$4 sm:$0xff]  }
  0x68   : >> { %1094 = vmatpush1.bf16.msra.mxu0 %v9459_v37  ;;  %1135 = vmatpush1.bf16.msra.mxu1 %v9462_v38  ;;  %v9549_v37 = vld [vmem:[%s14189_s1 + $0x480] ss:$16 sps:$4 sm:$0xff]   ;;  %v9552_v38 = vld [vmem:[%s14189_s1 + $0x488] ss:$16 sps:$4 sm:$0xff]  }
  0x69   : >> { %1095 = vmatprep.subr.bf16.mxu0 %v9467_v39  ;;  %1136 = vmatprep.subr.bf16.mxu1 %v9470_v40  ;;  %v9557_v39 = vld [vmem:[%s14189_s1 + $0x4a4] ss:$16 sps:$4 sm:$0xff]   ;;  %v9560_v40 = vld [vmem:[%s14189_s1 + $0x4ac] ss:$16 sps:$4 sm:$0xff]  }
  0x6c   : >> { %1096 = vmatpush1.bf16.msra.mxu0 %v9465_v41  ;;  %1137 = vmatpush1.bf16.msra.mxu1 %v9468_v42  ;;  %v9555_v41 = vld [vmem:[%s14189_s1 + $0x4a0] ss:$16 sps:$4 sm:$0xff]   ;;  %v9558_v42 = vld [vmem:[%s14189_s1 + $0x4a8] ss:$16 sps:$4 sm:$0xff]  }
  0x6d   : >> { %1097 = vmatprep.subr.bf16.mxu0 %v9473_v43  ;;  %1138 = vmatprep.subr.bf16.mxu1 %v9476_v44  ;;  %v9563_v43 = vld [vmem:[%s14189_s1 + $0x4c4] ss:$16 sps:$4 sm:$0xff]   ;;  %v9566_v44 = vld [vmem:[%s14189_s1 + $0x4cc] ss:$16 sps:$4 sm:$0xff]  }
  0x70   : >> { %1098 = vmatpush1.bf16.msra.mxu0 %v9471_v45  ;;  %1139 = vmatpush1.bf16.msra.mxu1 %v9474_v46  ;;  %v9561_v45 = vld [vmem:[%s14189_s1 + $0x4c0] ss:$16 sps:$4 sm:$0xff]   ;;  %v9564_v46 = vld [vmem:[%s14189_s1 + $0x4c8] ss:$16 sps:$4 sm:$0xff]  }
  0x71   : >> { %1099 = vmatprep.subr.bf16.mxu0 %v9479_v47  ;;  %1140 = vmatprep.subr.bf16.mxu1 %v9482_v48  ;;  %v9569_v47 = vld [vmem:[%s14189_s1 + $0x4e4] ss:$16 sps:$4 sm:$0xff]   ;;  %v9572_v48 = vld [vmem:[%s14189_s1 + $0x4ec] ss:$16 sps:$4 sm:$0xff]  }
  0x74   : >> { %1100 = vmatpush1.bf16.msra.mxu0 %v9477_v49  ;;  %1141 = vmatpush1.bf16.msra.mxu1 %v9480_v50  ;;  %v9567_v49 = vld [vmem:[%s14189_s1 + $0x4e0] ss:$16 sps:$4 sm:$0xff]   ;;  %v9570_v50 = vld [vmem:[%s14189_s1 + $0x4e8] ss:$16 sps:$4 sm:$0xff]  }
  0x75   : >> { %1101 = vmatprep.subr.bf16.mxu0 %v9485_v51  ;;  %1142 = vmatprep.subr.bf16.mxu1 %v9488_v52  ;;  %v9575_v51 = vld [vmem:[%s14189_s1 + $0x504] ss:$16 sps:$4 sm:$0xff]   ;;  %v9578_v52 = vld [vmem:[%s14189_s1 + $0x50c] ss:$16 sps:$4 sm:$0xff]  }
  0x78   : >> { %1102 = vmatpush1.bf16.msra.mxu0 %v9483_v53  ;;  %1143 = vmatpush1.bf16.msra.mxu1 %v9486_v54  ;;  %v9573_v53 = vld [vmem:[%s14189_s1 + $0x500] ss:$16 sps:$4 sm:$0xff]   ;;  %v9576_v54 = vld [vmem:[%s14189_s1 + $0x508] ss:$16 sps:$4 sm:$0xff]  }
  0x79   : >> { %1103 = vmatprep.subr.bf16.mxu0 %v9491_v55  ;;  %1144 = vmatprep.subr.bf16.mxu1 %v9494_v56  ;;  %v9581_v55 = vld [vmem:[%s14189_s1 + $0x524] ss:$16 sps:$4 sm:$0xff]   ;;  %v9584_v56 = vld [vmem:[%s14189_s1 + $0x52c] ss:$16 sps:$4 sm:$0xff]  }
  0x7c   : >> { %1104 = vmatpush1.bf16.msra.mxu0 %v9489_v57  ;;  %1145 = vmatpush1.bf16.msra.mxu1 %v9492_v58  ;;  %v9579_v57 = vld [vmem:[%s14189_s1 + $0x520] ss:$16 sps:$4 sm:$0xff]   ;;  %v9582_v58 = vld [vmem:[%s14189_s1 + $0x528] ss:$16 sps:$4 sm:$0xff]  }
  0x7d   : >> { %1105 = vmatprep.subr.bf16.mxu0 %v9497_v59  ;;  %1146 = vmatprep.subr.bf16.mxu1 %v9500_v60  ;;  %v9587_v59 = vld [vmem:[%s14189_s1 + $0x544] ss:$16 sps:$4 sm:$0xff]   ;;  %v9590_v60 = vld [vmem:[%s14189_s1 + $0x54c] ss:$16 sps:$4 sm:$0xff]  }
  0x80   : >> { %1106 = vmatpush1.bf16.msra.mxu0 %v9495_v61  ;;  %1147 = vmatpush1.bf16.msra.mxu1 %v9498_v63  ;;  %v9585_v61 = vld [vmem:[%s14189_s1 + $0x540] ss:$16 sps:$4 sm:$0xff]   ;;  %v9588_v63 = vld [vmem:[%s14189_s1 + $0x548] ss:$16 sps:$4 sm:$0xff]  }
  0x81   : >> { %1107 = vmatprep.subr.bf16.mxu0 %v9503_v2  ;;  %1148 = vmatprep.subr.bf16.mxu1 %v9506_v3  ;;  %v9593_v2 = vld [vmem:[%s14189_s1 + $0x564] ss:$16 sps:$4 sm:$0xff]   ;;  %v9596_v3 = vld [vmem:[%s14189_s1 + $0x56c] ss:$16 sps:$4 sm:$0xff]  }
  0x84   : >> { %1108 = vmatpush1.bf16.msra.mxu0 %v9501_v4  ;;  %1149 = vmatpush1.bf16.msra.mxu1 %v9504_v5  ;;  %v9591_v4 = vld [vmem:[%s14189_s1 + $0x560] ss:$16 sps:$4 sm:$0xff]   ;;  %v9594_v5 = vld [vmem:[%s14189_s1 + $0x568] ss:$16 sps:$4 sm:$0xff]  }
  0x85   : >> { %1109 = vmatprep.subr.bf16.mxu0 %v9509_v6  ;;  %1150 = vmatprep.subr.bf16.mxu1 %v9512_v7  ;;  %v9599_v6 = vld [vmem:[%s14189_s1 + $0x584] ss:$16 sps:$4 sm:$0xff]   ;;  %v9602_v7 = vld [vmem:[%s14189_s1 + $0x58c] ss:$16 sps:$4 sm:$0xff]  }
  0x88   : >> { %1110 = vmatpush1.bf16.msra.mxu0 %v9507_v8  ;;  %1151 = vmatpush1.bf16.msra.mxu1 %v9510_v9  ;;  %v9597_v8 = vld [vmem:[%s14189_s1 + $0x580] ss:$16 sps:$4 sm:$0xff]   ;;  %v9600_v9 = vld [vmem:[%s14189_s1 + $0x588] ss:$16 sps:$4 sm:$0xff]  }
  0x89   : >> { %1111 = vmatprep.subr.bf16.mxu0 %v9515_v10  ;;  %1152 = vmatprep.subr.bf16.mxu1 %v9518_v11  ;;  %v9605_v10 = vld [vmem:[%s14189_s1 + $0x5a4] ss:$16 sps:$4 sm:$0xff]   ;;  %v9608_v11 = vld [vmem:[%s14189_s1 + $0x5ac] ss:$16 sps:$4 sm:$0xff]  }
  0x8c   : >> { %1112 = vmatpush1.bf16.msra.mxu0 %v9513_v12  ;;  %1153 = vmatpush1.bf16.msra.mxu1 %v9516_v13  ;;  %v9603_v12 = vld [vmem:[%s14189_s1 + $0x5a0] ss:$16 sps:$4 sm:$0xff]   ;;  %v9606_v13 = vld [vmem:[%s14189_s1 + $0x5a8] ss:$16 sps:$4 sm:$0xff]  }
  0x8d   : >> { %1113 = vmatprep.subr.bf16.mxu0 %v9521_v14  ;;  %1154 = vmatprep.subr.bf16.mxu1 %v9524_v15  ;;  %v9611_v14 = vld [vmem:[%s14189_s1 + $0x5c4] ss:$16 sps:$4 sm:$0xff]   ;;  %v9614_v15 = vld [vmem:[%s14189_s1 + $0x5cc] ss:$16 sps:$4 sm:$0xff]  }
  0x90   : >> { %1114 = vmatpush1.bf16.msra.mxu0 %v9519_v16  ;;  %1155 = vmatpush1.bf16.msra.mxu1 %v9522_v17  ;;  %v9609_v16 = vld [vmem:[%s14189_s1 + $0x5c0] ss:$16 sps:$4 sm:$0xff]   ;;  %v9612_v17 = vld [vmem:[%s14189_s1 + $0x5c8] ss:$16 sps:$4 sm:$0xff]  }
  0x91   : >> { %1563 = vmatprep.subr.bf16.mxu0 %v9527_v18  ;;  %1604 = vmatprep.subr.bf16.mxu1 %v9530_v19  ;;  %v9617_v18 = vld [vmem:[%s14189_s1 + $0x5e4] ss:$16 sps:$4 sm:$0xff]   ;;  %v9620_v19 = vld [vmem:[%s14189_s1 + $0x5ec] ss:$16 sps:$4 sm:$0xff]  }
  0x93   : >> { %1116 = vmatmul.mubr.bf16.vlgmr.msra.gmra.mrb[0].mxu0 %v11134_v62  ;;  %1157 = vmatmul.mubr.bf16.vlgmr.msra.gmra.mrb[0].mxu1 %v11134_v62  ;;  %v9542_v62 = vld [vmem:[%s14189_s1 + $0x44c] ss:$16 sps:$4 sm:$0xff]  }
  0x94   : >> { %1564 = vmatpush1.bf16.msra.mxu0 %v9525_v20  ;;  %1605 = vmatpush1.bf16.msra.mxu1 %v9528_v21  ;;  %v1722_v20 = vshrl.u32 %v11381_v24, 16  ;;  %v1725_v21 = vshll.u32 %v11381_v24, 16  ;;  %v9629_v24 = vld [vmem:[%s14189_s1 + $0x60c] ss:$16 sps:$4 sm:$0xff]  }
  0x95   : >> { %1565 = vmatprep.subr.bf16.mxu0 %v9533_v22  ;;  %1606 = vmatprep.subr.bf16.mxu1 %v9536_v23  ;;  %v11557_v22 = vld [vmem:[%s11097_s5] ss:$8 sps:$4 sm:$0x1e]  }
  0x96   : >> { %1595 = vmatprep.mubr.bf16.mxu0 %v1240_v27  ;;  %1636 = vmatprep.mubr.bf16.mxu1 %v1240_v27  ;;  %v9615_v23 = vld [vmem:[%s14189_s1 + $0x5e0] ss:$16 sps:$4 sm:$0xff]   ;;  %v1724_v27 = vrot.slane %v1722_v20, 1  ;;  %v9707_v20 = vld [vmem:[%s14189_s1 + $0x7ac] ss:$16 sps:$4 sm:$0xff]  }
  0x98   : >> { %1566 = vmatpush1.bf16.msra.mxu0 %v9531_v25  ;;  %1607 = vmatpush1.bf16.msra.mxu1 %v9534_v26  ;;  %v9618_v25 = vld [vmem:[%s14189_s1 + $0x5e8] ss:$16 sps:$4 sm:$0xff]   ;;  %v9626_v26 = vld [vmem:[%s14189_s1 + $0x604] ss:$16 sps:$4 sm:$0xff]  }
  0x99   : >> { %1567 = vmatprep.subr.bf16.mxu0 %v9539_v28  ;;  %1608 = vmatprep.subr.bf16.mxu1 %v9542_v62  ;;  %v1727_v28 = vrot.slane %v1725_v21, 2  ;;  %v1239_v62 = vrot.slane %v11557_v22, 1  ;;  %v9702_v21 = vld [vmem:[%s14189_s1 + $0x7a0] ss:$16 sps:$4 sm:$0xff]  }
  0x9c   : >> { %1568 = vmatpush1.bf16.msra.mxu0 %v9537_v29  ;;  %1609 = vmatpush1.bf16.msra.mxu1 %v9540_v30  ;;  %v9624_v29 = vld [vmem:[%s14189_s1 + $0x600] ss:$16 sps:$4 sm:$0xff]   ;;  %v9627_v30 = vld [vmem:[%s14189_s1 + $0x608] ss:$16 sps:$4 sm:$0xff]  }
  0x9d   : >> { %1569 = vmatprep.subr.bf16.mxu0 %v9545_v31  ;;  %1610 = vmatprep.subr.bf16.mxu1 %v9548_v32  ;;  %v9632_v31 = vld [vmem:[%s14189_s1 + $0x624] ss:$16 sps:$4 sm:$0xff]   ;;  %v9635_v32 = vld [vmem:[%s14189_s1 + $0x62c] ss:$16 sps:$4 sm:$0xff]  }
  0xa0   : >> { %1570 = vmatpush1.bf16.msra.mxu0 %v9543_v33  ;;  %1611 = vmatpush1.bf16.msra.mxu1 %v9546_v34  ;;  %v1728_v33 = vor.u32 %v1727_v28, %v1724_v27  ;;  %v9630_v34 = vld [vmem:[%s14189_s1 + $0x620] ss:$16 sps:$4 sm:$0xff]   ;;  %v1714_v27 = vshrl.u32 %v11557_v22, 16  ;;  %v1717_v28 = vshll.u32 %v11557_v22, 16 }
  0xa1   : >> { %1571 = vmatprep.subr.bf16.mxu0 %v9551_v35  ;;  %1612 = vmatprep.subr.bf16.mxu1 %v9554_v36  ;;  %v9633_v35 = vld [vmem:[%s14189_s1 + $0x628] ss:$16 sps:$4 sm:$0xff]   ;;  %v9638_v36 = vld [vmem:[%s14189_s1 + $0x644] ss:$16 sps:$4 sm:$0xff]   ;;  %v9714_v22 = vld [vmem:[%s14189_s1 + $0x7e0] ss:$16 sps:$4 sm:$0xff]  }
  0xa4   : >> { %1572 = vmatpush1.bf16.msra.mxu0 %v9549_v37  ;;  %1613 = vmatpush1.bf16.msra.mxu1 %v9552_v38  ;;  %v9641_v37 = vld [vmem:[%s14189_s1 + $0x64c] ss:$16 sps:$4 sm:$0xff]   ;;  %v9636_v38 = vld [vmem:[%s14189_s1 + $0x640] ss:$16 sps:$4 sm:$0xff]  }
  0xa5   : >> { %1573 = vmatprep.subr.bf16.mxu0 %v9557_v39  ;;  %1614 = vmatprep.subr.bf16.mxu1 %v9560_v40  ;;  %v9639_v39 = vld [vmem:[%s14189_s1 + $0x648] ss:$16 sps:$4 sm:$0xff]   ;;  %v9644_v40 = vld [vmem:[%s14189_s1 + $0x664] ss:$16 sps:$4 sm:$0xff]  }
  0xa8   : >> { %1574 = vmatpush1.bf16.msra.mxu0 %v9555_v41  ;;  %1615 = vmatpush1.bf16.msra.mxu1 %v9558_v42  ;;  %v9647_v41 = vld [vmem:[%s14189_s1 + $0x66c] ss:$16 sps:$4 sm:$0xff]   ;;  %v9642_v42 = vld [vmem:[%s14189_s1 + $0x660] ss:$16 sps:$4 sm:$0xff]  }
  0xa9   : >> { %1575 = vmatprep.subr.bf16.mxu0 %v9563_v43  ;;  %1616 = vmatprep.subr.bf16.mxu1 %v9566_v44  ;;  %v9645_v43 = vld [vmem:[%s14189_s1 + $0x668] ss:$16 sps:$4 sm:$0xff]   ;;  %v9650_v44 = vld [vmem:[%s14189_s1 + $0x684] ss:$16 sps:$4 sm:$0xff]  }
  0xac   : >> { %1576 = vmatpush1.bf16.msra.mxu0 %v9561_v45  ;;  %1617 = vmatpush1.bf16.msra.mxu1 %v9564_v46  ;;  %v9653_v45 = vld [vmem:[%s14189_s1 + $0x68c] ss:$16 sps:$4 sm:$0xff]   ;;  %v9648_v46 = vld [vmem:[%s14189_s1 + $0x680] ss:$16 sps:$4 sm:$0xff]  }
  0xad   : >> { %1577 = vmatprep.subr.bf16.mxu0 %v9569_v47  ;;  %1618 = vmatprep.subr.bf16.mxu1 %v9572_v48  ;;  %v9651_v47 = vld [vmem:[%s14189_s1 + $0x688] ss:$16 sps:$4 sm:$0xff]   ;;  %v9656_v48 = vld [vmem:[%s14189_s1 + $0x6a4] ss:$16 sps:$4 sm:$0xff]  }
  0xb0   : >> { %1578 = vmatpush1.bf16.msra.mxu0 %v9567_v49  ;;  %1619 = vmatpush1.bf16.msra.mxu1 %v9570_v50  ;;  %v9659_v49 = vld [vmem:[%s14189_s1 + $0x6ac] ss:$16 sps:$4 sm:$0xff]   ;;  %v9654_v50 = vld [vmem:[%s14189_s1 + $0x6a0] ss:$16 sps:$4 sm:$0xff]  }
  0xb1   : >> { %1579 = vmatprep.subr.bf16.mxu0 %v9575_v51  ;;  %1620 = vmatprep.subr.bf16.mxu1 %v9578_v52  ;;  %v9657_v51 = vld [vmem:[%s14189_s1 + $0x6a8] ss:$16 sps:$4 sm:$0xff]   ;;  %v9662_v52 = vld [vmem:[%s14189_s1 + $0x6c4] ss:$16 sps:$4 sm:$0xff]  }
  0xb4   : >> { %1580 = vmatpush1.bf16.msra.mxu0 %v9573_v53  ;;  %1621 = vmatpush1.bf16.msra.mxu1 %v9576_v54  ;;  %v9665_v53 = vld [vmem:[%s14189_s1 + $0x6cc] ss:$16 sps:$4 sm:$0xff]   ;;  %v9660_v54 = vld [vmem:[%s14189_s1 + $0x6c0] ss:$16 sps:$4 sm:$0xff]  }
  0xb5   : >> { %1581 = vmatprep.subr.bf16.mxu0 %v9581_v55  ;;  %1622 = vmatprep.subr.bf16.mxu1 %v9584_v56  ;;  %v9663_v55 = vld [vmem:[%s14189_s1 + $0x6c8] ss:$16 sps:$4 sm:$0xff]   ;;  %v9668_v56 = vld [vmem:[%s14189_s1 + $0x6e4] ss:$16 sps:$4 sm:$0xff]  }
  0xb8   : >> { %1582 = vmatpush1.bf16.msra.mxu0 %v9579_v57  ;;  %1623 = vmatpush1.bf16.msra.mxu1 %v9582_v58  ;;  %v9671_v57 = vld [vmem:[%s14189_s1 + $0x6ec] ss:$16 sps:$4 sm:$0xff]   ;;  %v9666_v58 = vld [vmem:[%s14189_s1 + $0x6e0] ss:$16 sps:$4 sm:$0xff]  }
  0xb9   : >> { %1583 = vmatprep.subr.bf16.mxu0 %v9587_v59  ;;  %1624 = vmatprep.subr.bf16.mxu1 %v9590_v60  ;;  %v9669_v59 = vld [vmem:[%s14189_s1 + $0x6e8] ss:$16 sps:$4 sm:$0xff]   ;;  %v9674_v60 = vld [vmem:[%s14189_s1 + $0x704] ss:$16 sps:$4 sm:$0xff]  }
  0xbc   : >> { %1584 = vmatpush1.bf16.msra.mxu0 %v9585_v61  ;;  %1625 = vmatpush1.bf16.msra.mxu1 %v9588_v63  ;;  %v9677_v61 = vld [vmem:[%s14189_s1 + $0x70c] ss:$16 sps:$4 sm:$0xff]   ;;  %v9672_v63 = vld [vmem:[%s14189_s1 + $0x700] ss:$16 sps:$4 sm:$0xff]  }
  0xbd   : >> { %1585 = vmatprep.subr.bf16.mxu0 %v9593_v2  ;;  %1626 = vmatprep.subr.bf16.mxu1 %v9596_v3  ;;  %v9675_v2 = vld [vmem:[%s14189_s1 + $0x708] ss:$16 sps:$4 sm:$0xff]   ;;  %v9680_v3 = vld [vmem:[%s14189_s1 + $0x724] ss:$16 sps:$4 sm:$0xff]  }
  0xc0   : >> { %1586 = vmatpush1.bf16.msra.mxu0 %v9591_v4  ;;  %1627 = vmatpush1.bf16.msra.mxu1 %v9594_v5  ;;  %v9683_v4 = vld [vmem:[%s14189_s1 + $0x72c] ss:$16 sps:$4 sm:$0xff]   ;;  %v9678_v5 = vld [vmem:[%s14189_s1 + $0x720] ss:$16 sps:$4 sm:$0xff]  }
  0xc1   : >> { %1587 = vmatprep.subr.bf16.mxu0 %v9599_v6  ;;  %1628 = vmatprep.subr.bf16.mxu1 %v9602_v7  ;;  %v9681_v6 = vld [vmem:[%s14189_s1 + $0x728] ss:$16 sps:$4 sm:$0xff]   ;;  %v9686_v7 = vld [vmem:[%s14189_s1 + $0x744] ss:$16 sps:$4 sm:$0xff]  }
  0xc4   : >> { %1588 = vmatpush1.bf16.msra.mxu0 %v9597_v8  ;;  %1629 = vmatpush1.bf16.msra.mxu1 %v9600_v9  ;;  %v9689_v8 = vld [vmem:[%s14189_s1 + $0x74c] ss:$16 sps:$4 sm:$0xff]   ;;  %v9684_v9 = vld [vmem:[%s14189_s1 + $0x740] ss:$16 sps:$4 sm:$0xff]  }
  0xc5   : >> { %1589 = vmatprep.subr.bf16.mxu0 %v9605_v10  ;;  %1630 = vmatprep.subr.bf16.mxu1 %v9608_v11  ;;  %v9687_v10 = vld [vmem:[%s14189_s1 + $0x748] ss:$16 sps:$4 sm:$0xff]   ;;  %v9692_v11 = vld [vmem:[%s14189_s1 + $0x764] ss:$16 sps:$4 sm:$0xff]  }
  0xc8   : >> { %1590 = vmatpush1.bf16.msra.mxu0 %v9603_v12  ;;  %1631 = vmatpush1.bf16.msra.mxu1 %v9606_v13  ;;  %v9695_v12 = vld [vmem:[%s14189_s1 + $0x76c] ss:$16 sps:$4 sm:$0xff]   ;;  %v9690_v13 = vld [vmem:[%s14189_s1 + $0x760] ss:$16 sps:$4 sm:$0xff]  }
  0xc9   : >> { %1591 = vmatprep.subr.bf16.mxu0 %v9611_v14  ;;  %1632 = vmatprep.subr.bf16.mxu1 %v9614_v15  ;;  %v9693_v14 = vld [vmem:[%s14189_s1 + $0x768] ss:$16 sps:$4 sm:$0xff]   ;;  %v9698_v15 = vld [vmem:[%s14189_s1 + $0x784] ss:$16 sps:$4 sm:$0xff]  }
  0xcc   : >> { %1592 = vmatpush1.bf16.msra.mxu0 %v9609_v16  ;;  %1633 = vmatpush1.bf16.msra.mxu1 %v9612_v17  ;;  %v9701_v16 = vld [vmem:[%s14189_s1 + $0x78c] ss:$16 sps:$4 sm:$0xff]   ;;  %v9696_v17 = vld [vmem:[%s14189_s1 + $0x780] ss:$16 sps:$4 sm:$0xff]  }
  0xcd   : >> { %1593 = vmatprep.subr.bf16.mxu0 %v9617_v18  ;;  %1634 = vmatprep.subr.bf16.mxu1 %v9620_v19  ;;  %v9699_v18 = vld [vmem:[%s14189_s1 + $0x788] ss:$16 sps:$4 sm:$0xff]   ;;  %v9704_v19 = vld [vmem:[%s14189_s1 + $0x7a4] ss:$16 sps:$4 sm:$0xff]  }
  0xd0   : >> { %1594 = vmatpush1.bf16.msra.mxu0 %v9615_v23  ;;  %1635 = vmatpush1.bf16.msra.mxu1 %v9618_v25  ;;  %v9705_v23 = vld [vmem:[%s14189_s1 + $0x7a8] ss:$16 sps:$4 sm:$0xff]   ;;  %v9710_v25 = vld [vmem:[%s14189_s1 + $0x7c4] ss:$16 sps:$4 sm:$0xff]  }
  0xd1   : >> { %2051 = vmatprep.subr.bf16.mxu0 %v9626_v26  ;;  %2092 = vmatprep.subr.bf16.mxu1 %v9629_v24  ;;  %v9713_v26 = vld [vmem:[%s14189_s1 + $0x7cc] ss:$16 sps:$4 sm:$0xff]   ;;  %v9708_v24 = vld [vmem:[%s14189_s1 + $0x7c0] ss:$16 sps:$4 sm:$0xff]  }
  0xd3   : >> { %1596 = vmatmul.mubr.bf16.vlgmr.msra.gmra.mrb[0].mxu0 %v1239_v62  ;;  %1637 = vmatmul.mubr.bf16.vlgmr.msra.gmra.mrb[0].mxu1 %v1239_v62  ;;  %v9711_v62 = vld [vmem:[%s14189_s1 + $0x7c8] ss:$16 sps:$4 sm:$0xff]  }
  0xd4   : >> { %2052 = vmatpush1.bf16.msra.mxu0 %v9624_v29  ;;  %2093 = vmatpush1.bf16.msra.mxu1 %v9627_v30  ;;  %v9716_v29 = vld [vmem:[%s14189_s1 + $0x7e4] ss:$16 sps:$4 sm:$0xff]   ;;  %v9719_v30 = vld [vmem:[%s14189_s1 + $0x7ec] ss:$16 sps:$4 sm:$0xff]  }
  0xd5   : >> { %2053 = vmatprep.subr.bf16.mxu0 %v9632_v31  ;;  %2094 = vmatprep.subr.bf16.mxu1 %v9635_v32  ;;  %v1716_v31 = vrot.slane %v1714_v27, 1  ;;  %v1719_v32 = vrot.slane %v1717_v28, 2  ;;  %v9792_v27 = vld [vmem:[%s14189_s1 + $0x980] ss:$16 sps:$4 sm:$0xff]   ;;  %v9795_v28 = vld [vmem:[%s14189_s1 + $0x988] ss:$16 sps:$4 sm:$0xff]  }
  0xd6   : >> { %2083 = vmatprep.mubr.bf16.mxu0 %v1728_v33  ;;  %2124 = vmatprep.mubr.bf16.mxu1 %v1728_v33  ;;  %v9717_v33 = vld [vmem:[%s14189_s1 + $0x7e8] ss:$16 sps:$4 sm:$0xff]  }
  0xd8   : >> { %2054 = vmatpush1.bf16.msra.mxu0 %v9630_v34  ;;  %2095 = vmatpush1.bf16.msra.mxu1 %v9633_v35  ;;  %v9722_v34 = vld [vmem:[%s14189_s1 + $0x804] ss:$16 sps:$4 sm:$0xff]   ;;  %v9725_v35 = vld [vmem:[%s14189_s1 + $0x80c] ss:$16 sps:$4 sm:$0xff]  }
  0xd9   : >> { %2055 = vmatprep.subr.bf16.mxu0 %v9638_v36  ;;  %2096 = vmatprep.subr.bf16.mxu1 %v9641_v37  ;;  %v9720_v36 = vld [vmem:[%s14189_s1 + $0x800] ss:$16 sps:$4 sm:$0xff]   ;;  %v1720_v37 = vor.u32 %v1719_v32, %v1716_v31  ;;  %v9806_v31 = vld [vmem:[%s14189_s1 + $0x9c4] ss:$16 sps:$4 sm:$0xff]   ;;  %v9809_v32 = vld [vmem:[%s14189_s1 + $0x9cc] ss:$16 sps:$4 sm:$0xff]  }
  0xdc   : >> { %2056 = vmatpush1.bf16.msra.mxu0 %v9636_v38  ;;  %2097 = vmatpush1.bf16.msra.mxu1 %v9639_v39  ;;  %v11770_v38 = vld [vmem:[%s11097_s5 + $0x10] sm:$0xff]  ;;  %v9723_v39 = vld [vmem:[%s14189_s1 + $0x808] ss:$16 sps:$4 sm:$0xff]  }
  0xdd   : >> { %2057 = vmatprep.subr.bf16.mxu0 %v9644_v40  ;;  %2098 = vmatprep.subr.bf16.mxu1 %v9647_v41  ;;  %v9728_v40 = vld [vmem:[%s14189_s1 + $0x824] ss:$16 sps:$4 sm:$0xff]   ;;  %v9731_v41 = vld [vmem:[%s14189_s1 + $0x82c] ss:$16 sps:$4 sm:$0xff]  }
  0xe0   : >> { %2058 = vmatpush1.bf16.msra.mxu0 %v9642_v42  ;;  %2099 = vmatpush1.bf16.msra.mxu1 %v9645_v43  ;;  %v11783_v42 = vcombine.high %v11770_v38, %v11770_v38  ;;  %v9726_v43 = vld [vmem:[%s14189_s1 + $0x820] ss:$16 sps:$4 sm:$0xff]  }
  0xe1   : >> { %2059 = vmatprep.subr.bf16.mxu0 %v9650_v44  ;;  %2100 = vmatprep.subr.bf16.mxu1 %v9653_v45  ;;  %v9729_v44 = vld [vmem:[%s14189_s1 + $0x828] ss:$16 sps:$4 sm:$0xff]   ;;  %v9734_v45 = vld [vmem:[%s14189_s1 + $0x844] ss:$16 sps:$4 sm:$0xff]  }
  0xe4   : >> { %2060 = vmatpush1.bf16.msra.mxu0 %v9648_v46  ;;  %2101 = vmatpush1.bf16.msra.mxu1 %v9651_v47  ;;  %v9737_v46 = vld [vmem:[%s14189_s1 + $0x84c] ss:$16 sps:$4 sm:$0xff]   ;;  %v9732_v47 = vld [vmem:[%s14189_s1 + $0x840] ss:$16 sps:$4 sm:$0xff]  }
  0xe5   : >> { %2061 = vmatprep.subr.bf16.mxu0 %v9656_v48  ;;  %2102 = vmatprep.subr.bf16.mxu1 %v9659_v49  ;;  %v9735_v48 = vld [vmem:[%s14189_s1 + $0x848] ss:$16 sps:$4 sm:$0xff]   ;;  %v9740_v49 = vld [vmem:[%s14189_s1 + $0x864] ss:$16 sps:$4 sm:$0xff]  }
  0xe8   : >> { %2062 = vmatpush1.bf16.msra.mxu0 %v9654_v50  ;;  %2103 = vmatpush1.bf16.msra.mxu1 %v9657_v51  ;;  %v9743_v50 = vld [vmem:[%s14189_s1 + $0x86c] ss:$16 sps:$4 sm:$0xff]   ;;  %v9738_v51 = vld [vmem:[%s14189_s1 + $0x860] ss:$16 sps:$4 sm:$0xff]  }
  0xe9   : >> { %2063 = vmatprep.subr.bf16.mxu0 %v9662_v52  ;;  %2104 = vmatprep.subr.bf16.mxu1 %v9665_v53  ;;  %v9741_v52 = vld [vmem:[%s14189_s1 + $0x868] ss:$16 sps:$4 sm:$0xff]   ;;  %v9746_v53 = vld [vmem:[%s14189_s1 + $0x884] ss:$16 sps:$4 sm:$0xff]  }
  0xec   : >> { %2064 = vmatpush1.bf16.msra.mxu0 %v9660_v54  ;;  %2105 = vmatpush1.bf16.msra.mxu1 %v9663_v55  ;;  %v9749_v54 = vld [vmem:[%s14189_s1 + $0x88c] ss:$16 sps:$4 sm:$0xff]   ;;  %v9744_v55 = vld [vmem:[%s14189_s1 + $0x880] ss:$16 sps:$4 sm:$0xff]  }
  0xed   : >> { %2065 = vmatprep.subr.bf16.mxu0 %v9668_v56  ;;  %2106 = vmatprep.subr.bf16.mxu1 %v9671_v57  ;;  %v9747_v56 = vld [vmem:[%s14189_s1 + $0x888] ss:$16 sps:$4 sm:$0xff]   ;;  %v9752_v57 = vld [vmem:[%s14189_s1 + $0x8a4] ss:$16 sps:$4 sm:$0xff]  }
  0xf0   : >> { %2066 = vmatpush1.bf16.msra.mxu0 %v9666_v58  ;;  %2107 = vmatpush1.bf16.msra.mxu1 %v9669_v59  ;;  %v9755_v58 = vld [vmem:[%s14189_s1 + $0x8ac] ss:$16 sps:$4 sm:$0xff]   ;;  %v9750_v59 = vld [vmem:[%s14189_s1 + $0x8a0] ss:$16 sps:$4 sm:$0xff]  }
  0xf1   : >> { %2067 = vmatprep.subr.bf16.mxu0 %v9674_v60  ;;  %2108 = vmatprep.subr.bf16.mxu1 %v9677_v61  ;;  %v9753_v60 = vld [vmem:[%s14189_s1 + $0x8a8] ss:$16 sps:$4 sm:$0xff]   ;;  %v9758_v61 = vld [vmem:[%s14189_s1 + $0x8c4] ss:$16 sps:$4 sm:$0xff]  }
  0xf4   : >> { %2068 = vmatpush1.bf16.msra.mxu0 %v9672_v63  ;;  %2109 = vmatpush1.bf16.msra.mxu1 %v9675_v2  ;;  %v9761_v63 = vld [vmem:[%s14189_s1 + $0x8cc] ss:$16 sps:$4 sm:$0xff]   ;;  %v9756_v2 = vld [vmem:[%s14189_s1 + $0x8c0] ss:$16 sps:$4 sm:$0xff]  }
  0xf5   : >> { %2069 = vmatprep.subr.bf16.mxu0 %v9680_v3  ;;  %2110 = vmatprep.subr.bf16.mxu1 %v9683_v4  ;;  %v9759_v3 = vld [vmem:[%s14189_s1 + $0x8c8] ss:$16 sps:$4 sm:$0xff]   ;;  %v9764_v4 = vld [vmem:[%s14189_s1 + $0x8e4] ss:$16 sps:$4 sm:$0xff]  }
  0xf8   : >> { %2070 = vmatpush1.bf16.msra.mxu0 %v9678_v5  ;;  %2111 = vmatpush1.bf16.msra.mxu1 %v9681_v6  ;;  %v9767_v5 = vld [vmem:[%s14189_s1 + $0x8ec] ss:$16 sps:$4 sm:$0xff]   ;;  %v9762_v6 = vld [vmem:[%s14189_s1 + $0x8e0] ss:$16 sps:$4 sm:$0xff]  }
  0xf9   : >> { %2071 = vmatprep.subr.bf16.mxu0 %v9686_v7  ;;  %2112 = vmatprep.subr.bf16.mxu1 %v9689_v8  ;;  %v9765_v7 = vld [vmem:[%s14189_s1 + $0x8e8] ss:$16 sps:$4 sm:$0xff]   ;;  %v9770_v8 = vld [vmem:[%s14189_s1 + $0x904] ss:$16 sps:$4 sm:$0xff]  }
  0xfc   : >> { %2072 = vmatpush1.bf16.msra.mxu0 %v9684_v9  ;;  %2113 = vmatpush1.bf16.msra.mxu1 %v9687_v10  ;;  %v9773_v9 = vld [vmem:[%s14189_s1 + $0x90c] ss:$16 sps:$4 sm:$0xff]   ;;  %v9768_v10 = vld [vmem:[%s14189_s1 + $0x900] ss:$16 sps:$4 sm:$0xff]  }
  0xfd   : >> { %2073 = vmatprep.subr.bf16.mxu0 %v9692_v11  ;;  %2114 = vmatprep.subr.bf16.mxu1 %v9695_v12  ;;  %v9771_v11 = vld [vmem:[%s14189_s1 + $0x908] ss:$16 sps:$4 sm:$0xff]   ;;  %v9776_v12 = vld [vmem:[%s14189_s1 + $0x924] ss:$16 sps:$4 sm:$0xff]  }
 0x100   : >> { %2074 = vmatpush1.bf16.msra.mxu0 %v9690_v13  ;;  %2115 = vmatpush1.bf16.msra.mxu1 %v9693_v14  ;;  %v9779_v13 = vld [vmem:[%s14189_s1 + $0x92c] ss:$16 sps:$4 sm:$0xff]   ;;  %v9774_v14 = vld [vmem:[%s14189_s1 + $0x920] ss:$16 sps:$4 sm:$0xff]  }
 0x101   : >> { %2075 = vmatprep.subr.bf16.mxu0 %v9698_v15  ;;  %2116 = vmatprep.subr.bf16.mxu1 %v9701_v16  ;;  %v9777_v15 = vld [vmem:[%s14189_s1 + $0x928] ss:$16 sps:$4 sm:$0xff]   ;;  %v9782_v16 = vld [vmem:[%s14189_s1 + $0x944] ss:$16 sps:$4 sm:$0xff]  }
 0x104   : >> { %2076 = vmatpush1.bf16.msra.mxu0 %v9696_v17  ;;  %2117 = vmatpush1.bf16.msra.mxu1 %v9699_v18  ;;  %v9785_v17 = vld [vmem:[%s14189_s1 + $0x94c] ss:$16 sps:$4 sm:$0xff]   ;;  %v9780_v18 = vld [vmem:[%s14189_s1 + $0x940] ss:$16 sps:$4 sm:$0xff]  }
 0x105   : >> { %2077 = vmatprep.subr.bf16.mxu0 %v9704_v19  ;;  %2118 = vmatprep.subr.bf16.mxu1 %v9707_v20  ;;  %v9783_v19 = vld [vmem:[%s14189_s1 + $0x948] ss:$16 sps:$4 sm:$0xff]   ;;  %v9788_v20 = vld [vmem:[%s14189_s1 + $0x964] ss:$16 sps:$4 sm:$0xff]  }
 0x108   : >> { %2078 = vmatpush1.bf16.msra.mxu0 %v9702_v21  ;;  %2119 = vmatpush1.bf16.msra.mxu1 %v9705_v23  ;;  %v9791_v21 = vld [vmem:[%s14189_s1 + $0x96c] ss:$16 sps:$4 sm:$0xff]   ;;  %v9786_v23 = vld [vmem:[%s14189_s1 + $0x960] ss:$16 sps:$4 sm:$0xff]  }
 0x109   : >> { %2079 = vmatprep.subr.bf16.mxu0 %v9710_v25  ;;  %2120 = vmatprep.subr.bf16.mxu1 %v9713_v26  ;;  %v9789_v25 = vld [vmem:[%s14189_s1 + $0x968] ss:$16 sps:$4 sm:$0xff]   ;;  %v9794_v26 = vld [vmem:[%s14189_s1 + $0x984] ss:$16 sps:$4 sm:$0xff]  }
 0x10c   : >> { %2080 = vmatpush1.bf16.msra.mxu0 %v9708_v24  ;;  %2121 = vmatpush1.bf16.msra.mxu1 %v9711_v62  ;;  %v9797_v24 = vld [vmem:[%s14189_s1 + $0x98c] ss:$16 sps:$4 sm:$0xff]   ;;  %v9800_v62 = vld [vmem:[%s14189_s1 + $0x9a4] ss:$16 sps:$4 sm:$0xff]  }
 0x10d   : >> { %2081 = vmatprep.subr.bf16.mxu0 %v9716_v29  ;;  %2122 = vmatprep.subr.bf16.mxu1 %v9719_v30  ;;  %v9803_v29 = vld [vmem:[%s14189_s1 + $0x9ac] ss:$16 sps:$4 sm:$0xff]   ;;  %v9798_v30 = vld [vmem:[%s14189_s1 + $0x9a0] ss:$16 sps:$4 sm:$0xff]  }
 0x110   : >> { %2082 = vmatpush1.bf16.msra.mxu0 %v9714_v22  ;;  %2123 = vmatpush1.bf16.msra.mxu1 %v9717_v33  ;;  %v9801_v22 = vld [vmem:[%s14189_s1 + $0x9a8] ss:$16 sps:$4 sm:$0xff]   ;;  %v9804_v33 = vld [vmem:[%s14189_s1 + $0x9c0] ss:$16 sps:$4 sm:$0xff]  }
 0x111   : >> { %2533 = vmatprep.subr.bf16.mxu0 %v9722_v34  ;;  %2574 = vmatprep.subr.bf16.mxu1 %v9725_v35  ;;  %v9807_v34 = vld [vmem:[%s14189_s1 + $0x9c8] ss:$16 sps:$4 sm:$0xff]   ;;  %v9812_v35 = vld [vmem:[%s14189_s1 + $0x9e4] ss:$16 sps:$4 sm:$0xff]  }
 0x113   : >> { %2084 = vmatmul.mubr.bf16.vlgmr.msra.gmra.mrb[0].mxu0 %v1720_v37  ;;  %2125 = vmatmul.mubr.bf16.vlgmr.msra.gmra.mrb[0].mxu1 %v1720_v37  ;;  %v2693_v37 = vshll.u32 %v11783_v42, 16 }
 0x114   : >> { %2534 = vmatpush1.bf16.msra.mxu0 %v9720_v36  ;;  %2575 = vmatpush1.bf16.msra.mxu1 %v9723_v39  ;;  %v9815_v36 = vld [vmem:[%s14189_s1 + $0x9ec] ss:$16 sps:$4 sm:$0xff]   ;;  %v9810_v39 = vld [vmem:[%s14189_s1 + $0x9e0] ss:$16 sps:$4 sm:$0xff]  }
 0x115   : >> { %2535 = vmatprep.subr.bf16.mxu0 %v9728_v40  ;;  %2576 = vmatprep.subr.bf16.mxu1 %v9731_v41  ;;  %v9813_v40 = vld [vmem:[%s14189_s1 + $0x9e8] ss:$16 sps:$4 sm:$0xff]   ;;  %v9819_v41 = vld [vmem:[%s14189_s1 + $0xa04] ss:$16 sps:$4 sm:$0xff]  }
 0x116   : >> { %2565 = vmatprep.mubr.bf16.mxu0 %v11783_v42  ;;  %2606 = vmatprep.mubr.bf16.mxu1 %v11783_v42 }
 0x118   : >> { %2536 = vmatpush1.bf16.msra.mxu0 %v9726_v43  ;;  %2577 = vmatpush1.bf16.msra.mxu1 %v9729_v44  ;;  %v9822_v43 = vld [vmem:[%s14189_s1 + $0xa0c] ss:$16 sps:$4 sm:$0xff]   ;;  %v2691_v44 = vshrl.u32 %v11783_v42, 16  ;;  %v9826_v42 = vld [vmem:[%s14189_s1 + $0xa24] ss:$16 sps:$4 sm:$0xff]  }
 0x119   : >> { %2537 = vmatprep.subr.bf16.mxu0 %v9734_v45  ;;  %2578 = vmatprep.subr.bf16.mxu1 %v9737_v46  ;;  %v2695_v45 = vrot.slane %v2693_v37, 1  ;;  %v11971_v46 = vcombine.low %v11770_v38, %v11770_v38  ;;  %v9829_v38 = vld [vmem:[%s14189_s1 + $0xa2c] ss:$16 sps:$4 sm:$0xff]   ;;  %v9899_v37 = vld [vmem:[%s14189_s1 + $0xba8] ss:$16 sps:$4 sm:$0xff]  }
 0x11c   : >> { %2538 = vmatpush1.bf16.msra.mxu0 %v9732_v47  ;;  %2579 = vmatpush1.bf16.msra.mxu1 %v9735_v48  ;;  %v9817_v47 = vld [vmem:[%s14189_s1 + $0xa00] ss:$16 sps:$4 sm:$0xff]   ;;  %v9820_v48 = vld [vmem:[%s14189_s1 + $0xa08] ss:$16 sps:$4 sm:$0xff]  }
 0x11d   : >> { %2539 = vmatprep.subr.bf16.mxu0 %v9740_v49  ;;  %2580 = vmatprep.subr.bf16.mxu1 %v9743_v50  ;;  %v2696_v49 = vor.u32 %v2695_v45, %v2691_v44  ;;  %v9824_v50 = vld [vmem:[%s14189_s1 + $0xa20] ss:$16 sps:$4 sm:$0xff]   ;;  %v9905_v44 = vld [vmem:[%s14189_s1 + $0xbc8] ss:$16 sps:$4 sm:$0xff]   ;;  %v9910_v45 = vld [vmem:[%s14189_s1 + $0xbe4] ss:$16 sps:$4 sm:$0xff]  }
 0x120   : >> { %2540 = vmatpush1.bf16.msra.mxu0 %v9738_v51  ;;  %2581 = vmatpush1.bf16.msra.mxu1 %v9741_v52  ;;  %v9827_v51 = vld [vmem:[%s14189_s1 + $0xa28] ss:$16 sps:$4 sm:$0xff]   ;;  %v9832_v52 = vld [vmem:[%s14189_s1 + $0xa44] ss:$16 sps:$4 sm:$0xff]  }
 0x121   : >> { %2541 = vmatprep.subr.bf16.mxu0 %v9746_v53  ;;  %2582 = vmatprep.subr.bf16.mxu1 %v9749_v54  ;;  %v9835_v53 = vld [vmem:[%s14189_s1 + $0xa4c] ss:$16 sps:$4 sm:$0xff]   ;;  %v9830_v54 = vld [vmem:[%s14189_s1 + $0xa40] ss:$16 sps:$4 sm:$0xff]  }
 0x124   : >> { %2542 = vmatpush1.bf16.msra.mxu0 %v9744_v55  ;;  %2583 = vmatpush1.bf16.msra.mxu1 %v9747_v56  ;;  %v9833_v55 = vld [vmem:[%s14189_s1 + $0xa48] ss:$16 sps:$4 sm:$0xff]   ;;  %v9838_v56 = vld [vmem:[%s14189_s1 + $0xa64] ss:$16 sps:$4 sm:$0xff]  }
 0x125   : >> { %2543 = vmatprep.subr.bf16.mxu0 %v9752_v57  ;;  %2584 = vmatprep.subr.bf16.mxu1 %v9755_v58  ;;  %v9841_v57 = vld [vmem:[%s14189_s1 + $0xa6c] ss:$16 sps:$4 sm:$0xff]   ;;  %v9836_v58 = vld [vmem:[%s14189_s1 + $0xa60] ss:$16 sps:$4 sm:$0xff]  }
 0x128   : >> { %2544 = vmatpush1.bf16.msra.mxu0 %v9750_v59  ;;  %2585 = vmatpush1.bf16.msra.mxu1 %v9753_v60  ;;  %v9839_v59 = vld [vmem:[%s14189_s1 + $0xa68] ss:$16 sps:$4 sm:$0xff]   ;;  %v9844_v60 = vld [vmem:[%s14189_s1 + $0xa84] ss:$16 sps:$4 sm:$0xff]  }
 0x129   : >> { %2545 = vmatprep.subr.bf16.mxu0 %v9758_v61  ;;  %2586 = vmatprep.subr.bf16.mxu1 %v9761_v63  ;;  %v9847_v61 = vld [vmem:[%s14189_s1 + $0xa8c] ss:$16 sps:$4 sm:$0xff]   ;;  %v9842_v63 = vld [vmem:[%s14189_s1 + $0xa80] ss:$16 sps:$4 sm:$0xff]  }
 0x12c   : >> { %2546 = vmatpush1.bf16.msra.mxu0 %v9756_v2  ;;  %2587 = vmatpush1.bf16.msra.mxu1 %v9759_v3  ;;  %v9845_v2 = vld [vmem:[%s14189_s1 + $0xa88] ss:$16 sps:$4 sm:$0xff]   ;;  %v9850_v3 = vld [vmem:[%s14189_s1 + $0xaa4] ss:$16 sps:$4 sm:$0xff]  }
 0x12d   : >> { %2547 = vmatprep.subr.bf16.mxu0 %v9764_v4  ;;  %2588 = vmatprep.subr.bf16.mxu1 %v9767_v5  ;;  %v9853_v4 = vld [vmem:[%s14189_s1 + $0xaac] ss:$16 sps:$4 sm:$0xff]   ;;  %v9848_v5 = vld [vmem:[%s14189_s1 + $0xaa0] ss:$16 sps:$4 sm:$0xff]  }
 0x130   : >> { %2548 = vmatpush1.bf16.msra.mxu0 %v9762_v6  ;;  %2589 = vmatpush1.bf16.msra.mxu1 %v9765_v7  ;;  %v9851_v6 = vld [vmem:[%s14189_s1 + $0xaa8] ss:$16 sps:$4 sm:$0xff]   ;;  %v9856_v7 = vld [vmem:[%s14189_s1 + $0xac4] ss:$16 sps:$4 sm:$0xff]  }
 0x131   : >> { %2549 = vmatprep.subr.bf16.mxu0 %v9770_v8  ;;  %2590 = vmatprep.subr.bf16.mxu1 %v9773_v9  ;;  %v9859_v8 = vld [vmem:[%s14189_s1 + $0xacc] ss:$16 sps:$4 sm:$0xff]   ;;  %v9854_v9 = vld [vmem:[%s14189_s1 + $0xac0] ss:$16 sps:$4 sm:$0xff]  }
 0x134   : >> { %2550 = vmatpush1.bf16.msra.mxu0 %v9768_v10  ;;  %2591 = vmatpush1.bf16.msra.mxu1 %v9771_v11  ;;  %v9857_v10 = vld [vmem:[%s14189_s1 + $0xac8] ss:$16 sps:$4 sm:$0xff]   ;;  %v9862_v11 = vld [vmem:[%s14189_s1 + $0xae4] ss:$16 sps:$4 sm:$0xff]  }
 0x135   : >> { %2551 = vmatprep.subr.bf16.mxu0 %v9776_v12  ;;  %2592 = vmatprep.subr.bf16.mxu1 %v9779_v13  ;;  %v9865_v12 = vld [vmem:[%s14189_s1 + $0xaec] ss:$16 sps:$4 sm:$0xff]   ;;  %v9860_v13 = vld [vmem:[%s14189_s1 + $0xae0] ss:$16 sps:$4 sm:$0xff]  }
 0x138   : >> { %2552 = vmatpush1.bf16.msra.mxu0 %v9774_v14  ;;  %2593 = vmatpush1.bf16.msra.mxu1 %v9777_v15  ;;  %v9863_v14 = vld [vmem:[%s14189_s1 + $0xae8] ss:$16 sps:$4 sm:$0xff]   ;;  %v9868_v15 = vld [vmem:[%s14189_s1 + $0xb04] ss:$16 sps:$4 sm:$0xff]  }
 0x139   : >> { %2553 = vmatprep.subr.bf16.mxu0 %v9782_v16  ;;  %2594 = vmatprep.subr.bf16.mxu1 %v9785_v17  ;;  %v9871_v16 = vld [vmem:[%s14189_s1 + $0xb0c] ss:$16 sps:$4 sm:$0xff]   ;;  %v9866_v17 = vld [vmem:[%s14189_s1 + $0xb00] ss:$16 sps:$4 sm:$0xff]  }
 0x13c   : >> { %2554 = vmatpush1.bf16.msra.mxu0 %v9780_v18  ;;  %2595 = vmatpush1.bf16.msra.mxu1 %v9783_v19  ;;  %v9869_v18 = vld [vmem:[%s14189_s1 + $0xb08] ss:$16 sps:$4 sm:$0xff]   ;;  %v9874_v19 = vld [vmem:[%s14189_s1 + $0xb24] ss:$16 sps:$4 sm:$0xff]  }
 0x13d   : >> { %2555 = vmatprep.subr.bf16.mxu0 %v9788_v20  ;;  %2596 = vmatprep.subr.bf16.mxu1 %v9791_v21  ;;  %v9877_v20 = vld [vmem:[%s14189_s1 + $0xb2c] ss:$16 sps:$4 sm:$0xff]   ;;  %v9872_v21 = vld [vmem:[%s14189_s1 + $0xb20] ss:$16 sps:$4 sm:$0xff]  }
 0x140   : >> { %2556 = vmatpush1.bf16.msra.mxu0 %v9786_v23  ;;  %2597 = vmatpush1.bf16.msra.mxu1 %v9789_v25  ;;  %v9875_v23 = vld [vmem:[%s14189_s1 + $0xb28] ss:$16 sps:$4 sm:$0xff]   ;;  %v9880_v25 = vld [vmem:[%s14189_s1 + $0xb44] ss:$16 sps:$4 sm:$0xff]  }
 0x141   : >> { %2557 = vmatprep.subr.bf16.mxu0 %v9794_v26  ;;  %2598 = vmatprep.subr.bf16.mxu1 %v9797_v24  ;;  %v9883_v26 = vld [vmem:[%s14189_s1 + $0xb4c] ss:$16 sps:$4 sm:$0xff]   ;;  %v9878_v24 = vld [vmem:[%s14189_s1 + $0xb40] ss:$16 sps:$4 sm:$0xff]  }
 0x144   : >> { %2558 = vmatpush1.bf16.msra.mxu0 %v9792_v27  ;;  %2599 = vmatpush1.bf16.msra.mxu1 %v9795_v28  ;;  %v9881_v27 = vld [vmem:[%s14189_s1 + $0xb48] ss:$16 sps:$4 sm:$0xff]   ;;  %v9886_v28 = vld [vmem:[%s14189_s1 + $0xb64] ss:$16 sps:$4 sm:$0xff]  }
 0x145   : >> { %2559 = vmatprep.subr.bf16.mxu0 %v9800_v62  ;;  %2600 = vmatprep.subr.bf16.mxu1 %v9803_v29  ;;  %v9889_v62 = vld [vmem:[%s14189_s1 + $0xb6c] ss:$16 sps:$4 sm:$0xff]   ;;  %v9884_v29 = vld [vmem:[%s14189_s1 + $0xb60] ss:$16 sps:$4 sm:$0xff]  }
 0x148   : >> { %2560 = vmatpush1.bf16.msra.mxu0 %v9798_v30  ;;  %2601 = vmatpush1.bf16.msra.mxu1 %v9801_v22  ;;  %v9887_v30 = vld [vmem:[%s14189_s1 + $0xb68] ss:$16 sps:$4 sm:$0xff]   ;;  %v9892_v22 = vld [vmem:[%s14189_s1 + $0xb84] ss:$16 sps:$4 sm:$0xff]  }
 0x149   : >> { %2561 = vmatprep.subr.bf16.mxu0 %v9806_v31  ;;  %2602 = vmatprep.subr.bf16.mxu1 %v9809_v32  ;;  %v9895_v31 = vld [vmem:[%s14189_s1 + $0xb8c] ss:$16 sps:$4 sm:$0xff]   ;;  %v9890_v32 = vld [vmem:[%s14189_s1 + $0xb80] ss:$16 sps:$4 sm:$0xff]  }
 0x14c   : >> { %2562 = vmatpush1.bf16.msra.mxu0 %v9804_v33  ;;  %2603 = vmatpush1.bf16.msra.mxu1 %v9807_v34  ;;  %v9893_v33 = vld [vmem:[%s14189_s1 + $0xb88] ss:$16 sps:$4 sm:$0xff]   ;;  %v9898_v34 = vld [vmem:[%s14189_s1 + $0xba4] ss:$16 sps:$4 sm:$0xff]  }
 0x14d   : >> { %2563 = vmatprep.subr.bf16.mxu0 %v9812_v35  ;;  %2604 = vmatprep.subr.bf16.mxu1 %v9815_v36  ;;  %v9901_v35 = vld [vmem:[%s14189_s1 + $0xbac] ss:$16 sps:$4 sm:$0xff]   ;;  %v9896_v36 = vld [vmem:[%s14189_s1 + $0xba0] ss:$16 sps:$4 sm:$0xff]  }
 0x150   : >> { %2564 = vmatpush1.bf16.msra.mxu0 %v9810_v39  ;;  %2605 = vmatpush1.bf16.msra.mxu1 %v9813_v40  ;;  %v9904_v39 = vld [vmem:[%s14189_s1 + $0xbc4] ss:$16 sps:$4 sm:$0xff]   ;;  %v9907_v40 = vld [vmem:[%s14189_s1 + $0xbcc] ss:$16 sps:$4 sm:$0xff]  }
 0x151   : >> { %3019 = vmatprep.subr.bf16.mxu0 %v9819_v41  ;;  %3060 = vmatprep.subr.bf16.mxu1 %v9822_v43  ;;  %v2686_v41 = vshll.u32 %v11971_v46, 16  ;;  %v9902_v43 = vld [vmem:[%s14189_s1 + $0xbc0] ss:$16 sps:$4 sm:$0xff]  }
 0x153   : >> { %2566 = vmatmul.mubr.bf16.vlgmr.msra.gmra.mrb[0].mxu0 %v11971_v46  ;;  %2607 = vmatmul.mubr.bf16.vlgmr.msra.gmra.mrb[0].mxu1 %v11971_v46 }
 0x154   : >> { %3020 = vmatpush1.bf16.msra.mxu0 %v9817_v47  ;;  %3061 = vmatpush1.bf16.msra.mxu1 %v9820_v48  ;;  %v9913_v47 = vld [vmem:[%s14189_s1 + $0xbec] ss:$16 sps:$4 sm:$0xff]   ;;  %v9908_v48 = vld [vmem:[%s14189_s1 + $0xbe0] ss:$16 sps:$4 sm:$0xff]  }
 0x155   : >> { %3021 = vmatprep.subr.bf16.mxu0 %v9826_v42  ;;  %3062 = vmatprep.subr.bf16.mxu1 %v9829_v38  ;;  %v2684_v42 = vshrl.u32 %v11971_v46, 16  ;;  %v2688_v38 = vrot.slane %v2686_v41, 1  ;;  %v9986_v41 = vld [vmem:[%s14189_s1 + $0xd80] ss:$16 sps:$4 sm:$0xff]  }
 0x156   : >> { %3051 = vmatprep.mubr.bf16.mxu0 %v2696_v49  ;;  %3092 = vmatprep.mubr.bf16.mxu1 %v2696_v49  ;;  %v9911_v49 = vld [vmem:[%s14189_s1 + $0xbe8] ss:$16 sps:$4 sm:$0xff]  }
 0x157   : >> { %v2689_v46 = vor.u32 %v2688_v38, %v2684_v42  ;;  %v10000_v42 = vld [vmem:[%s14189_s1 + $0xdc4] ss:$16 sps:$4 sm:$0xff]   ;;  %v10003_v38 = vld [vmem:[%s14189_s1 + $0xdcc] ss:$16 sps:$4 sm:$0xff]  }
 0x158   : >> { %3022 = vmatpush1.bf16.msra.mxu0 %v9824_v50  ;;  %3063 = vmatpush1.bf16.msra.mxu1 %v9827_v51  ;;  %v9916_v50 = vld [vmem:[%s14189_s1 + $0xc04] ss:$16 sps:$4 sm:$0xff]   ;;  %v9919_v51 = vld [vmem:[%s14189_s1 + $0xc0c] ss:$16 sps:$4 sm:$0xff]  }
 0x159   : >> { %3023 = vmatprep.subr.bf16.mxu0 %v9832_v52  ;;  %3064 = vmatprep.subr.bf16.mxu1 %v9835_v53  ;;  %v12170_v52 = vld [vmem:[%s11097_s5 + $0x14] ss:$8 sps:$4 sm:$0x1e]   ;;  %v9914_v53 = vld [vmem:[%s14189_s1 + $0xc00] ss:$16 sps:$4 sm:$0xff]  }
 0x15c   : >> { %3024 = vmatpush1.bf16.msra.mxu0 %v9830_v54  ;;  %3065 = vmatpush1.bf16.msra.mxu1 %v9833_v55  ;;  %v9917_v54 = vld [vmem:[%s14189_s1 + $0xc08] ss:$16 sps:$4 sm:$0xff]   ;;  %v9922_v55 = vld [vmem:[%s14189_s1 + $0xc24] ss:$16 sps:$4 sm:$0xff]  }
 0x15d   : >> { %3025 = vmatprep.subr.bf16.mxu0 %v9838_v56  ;;  %3066 = vmatprep.subr.bf16.mxu1 %v9841_v57  ;;  %v9925_v56 = vld [vmem:[%s14189_s1 + $0xc2c] ss:$16 sps:$4 sm:$0xff]   ;;  %v3180_v57 = vrot.slane %v12170_v52, 1 }
 0x160   : >> { %3026 = vmatpush1.bf16.msra.mxu0 %v9836_v58  ;;  %3067 = vmatpush1.bf16.msra.mxu1 %v9839_v59  ;;  %v9920_v58 = vld [vmem:[%s14189_s1 + $0xc20] ss:$16 sps:$4 sm:$0xff]   ;;  %v9923_v59 = vld [vmem:[%s14189_s1 + $0xc28] ss:$16 sps:$4 sm:$0xff]  }
 0x161   : >> { %3027 = vmatprep.subr.bf16.mxu0 %v9844_v60  ;;  %3068 = vmatprep.subr.bf16.mxu1 %v9847_v61  ;;  %v9928_v60 = vld [vmem:[%s14189_s1 + $0xc44] ss:$16 sps:$4 sm:$0xff]   ;;  %v9931_v61 = vld [vmem:[%s14189_s1 + $0xc4c] ss:$16 sps:$4 sm:$0xff]  }
 0x164   : >> { %3028 = vmatpush1.bf16.msra.mxu0 %v9842_v63  ;;  %3069 = vmatpush1.bf16.msra.mxu1 %v9845_v2  ;;  %v9926_v63 = vld [vmem:[%s14189_s1 + $0xc40] ss:$16 sps:$4 sm:$0xff]   ;;  %v9929_v2 = vld [vmem:[%s14189_s1 + $0xc48] ss:$16 sps:$4 sm:$0xff]  }
 0x165   : >> { %3029 = vmatprep.subr.bf16.mxu0 %v9850_v3  ;;  %3070 = vmatprep.subr.bf16.mxu1 %v9853_v4  ;;  %v9934_v3 = vld [vmem:[%s14189_s1 + $0xc64] ss:$16 sps:$4 sm:$0xff]   ;;  %v9937_v4 = vld [vmem:[%s14189_s1 + $0xc6c] ss:$16 sps:$4 sm:$0xff]  }
 0x168   : >> { %3030 = vmatpush1.bf16.msra.mxu0 %v9848_v5  ;;  %3071 = vmatpush1.bf16.msra.mxu1 %v9851_v6  ;;  %v9932_v5 = vld [vmem:[%s14189_s1 + $0xc60] ss:$16 sps:$4 sm:$0xff]   ;;  %v9935_v6 = vld [vmem:[%s14189_s1 + $0xc68] ss:$16 sps:$4 sm:$0xff]  }
 0x169   : >> { %3031 = vmatprep.subr.bf16.mxu0 %v9856_v7  ;;  %3072 = vmatprep.subr.bf16.mxu1 %v9859_v8  ;;  %v9940_v7 = vld [vmem:[%s14189_s1 + $0xc84] ss:$16 sps:$4 sm:$0xff]   ;;  %v9943_v8 = vld [vmem:[%s14189_s1 + $0xc8c] ss:$16 sps:$4 sm:$0xff]  }
 0x16c   : >> { %3032 = vmatpush1.bf16.msra.mxu0 %v9854_v9  ;;  %3073 = vmatpush1.bf16.msra.mxu1 %v9857_v10  ;;  %v9938_v9 = vld [vmem:[%s14189_s1 + $0xc80] ss:$16 sps:$4 sm:$0xff]   ;;  %v9941_v10 = vld [vmem:[%s14189_s1 + $0xc88] ss:$16 sps:$4 sm:$0xff]  }
 0x16d   : >> { %3033 = vmatprep.subr.bf16.mxu0 %v9862_v11  ;;  %3074 = vmatprep.subr.bf16.mxu1 %v9865_v12  ;;  %v9946_v11 = vld [vmem:[%s14189_s1 + $0xca4] ss:$16 sps:$4 sm:$0xff]   ;;  %v9949_v12 = vld [vmem:[%s14189_s1 + $0xcac] ss:$16 sps:$4 sm:$0xff]  }
 0x170   : >> { %3034 = vmatpush1.bf16.msra.mxu0 %v9860_v13  ;;  %3075 = vmatpush1.bf16.msra.mxu1 %v9863_v14  ;;  %v9944_v13 = vld [vmem:[%s14189_s1 + $0xca0] ss:$16 sps:$4 sm:$0xff]   ;;  %v9947_v14 = vld [vmem:[%s14189_s1 + $0xca8] ss:$16 sps:$4 sm:$0xff]  }
 0x171   : >> { %3035 = vmatprep.subr.bf16.mxu0 %v9868_v15  ;;  %3076 = vmatprep.subr.bf16.mxu1 %v9871_v16  ;;  %v9952_v15 = vld [vmem:[%s14189_s1 + $0xcc4] ss:$16 sps:$4 sm:$0xff]   ;;  %v9955_v16 = vld [vmem:[%s14189_s1 + $0xccc] ss:$16 sps:$4 sm:$0xff]  }
 0x174   : >> { %3036 = vmatpush1.bf16.msra.mxu0 %v9866_v17  ;;  %3077 = vmatpush1.bf16.msra.mxu1 %v9869_v18  ;;  %v9950_v17 = vld [vmem:[%s14189_s1 + $0xcc0] ss:$16 sps:$4 sm:$0xff]   ;;  %v9953_v18 = vld [vmem:[%s14189_s1 + $0xcc8] ss:$16 sps:$4 sm:$0xff]  }
 0x175   : >> { %3037 = vmatprep.subr.bf16.mxu0 %v9874_v19  ;;  %3078 = vmatprep.subr.bf16.mxu1 %v9877_v20  ;;  %v9958_v19 = vld [vmem:[%s14189_s1 + $0xce4] ss:$16 sps:$4 sm:$0xff]   ;;  %v9961_v20 = vld [vmem:[%s14189_s1 + $0xcec] ss:$16 sps:$4 sm:$0xff]  }
 0x178   : >> { %3038 = vmatpush1.bf16.msra.mxu0 %v9872_v21  ;;  %3079 = vmatpush1.bf16.msra.mxu1 %v9875_v23  ;;  %v9956_v21 = vld [vmem:[%s14189_s1 + $0xce0] ss:$16 sps:$4 sm:$0xff]   ;;  %v9959_v23 = vld [vmem:[%s14189_s1 + $0xce8] ss:$16 sps:$4 sm:$0xff]  }
 0x179   : >> { %3039 = vmatprep.subr.bf16.mxu0 %v9880_v25  ;;  %3080 = vmatprep.subr.bf16.mxu1 %v9883_v26  ;;  %v9964_v25 = vld [vmem:[%s14189_s1 + $0xd04] ss:$16 sps:$4 sm:$0xff]   ;;  %v9967_v26 = vld [vmem:[%s14189_s1 + $0xd0c] ss:$16 sps:$4 sm:$0xff]  }
 0x17c   : >> { %3040 = vmatpush1.bf16.msra.mxu0 %v9878_v24  ;;  %3081 = vmatpush1.bf16.msra.mxu1 %v9881_v27  ;;  %v9962_v24 = vld [vmem:[%s14189_s1 + $0xd00] ss:$16 sps:$4 sm:$0xff]   ;;  %v9965_v27 = vld [vmem:[%s14189_s1 + $0xd08] ss:$16 sps:$4 sm:$0xff]  }
 0x17d   : >> { %3041 = vmatprep.subr.bf16.mxu0 %v9886_v28  ;;  %3082 = vmatprep.subr.bf16.mxu1 %v9889_v62  ;;  %v9970_v28 = vld [vmem:[%s14189_s1 + $0xd24] ss:$16 sps:$4 sm:$0xff]   ;;  %v9973_v62 = vld [vmem:[%s14189_s1 + $0xd2c] ss:$16 sps:$4 sm:$0xff]  }
 0x180   : >> { %3042 = vmatpush1.bf16.msra.mxu0 %v9884_v29  ;;  %3083 = vmatpush1.bf16.msra.mxu1 %v9887_v30  ;;  %v9968_v29 = vld [vmem:[%s14189_s1 + $0xd20] ss:$16 sps:$4 sm:$0xff]   ;;  %v9971_v30 = vld [vmem:[%s14189_s1 + $0xd28] ss:$16 sps:$4 sm:$0xff]  }
 0x181   : >> { %3043 = vmatprep.subr.bf16.mxu0 %v9892_v22  ;;  %3084 = vmatprep.subr.bf16.mxu1 %v9895_v31  ;;  %v9976_v22 = vld [vmem:[%s14189_s1 + $0xd44] ss:$16 sps:$4 sm:$0xff]   ;;  %v9979_v31 = vld [vmem:[%s14189_s1 + $0xd4c] ss:$16 sps:$4 sm:$0xff]  }
 0x184   : >> { %3044 = vmatpush1.bf16.msra.mxu0 %v9890_v32  ;;  %3085 = vmatpush1.bf16.msra.mxu1 %v9893_v33  ;;  %v9974_v32 = vld [vmem:[%s14189_s1 + $0xd40] ss:$16 sps:$4 sm:$0xff]   ;;  %v9977_v33 = vld [vmem:[%s14189_s1 + $0xd48] ss:$16 sps:$4 sm:$0xff]  }
 0x185   : >> { %3045 = vmatprep.subr.bf16.mxu0 %v9898_v34  ;;  %3086 = vmatprep.subr.bf16.mxu1 %v9901_v35  ;;  %v9982_v34 = vld [vmem:[%s14189_s1 + $0xd64] ss:$16 sps:$4 sm:$0xff]   ;;  %v9985_v35 = vld [vmem:[%s14189_s1 + $0xd6c] ss:$16 sps:$4 sm:$0xff]  }
 0x188   : >> { %3046 = vmatpush1.bf16.msra.mxu0 %v9896_v36  ;;  %3087 = vmatpush1.bf16.msra.mxu1 %v9899_v37  ;;  %v9980_v36 = vld [vmem:[%s14189_s1 + $0xd60] ss:$16 sps:$4 sm:$0xff]   ;;  %v9983_v37 = vld [vmem:[%s14189_s1 + $0xd68] ss:$16 sps:$4 sm:$0xff]  }
 0x189   : >> { %3047 = vmatprep.subr.bf16.mxu0 %v9904_v39  ;;  %3088 = vmatprep.subr.bf16.mxu1 %v9907_v40  ;;  %v9988_v39 = vld [vmem:[%s14189_s1 + $0xd84] ss:$16 sps:$4 sm:$0xff]   ;;  %v9991_v40 = vld [vmem:[%s14189_s1 + $0xd8c] ss:$16 sps:$4 sm:$0xff]  }
 0x18c   : >> { %3048 = vmatpush1.bf16.msra.mxu0 %v9902_v43  ;;  %3089 = vmatpush1.bf16.msra.mxu1 %v9905_v44  ;;  %v9989_v43 = vld [vmem:[%s14189_s1 + $0xd88] ss:$16 sps:$4 sm:$0xff]   ;;  %v9994_v44 = vld [vmem:[%s14189_s1 + $0xda4] ss:$16 sps:$4 sm:$0xff]  }
 0x18d   : >> { %3049 = vmatprep.subr.bf16.mxu0 %v9910_v45  ;;  %3090 = vmatprep.subr.bf16.mxu1 %v9913_v47  ;;  %v9997_v45 = vld [vmem:[%s14189_s1 + $0xdac] ss:$16 sps:$4 sm:$0xff]   ;;  %v9992_v47 = vld [vmem:[%s14189_s1 + $0xda0] ss:$16 sps:$4 sm:$0xff]  }
 0x190   : >> { %3050 = vmatpush1.bf16.msra.mxu0 %v9908_v48  ;;  %3091 = vmatpush1.bf16.msra.mxu1 %v9911_v49  ;;  %v9995_v48 = vld [vmem:[%s14189_s1 + $0xda8] ss:$16 sps:$4 sm:$0xff]   ;;  %v9998_v49 = vld [vmem:[%s14189_s1 + $0xdc0] ss:$16 sps:$4 sm:$0xff]  }
 0x191   : >> { %3503 = vmatprep.subr.bf16.mxu0 %v9916_v50  ;;  %3544 = vmatprep.subr.bf16.mxu1 %v9919_v51  ;;  %v10001_v50 = vld [vmem:[%s14189_s1 + $0xdc8] ss:$16 sps:$4 sm:$0xff]   ;;  %v10006_v51 = vld [vmem:[%s14189_s1 + $0xde4] ss:$16 sps:$4 sm:$0xff]  }
 0x193   : >> { %3052 = vmatmul.mubr.bf16.vlgmr.msra.gmra.mrb[0].mxu0 %v2689_v46  ;;  %3093 = vmatmul.mubr.bf16.vlgmr.msra.gmra.mrb[0].mxu1 %v2689_v46  ;;  %v10009_v46 = vld [vmem:[%s14189_s1 + $0xdec] ss:$16 sps:$4 sm:$0xff]  }
 0x194   : >> { %3504 = vmatpush1.bf16.msra.mxu0 %v9914_v53  ;;  %3545 = vmatpush1.bf16.msra.mxu1 %v9917_v54  ;;  %v12354_v53 = vld [vmem:[%s11097_s5 + $0x10] ss:$8 sps:$4 sm:$0x1e]   ;;  %v3662_v54 = vshrl.u32 %v12170_v52, 16 }
 0x195   : >> { %3505 = vmatprep.subr.bf16.mxu0 %v9922_v55  ;;  %3546 = vmatprep.subr.bf16.mxu1 %v9925_v56  ;;  %v3665_v55 = vshll.u32 %v12170_v52, 16  ;;  %v10004_v56 = vld [vmem:[%s14189_s1 + $0xde0] ss:$16 sps:$4 sm:$0xff]   ;;  %v10018_v52 = vld [vmem:[%s14189_s1 + $0xe0c] ss:$16 sps:$4 sm:$0xff]  }
 0x196   : >> { %3535 = vmatprep.mubr.bf16.mxu0 %v3180_v57  ;;  %3576 = vmatprep.mubr.bf16.mxu1 %v3180_v57  ;;  %v10007_v57 = vld [vmem:[%s14189_s1 + $0xde8] ss:$16 sps:$4 sm:$0xff]  }
 0x198   : >> { %3506 = vmatpush1.bf16.msra.mxu0 %v9920_v58  ;;  %3547 = vmatpush1.bf16.msra.mxu1 %v9923_v59  ;;  %v10015_v58 = vld [vmem:[%s14189_s1 + $0xe04] ss:$16 sps:$4 sm:$0xff]   ;;  %v3664_v59 = vrot.slane %v3662_v54, 1  ;;  %v10096_v54 = vld [vmem:[%s14189_s1 + $0xfac] ss:$16 sps:$4 sm:$0xff]  }
 0x199   : >> { %3507 = vmatprep.subr.bf16.mxu0 %v9928_v60  ;;  %3548 = vmatprep.subr.bf16.mxu1 %v9931_v61  ;;  %v3667_v60 = vrot.slane %v3665_v55, 2  ;;  %v3179_v61 = vrot.slane %v12354_v53, 1  ;;  %v10091_v55 = vld [vmem:[%s14189_s1 + $0xfa0] ss:$16 sps:$4 sm:$0xff]  }
 0x19c   : >> { %3508 = vmatpush1.bf16.msra.mxu0 %v9926_v63  ;;  %3549 = vmatpush1.bf16.msra.mxu1 %v9929_v2  ;;  %v10013_v63 = vld [vmem:[%s14189_s1 + $0xe00] ss:$16 sps:$4 sm:$0xff]   ;;  %v10016_v2 = vld [vmem:[%s14189_s1 + $0xe08] ss:$16 sps:$4 sm:$0xff]  }
 0x19d   : >> { %3509 = vmatprep.subr.bf16.mxu0 %v9934_v3  ;;  %3550 = vmatprep.subr.bf16.mxu1 %v9937_v4  ;;  %v10021_v3 = vld [vmem:[%s14189_s1 + $0xe24] ss:$16 sps:$4 sm:$0xff]   ;;  %v10024_v4 = vld [vmem:[%s14189_s1 + $0xe2c] ss:$16 sps:$4 sm:$0xff]  }
 0x1a0   : >> { %3510 = vmatpush1.bf16.msra.mxu0 %v9932_v5  ;;  %3551 = vmatpush1.bf16.msra.mxu1 %v9935_v6  ;;  %v3668_v5 = vor.u32 %v3667_v60, %v3664_v59  ;;  %v10019_v6 = vld [vmem:[%s14189_s1 + $0xe20] ss:$16 sps:$4 sm:$0xff]   ;;  %v3657_v59 = vshll.u32 %v12354_v53, 16 }
 0x1a1   : >> { %3511 = vmatprep.subr.bf16.mxu0 %v9940_v7  ;;  %3552 = vmatprep.subr.bf16.mxu1 %v9943_v8  ;;  %v10022_v7 = vld [vmem:[%s14189_s1 + $0xe28] ss:$16 sps:$4 sm:$0xff]   ;;  %v10027_v8 = vld [vmem:[%s14189_s1 + $0xe44] ss:$16 sps:$4 sm:$0xff]   ;;  %v10097_v60 = vld [vmem:[%s14189_s1 + $0xfc0] ss:$16 sps:$4 sm:$0xff]  }
 0x1a4   : >> { %3512 = vmatpush1.bf16.msra.mxu0 %v9938_v9  ;;  %3553 = vmatpush1.bf16.msra.mxu1 %v9941_v10  ;;  %v10030_v9 = vld [vmem:[%s14189_s1 + $0xe4c] ss:$16 sps:$4 sm:$0xff]   ;;  %v10025_v10 = vld [vmem:[%s14189_s1 + $0xe40] ss:$16 sps:$4 sm:$0xff]  }
 0x1a5   : >> { %3513 = vmatprep.subr.bf16.mxu0 %v9946_v11  ;;  %3554 = vmatprep.subr.bf16.mxu1 %v9949_v12  ;;  %v10028_v11 = vld [vmem:[%s14189_s1 + $0xe48] ss:$16 sps:$4 sm:$0xff]   ;;  %v10033_v12 = vld [vmem:[%s14189_s1 + $0xe64] ss:$16 sps:$4 sm:$0xff]  }
 0x1a8   : >> { %3514 = vmatpush1.bf16.msra.mxu0 %v9944_v13  ;;  %3555 = vmatpush1.bf16.msra.mxu1 %v9947_v14  ;;  %v10036_v13 = vld [vmem:[%s14189_s1 + $0xe6c] ss:$16 sps:$4 sm:$0xff]   ;;  %v10031_v14 = vld [vmem:[%s14189_s1 + $0xe60] ss:$16 sps:$4 sm:$0xff]  }
 0x1a9   : >> { %3515 = vmatprep.subr.bf16.mxu0 %v9952_v15  ;;  %3556 = vmatprep.subr.bf16.mxu1 %v9955_v16  ;;  %v10034_v15 = vld [vmem:[%s14189_s1 + $0xe68] ss:$16 sps:$4 sm:$0xff]   ;;  %v10039_v16 = vld [vmem:[%s14189_s1 + $0xe84] ss:$16 sps:$4 sm:$0xff]  }
 0x1ac   : >> { %3516 = vmatpush1.bf16.msra.mxu0 %v9950_v17  ;;  %3557 = vmatpush1.bf16.msra.mxu1 %v9953_v18  ;;  %v10042_v17 = vld [vmem:[%s14189_s1 + $0xe8c] ss:$16 sps:$4 sm:$0xff]   ;;  %v10037_v18 = vld [vmem:[%s14189_s1 + $0xe80] ss:$16 sps:$4 sm:$0xff]  }
 0x1ad   : >> { %3517 = vmatprep.subr.bf16.mxu0 %v9958_v19  ;;  %3558 = vmatprep.subr.bf16.mxu1 %v9961_v20  ;;  %v10040_v19 = vld [vmem:[%s14189_s1 + $0xe88] ss:$16 sps:$4 sm:$0xff]   ;;  %v10045_v20 = vld [vmem:[%s14189_s1 + $0xea4] ss:$16 sps:$4 sm:$0xff]  }
 0x1b0   : >> { %3518 = vmatpush1.bf16.msra.mxu0 %v9956_v21  ;;  %3559 = vmatpush1.bf16.msra.mxu1 %v9959_v23  ;;  %v10048_v21 = vld [vmem:[%s14189_s1 + $0xeac] ss:$16 sps:$4 sm:$0xff]   ;;  %v10043_v23 = vld [vmem:[%s14189_s1 + $0xea0] ss:$16 sps:$4 sm:$0xff]  }
 0x1b1   : >> { %3519 = vmatprep.subr.bf16.mxu0 %v9964_v25  ;;  %3560 = vmatprep.subr.bf16.mxu1 %v9967_v26  ;;  %v10046_v25 = vld [vmem:[%s14189_s1 + $0xea8] ss:$16 sps:$4 sm:$0xff]   ;;  %v10051_v26 = vld [vmem:[%s14189_s1 + $0xec4] ss:$16 sps:$4 sm:$0xff]  }
 0x1b4   : >> { %3520 = vmatpush1.bf16.msra.mxu0 %v9962_v24  ;;  %3561 = vmatpush1.bf16.msra.mxu1 %v9965_v27  ;;  %v10054_v24 = vld [vmem:[%s14189_s1 + $0xecc] ss:$16 sps:$4 sm:$0xff]   ;;  %v10049_v27 = vld [vmem:[%s14189_s1 + $0xec0] ss:$16 sps:$4 sm:$0xff]  }
 0x1b5   : >> { %3521 = vmatprep.subr.bf16.mxu0 %v9970_v28  ;;  %3562 = vmatprep.subr.bf16.mxu1 %v9973_v62  ;;  %v10052_v28 = vld [vmem:[%s14189_s1 + $0xec8] ss:$16 sps:$4 sm:$0xff]   ;;  %v10057_v62 = vld [vmem:[%s14189_s1 + $0xee4] ss:$16 sps:$4 sm:$0xff]  }
 0x1b8   : >> { %3522 = vmatpush1.bf16.msra.mxu0 %v9968_v29  ;;  %3563 = vmatpush1.bf16.msra.mxu1 %v9971_v30  ;;  %v10060_v29 = vld [vmem:[%s14189_s1 + $0xeec] ss:$16 sps:$4 sm:$0xff]   ;;  %v10055_v30 = vld [vmem:[%s14189_s1 + $0xee0] ss:$16 sps:$4 sm:$0xff]  }
 0x1b9   : >> { %3523 = vmatprep.subr.bf16.mxu0 %v9976_v22  ;;  %3564 = vmatprep.subr.bf16.mxu1 %v9979_v31  ;;  %v10058_v22 = vld [vmem:[%s14189_s1 + $0xee8] ss:$16 sps:$4 sm:$0xff]   ;;  %v10063_v31 = vld [vmem:[%s14189_s1 + $0xf04] ss:$16 sps:$4 sm:$0xff]  }
 0x1bc   : >> { %3524 = vmatpush1.bf16.msra.mxu0 %v9974_v32  ;;  %3565 = vmatpush1.bf16.msra.mxu1 %v9977_v33  ;;  %v10066_v32 = vld [vmem:[%s14189_s1 + $0xf0c] ss:$16 sps:$4 sm:$0xff]   ;;  %v10061_v33 = vld [vmem:[%s14189_s1 + $0xf00] ss:$16 sps:$4 sm:$0xff]  }
 0x1bd   : >> { %3525 = vmatprep.subr.bf16.mxu0 %v9982_v34  ;;  %3566 = vmatprep.subr.bf16.mxu1 %v9985_v35  ;;  %v10064_v34 = vld [vmem:[%s14189_s1 + $0xf08] ss:$16 sps:$4 sm:$0xff]   ;;  %v10069_v35 = vld [vmem:[%s14189_s1 + $0xf24] ss:$16 sps:$4 sm:$0xff]  }
 0x1c0   : >> { %3526 = vmatpush1.bf16.msra.mxu0 %v9980_v36  ;;  %3567 = vmatpush1.bf16.msra.mxu1 %v9983_v37  ;;  %v10072_v36 = vld [vmem:[%s14189_s1 + $0xf2c] ss:$16 sps:$4 sm:$0xff]   ;;  %v10067_v37 = vld [vmem:[%s14189_s1 + $0xf20] ss:$16 sps:$4 sm:$0xff]  }
 0x1c1   : >> { %3527 = vmatprep.subr.bf16.mxu0 %v9988_v39  ;;  %3568 = vmatprep.subr.bf16.mxu1 %v9991_v40  ;;  %v10070_v39 = vld [vmem:[%s14189_s1 + $0xf28] ss:$16 sps:$4 sm:$0xff]   ;;  %v10075_v40 = vld [vmem:[%s14189_s1 + $0xf44] ss:$16 sps:$4 sm:$0xff]  }
 0x1c4   : >> { %3528 = vmatpush1.bf16.msra.mxu0 %v9986_v41  ;;  %3569 = vmatpush1.bf16.msra.mxu1 %v9989_v43  ;;  %v10078_v41 = vld [vmem:[%s14189_s1 + $0xf4c] ss:$16 sps:$4 sm:$0xff]   ;;  %v10073_v43 = vld [vmem:[%s14189_s1 + $0xf40] ss:$16 sps:$4 sm:$0xff]  }
 0x1c5   : >> { %3529 = vmatprep.subr.bf16.mxu0 %v9994_v44  ;;  %3570 = vmatprep.subr.bf16.mxu1 %v9997_v45  ;;  %v10076_v44 = vld [vmem:[%s14189_s1 + $0xf48] ss:$16 sps:$4 sm:$0xff]   ;;  %v10081_v45 = vld [vmem:[%s14189_s1 + $0xf64] ss:$16 sps:$4 sm:$0xff]  }
 0x1c8   : >> { %3530 = vmatpush1.bf16.msra.mxu0 %v9992_v47  ;;  %3571 = vmatpush1.bf16.msra.mxu1 %v9995_v48  ;;  %v10084_v47 = vld [vmem:[%s14189_s1 + $0xf6c] ss:$16 sps:$4 sm:$0xff]   ;;  %v10079_v48 = vld [vmem:[%s14189_s1 + $0xf60] ss:$16 sps:$4 sm:$0xff]  }
 0x1c9   : >> { %3531 = vmatprep.subr.bf16.mxu0 %v10000_v42  ;;  %3572 = vmatprep.subr.bf16.mxu1 %v10003_v38  ;;  %v10082_v42 = vld [vmem:[%s14189_s1 + $0xf68] ss:$16 sps:$4 sm:$0xff]   ;;  %v10087_v38 = vld [vmem:[%s14189_s1 + $0xf84] ss:$16 sps:$4 sm:$0xff]  }
 0x1cc   : >> { %3532 = vmatpush1.bf16.msra.mxu0 %v9998_v49  ;;  %3573 = vmatpush1.bf16.msra.mxu1 %v10001_v50  ;;  %v10090_v49 = vld [vmem:[%s14189_s1 + $0xf8c] ss:$16 sps:$4 sm:$0xff]   ;;  %v10085_v50 = vld [vmem:[%s14189_s1 + $0xf80] ss:$16 sps:$4 sm:$0xff]  }
 0x1cd   : >> { %3533 = vmatprep.subr.bf16.mxu0 %v10006_v51  ;;  %3574 = vmatprep.subr.bf16.mxu1 %v10009_v46  ;;  %v10088_v51 = vld [vmem:[%s14189_s1 + $0xf88] ss:$16 sps:$4 sm:$0xff]   ;;  %v10093_v46 = vld [vmem:[%s14189_s1 + $0xfa4] ss:$16 sps:$4 sm:$0xff]  }
 0x1d0   : >> { %3534 = vmatpush1.bf16.msra.mxu0 %v10004_v56  ;;  %3575 = vmatpush1.bf16.msra.mxu1 %v10007_v57  ;;  %v10094_v56 = vld [vmem:[%s14189_s1 + $0xfa8] ss:$16 sps:$4 sm:$0xff]   ;;  %v10099_v57 = vld [vmem:[%s14189_s1 + $0xfc4] ss:$16 sps:$4 sm:$0xff]  }
 0x1d1   : >> { %3991 = vmatprep.subr.bf16.mxu0 %v10015_v58  ;;  %4032 = vmatprep.subr.bf16.mxu1 %v10018_v52  ;;  %v10102_v58 = vld [vmem:[%s14189_s1 + $0xfcc] ss:$16 sps:$4 sm:$0xff]   ;;  %v3654_v52 = vshrl.u32 %v12354_v53, 16 }
 0x1d2   : >> { %v10108_v53 = vld [vmem:[%s14189_s1 + $0xfec] ss:$16 sps:$4 sm:$0xff]  }
 0x1d3   : >> { %3536 = vmatmul.mubr.bf16.vlgmr.msra.gmra.mrb[0].mxu0 %v3179_v61  ;;  %3577 = vmatmul.mubr.bf16.vlgmr.msra.gmra.mrb[0].mxu1 %v3179_v61  ;;  %v10100_v61 = vld [vmem:[%s14189_s1 + $0xfc8] ss:$16 sps:$4 sm:$0xff]  }
 0x1d4   : >> { %3992 = vmatpush1.bf16.msra.mxu0 %v10013_v63  ;;  %4033 = vmatpush1.bf16.msra.mxu1 %v10016_v2  ;;  %v10105_v63 = vld [vmem:[%s14189_s1 + $0xfe4] ss:$16 sps:$4 sm:$0xff]   ;;  %v10103_v2 = vld [vmem:[%s14189_s1 + $0xfe0] ss:$16 sps:$4 sm:$0xff]  }
 0x1d5   : >> { %3993 = vmatprep.subr.bf16.mxu0 %v10021_v3  ;;  %4034 = vmatprep.subr.bf16.mxu1 %v10024_v4  ;;  %v3656_v3 = vrot.slane %v3654_v52, 1  ;;  %v3659_v4 = vrot.slane %v3657_v59, 2  ;;  %v10186_v52 = vld [vmem:[%s14189_s1 + $0x118c] ss:$16 sps:$4 sm:$0xff]   ;;  %v10181_v59 = vld [vmem:[%s14189_s1 + $0x1180] ss:$16 sps:$4 sm:$0xff]  }
 0x1d6   : >> { %4023 = vmatprep.mubr.bf16.mxu0 %v3668_v5  ;;  %4064 = vmatprep.mubr.bf16.mxu1 %v3668_v5  ;;  %v10106_v5 = vld [vmem:[%s14189_s1 + $0xfe8] ss:$16 sps:$4 sm:$0xff]  }
 0x1d8   : >> { %3994 = vmatpush1.bf16.msra.mxu0 %v10019_v6  ;;  %4035 = vmatpush1.bf16.msra.mxu1 %v10022_v7  ;;  %v10111_v6 = vld [vmem:[%s14189_s1 + $0x1004] ss:$16 sps:$4 sm:$0xff]   ;;  %v10114_v7 = vld [vmem:[%s14189_s1 + $0x100c] ss:$16 sps:$4 sm:$0xff]  }
 0x1d9   : >> { %3995 = vmatprep.subr.bf16.mxu0 %v10027_v8  ;;  %4036 = vmatprep.subr.bf16.mxu1 %v10030_v9  ;;  %v12566_v8 = vld [vmem:[%s11097_s5 + $0x20] sm:$0xff]  ;;  %v3660_v9 = vor.u32 %v3659_v4, %v3656_v3  ;;  %v10198_v4 = vld [vmem:[%s14189_s1 + $0x11cc] ss:$16 sps:$4 sm:$0xff]  }
 0x1da   : >> { %v10195_v3 = vld [vmem:[%s14189_s1 + $0x11c4] ss:$16 sps:$4 sm:$0xff]  }
 0x1dc   : >> { %3996 = vmatpush1.bf16.msra.mxu0 %v10025_v10  ;;  %4037 = vmatpush1.bf16.msra.mxu1 %v10028_v11  ;;  %v10109_v10 = vld [vmem:[%s14189_s1 + $0x1000] ss:$16 sps:$4 sm:$0xff]   ;;  %v10112_v11 = vld [vmem:[%s14189_s1 + $0x1008] ss:$16 sps:$4 sm:$0xff]  }
 0x1dd   : >> { %3997 = vmatprep.subr.bf16.mxu0 %v10033_v12  ;;  %4038 = vmatprep.subr.bf16.mxu1 %v10036_v13  ;;  %v10117_v12 = vld [vmem:[%s14189_s1 + $0x1024] ss:$16 sps:$4 sm:$0xff]   ;;  %v10120_v13 = vld [vmem:[%s14189_s1 + $0x102c] ss:$16 sps:$4 sm:$0xff]  }
 0x1e0   : >> { %3998 = vmatpush1.bf16.msra.mxu0 %v10031_v14  ;;  %4039 = vmatpush1.bf16.msra.mxu1 %v10034_v15  ;;  %v12582_v14 = vcombine.high %v12566_v8, %v12566_v8  ;;  %v10115_v15 = vld [vmem:[%s14189_s1 + $0x1020] ss:$16 sps:$4 sm:$0xff]  }
 0x1e1   : >> { %3999 = vmatprep.subr.bf16.mxu0 %v10039_v16  ;;  %4040 = vmatprep.subr.bf16.mxu1 %v10042_v17  ;;  %v10118_v16 = vld [vmem:[%s14189_s1 + $0x1028] ss:$16 sps:$4 sm:$0xff]   ;;  %v10123_v17 = vld [vmem:[%s14189_s1 + $0x1044] ss:$16 sps:$4 sm:$0xff]  }
 0x1e4   : >> { %4000 = vmatpush1.bf16.msra.mxu0 %v10037_v18  ;;  %4041 = vmatpush1.bf16.msra.mxu1 %v10040_v19  ;;  %v10126_v18 = vld [vmem:[%s14189_s1 + $0x104c] ss:$16 sps:$4 sm:$0xff]   ;;  %v10121_v19 = vld [vmem:[%s14189_s1 + $0x1040] ss:$16 sps:$4 sm:$0xff]  }
 0x1e5   : >> { %4001 = vmatprep.subr.bf16.mxu0 %v10045_v20  ;;  %4042 = vmatprep.subr.bf16.mxu1 %v10048_v21  ;;  %v10124_v20 = vld [vmem:[%s14189_s1 + $0x1048] ss:$16 sps:$4 sm:$0xff]   ;;  %v10129_v21 = vld [vmem:[%s14189_s1 + $0x1064] ss:$16 sps:$4 sm:$0xff]  }
 0x1e8   : >> { %4002 = vmatpush1.bf16.msra.mxu0 %v10043_v23  ;;  %4043 = vmatpush1.bf16.msra.mxu1 %v10046_v25  ;;  %v10132_v23 = vld [vmem:[%s14189_s1 + $0x106c] ss:$16 sps:$4 sm:$0xff]   ;;  %v10127_v25 = vld [vmem:[%s14189_s1 + $0x1060] ss:$16 sps:$4 sm:$0xff]  }
 0x1e9   : >> { %4003 = vmatprep.subr.bf16.mxu0 %v10051_v26  ;;  %4044 = vmatprep.subr.bf16.mxu1 %v10054_v24  ;;  %v10130_v26 = vld [vmem:[%s14189_s1 + $0x1068] ss:$16 sps:$4 sm:$0xff]   ;;  %v10135_v24 = vld [vmem:[%s14189_s1 + $0x1084] ss:$16 sps:$4 sm:$0xff]  }
 0x1ec   : >> { %4004 = vmatpush1.bf16.msra.mxu0 %v10049_v27  ;;  %4045 = vmatpush1.bf16.msra.mxu1 %v10052_v28  ;;  %v10138_v27 = vld [vmem:[%s14189_s1 + $0x108c] ss:$16 sps:$4 sm:$0xff]   ;;  %v10133_v28 = vld [vmem:[%s14189_s1 + $0x1080] ss:$16 sps:$4 sm:$0xff]  }
 0x1ed   : >> { %4005 = vmatprep.subr.bf16.mxu0 %v10057_v62  ;;  %4046 = vmatprep.subr.bf16.mxu1 %v10060_v29  ;;  %v10136_v62 = vld [vmem:[%s14189_s1 + $0x1088] ss:$16 sps:$4 sm:$0xff]   ;;  %v10141_v29 = vld [vmem:[%s14189_s1 + $0x10a4] ss:$16 sps:$4 sm:$0xff]  }
 0x1f0   : >> { %4006 = vmatpush1.bf16.msra.mxu0 %v10055_v30  ;;  %4047 = vmatpush1.bf16.msra.mxu1 %v10058_v22  ;;  %v10144_v30 = vld [vmem:[%s14189_s1 + $0x10ac] ss:$16 sps:$4 sm:$0xff]   ;;  %v10139_v22 = vld [vmem:[%s14189_s1 + $0x10a0] ss:$16 sps:$4 sm:$0xff]  }
 0x1f1   : >> { %4007 = vmatprep.subr.bf16.mxu0 %v10063_v31  ;;  %4048 = vmatprep.subr.bf16.mxu1 %v10066_v32  ;;  %v10142_v31 = vld [vmem:[%s14189_s1 + $0x10a8] ss:$16 sps:$4 sm:$0xff]   ;;  %v10147_v32 = vld [vmem:[%s14189_s1 + $0x10c4] ss:$16 sps:$4 sm:$0xff]  }
 0x1f4   : >> { %4008 = vmatpush1.bf16.msra.mxu0 %v10061_v33  ;;  %4049 = vmatpush1.bf16.msra.mxu1 %v10064_v34  ;;  %v10150_v33 = vld [vmem:[%s14189_s1 + $0x10cc] ss:$16 sps:$4 sm:$0xff]   ;;  %v10145_v34 = vld [vmem:[%s14189_s1 + $0x10c0] ss:$16 sps:$4 sm:$0xff]  }
 0x1f5   : >> { %4009 = vmatprep.subr.bf16.mxu0 %v10069_v35  ;;  %4050 = vmatprep.subr.bf16.mxu1 %v10072_v36  ;;  %v10148_v35 = vld [vmem:[%s14189_s1 + $0x10c8] ss:$16 sps:$4 sm:$0xff]   ;;  %v10153_v36 = vld [vmem:[%s14189_s1 + $0x10e4] ss:$16 sps:$4 sm:$0xff]  }
 0x1f8   : >> { %4010 = vmatpush1.bf16.msra.mxu0 %v10067_v37  ;;  %4051 = vmatpush1.bf16.msra.mxu1 %v10070_v39  ;;  %v10156_v37 = vld [vmem:[%s14189_s1 + $0x10ec] ss:$16 sps:$4 sm:$0xff]   ;;  %v10151_v39 = vld [vmem:[%s14189_s1 + $0x10e0] ss:$16 sps:$4 sm:$0xff]  }
 0x1f9   : >> { %4011 = vmatprep.subr.bf16.mxu0 %v10075_v40  ;;  %4052 = vmatprep.subr.bf16.mxu1 %v10078_v41  ;;  %v10154_v40 = vld [vmem:[%s14189_s1 + $0x10e8] ss:$16 sps:$4 sm:$0xff]   ;;  %v10159_v41 = vld [vmem:[%s14189_s1 + $0x1104] ss:$16 sps:$4 sm:$0xff]  }
 0x1fc   : >> { %4012 = vmatpush1.bf16.msra.mxu0 %v10073_v43  ;;  %4053 = vmatpush1.bf16.msra.mxu1 %v10076_v44  ;;  %v10162_v43 = vld [vmem:[%s14189_s1 + $0x110c] ss:$16 sps:$4 sm:$0xff]   ;;  %v10157_v44 = vld [vmem:[%s14189_s1 + $0x1100] ss:$16 sps:$4 sm:$0xff]  }
 0x1fd   : >> { %4013 = vmatprep.subr.bf16.mxu0 %v10081_v45  ;;  %4054 = vmatprep.subr.bf16.mxu1 %v10084_v47  ;;  %v10160_v45 = vld [vmem:[%s14189_s1 + $0x1108] ss:$16 sps:$4 sm:$0xff]   ;;  %v10165_v47 = vld [vmem:[%s14189_s1 + $0x1124] ss:$16 sps:$4 sm:$0xff]  }
 0x200   : >> { %4014 = vmatpush1.bf16.msra.mxu0 %v10079_v48  ;;  %4055 = vmatpush1.bf16.msra.mxu1 %v10082_v42  ;;  %v10168_v48 = vld [vmem:[%s14189_s1 + $0x112c] ss:$16 sps:$4 sm:$0xff]   ;;  %v10163_v42 = vld [vmem:[%s14189_s1 + $0x1120] ss:$16 sps:$4 sm:$0xff]  }
 0x201   : >> { %4015 = vmatprep.subr.bf16.mxu0 %v10087_v38  ;;  %4056 = vmatprep.subr.bf16.mxu1 %v10090_v49  ;;  %v10166_v38 = vld [vmem:[%s14189_s1 + $0x1128] ss:$16 sps:$4 sm:$0xff]   ;;  %v10171_v49 = vld [vmem:[%s14189_s1 + $0x1144] ss:$16 sps:$4 sm:$0xff]  }
 0x204   : >> { %4016 = vmatpush1.bf16.msra.mxu0 %v10085_v50  ;;  %4057 = vmatpush1.bf16.msra.mxu1 %v10088_v51  ;;  %v10174_v50 = vld [vmem:[%s14189_s1 + $0x114c] ss:$16 sps:$4 sm:$0xff]   ;;  %v10169_v51 = vld [vmem:[%s14189_s1 + $0x1140] ss:$16 sps:$4 sm:$0xff]  }
 0x205   : >> { %4017 = vmatprep.subr.bf16.mxu0 %v10093_v46  ;;  %4058 = vmatprep.subr.bf16.mxu1 %v10096_v54  ;;  %v10172_v46 = vld [vmem:[%s14189_s1 + $0x1148] ss:$16 sps:$4 sm:$0xff]   ;;  %v10177_v54 = vld [vmem:[%s14189_s1 + $0x1164] ss:$16 sps:$4 sm:$0xff]  }
 0x208   : >> { %4018 = vmatpush1.bf16.msra.mxu0 %v10091_v55  ;;  %4059 = vmatpush1.bf16.msra.mxu1 %v10094_v56  ;;  %v10180_v55 = vld [vmem:[%s14189_s1 + $0x116c] ss:$16 sps:$4 sm:$0xff]   ;;  %v10175_v56 = vld [vmem:[%s14189_s1 + $0x1160] ss:$16 sps:$4 sm:$0xff]  }
 0x209   : >> { %4019 = vmatprep.subr.bf16.mxu0 %v10099_v57  ;;  %4060 = vmatprep.subr.bf16.mxu1 %v10102_v58  ;;  %v10178_v57 = vld [vmem:[%s14189_s1 + $0x1168] ss:$16 sps:$4 sm:$0xff]   ;;  %v10183_v58 = vld [vmem:[%s14189_s1 + $0x1184] ss:$16 sps:$4 sm:$0xff]  }
 0x20c   : >> { %4020 = vmatpush1.bf16.msra.mxu0 %v10097_v60  ;;  %4061 = vmatpush1.bf16.msra.mxu1 %v10100_v61  ;;  %v10184_v60 = vld [vmem:[%s14189_s1 + $0x1188] ss:$16 sps:$4 sm:$0xff]   ;;  %v10189_v61 = vld [vmem:[%s14189_s1 + $0x11a4] ss:$16 sps:$4 sm:$0xff]  }
 0x20d   : >> { %4021 = vmatprep.subr.bf16.mxu0 %v10105_v63  ;;  %4062 = vmatprep.subr.bf16.mxu1 %v10108_v53  ;;  %v10192_v63 = vld [vmem:[%s14189_s1 + $0x11ac] ss:$16 sps:$4 sm:$0xff]   ;;  %v10187_v53 = vld [vmem:[%s14189_s1 + $0x11a0] ss:$16 sps:$4 sm:$0xff]  }
 0x210   : >> { %4022 = vmatpush1.bf16.msra.mxu0 %v10103_v2  ;;  %4063 = vmatpush1.bf16.msra.mxu1 %v10106_v5  ;;  %v10190_v2 = vld [vmem:[%s14189_s1 + $0x11a8] ss:$16 sps:$4 sm:$0xff]   ;;  %v10193_v5 = vld [vmem:[%s14189_s1 + $0x11c0] ss:$16 sps:$4 sm:$0xff]  }
 0x211   : >> { %4473 = vmatprep.subr.bf16.mxu0 %v10111_v6  ;;  %4514 = vmatprep.subr.bf16.mxu1 %v10114_v7  ;;  %v10196_v6 = vld [vmem:[%s14189_s1 + $0x11c8] ss:$16 sps:$4 sm:$0xff]   ;;  %v10201_v7 = vld [vmem:[%s14189_s1 + $0x11e4] ss:$16 sps:$4 sm:$0xff]  }
 0x213   : >> { %4024 = vmatmul.mubr.bf16.vlgmr.msra.gmra.mrb[0].mxu0 %v3660_v9  ;;  %4065 = vmatmul.mubr.bf16.vlgmr.msra.gmra.mrb[0].mxu1 %v3660_v9  ;;  %v10204_v9 = vld [vmem:[%s14189_s1 + $0x11ec] ss:$16 sps:$4 sm:$0xff]  }
 0x214   : >> { %4474 = vmatpush1.bf16.msra.mxu0 %v10109_v10  ;;  %4515 = vmatpush1.bf16.msra.mxu1 %v10112_v11  ;;  %v4633_v10 = vshll.u32 %v12582_v14, 16  ;;  %v10199_v11 = vld [vmem:[%s14189_s1 + $0x11e0] ss:$16 sps:$4 sm:$0xff]  }
 0x215   : >> { %4475 = vmatprep.subr.bf16.mxu0 %v10117_v12  ;;  %4516 = vmatprep.subr.bf16.mxu1 %v10120_v13  ;;  %v10202_v12 = vld [vmem:[%s14189_s1 + $0x11e8] ss:$16 sps:$4 sm:$0xff]   ;;  %v10208_v13 = vld [vmem:[%s14189_s1 + $0x1204] ss:$16 sps:$4 sm:$0xff]  }
 0x216   : >> { %4505 = vmatprep.mubr.bf16.mxu0 %v12582_v14  ;;  %4546 = vmatprep.mubr.bf16.mxu1 %v12582_v14 }
 0x218   : >> { %4476 = vmatpush1.bf16.msra.mxu0 %v10115_v15  ;;  %4517 = vmatpush1.bf16.msra.mxu1 %v10118_v16  ;;  %v10211_v15 = vld [vmem:[%s14189_s1 + $0x120c] ss:$16 sps:$4 sm:$0xff]   ;;  %v4631_v16 = vshrl.u32 %v12582_v14, 16  ;;  %v10215_v14 = vld [vmem:[%s14189_s1 + $0x1224] ss:$16 sps:$4 sm:$0xff]  }
 0x219   : >> { %4477 = vmatprep.subr.bf16.mxu0 %v10123_v17  ;;  %4518 = vmatprep.subr.bf16.mxu1 %v10126_v18  ;;  %v4635_v17 = vrot.slane %v4633_v10, 1  ;;  %v12770_v18 = vcombine.low %v12566_v8, %v12566_v8  ;;  %v10218_v8 = vld [vmem:[%s14189_s1 + $0x122c] ss:$16 sps:$4 sm:$0xff]   ;;  %v10288_v10 = vld [vmem:[%s14189_s1 + $0x13a8] ss:$16 sps:$4 sm:$0xff]  }
 0x21c   : >> { %4478 = vmatpush1.bf16.msra.mxu0 %v10121_v19  ;;  %4519 = vmatpush1.bf16.msra.mxu1 %v10124_v20  ;;  %v10206_v19 = vld [vmem:[%s14189_s1 + $0x1200] ss:$16 sps:$4 sm:$0xff]   ;;  %v10209_v20 = vld [vmem:[%s14189_s1 + $0x1208] ss:$16 sps:$4 sm:$0xff]  }
 0x21d   : >> { %4479 = vmatprep.subr.bf16.mxu0 %v10129_v21  ;;  %4520 = vmatprep.subr.bf16.mxu1 %v10132_v23  ;;  %v4636_v21 = vor.u32 %v4635_v17, %v4631_v16  ;;  %v10213_v23 = vld [vmem:[%s14189_s1 + $0x1220] ss:$16 sps:$4 sm:$0xff]   ;;  %v10294_v16 = vld [vmem:[%s14189_s1 + $0x13c8] ss:$16 sps:$4 sm:$0xff]   ;;  %v10299_v17 = vld [vmem:[%s14189_s1 + $0x13e4] ss:$16 sps:$4 sm:$0xff]  }
 0x220   : >> { %4480 = vmatpush1.bf16.msra.mxu0 %v10127_v25  ;;  %4521 = vmatpush1.bf16.msra.mxu1 %v10130_v26  ;;  %v10216_v25 = vld [vmem:[%s14189_s1 + $0x1228] ss:$16 sps:$4 sm:$0xff]   ;;  %v10221_v26 = vld [vmem:[%s14189_s1 + $0x1244] ss:$16 sps:$4 sm:$0xff]  }
 0x221   : >> { %4481 = vmatprep.subr.bf16.mxu0 %v10135_v24  ;;  %4522 = vmatprep.subr.bf16.mxu1 %v10138_v27  ;;  %v10224_v24 = vld [vmem:[%s14189_s1 + $0x124c] ss:$16 sps:$4 sm:$0xff]   ;;  %v10219_v27 = vld [vmem:[%s14189_s1 + $0x1240] ss:$16 sps:$4 sm:$0xff]  }
 0x224   : >> { %4482 = vmatpush1.bf16.msra.mxu0 %v10133_v28  ;;  %4523 = vmatpush1.bf16.msra.mxu1 %v10136_v62  ;;  %v10222_v28 = vld [vmem:[%s14189_s1 + $0x1248] ss:$16 sps:$4 sm:$0xff]   ;;  %v10227_v62 = vld [vmem:[%s14189_s1 + $0x1264] ss:$16 sps:$4 sm:$0xff]  }
 0x225   : >> { %4483 = vmatprep.subr.bf16.mxu0 %v10141_v29  ;;  %4524 = vmatprep.subr.bf16.mxu1 %v10144_v30  ;;  %v10230_v29 = vld [vmem:[%s14189_s1 + $0x126c] ss:$16 sps:$4 sm:$0xff]   ;;  %v10225_v30 = vld [vmem:[%s14189_s1 + $0x1260] ss:$16 sps:$4 sm:$0xff]  }
 0x228   : >> { %4484 = vmatpush1.bf16.msra.mxu0 %v10139_v22  ;;  %4525 = vmatpush1.bf16.msra.mxu1 %v10142_v31  ;;  %v10228_v22 = vld [vmem:[%s14189_s1 + $0x1268] ss:$16 sps:$4 sm:$0xff]   ;;  %v10233_v31 = vld [vmem:[%s14189_s1 + $0x1284] ss:$16 sps:$4 sm:$0xff]  }
 0x229   : >> { %4485 = vmatprep.subr.bf16.mxu0 %v10147_v32  ;;  %4526 = vmatprep.subr.bf16.mxu1 %v10150_v33  ;;  %v10236_v32 = vld [vmem:[%s14189_s1 + $0x128c] ss:$16 sps:$4 sm:$0xff]   ;;  %v10231_v33 = vld [vmem:[%s14189_s1 + $0x1280] ss:$16 sps:$4 sm:$0xff]  }
 0x22c   : >> { %4486 = vmatpush1.bf16.msra.mxu0 %v10145_v34  ;;  %4527 = vmatpush1.bf16.msra.mxu1 %v10148_v35  ;;  %v10234_v34 = vld [vmem:[%s14189_s1 + $0x1288] ss:$16 sps:$4 sm:$0xff]   ;;  %v10239_v35 = vld [vmem:[%s14189_s1 + $0x12a4] ss:$16 sps:$4 sm:$0xff]  }
 0x22d   : >> { %4487 = vmatprep.subr.bf16.mxu0 %v10153_v36  ;;  %4528 = vmatprep.subr.bf16.mxu1 %v10156_v37  ;;  %v10242_v36 = vld [vmem:[%s14189_s1 + $0x12ac] ss:$16 sps:$4 sm:$0xff]   ;;  %v10237_v37 = vld [vmem:[%s14189_s1 + $0x12a0] ss:$16 sps:$4 sm:$0xff]  }
 0x230   : >> { %4488 = vmatpush1.bf16.msra.mxu0 %v10151_v39  ;;  %4529 = vmatpush1.bf16.msra.mxu1 %v10154_v40  ;;  %v10240_v39 = vld [vmem:[%s14189_s1 + $0x12a8] ss:$16 sps:$4 sm:$0xff]   ;;  %v10245_v40 = vld [vmem:[%s14189_s1 + $0x12c4] ss:$16 sps:$4 sm:$0xff]  }
 0x231   : >> { %4489 = vmatprep.subr.bf16.mxu0 %v10159_v41  ;;  %4530 = vmatprep.subr.bf16.mxu1 %v10162_v43  ;;  %v10248_v41 = vld [vmem:[%s14189_s1 + $0x12cc] ss:$16 sps:$4 sm:$0xff]   ;;  %v10243_v43 = vld [vmem:[%s14189_s1 + $0x12c0] ss:$16 sps:$4 sm:$0xff]  }
 0x234   : >> { %4490 = vmatpush1.bf16.msra.mxu0 %v10157_v44  ;;  %4531 = vmatpush1.bf16.msra.mxu1 %v10160_v45  ;;  %v10246_v44 = vld [vmem:[%s14189_s1 + $0x12c8] ss:$16 sps:$4 sm:$0xff]   ;;  %v10251_v45 = vld [vmem:[%s14189_s1 + $0x12e4] ss:$16 sps:$4 sm:$0xff]  }
 0x235   : >> { %4491 = vmatprep.subr.bf16.mxu0 %v10165_v47  ;;  %4532 = vmatprep.subr.bf16.mxu1 %v10168_v48  ;;  %v10254_v47 = vld [vmem:[%s14189_s1 + $0x12ec] ss:$16 sps:$4 sm:$0xff]   ;;  %v10249_v48 = vld [vmem:[%s14189_s1 + $0x12e0] ss:$16 sps:$4 sm:$0xff]  }
 0x238   : >> { %4492 = vmatpush1.bf16.msra.mxu0 %v10163_v42  ;;  %4533 = vmatpush1.bf16.msra.mxu1 %v10166_v38  ;;  %v10252_v42 = vld [vmem:[%s14189_s1 + $0x12e8] ss:$16 sps:$4 sm:$0xff]   ;;  %v10257_v38 = vld [vmem:[%s14189_s1 + $0x1304] ss:$16 sps:$4 sm:$0xff]  }
 0x239   : >> { %4493 = vmatprep.subr.bf16.mxu0 %v10171_v49  ;;  %4534 = vmatprep.subr.bf16.mxu1 %v10174_v50  ;;  %v10260_v49 = vld [vmem:[%s14189_s1 + $0x130c] ss:$16 sps:$4 sm:$0xff]   ;;  %v10255_v50 = vld [vmem:[%s14189_s1 + $0x1300] ss:$16 sps:$4 sm:$0xff]  }
 0x23c   : >> { %4494 = vmatpush1.bf16.msra.mxu0 %v10169_v51  ;;  %4535 = vmatpush1.bf16.msra.mxu1 %v10172_v46  ;;  %v10258_v51 = vld [vmem:[%s14189_s1 + $0x1308] ss:$16 sps:$4 sm:$0xff]   ;;  %v10263_v46 = vld [vmem:[%s14189_s1 + $0x1324] ss:$16 sps:$4 sm:$0xff]  }
 0x23d   : >> { %4495 = vmatprep.subr.bf16.mxu0 %v10177_v54  ;;  %4536 = vmatprep.subr.bf16.mxu1 %v10180_v55  ;;  %v10266_v54 = vld [vmem:[%s14189_s1 + $0x132c] ss:$16 sps:$4 sm:$0xff]   ;;  %v10261_v55 = vld [vmem:[%s14189_s1 + $0x1320] ss:$16 sps:$4 sm:$0xff]  }
 0x240   : >> { %4496 = vmatpush1.bf16.msra.mxu0 %v10175_v56  ;;  %4537 = vmatpush1.bf16.msra.mxu1 %v10178_v57  ;;  %v10264_v56 = vld [vmem:[%s14189_s1 + $0x1328] ss:$16 sps:$4 sm:$0xff]   ;;  %v10269_v57 = vld [vmem:[%s14189_s1 + $0x1344] ss:$16 sps:$4 sm:$0xff]  }
 0x241   : >> { %4497 = vmatprep.subr.bf16.mxu0 %v10183_v58  ;;  %4538 = vmatprep.subr.bf16.mxu1 %v10186_v52  ;;  %v10272_v58 = vld [vmem:[%s14189_s1 + $0x134c] ss:$16 sps:$4 sm:$0xff]   ;;  %v10267_v52 = vld [vmem:[%s14189_s1 + $0x1340] ss:$16 sps:$4 sm:$0xff]  }
 0x244   : >> { %4498 = vmatpush1.bf16.msra.mxu0 %v10181_v59  ;;  %4539 = vmatpush1.bf16.msra.mxu1 %v10184_v60  ;;  %v10270_v59 = vld [vmem:[%s14189_s1 + $0x1348] ss:$16 sps:$4 sm:$0xff]   ;;  %v10275_v60 = vld [vmem:[%s14189_s1 + $0x1364] ss:$16 sps:$4 sm:$0xff]  }
 0x245   : >> { %4499 = vmatprep.subr.bf16.mxu0 %v10189_v61  ;;  %4540 = vmatprep.subr.bf16.mxu1 %v10192_v63  ;;  %v10278_v61 = vld [vmem:[%s14189_s1 + $0x136c] ss:$16 sps:$4 sm:$0xff]   ;;  %v10273_v63 = vld [vmem:[%s14189_s1 + $0x1360] ss:$16 sps:$4 sm:$0xff]  }
 0x248   : >> { %4500 = vmatpush1.bf16.msra.mxu0 %v10187_v53  ;;  %4541 = vmatpush1.bf16.msra.mxu1 %v10190_v2  ;;  %v10276_v53 = vld [vmem:[%s14189_s1 + $0x1368] ss:$16 sps:$4 sm:$0xff]   ;;  %v10281_v2 = vld [vmem:[%s14189_s1 + $0x1384] ss:$16 sps:$4 sm:$0xff]  }
 0x249   : >> { %4501 = vmatprep.subr.bf16.mxu0 %v10195_v3  ;;  %4542 = vmatprep.subr.bf16.mxu1 %v10198_v4  ;;  %v10284_v3 = vld [vmem:[%s14189_s1 + $0x138c] ss:$16 sps:$4 sm:$0xff]   ;;  %v10279_v4 = vld [vmem:[%s14189_s1 + $0x1380] ss:$16 sps:$4 sm:$0xff]  }
 0x24c   : >> { %4502 = vmatpush1.bf16.msra.mxu0 %v10193_v5  ;;  %4543 = vmatpush1.bf16.msra.mxu1 %v10196_v6  ;;  %v10282_v5 = vld [vmem:[%s14189_s1 + $0x1388] ss:$16 sps:$4 sm:$0xff]   ;;  %v10287_v6 = vld [vmem:[%s14189_s1 + $0x13a4] ss:$16 sps:$4 sm:$0xff]  }
 0x24d   : >> { %4503 = vmatprep.subr.bf16.mxu0 %v10201_v7  ;;  %4544 = vmatprep.subr.bf16.mxu1 %v10204_v9  ;;  %v10290_v7 = vld [vmem:[%s14189_s1 + $0x13ac] ss:$16 sps:$4 sm:$0xff]   ;;  %v10285_v9 = vld [vmem:[%s14189_s1 + $0x13a0] ss:$16 sps:$4 sm:$0xff]  }
 0x250   : >> { %4504 = vmatpush1.bf16.msra.mxu0 %v10199_v11  ;;  %4545 = vmatpush1.bf16.msra.mxu1 %v10202_v12  ;;  %v10293_v11 = vld [vmem:[%s14189_s1 + $0x13c4] ss:$16 sps:$4 sm:$0xff]   ;;  %v10296_v12 = vld [vmem:[%s14189_s1 + $0x13cc] ss:$16 sps:$4 sm:$0xff]  }
 0x251   : >> { %4959 = vmatprep.subr.bf16.mxu0 %v10208_v13  ;;  %5000 = vmatprep.subr.bf16.mxu1 %v10211_v15  ;;  %v4626_v13 = vshll.u32 %v12770_v18, 16  ;;  %v10291_v15 = vld [vmem:[%s14189_s1 + $0x13c0] ss:$16 sps:$4 sm:$0xff]  }
 0x253   : >> { %4506 = vmatmul.mubr.bf16.vlgmr.msra.gmra.mrb[0].mxu0 %v12770_v18  ;;  %4547 = vmatmul.mubr.bf16.vlgmr.msra.gmra.mrb[0].mxu1 %v12770_v18 }
 0x254   : >> { %4960 = vmatpush1.bf16.msra.mxu0 %v10206_v19  ;;  %5001 = vmatpush1.bf16.msra.mxu1 %v10209_v20  ;;  %v10302_v19 = vld [vmem:[%s14189_s1 + $0x13ec] ss:$16 sps:$4 sm:$0xff]   ;;  %v4624_v20 = vshrl.u32 %v12770_v18, 16 }
 0x255   : >> { %4961 = vmatprep.subr.bf16.mxu0 %v10215_v14  ;;  %5002 = vmatprep.subr.bf16.mxu1 %v10218_v8  ;;  %v4628_v14 = vrot.slane %v4626_v13, 1  ;;  %v10297_v8 = vld [vmem:[%s14189_s1 + $0x13e0] ss:$16 sps:$4 sm:$0xff]   ;;  %v10308_v18 = vld [vmem:[%s14189_s1 + $0x140c] ss:$16 sps:$4 sm:$0xff]  }
 0x256   : >> { %4991 = vmatprep.mubr.bf16.mxu0 %v4636_v21  ;;  %5032 = vmatprep.mubr.bf16.mxu1 %v4636_v21  ;;  %v10300_v21 = vld [vmem:[%s14189_s1 + $0x13e8] ss:$16 sps:$4 sm:$0xff]   ;;  %v10375_v13 = vld [vmem:[%s14189_s1 + $0x1580] ss:$16 sps:$4 sm:$0xff]  }
 0x258   : >> { %4962 = vmatpush1.bf16.msra.mxu0 %v10213_v23  ;;  %5003 = vmatpush1.bf16.msra.mxu1 %v10216_v25  ;;  %v10305_v23 = vld [vmem:[%s14189_s1 + $0x1404] ss:$16 sps:$4 sm:$0xff]  }
 0x259   : >> { %4963 = vmatprep.subr.bf16.mxu0 %v10221_v26  ;;  %5004 = vmatprep.subr.bf16.mxu1 %v10224_v24  ;;  %v12969_v25 = vld [vmem:[%s11097_s5 + $0x24] ss:$8 sps:$4 sm:$0x1e]   ;;  %v4629_v26 = vor.u32 %v4628_v14, %v4624_v20  ;;  %v10303_v24 = vld [vmem:[%s14189_s1 + $0x1400] ss:$16 sps:$4 sm:$0xff]  }
 0x25a   : >> { %v10384_v20 = vld [vmem:[%s14189_s1 + $0x15a8] ss:$16 sps:$4 sm:$0xff]   ;;  %v10389_v14 = vld [vmem:[%s14189_s1 + $0x15c4] ss:$16 sps:$4 sm:$0xff]  }
 0x25c   : >> { %4964 = vmatpush1.bf16.msra.mxu0 %v10219_v27  ;;  %5005 = vmatpush1.bf16.msra.mxu1 %v10222_v28  ;;  %v10306_v27 = vld [vmem:[%s14189_s1 + $0x1408] ss:$16 sps:$4 sm:$0xff]   ;;  %v10311_v28 = vld [vmem:[%s14189_s1 + $0x1424] ss:$16 sps:$4 sm:$0xff]  }
 0x25d   : >> { %4965 = vmatprep.subr.bf16.mxu0 %v10227_v62  ;;  %5006 = vmatprep.subr.bf16.mxu1 %v10230_v29  ;;  %v10314_v62 = vld [vmem:[%s14189_s1 + $0x142c] ss:$16 sps:$4 sm:$0xff]   ;;  %v5120_v29 = vrot.slane %v12969_v25, 1 }
 0x260   : >> { %4966 = vmatpush1.bf16.msra.mxu0 %v10225_v30  ;;  %5007 = vmatpush1.bf16.msra.mxu1 %v10228_v22  ;;  %v10309_v30 = vld [vmem:[%s14189_s1 + $0x1420] ss:$16 sps:$4 sm:$0xff]   ;;  %v10312_v22 = vld [vmem:[%s14189_s1 + $0x1428] ss:$16 sps:$4 sm:$0xff]  }
 0x261   : >> { %4967 = vmatprep.subr.bf16.mxu0 %v10233_v31  ;;  %5008 = vmatprep.subr.bf16.mxu1 %v10236_v32  ;;  %v10317_v31 = vld [vmem:[%s14189_s1 + $0x1444] ss:$16 sps:$4 sm:$0xff]   ;;  %v10320_v32 = vld [vmem:[%s14189_s1 + $0x144c] ss:$16 sps:$4 sm:$0xff]  }
 0x264   : >> { %4968 = vmatpush1.bf16.msra.mxu0 %v10231_v33  ;;  %5009 = vmatpush1.bf16.msra.mxu1 %v10234_v34  ;;  %v10315_v33 = vld [vmem:[%s14189_s1 + $0x1440] ss:$16 sps:$4 sm:$0xff]   ;;  %v10318_v34 = vld [vmem:[%s14189_s1 + $0x1448] ss:$16 sps:$4 sm:$0xff]  }
 0x265   : >> { %4969 = vmatprep.subr.bf16.mxu0 %v10239_v35  ;;  %5010 = vmatprep.subr.bf16.mxu1 %v10242_v36  ;;  %v10323_v35 = vld [vmem:[%s14189_s1 + $0x1464] ss:$16 sps:$4 sm:$0xff]   ;;  %v10326_v36 = vld [vmem:[%s14189_s1 + $0x146c] ss:$16 sps:$4 sm:$0xff]  }
 0x268   : >> { %4970 = vmatpush1.bf16.msra.mxu0 %v10237_v37  ;;  %5011 = vmatpush1.bf16.msra.mxu1 %v10240_v39  ;;  %v10321_v37 = vld [vmem:[%s14189_s1 + $0x1460] ss:$16 sps:$4 sm:$0xff]   ;;  %v10324_v39 = vld [vmem:[%s14189_s1 + $0x1468] ss:$16 sps:$4 sm:$0xff]  }
 0x269   : >> { %4971 = vmatprep.subr.bf16.mxu0 %v10245_v40  ;;  %5012 = vmatprep.subr.bf16.mxu1 %v10248_v41  ;;  %v10329_v40 = vld [vmem:[%s14189_s1 + $0x1484] ss:$16 sps:$4 sm:$0xff]   ;;  %v10332_v41 = vld [vmem:[%s14189_s1 + $0x148c] ss:$16 sps:$4 sm:$0xff]  }
 0x26c   : >> { %4972 = vmatpush1.bf16.msra.mxu0 %v10243_v43  ;;  %5013 = vmatpush1.bf16.msra.mxu1 %v10246_v44  ;;  %v10327_v43 = vld [vmem:[%s14189_s1 + $0x1480] ss:$16 sps:$4 sm:$0xff]   ;;  %v10330_v44 = vld [vmem:[%s14189_s1 + $0x1488] ss:$16 sps:$4 sm:$0xff]  }
 0x26d   : >> { %4973 = vmatprep.subr.bf16.mxu0 %v10251_v45  ;;  %5014 = vmatprep.subr.bf16.mxu1 %v10254_v47  ;;  %v10335_v45 = vld [vmem:[%s14189_s1 + $0x14a4] ss:$16 sps:$4 sm:$0xff]   ;;  %v10338_v47 = vld [vmem:[%s14189_s1 + $0x14ac] ss:$16 sps:$4 sm:$0xff]  }
 0x270   : >> { %4974 = vmatpush1.bf16.msra.mxu0 %v10249_v48  ;;  %5015 = vmatpush1.bf16.msra.mxu1 %v10252_v42  ;;  %v10333_v48 = vld [vmem:[%s14189_s1 + $0x14a0] ss:$16 sps:$4 sm:$0xff]   ;;  %v10336_v42 = vld [vmem:[%s14189_s1 + $0x14a8] ss:$16 sps:$4 sm:$0xff]  }
 0x271   : >> { %4975 = vmatprep.subr.bf16.mxu0 %v10257_v38  ;;  %5016 = vmatprep.subr.bf16.mxu1 %v10260_v49  ;;  %v10341_v38 = vld [vmem:[%s14189_s1 + $0x14c4] ss:$16 sps:$4 sm:$0xff]   ;;  %v10344_v49 = vld [vmem:[%s14189_s1 + $0x14cc] ss:$16 sps:$4 sm:$0xff]  }
 0x274   : >> { %4976 = vmatpush1.bf16.msra.mxu0 %v10255_v50  ;;  %5017 = vmatpush1.bf16.msra.mxu1 %v10258_v51  ;;  %v10339_v50 = vld [vmem:[%s14189_s1 + $0x14c0] ss:$16 sps:$4 sm:$0xff]   ;;  %v10342_v51 = vld [vmem:[%s14189_s1 + $0x14c8] ss:$16 sps:$4 sm:$0xff]  }
 0x275   : >> { %4977 = vmatprep.subr.bf16.mxu0 %v10263_v46  ;;  %5018 = vmatprep.subr.bf16.mxu1 %v10266_v54  ;;  %v10347_v46 = vld [vmem:[%s14189_s1 + $0x14e4] ss:$16 sps:$4 sm:$0xff]   ;;  %v10350_v54 = vld [vmem:[%s14189_s1 + $0x14ec] ss:$16 sps:$4 sm:$0xff]  }
 0x278   : >> { %4978 = vmatpush1.bf16.msra.mxu0 %v10261_v55  ;;  %5019 = vmatpush1.bf16.msra.mxu1 %v10264_v56  ;;  %v10345_v55 = vld [vmem:[%s14189_s1 + $0x14e0] ss:$16 sps:$4 sm:$0xff]   ;;  %v10348_v56 = vld [vmem:[%s14189_s1 + $0x14e8] ss:$16 sps:$4 sm:$0xff]  }
 0x279   : >> { %4979 = vmatprep.subr.bf16.mxu0 %v10269_v57  ;;  %5020 = vmatprep.subr.bf16.mxu1 %v10272_v58  ;;  %v10353_v57 = vld [vmem:[%s14189_s1 + $0x1504] ss:$16 sps:$4 sm:$0xff]   ;;  %v10356_v58 = vld [vmem:[%s14189_s1 + $0x150c] ss:$16 sps:$4 sm:$0xff]  }
 0x27c   : >> { %4980 = vmatpush1.bf16.msra.mxu0 %v10267_v52  ;;  %5021 = vmatpush1.bf16.msra.mxu1 %v10270_v59  ;;  %v10351_v52 = vld [vmem:[%s14189_s1 + $0x1500] ss:$16 sps:$4 sm:$0xff]   ;;  %v10354_v59 = vld [vmem:[%s14189_s1 + $0x1508] ss:$16 sps:$4 sm:$0xff]  }
 0x27d   : >> { %4981 = vmatprep.subr.bf16.mxu0 %v10275_v60  ;;  %5022 = vmatprep.subr.bf16.mxu1 %v10278_v61  ;;  %v10359_v60 = vld [vmem:[%s14189_s1 + $0x1524] ss:$16 sps:$4 sm:$0xff]   ;;  %v10362_v61 = vld [vmem:[%s14189_s1 + $0x152c] ss:$16 sps:$4 sm:$0xff]  }
 0x280   : >> { %4982 = vmatpush1.bf16.msra.mxu0 %v10273_v63  ;;  %5023 = vmatpush1.bf16.msra.mxu1 %v10276_v53  ;;  %v10357_v63 = vld [vmem:[%s14189_s1 + $0x1520] ss:$16 sps:$4 sm:$0xff]   ;;  %v10360_v53 = vld [vmem:[%s14189_s1 + $0x1528] ss:$16 sps:$4 sm:$0xff]  }
 0x281   : >> { %4983 = vmatprep.subr.bf16.mxu0 %v10281_v2  ;;  %5024 = vmatprep.subr.bf16.mxu1 %v10284_v3  ;;  %v10365_v2 = vld [vmem:[%s14189_s1 + $0x1544] ss:$16 sps:$4 sm:$0xff]   ;;  %v10368_v3 = vld [vmem:[%s14189_s1 + $0x154c] ss:$16 sps:$4 sm:$0xff]  }
 0x284   : >> { %4984 = vmatpush1.bf16.msra.mxu0 %v10279_v4  ;;  %5025 = vmatpush1.bf16.msra.mxu1 %v10282_v5  ;;  %v10363_v4 = vld [vmem:[%s14189_s1 + $0x1540] ss:$16 sps:$4 sm:$0xff]   ;;  %v10366_v5 = vld [vmem:[%s14189_s1 + $0x1548] ss:$16 sps:$4 sm:$0xff]  }
 0x285   : >> { %4985 = vmatprep.subr.bf16.mxu0 %v10287_v6  ;;  %5026 = vmatprep.subr.bf16.mxu1 %v10290_v7  ;;  %v10371_v6 = vld [vmem:[%s14189_s1 + $0x1564] ss:$16 sps:$4 sm:$0xff]   ;;  %v10374_v7 = vld [vmem:[%s14189_s1 + $0x156c] ss:$16 sps:$4 sm:$0xff]  }
 0x288   : >> { %4986 = vmatpush1.bf16.msra.mxu0 %v10285_v9  ;;  %5027 = vmatpush1.bf16.msra.mxu1 %v10288_v10  ;;  %v10369_v9 = vld [vmem:[%s14189_s1 + $0x1560] ss:$16 sps:$4 sm:$0xff]   ;;  %v10372_v10 = vld [vmem:[%s14189_s1 + $0x1568] ss:$16 sps:$4 sm:$0xff]  }
 0x289   : >> { %4987 = vmatprep.subr.bf16.mxu0 %v10293_v11  ;;  %5028 = vmatprep.subr.bf16.mxu1 %v10296_v12  ;;  %v10377_v11 = vld [vmem:[%s14189_s1 + $0x1584] ss:$16 sps:$4 sm:$0xff]   ;;  %v10380_v12 = vld [vmem:[%s14189_s1 + $0x158c] ss:$16 sps:$4 sm:$0xff]  }
 0x28c   : >> { %4988 = vmatpush1.bf16.msra.mxu0 %v10291_v15  ;;  %5029 = vmatpush1.bf16.msra.mxu1 %v10294_v16  ;;  %v10378_v15 = vld [vmem:[%s14189_s1 + $0x1588] ss:$16 sps:$4 sm:$0xff]   ;;  %v10383_v16 = vld [vmem:[%s14189_s1 + $0x15a4] ss:$16 sps:$4 sm:$0xff]  }
 0x28d   : >> { %4989 = vmatprep.subr.bf16.mxu0 %v10299_v17  ;;  %5030 = vmatprep.subr.bf16.mxu1 %v10302_v19  ;;  %v10386_v17 = vld [vmem:[%s14189_s1 + $0x15ac] ss:$16 sps:$4 sm:$0xff]   ;;  %v10381_v19 = vld [vmem:[%s14189_s1 + $0x15a0] ss:$16 sps:$4 sm:$0xff]  }
 0x290   : >> { %4990 = vmatpush1.bf16.msra.mxu0 %v10297_v8  ;;  %5031 = vmatpush1.bf16.msra.mxu1 %v10300_v21  ;;  %v10392_v8 = vld [vmem:[%s14189_s1 + $0x15cc] ss:$16 sps:$4 sm:$0xff]   ;;  %v10387_v21 = vld [vmem:[%s14189_s1 + $0x15c0] ss:$16 sps:$4 sm:$0xff]  }
 0x291   : >> { %5443 = vmatprep.subr.bf16.mxu0 %v10305_v23  ;;  %5484 = vmatprep.subr.bf16.mxu1 %v10308_v18  ;;  %v10390_v23 = vld [vmem:[%s14189_s1 + $0x15c8] ss:$16 sps:$4 sm:$0xff]   ;;  %v10395_v18 = vld [vmem:[%s14189_s1 + $0x15e4] ss:$16 sps:$4 sm:$0xff]  }
 0x293   : >> { %4992 = vmatmul.mubr.bf16.vlgmr.msra.gmra.mrb[0].mxu0 %v4629_v26  ;;  %5033 = vmatmul.mubr.bf16.vlgmr.msra.gmra.mrb[0].mxu1 %v4629_v26  ;;  %v10398_v26 = vld [vmem:[%s14189_s1 + $0x15ec] ss:$16 sps:$4 sm:$0xff]  }
 0x294   : >> { %5444 = vmatpush1.bf16.msra.mxu0 %v10303_v24  ;;  %5485 = vmatpush1.bf16.msra.mxu1 %v10306_v27  ;;  %v5602_v24 = vshrl.u32 %v12969_v25, 16  ;;  %v5605_v27 = vshll.u32 %v12969_v25, 16  ;;  %v10407_v25 = vld [vmem:[%s14189_s1 + $0x160c] ss:$16 sps:$4 sm:$0xff]  }
 0x295   : >> { %5445 = vmatprep.subr.bf16.mxu0 %v10311_v28  ;;  %5486 = vmatprep.subr.bf16.mxu1 %v10314_v62  ;;  %v13155_v28 = vld [vmem:[%s11097_s5 + $0x20] ss:$8 sps:$4 sm:$0x1e]  }
 0x296   : >> { %5475 = vmatprep.mubr.bf16.mxu0 %v5120_v29  ;;  %5516 = vmatprep.mubr.bf16.mxu1 %v5120_v29  ;;  %v10393_v62 = vld [vmem:[%s14189_s1 + $0x15e0] ss:$16 sps:$4 sm:$0xff]   ;;  %v10396_v29 = vld [vmem:[%s14189_s1 + $0x15e8] ss:$16 sps:$4 sm:$0xff]  }
 0x298   : >> { %5446 = vmatpush1.bf16.msra.mxu0 %v10309_v30  ;;  %5487 = vmatpush1.bf16.msra.mxu1 %v10312_v22  ;;  %v10404_v30 = vld [vmem:[%s14189_s1 + $0x1604] ss:$16 sps:$4 sm:$0xff]   ;;  %v5604_v22 = vrot.slane %v5602_v24, 1  ;;  %v10485_v24 = vld [vmem:[%s14189_s1 + $0x17ac] ss:$16 sps:$4 sm:$0xff]  }
 0x299   : >> { %5447 = vmatprep.subr.bf16.mxu0 %v10317_v31  ;;  %5488 = vmatprep.subr.bf16.mxu1 %v10320_v32  ;;  %v5607_v31 = vrot.slane %v5605_v27, 2  ;;  %v5119_v32 = vrot.slane %v13155_v28, 1  ;;  %v10480_v27 = vld [vmem:[%s14189_s1 + $0x17a0] ss:$16 sps:$4 sm:$0xff]  }
 0x29c   : >> { %5448 = vmatpush1.bf16.msra.mxu0 %v10315_v33  ;;  %5489 = vmatpush1.bf16.msra.mxu1 %v10318_v34  ;;  %v10402_v33 = vld [vmem:[%s14189_s1 + $0x1600] ss:$16 sps:$4 sm:$0xff]   ;;  %v10405_v34 = vld [vmem:[%s14189_s1 + $0x1608] ss:$16 sps:$4 sm:$0xff]  }
 0x29d   : >> { %5449 = vmatprep.subr.bf16.mxu0 %v10323_v35  ;;  %5490 = vmatprep.subr.bf16.mxu1 %v10326_v36  ;;  %v10410_v35 = vld [vmem:[%s14189_s1 + $0x1624] ss:$16 sps:$4 sm:$0xff]   ;;  %v10413_v36 = vld [vmem:[%s14189_s1 + $0x162c] ss:$16 sps:$4 sm:$0xff]  }
 0x2a0   : >> { %5450 = vmatpush1.bf16.msra.mxu0 %v10321_v37  ;;  %5491 = vmatpush1.bf16.msra.mxu1 %v10324_v39  ;;  %v5608_v37 = vor.u32 %v5607_v31, %v5604_v22  ;;  %v10408_v39 = vld [vmem:[%s14189_s1 + $0x1620] ss:$16 sps:$4 sm:$0xff]   ;;  %v5597_v22 = vshll.u32 %v13155_v28, 16 }
 0x2a1   : >> { %5451 = vmatprep.subr.bf16.mxu0 %v10329_v40  ;;  %5492 = vmatprep.subr.bf16.mxu1 %v10332_v41  ;;  %v10411_v40 = vld [vmem:[%s14189_s1 + $0x1628] ss:$16 sps:$4 sm:$0xff]   ;;  %v10416_v41 = vld [vmem:[%s14189_s1 + $0x1644] ss:$16 sps:$4 sm:$0xff]   ;;  %v10486_v31 = vld [vmem:[%s14189_s1 + $0x17c0] ss:$16 sps:$4 sm:$0xff]  }
 0x2a4   : >> { %5452 = vmatpush1.bf16.msra.mxu0 %v10327_v43  ;;  %5493 = vmatpush1.bf16.msra.mxu1 %v10330_v44  ;;  %v10419_v43 = vld [vmem:[%s14189_s1 + $0x164c] ss:$16 sps:$4 sm:$0xff]   ;;  %v10414_v44 = vld [vmem:[%s14189_s1 + $0x1640] ss:$16 sps:$4 sm:$0xff]  }
 0x2a5   : >> { %5453 = vmatprep.subr.bf16.mxu0 %v10335_v45  ;;  %5494 = vmatprep.subr.bf16.mxu1 %v10338_v47  ;;  %v10417_v45 = vld [vmem:[%s14189_s1 + $0x1648] ss:$16 sps:$4 sm:$0xff]   ;;  %v10422_v47 = vld [vmem:[%s14189_s1 + $0x1664] ss:$16 sps:$4 sm:$0xff]  }
 0x2a8   : >> { %5454 = vmatpush1.bf16.msra.mxu0 %v10333_v48  ;;  %5495 = vmatpush1.bf16.msra.mxu1 %v10336_v42  ;;  %v10425_v48 = vld [vmem:[%s14189_s1 + $0x166c] ss:$16 sps:$4 sm:$0xff]   ;;  %v10420_v42 = vld [vmem:[%s14189_s1 + $0x1660] ss:$16 sps:$4 sm:$0xff]  }
 0x2a9   : >> { %5455 = vmatprep.subr.bf16.mxu0 %v10341_v38  ;;  %5496 = vmatprep.subr.bf16.mxu1 %v10344_v49  ;;  %v10423_v38 = vld [vmem:[%s14189_s1 + $0x1668] ss:$16 sps:$4 sm:$0xff]   ;;  %v10428_v49 = vld [vmem:[%s14189_s1 + $0x1684] ss:$16 sps:$4 sm:$0xff]  }
 0x2ac   : >> { %5456 = vmatpush1.bf16.msra.mxu0 %v10339_v50  ;;  %5497 = vmatpush1.bf16.msra.mxu1 %v10342_v51  ;;  %v10431_v50 = vld [vmem:[%s14189_s1 + $0x168c] ss:$16 sps:$4 sm:$0xff]   ;;  %v10426_v51 = vld [vmem:[%s14189_s1 + $0x1680] ss:$16 sps:$4 sm:$0xff]  }
 0x2ad   : >> { %5457 = vmatprep.subr.bf16.mxu0 %v10347_v46  ;;  %5498 = vmatprep.subr.bf16.mxu1 %v10350_v54  ;;  %v10429_v46 = vld [vmem:[%s14189_s1 + $0x1688] ss:$16 sps:$4 sm:$0xff]   ;;  %v10434_v54 = vld [vmem:[%s14189_s1 + $0x16a4] ss:$16 sps:$4 sm:$0xff]  }
 0x2b0   : >> { %5458 = vmatpush1.bf16.msra.mxu0 %v10345_v55  ;;  %5499 = vmatpush1.bf16.msra.mxu1 %v10348_v56  ;;  %v10437_v55 = vld [vmem:[%s14189_s1 + $0x16ac] ss:$16 sps:$4 sm:$0xff]   ;;  %v10432_v56 = vld [vmem:[%s14189_s1 + $0x16a0] ss:$16 sps:$4 sm:$0xff]  }
 0x2b1   : >> { %5459 = vmatprep.subr.bf16.mxu0 %v10353_v57  ;;  %5500 = vmatprep.subr.bf16.mxu1 %v10356_v58  ;;  %v10435_v57 = vld [vmem:[%s14189_s1 + $0x16a8] ss:$16 sps:$4 sm:$0xff]   ;;  %v10440_v58 = vld [vmem:[%s14189_s1 + $0x16c4] ss:$16 sps:$4 sm:$0xff]  }
 0x2b4   : >> { %5460 = vmatpush1.bf16.msra.mxu0 %v10351_v52  ;;  %5501 = vmatpush1.bf16.msra.mxu1 %v10354_v59  ;;  %v10443_v52 = vld [vmem:[%s14189_s1 + $0x16cc] ss:$16 sps:$4 sm:$0xff]   ;;  %v10438_v59 = vld [vmem:[%s14189_s1 + $0x16c0] ss:$16 sps:$4 sm:$0xff]  }
 0x2b5   : >> { %5461 = vmatprep.subr.bf16.mxu0 %v10359_v60  ;;  %5502 = vmatprep.subr.bf16.mxu1 %v10362_v61  ;;  %v10441_v60 = vld [vmem:[%s14189_s1 + $0x16c8] ss:$16 sps:$4 sm:$0xff]   ;;  %v10446_v61 = vld [vmem:[%s14189_s1 + $0x16e4] ss:$16 sps:$4 sm:$0xff]  }
 0x2b8   : >> { %5462 = vmatpush1.bf16.msra.mxu0 %v10357_v63  ;;  %5503 = vmatpush1.bf16.msra.mxu1 %v10360_v53  ;;  %v10449_v63 = vld [vmem:[%s14189_s1 + $0x16ec] ss:$16 sps:$4 sm:$0xff]   ;;  %v10444_v53 = vld [vmem:[%s14189_s1 + $0x16e0] ss:$16 sps:$4 sm:$0xff]  }
 0x2b9   : >> { %5463 = vmatprep.subr.bf16.mxu0 %v10365_v2  ;;  %5504 = vmatprep.subr.bf16.mxu1 %v10368_v3  ;;  %v10447_v2 = vld [vmem:[%s14189_s1 + $0x16e8] ss:$16 sps:$4 sm:$0xff]   ;;  %v10452_v3 = vld [vmem:[%s14189_s1 + $0x1704] ss:$16 sps:$4 sm:$0xff]  }
 0x2bc   : >> { %5464 = vmatpush1.bf16.msra.mxu0 %v10363_v4  ;;  %5505 = vmatpush1.bf16.msra.mxu1 %v10366_v5  ;;  %v10455_v4 = vld [vmem:[%s14189_s1 + $0x170c] ss:$16 sps:$4 sm:$0xff]   ;;  %v10450_v5 = vld [vmem:[%s14189_s1 + $0x1700] ss:$16 sps:$4 sm:$0xff]  }
 0x2bd   : >> { %5465 = vmatprep.subr.bf16.mxu0 %v10371_v6  ;;  %5506 = vmatprep.subr.bf16.mxu1 %v10374_v7  ;;  %v10453_v6 = vld [vmem:[%s14189_s1 + $0x1708] ss:$16 sps:$4 sm:$0xff]   ;;  %v10458_v7 = vld [vmem:[%s14189_s1 + $0x1724] ss:$16 sps:$4 sm:$0xff]  }
 0x2c0   : >> { %5466 = vmatpush1.bf16.msra.mxu0 %v10369_v9  ;;  %5507 = vmatpush1.bf16.msra.mxu1 %v10372_v10  ;;  %v10461_v9 = vld [vmem:[%s14189_s1 + $0x172c] ss:$16 sps:$4 sm:$0xff]   ;;  %v10456_v10 = vld [vmem:[%s14189_s1 + $0x1720] ss:$16 sps:$4 sm:$0xff]  }
 0x2c1   : >> { %5467 = vmatprep.subr.bf16.mxu0 %v10377_v11  ;;  %5508 = vmatprep.subr.bf16.mxu1 %v10380_v12  ;;  %v10459_v11 = vld [vmem:[%s14189_s1 + $0x1728] ss:$16 sps:$4 sm:$0xff]   ;;  %v10464_v12 = vld [vmem:[%s14189_s1 + $0x1744] ss:$16 sps:$4 sm:$0xff]  }
 0x2c4   : >> { %5468 = vmatpush1.bf16.msra.mxu0 %v10375_v13  ;;  %5509 = vmatpush1.bf16.msra.mxu1 %v10378_v15  ;;  %v10467_v13 = vld [vmem:[%s14189_s1 + $0x174c] ss:$16 sps:$4 sm:$0xff]   ;;  %v10462_v15 = vld [vmem:[%s14189_s1 + $0x1740] ss:$16 sps:$4 sm:$0xff]  }
 0x2c5   : >> { %5469 = vmatprep.subr.bf16.mxu0 %v10383_v16  ;;  %5510 = vmatprep.subr.bf16.mxu1 %v10386_v17  ;;  %v10465_v16 = vld [vmem:[%s14189_s1 + $0x1748] ss:$16 sps:$4 sm:$0xff]   ;;  %v10470_v17 = vld [vmem:[%s14189_s1 + $0x1764] ss:$16 sps:$4 sm:$0xff]  }
 0x2c8   : >> { %5470 = vmatpush1.bf16.msra.mxu0 %v10381_v19  ;;  %5511 = vmatpush1.bf16.msra.mxu1 %v10384_v20  ;;  %v10473_v19 = vld [vmem:[%s14189_s1 + $0x176c] ss:$16 sps:$4 sm:$0xff]   ;;  %v10468_v20 = vld [vmem:[%s14189_s1 + $0x1760] ss:$16 sps:$4 sm:$0xff]  }
 0x2c9   : >> { %5471 = vmatprep.subr.bf16.mxu0 %v10389_v14  ;;  %5512 = vmatprep.subr.bf16.mxu1 %v10392_v8  ;;  %v10471_v14 = vld [vmem:[%s14189_s1 + $0x1768] ss:$16 sps:$4 sm:$0xff]   ;;  %v10476_v8 = vld [vmem:[%s14189_s1 + $0x1784] ss:$16 sps:$4 sm:$0xff]  }
 0x2cc   : >> { %5472 = vmatpush1.bf16.msra.mxu0 %v10387_v21  ;;  %5513 = vmatpush1.bf16.msra.mxu1 %v10390_v23  ;;  %v10479_v21 = vld [vmem:[%s14189_s1 + $0x178c] ss:$16 sps:$4 sm:$0xff]   ;;  %v10474_v23 = vld [vmem:[%s14189_s1 + $0x1780] ss:$16 sps:$4 sm:$0xff]  }
 0x2cd   : >> { %5473 = vmatprep.subr.bf16.mxu0 %v10395_v18  ;;  %5514 = vmatprep.subr.bf16.mxu1 %v10398_v26  ;;  %v10477_v18 = vld [vmem:[%s14189_s1 + $0x1788] ss:$16 sps:$4 sm:$0xff]   ;;  %v10482_v26 = vld [vmem:[%s14189_s1 + $0x17a4] ss:$16 sps:$4 sm:$0xff]  }
 0x2d0   : >> { %5474 = vmatpush1.bf16.msra.mxu0 %v10393_v62  ;;  %5515 = vmatpush1.bf16.msra.mxu1 %v10396_v29  ;;  %v10483_v62 = vld [vmem:[%s14189_s1 + $0x17a8] ss:$16 sps:$4 sm:$0xff]   ;;  %v10488_v29 = vld [vmem:[%s14189_s1 + $0x17c4] ss:$16 sps:$4 sm:$0xff]  }
 0x2d1   : >> { %5931 = vmatprep.subr.bf16.mxu0 %v10404_v30  ;;  %5972 = vmatprep.subr.bf16.mxu1 %v10407_v25  ;;  %v10491_v30 = vld [vmem:[%s14189_s1 + $0x17cc] ss:$16 sps:$4 sm:$0xff]   ;;  %v5594_v25 = vshrl.u32 %v13155_v28, 16 }
 0x2d2   : >> { %v10497_v28 = vld [vmem:[%s14189_s1 + $0x17ec] ss:$16 sps:$4 sm:$0xff]  }
 0x2d3   : >> { %5476 = vmatmul.mubr.bf16.vlgmr.msra.gmra.mrb[0].mxu0 %v5119_v32  ;;  %5517 = vmatmul.mubr.bf16.vlgmr.msra.gmra.mrb[0].mxu1 %v5119_v32  ;;  %v10489_v32 = vld [vmem:[%s14189_s1 + $0x17c8] ss:$16 sps:$4 sm:$0xff]  }
 0x2d4   : >> { %5932 = vmatpush1.bf16.msra.mxu0 %v10402_v33  ;;  %5973 = vmatpush1.bf16.msra.mxu1 %v10405_v34  ;;  %v10494_v33 = vld [vmem:[%s14189_s1 + $0x17e4] ss:$16 sps:$4 sm:$0xff]   ;;  %v5596_v34 = vrot.slane %v5594_v25, 1  ;;  %v10575_v25 = vld [vmem:[%s14189_s1 + $0x198c] ss:$16 sps:$4 sm:$0xff]  }
 0x2d5   : >> { %5933 = vmatprep.subr.bf16.mxu0 %v10410_v35  ;;  %5974 = vmatprep.subr.bf16.mxu1 %v10413_v36  ;;  %v5599_v35 = vrot.slane %v5597_v22, 2  ;;  %v10492_v36 = vld [vmem:[%s14189_s1 + $0x17e0] ss:$16 sps:$4 sm:$0xff]  }
 0x2d6   : >> { %5963 = vmatprep.mubr.bf16.mxu0 %v5608_v37  ;;  %6004 = vmatprep.mubr.bf16.mxu1 %v5608_v37  ;;  %v10495_v37 = vld [vmem:[%s14189_s1 + $0x17e8] ss:$16 sps:$4 sm:$0xff]   ;;  %v10570_v22 = vld [vmem:[%s14189_s1 + $0x1980] ss:$16 sps:$4 sm:$0xff]  }
 0x2d8   : >> { %5934 = vmatpush1.bf16.msra.mxu0 %v10408_v39  ;;  %5975 = vmatpush1.bf16.msra.mxu1 %v10411_v40  ;;  %v10500_v39 = vld [vmem:[%s14189_s1 + $0x1804] ss:$16 sps:$4 sm:$0xff]   ;;  %v10503_v40 = vld [vmem:[%s14189_s1 + $0x180c] ss:$16 sps:$4 sm:$0xff]  }
 0x2d9   : >> { %5935 = vmatprep.subr.bf16.mxu0 %v10416_v41  ;;  %5976 = vmatprep.subr.bf16.mxu1 %v10419_v43  ;;  %v5600_v41 = vor.u32 %v5599_v35, %v5596_v34  ;;  %v13365_v43 = vld [vmem:[%s11097_s5 + $0x30] sm:$0xff]  ;;  %v10579_v34 = vld [vmem:[%s14189_s1 + $0x19a8] ss:$16 sps:$4 sm:$0xff]  }
 0x2da   : >> { %v10584_v35 = vld [vmem:[%s14189_s1 + $0x19c4] ss:$16 sps:$4 sm:$0xff]  }
 0x2dc   : >> { %5936 = vmatpush1.bf16.msra.mxu0 %v10414_v44  ;;  %5977 = vmatpush1.bf16.msra.mxu1 %v10417_v45  ;;  %v10498_v44 = vld [vmem:[%s14189_s1 + $0x1800] ss:$16 sps:$4 sm:$0xff]   ;;  %v10501_v45 = vld [vmem:[%s14189_s1 + $0x1808] ss:$16 sps:$4 sm:$0xff]  }
 0x2dd   : >> { %5937 = vmatprep.subr.bf16.mxu0 %v10422_v47  ;;  %5978 = vmatprep.subr.bf16.mxu1 %v10425_v48  ;;  %v10506_v47 = vld [vmem:[%s14189_s1 + $0x1824] ss:$16 sps:$4 sm:$0xff]   ;;  %v10509_v48 = vld [vmem:[%s14189_s1 + $0x182c] ss:$16 sps:$4 sm:$0xff]  }
 0x2e0   : >> { %5938 = vmatpush1.bf16.msra.mxu0 %v10420_v42  ;;  %5979 = vmatpush1.bf16.msra.mxu1 %v10423_v38  ;;  %v13381_v42 = vcombine.high %v13365_v43, %v13365_v43  ;;  %v10504_v38 = vld [vmem:[%s14189_s1 + $0x1820] ss:$16 sps:$4 sm:$0xff]  }
 0x2e1   : >> { %5939 = vmatprep.subr.bf16.mxu0 %v10428_v49  ;;  %5980 = vmatprep.subr.bf16.mxu1 %v10431_v50  ;;  %v10507_v49 = vld [vmem:[%s14189_s1 + $0x1828] ss:$16 sps:$4 sm:$0xff]   ;;  %v10512_v50 = vld [vmem:[%s14189_s1 + $0x1844] ss:$16 sps:$4 sm:$0xff]  }
 0x2e4   : >> { %5940 = vmatpush1.bf16.msra.mxu0 %v10426_v51  ;;  %5981 = vmatpush1.bf16.msra.mxu1 %v10429_v46  ;;  %v10515_v51 = vld [vmem:[%s14189_s1 + $0x184c] ss:$16 sps:$4 sm:$0xff]   ;;  %v10510_v46 = vld [vmem:[%s14189_s1 + $0x1840] ss:$16 sps:$4 sm:$0xff]  }
 0x2e5   : >> { %5941 = vmatprep.subr.bf16.mxu0 %v10434_v54  ;;  %5982 = vmatprep.subr.bf16.mxu1 %v10437_v55  ;;  %v10513_v54 = vld [vmem:[%s14189_s1 + $0x1848] ss:$16 sps:$4 sm:$0xff]   ;;  %v10518_v55 = vld [vmem:[%s14189_s1 + $0x1864] ss:$16 sps:$4 sm:$0xff]  }
 0x2e8   : >> { %5942 = vmatpush1.bf16.msra.mxu0 %v10432_v56  ;;  %5983 = vmatpush1.bf16.msra.mxu1 %v10435_v57  ;;  %v10521_v56 = vld [vmem:[%s14189_s1 + $0x186c] ss:$16 sps:$4 sm:$0xff]   ;;  %v10516_v57 = vld [vmem:[%s14189_s1 + $0x1860] ss:$16 sps:$4 sm:$0xff]  }
 0x2e9   : >> { %5943 = vmatprep.subr.bf16.mxu0 %v10440_v58  ;;  %5984 = vmatprep.subr.bf16.mxu1 %v10443_v52  ;;  %v10519_v58 = vld [vmem:[%s14189_s1 + $0x1868] ss:$16 sps:$4 sm:$0xff]   ;;  %v10524_v52 = vld [vmem:[%s14189_s1 + $0x1884] ss:$16 sps:$4 sm:$0xff]  }
 0x2ec   : >> { %5944 = vmatpush1.bf16.msra.mxu0 %v10438_v59  ;;  %5985 = vmatpush1.bf16.msra.mxu1 %v10441_v60  ;;  %v10527_v59 = vld [vmem:[%s14189_s1 + $0x188c] ss:$16 sps:$4 sm:$0xff]   ;;  %v10522_v60 = vld [vmem:[%s14189_s1 + $0x1880] ss:$16 sps:$4 sm:$0xff]  }
 0x2ed   : >> { %5945 = vmatprep.subr.bf16.mxu0 %v10446_v61  ;;  %5986 = vmatprep.subr.bf16.mxu1 %v10449_v63  ;;  %v10525_v61 = vld [vmem:[%s14189_s1 + $0x1888] ss:$16 sps:$4 sm:$0xff]   ;;  %v10530_v63 = vld [vmem:[%s14189_s1 + $0x18a4] ss:$16 sps:$4 sm:$0xff]  }
 0x2f0   : >> { %5946 = vmatpush1.bf16.msra.mxu0 %v10444_v53  ;;  %5987 = vmatpush1.bf16.msra.mxu1 %v10447_v2  ;;  %v10533_v53 = vld [vmem:[%s14189_s1 + $0x18ac] ss:$16 sps:$4 sm:$0xff]   ;;  %v10528_v2 = vld [vmem:[%s14189_s1 + $0x18a0] ss:$16 sps:$4 sm:$0xff]  }
 0x2f1   : >> { %5947 = vmatprep.subr.bf16.mxu0 %v10452_v3  ;;  %5988 = vmatprep.subr.bf16.mxu1 %v10455_v4  ;;  %v10531_v3 = vld [vmem:[%s14189_s1 + $0x18a8] ss:$16 sps:$4 sm:$0xff]   ;;  %v10536_v4 = vld [vmem:[%s14189_s1 + $0x18c4] ss:$16 sps:$4 sm:$0xff]  }
 0x2f4   : >> { %5948 = vmatpush1.bf16.msra.mxu0 %v10450_v5  ;;  %5989 = vmatpush1.bf16.msra.mxu1 %v10453_v6  ;;  %v10539_v5 = vld [vmem:[%s14189_s1 + $0x18cc] ss:$16 sps:$4 sm:$0xff]   ;;  %v10534_v6 = vld [vmem:[%s14189_s1 + $0x18c0] ss:$16 sps:$4 sm:$0xff]  }
 0x2f5   : >> { %5949 = vmatprep.subr.bf16.mxu0 %v10458_v7  ;;  %5990 = vmatprep.subr.bf16.mxu1 %v10461_v9  ;;  %v10537_v7 = vld [vmem:[%s14189_s1 + $0x18c8] ss:$16 sps:$4 sm:$0xff]   ;;  %v10542_v9 = vld [vmem:[%s14189_s1 + $0x18e4] ss:$16 sps:$4 sm:$0xff]  }
 0x2f8   : >> { %5950 = vmatpush1.bf16.msra.mxu0 %v10456_v10  ;;  %5991 = vmatpush1.bf16.msra.mxu1 %v10459_v11  ;;  %v10545_v10 = vld [vmem:[%s14189_s1 + $0x18ec] ss:$16 sps:$4 sm:$0xff]   ;;  %v10540_v11 = vld [vmem:[%s14189_s1 + $0x18e0] ss:$16 sps:$4 sm:$0xff]  }
 0x2f9   : >> { %5951 = vmatprep.subr.bf16.mxu0 %v10464_v12  ;;  %5992 = vmatprep.subr.bf16.mxu1 %v10467_v13  ;;  %v10543_v12 = vld [vmem:[%s14189_s1 + $0x18e8] ss:$16 sps:$4 sm:$0xff]   ;;  %v10548_v13 = vld [vmem:[%s14189_s1 + $0x1904] ss:$16 sps:$4 sm:$0xff]  }
 0x2fc   : >> { %5952 = vmatpush1.bf16.msra.mxu0 %v10462_v15  ;;  %5993 = vmatpush1.bf16.msra.mxu1 %v10465_v16  ;;  %v10551_v15 = vld [vmem:[%s14189_s1 + $0x190c] ss:$16 sps:$4 sm:$0xff]   ;;  %v10546_v16 = vld [vmem:[%s14189_s1 + $0x1900] ss:$16 sps:$4 sm:$0xff]  }
 0x2fd   : >> { %5953 = vmatprep.subr.bf16.mxu0 %v10470_v17  ;;  %5994 = vmatprep.subr.bf16.mxu1 %v10473_v19  ;;  %v10549_v17 = vld [vmem:[%s14189_s1 + $0x1908] ss:$16 sps:$4 sm:$0xff]   ;;  %v10554_v19 = vld [vmem:[%s14189_s1 + $0x1924] ss:$16 sps:$4 sm:$0xff]  }
 0x300   : >> { %5954 = vmatpush1.bf16.msra.mxu0 %v10468_v20  ;;  %5995 = vmatpush1.bf16.msra.mxu1 %v10471_v14  ;;  %v10557_v20 = vld [vmem:[%s14189_s1 + $0x192c] ss:$16 sps:$4 sm:$0xff]   ;;  %v10552_v14 = vld [vmem:[%s14189_s1 + $0x1920] ss:$16 sps:$4 sm:$0xff]  }
 0x301   : >> { %5955 = vmatprep.subr.bf16.mxu0 %v10476_v8  ;;  %5996 = vmatprep.subr.bf16.mxu1 %v10479_v21  ;;  %v10555_v8 = vld [vmem:[%s14189_s1 + $0x1928] ss:$16 sps:$4 sm:$0xff]   ;;  %v10560_v21 = vld [vmem:[%s14189_s1 + $0x1944] ss:$16 sps:$4 sm:$0xff]  }
 0x304   : >> { %5956 = vmatpush1.bf16.msra.mxu0 %v10474_v23  ;;  %5997 = vmatpush1.bf16.msra.mxu1 %v10477_v18  ;;  %v10563_v23 = vld [vmem:[%s14189_s1 + $0x194c] ss:$16 sps:$4 sm:$0xff]   ;;  %v10558_v18 = vld [vmem:[%s14189_s1 + $0x1940] ss:$16 sps:$4 sm:$0xff]  }
 0x305   : >> { %5957 = vmatprep.subr.bf16.mxu0 %v10482_v26  ;;  %5998 = vmatprep.subr.bf16.mxu1 %v10485_v24  ;;  %v10561_v26 = vld [vmem:[%s14189_s1 + $0x1948] ss:$16 sps:$4 sm:$0xff]   ;;  %v10566_v24 = vld [vmem:[%s14189_s1 + $0x1964] ss:$16 sps:$4 sm:$0xff]  }
 0x308   : >> { %5958 = vmatpush1.bf16.msra.mxu0 %v10480_v27  ;;  %5999 = vmatpush1.bf16.msra.mxu1 %v10483_v62  ;;  %v10569_v27 = vld [vmem:[%s14189_s1 + $0x196c] ss:$16 sps:$4 sm:$0xff]   ;;  %v10564_v62 = vld [vmem:[%s14189_s1 + $0x1960] ss:$16 sps:$4 sm:$0xff]  }
 0x309   : >> { %5959 = vmatprep.subr.bf16.mxu0 %v10488_v29  ;;  %6000 = vmatprep.subr.bf16.mxu1 %v10491_v30  ;;  %v10567_v29 = vld [vmem:[%s14189_s1 + $0x1968] ss:$16 sps:$4 sm:$0xff]   ;;  %v10572_v30 = vld [vmem:[%s14189_s1 + $0x1984] ss:$16 sps:$4 sm:$0xff]  }
 0x30c   : >> { %5960 = vmatpush1.bf16.msra.mxu0 %v10486_v31  ;;  %6001 = vmatpush1.bf16.msra.mxu1 %v10489_v32  ;;  %v10573_v31 = vld [vmem:[%s14189_s1 + $0x1988] ss:$16 sps:$4 sm:$0xff]   ;;  %v10578_v32 = vld [vmem:[%s14189_s1 + $0x19a4] ss:$16 sps:$4 sm:$0xff]  }
 0x30d   : >> { %5961 = vmatprep.subr.bf16.mxu0 %v10494_v33  ;;  %6002 = vmatprep.subr.bf16.mxu1 %v10497_v28  ;;  %v10581_v33 = vld [vmem:[%s14189_s1 + $0x19ac] ss:$16 sps:$4 sm:$0xff]   ;;  %v10576_v28 = vld [vmem:[%s14189_s1 + $0x19a0] ss:$16 sps:$4 sm:$0xff]  }
 0x310   : >> { %5962 = vmatpush1.bf16.msra.mxu0 %v10492_v36  ;;  %6003 = vmatpush1.bf16.msra.mxu1 %v10495_v37  ;;  %v10587_v36 = vld [vmem:[%s14189_s1 + $0x19cc] ss:$16 sps:$4 sm:$0xff]   ;;  %v10582_v37 = vld [vmem:[%s14189_s1 + $0x19c0] ss:$16 sps:$4 sm:$0xff]  }
 0x311   : >> { %6413 = vmatprep.subr.bf16.mxu0 %v10500_v39  ;;  %6454 = vmatprep.subr.bf16.mxu1 %v10503_v40  ;;  %v10585_v39 = vld [vmem:[%s14189_s1 + $0x19c8] ss:$16 sps:$4 sm:$0xff]   ;;  %v10590_v40 = vld [vmem:[%s14189_s1 + $0x19e4] ss:$16 sps:$4 sm:$0xff]  }
 0x313   : >> { %5964 = vmatmul.mubr.bf16.vlgmr.msra.gmra.mrb[0].mxu0 %v5600_v41  ;;  %6005 = vmatmul.mubr.bf16.vlgmr.msra.gmra.mrb[0].mxu1 %v5600_v41  ;;  %v10593_v41 = vld [vmem:[%s14189_s1 + $0x19ec] ss:$16 sps:$4 sm:$0xff]  }
 0x314   : >> { %6414 = vmatpush1.bf16.msra.mxu0 %v10498_v44  ;;  %6455 = vmatpush1.bf16.msra.mxu1 %v10501_v45  ;;  %v6573_v44 = vshll.u32 %v13381_v42, 16  ;;  %v10588_v45 = vld [vmem:[%s14189_s1 + $0x19e0] ss:$16 sps:$4 sm:$0xff]  }
 0x315   : >> { %6415 = vmatprep.subr.bf16.mxu0 %v10506_v47  ;;  %6456 = vmatprep.subr.bf16.mxu1 %v10509_v48  ;;  %v10591_v47 = vld [vmem:[%s14189_s1 + $0x19e8] ss:$16 sps:$4 sm:$0xff]   ;;  %v10597_v48 = vld [vmem:[%s14189_s1 + $0x1a04] ss:$16 sps:$4 sm:$0xff]  }
 0x316   : >> { %6445 = vmatprep.mubr.bf16.mxu0 %v13381_v42  ;;  %6486 = vmatprep.mubr.bf16.mxu1 %v13381_v42 }
 0x318   : >> { %6416 = vmatpush1.bf16.msra.mxu0 %v10504_v38  ;;  %6457 = vmatpush1.bf16.msra.mxu1 %v10507_v49  ;;  %v10600_v38 = vld [vmem:[%s14189_s1 + $0x1a0c] ss:$16 sps:$4 sm:$0xff]   ;;  %v6571_v49 = vshrl.u32 %v13381_v42, 16  ;;  %v10604_v42 = vld [vmem:[%s14189_s1 + $0x1a24] ss:$16 sps:$4 sm:$0xff]  }
 0x319   : >> { %6417 = vmatprep.subr.bf16.mxu0 %v10512_v50  ;;  %6458 = vmatprep.subr.bf16.mxu1 %v10515_v51  ;;  %v6575_v50 = vrot.slane %v6573_v44, 1  ;;  %v13569_v51 = vcombine.low %v13365_v43, %v13365_v43  ;;  %v10607_v43 = vld [vmem:[%s14189_s1 + $0x1a2c] ss:$16 sps:$4 sm:$0xff]   ;;  %v10677_v44 = vld [vmem:[%s14189_s1 + $0x1ba8] ss:$16 sps:$4 sm:$0xff]  }
 0x31c   : >> { %6418 = vmatpush1.bf16.msra.mxu0 %v10510_v46  ;;  %6459 = vmatpush1.bf16.msra.mxu1 %v10513_v54  ;;  %v10595_v46 = vld [vmem:[%s14189_s1 + $0x1a00] ss:$16 sps:$4 sm:$0xff]   ;;  %v10598_v54 = vld [vmem:[%s14189_s1 + $0x1a08] ss:$16 sps:$4 sm:$0xff]  }
 0x31d   : >> { %6419 = vmatprep.subr.bf16.mxu0 %v10518_v55  ;;  %6460 = vmatprep.subr.bf16.mxu1 %v10521_v56  ;;  %v6576_v55 = vor.u32 %v6575_v50, %v6571_v49  ;;  %v10602_v56 = vld [vmem:[%s14189_s1 + $0x1a20] ss:$16 sps:$4 sm:$0xff]   ;;  %v10683_v49 = vld [vmem:[%s14189_s1 + $0x1bc8] ss:$16 sps:$4 sm:$0xff]   ;;  %v10688_v50 = vld [vmem:[%s14189_s1 + $0x1be4] ss:$16 sps:$4 sm:$0xff]  }
 0x320   : >> { %6420 = vmatpush1.bf16.msra.mxu0 %v10516_v57  ;;  %6461 = vmatpush1.bf16.msra.mxu1 %v10519_v58  ;;  %v10605_v57 = vld [vmem:[%s14189_s1 + $0x1a28] ss:$16 sps:$4 sm:$0xff]   ;;  %v10610_v58 = vld [vmem:[%s14189_s1 + $0x1a44] ss:$16 sps:$4 sm:$0xff]  }
 0x321   : >> { %6421 = vmatprep.subr.bf16.mxu0 %v10524_v52  ;;  %6462 = vmatprep.subr.bf16.mxu1 %v10527_v59  ;;  %v10613_v52 = vld [vmem:[%s14189_s1 + $0x1a4c] ss:$16 sps:$4 sm:$0xff]   ;;  %v10608_v59 = vld [vmem:[%s14189_s1 + $0x1a40] ss:$16 sps:$4 sm:$0xff]  }
 0x324   : >> { %6422 = vmatpush1.bf16.msra.mxu0 %v10522_v60  ;;  %6463 = vmatpush1.bf16.msra.mxu1 %v10525_v61  ;;  %v10611_v60 = vld [vmem:[%s14189_s1 + $0x1a48] ss:$16 sps:$4 sm:$0xff]   ;;  %v10616_v61 = vld [vmem:[%s14189_s1 + $0x1a64] ss:$16 sps:$4 sm:$0xff]  }
 0x325   : >> { %6423 = vmatprep.subr.bf16.mxu0 %v10530_v63  ;;  %6464 = vmatprep.subr.bf16.mxu1 %v10533_v53  ;;  %v10619_v63 = vld [vmem:[%s14189_s1 + $0x1a6c] ss:$16 sps:$4 sm:$0xff]   ;;  %v10614_v53 = vld [vmem:[%s14189_s1 + $0x1a60] ss:$16 sps:$4 sm:$0xff]  }
 0x328   : >> { %6424 = vmatpush1.bf16.msra.mxu0 %v10528_v2  ;;  %6465 = vmatpush1.bf16.msra.mxu1 %v10531_v3  ;;  %v10617_v2 = vld [vmem:[%s14189_s1 + $0x1a68] ss:$16 sps:$4 sm:$0xff]   ;;  %v10622_v3 = vld [vmem:[%s14189_s1 + $0x1a84] ss:$16 sps:$4 sm:$0xff]  }
 0x329   : >> { %6425 = vmatprep.subr.bf16.mxu0 %v10536_v4  ;;  %6466 = vmatprep.subr.bf16.mxu1 %v10539_v5  ;;  %v10625_v4 = vld [vmem:[%s14189_s1 + $0x1a8c] ss:$16 sps:$4 sm:$0xff]   ;;  %v10620_v5 = vld [vmem:[%s14189_s1 + $0x1a80] ss:$16 sps:$4 sm:$0xff]  }
 0x32c   : >> { %6426 = vmatpush1.bf16.msra.mxu0 %v10534_v6  ;;  %6467 = vmatpush1.bf16.msra.mxu1 %v10537_v7  ;;  %v10623_v6 = vld [vmem:[%s14189_s1 + $0x1a88] ss:$16 sps:$4 sm:$0xff]   ;;  %v10628_v7 = vld [vmem:[%s14189_s1 + $0x1aa4] ss:$16 sps:$4 sm:$0xff]  }
 0x32d   : >> { %6427 = vmatprep.subr.bf16.mxu0 %v10542_v9  ;;  %6468 = vmatprep.subr.bf16.mxu1 %v10545_v10  ;;  %v10631_v9 = vld [vmem:[%s14189_s1 + $0x1aac] ss:$16 sps:$4 sm:$0xff]   ;;  %v10626_v10 = vld [vmem:[%s14189_s1 + $0x1aa0] ss:$16 sps:$4 sm:$0xff]  }
 0x330   : >> { %6428 = vmatpush1.bf16.msra.mxu0 %v10540_v11  ;;  %6469 = vmatpush1.bf16.msra.mxu1 %v10543_v12  ;;  %v10629_v11 = vld [vmem:[%s14189_s1 + $0x1aa8] ss:$16 sps:$4 sm:$0xff]   ;;  %v10634_v12 = vld [vmem:[%s14189_s1 + $0x1ac4] ss:$16 sps:$4 sm:$0xff]  }
 0x331   : >> { %6429 = vmatprep.subr.bf16.mxu0 %v10548_v13  ;;  %6470 = vmatprep.subr.bf16.mxu1 %v10551_v15  ;;  %v10637_v13 = vld [vmem:[%s14189_s1 + $0x1acc] ss:$16 sps:$4 sm:$0xff]   ;;  %v10632_v15 = vld [vmem:[%s14189_s1 + $0x1ac0] ss:$16 sps:$4 sm:$0xff]  }
 0x334   : >> { %6430 = vmatpush1.bf16.msra.mxu0 %v10546_v16  ;;  %6471 = vmatpush1.bf16.msra.mxu1 %v10549_v17  ;;  %v10635_v16 = vld [vmem:[%s14189_s1 + $0x1ac8] ss:$16 sps:$4 sm:$0xff]   ;;  %v10640_v17 = vld [vmem:[%s14189_s1 + $0x1ae4] ss:$16 sps:$4 sm:$0xff]  }
 0x335   : >> { %6431 = vmatprep.subr.bf16.mxu0 %v10554_v19  ;;  %6472 = vmatprep.subr.bf16.mxu1 %v10557_v20  ;;  %v10643_v19 = vld [vmem:[%s14189_s1 + $0x1aec] ss:$16 sps:$4 sm:$0xff]   ;;  %v10638_v20 = vld [vmem:[%s14189_s1 + $0x1ae0] ss:$16 sps:$4 sm:$0xff]  }
 0x338   : >> { %6432 = vmatpush1.bf16.msra.mxu0 %v10552_v14  ;;  %6473 = vmatpush1.bf16.msra.mxu1 %v10555_v8  ;;  %v10641_v14 = vld [vmem:[%s14189_s1 + $0x1ae8] ss:$16 sps:$4 sm:$0xff]   ;;  %v10646_v8 = vld [vmem:[%s14189_s1 + $0x1b04] ss:$16 sps:$4 sm:$0xff]  }
 0x339   : >> { %6433 = vmatprep.subr.bf16.mxu0 %v10560_v21  ;;  %6474 = vmatprep.subr.bf16.mxu1 %v10563_v23  ;;  %v10649_v21 = vld [vmem:[%s14189_s1 + $0x1b0c] ss:$16 sps:$4 sm:$0xff]   ;;  %v10644_v23 = vld [vmem:[%s14189_s1 + $0x1b00] ss:$16 sps:$4 sm:$0xff]  }
 0x33c   : >> { %6434 = vmatpush1.bf16.msra.mxu0 %v10558_v18  ;;  %6475 = vmatpush1.bf16.msra.mxu1 %v10561_v26  ;;  %v10647_v18 = vld [vmem:[%s14189_s1 + $0x1b08] ss:$16 sps:$4 sm:$0xff]   ;;  %v10652_v26 = vld [vmem:[%s14189_s1 + $0x1b24] ss:$16 sps:$4 sm:$0xff]  }
 0x33d   : >> { %6435 = vmatprep.subr.bf16.mxu0 %v10566_v24  ;;  %6476 = vmatprep.subr.bf16.mxu1 %v10569_v27  ;;  %v10655_v24 = vld [vmem:[%s14189_s1 + $0x1b2c] ss:$16 sps:$4 sm:$0xff]   ;;  %v10650_v27 = vld [vmem:[%s14189_s1 + $0x1b20] ss:$16 sps:$4 sm:$0xff]  }
 0x340   : >> { %6436 = vmatpush1.bf16.msra.mxu0 %v10564_v62  ;;  %6477 = vmatpush1.bf16.msra.mxu1 %v10567_v29  ;;  %v10653_v62 = vld [vmem:[%s14189_s1 + $0x1b28] ss:$16 sps:$4 sm:$0xff]   ;;  %v10658_v29 = vld [vmem:[%s14189_s1 + $0x1b44] ss:$16 sps:$4 sm:$0xff]  }
 0x341   : >> { %6437 = vmatprep.subr.bf16.mxu0 %v10572_v30  ;;  %6478 = vmatprep.subr.bf16.mxu1 %v10575_v25  ;;  %v10661_v30 = vld [vmem:[%s14189_s1 + $0x1b4c] ss:$16 sps:$4 sm:$0xff]   ;;  %v10656_v25 = vld [vmem:[%s14189_s1 + $0x1b40] ss:$16 sps:$4 sm:$0xff]  }
 0x344   : >> { %6438 = vmatpush1.bf16.msra.mxu0 %v10570_v22  ;;  %6479 = vmatpush1.bf16.msra.mxu1 %v10573_v31  ;;  %v10659_v22 = vld [vmem:[%s14189_s1 + $0x1b48] ss:$16 sps:$4 sm:$0xff]   ;;  %v10664_v31 = vld [vmem:[%s14189_s1 + $0x1b64] ss:$16 sps:$4 sm:$0xff]  }
 0x345   : >> { %6439 = vmatprep.subr.bf16.mxu0 %v10578_v32  ;;  %6480 = vmatprep.subr.bf16.mxu1 %v10581_v33  ;;  %v10667_v32 = vld [vmem:[%s14189_s1 + $0x1b6c] ss:$16 sps:$4 sm:$0xff]   ;;  %v10662_v33 = vld [vmem:[%s14189_s1 + $0x1b60] ss:$16 sps:$4 sm:$0xff]  }
 0x348   : >> { %6440 = vmatpush1.bf16.msra.mxu0 %v10576_v28  ;;  %6481 = vmatpush1.bf16.msra.mxu1 %v10579_v34  ;;  %v10665_v28 = vld [vmem:[%s14189_s1 + $0x1b68] ss:$16 sps:$4 sm:$0xff]   ;;  %v10670_v34 = vld [vmem:[%s14189_s1 + $0x1b84] ss:$16 sps:$4 sm:$0xff]  }
 0x349   : >> { %6441 = vmatprep.subr.bf16.mxu0 %v10584_v35  ;;  %6482 = vmatprep.subr.bf16.mxu1 %v10587_v36  ;;  %v10673_v35 = vld [vmem:[%s14189_s1 + $0x1b8c] ss:$16 sps:$4 sm:$0xff]   ;;  %v10668_v36 = vld [vmem:[%s14189_s1 + $0x1b80] ss:$16 sps:$4 sm:$0xff]  }
 0x34c   : >> { %6442 = vmatpush1.bf16.msra.mxu0 %v10582_v37  ;;  %6483 = vmatpush1.bf16.msra.mxu1 %v10585_v39  ;;  %v10671_v37 = vld [vmem:[%s14189_s1 + $0x1b88] ss:$16 sps:$4 sm:$0xff]   ;;  %v10676_v39 = vld [vmem:[%s14189_s1 + $0x1ba4] ss:$16 sps:$4 sm:$0xff]  }
 0x34d   : >> { %6443 = vmatprep.subr.bf16.mxu0 %v10590_v40  ;;  %6484 = vmatprep.subr.bf16.mxu1 %v10593_v41  ;;  %v10679_v40 = vld [vmem:[%s14189_s1 + $0x1bac] ss:$16 sps:$4 sm:$0xff]   ;;  %v10674_v41 = vld [vmem:[%s14189_s1 + $0x1ba0] ss:$16 sps:$4 sm:$0xff]  }
 0x350   : >> { %6444 = vmatpush1.bf16.msra.mxu0 %v10588_v45  ;;  %6485 = vmatpush1.bf16.msra.mxu1 %v10591_v47  ;;  %v10682_v45 = vld [vmem:[%s14189_s1 + $0x1bc4] ss:$16 sps:$4 sm:$0xff]   ;;  %v10685_v47 = vld [vmem:[%s14189_s1 + $0x1bcc] ss:$16 sps:$4 sm:$0xff]  }
 0x351   : >> { %6899 = vmatprep.subr.bf16.mxu0 %v10597_v48  ;;  %6940 = vmatprep.subr.bf16.mxu1 %v10600_v38  ;;  %v6566_v48 = vshll.u32 %v13569_v51, 16  ;;  %v10680_v38 = vld [vmem:[%s14189_s1 + $0x1bc0] ss:$16 sps:$4 sm:$0xff]  }
 0x353   : >> { %6446 = vmatmul.mubr.bf16.vlgmr.msra.gmra.mrb[0].mxu0 %v13569_v51  ;;  %6487 = vmatmul.mubr.bf16.vlgmr.msra.gmra.mrb[0].mxu1 %v13569_v51 }
 0x354   : >> { %6900 = vmatpush1.bf16.msra.mxu0 %v10595_v46  ;;  %6941 = vmatpush1.bf16.msra.mxu1 %v10598_v54  ;;  %v10691_v46 = vld [vmem:[%s14189_s1 + $0x1bec] ss:$16 sps:$4 sm:$0xff]   ;;  %v6564_v54 = vshrl.u32 %v13569_v51, 16 }
 0x355   : >> { %6901 = vmatprep.subr.bf16.mxu0 %v10604_v42  ;;  %6942 = vmatprep.subr.bf16.mxu1 %v10607_v43  ;;  %v6568_v42 = vrot.slane %v6566_v48, 1  ;;  %v10686_v43 = vld [vmem:[%s14189_s1 + $0x1be0] ss:$16 sps:$4 sm:$0xff]   ;;  %v10697_v51 = vld [vmem:[%s14189_s1 + $0x1c0c] ss:$16 sps:$4 sm:$0xff]  }
 0x356   : >> { %6931 = vmatprep.mubr.bf16.mxu0 %v6576_v55  ;;  %6972 = vmatprep.mubr.bf16.mxu1 %v6576_v55  ;;  %v10689_v55 = vld [vmem:[%s14189_s1 + $0x1be8] ss:$16 sps:$4 sm:$0xff]   ;;  %v10764_v48 = vld [vmem:[%s14189_s1 + $0x1d80] ss:$16 sps:$4 sm:$0xff]  }
 0x358   : >> { %6902 = vmatpush1.bf16.msra.mxu0 %v10602_v56  ;;  %6943 = vmatpush1.bf16.msra.mxu1 %v10605_v57  ;;  %v10694_v56 = vld [vmem:[%s14189_s1 + $0x1c04] ss:$16 sps:$4 sm:$0xff]  }
 0x359   : >> { %6903 = vmatprep.subr.bf16.mxu0 %v10610_v58  ;;  %6944 = vmatprep.subr.bf16.mxu1 %v10613_v52  ;;  %v13768_v57 = vld [vmem:[%s11097_s5 + $0x34] ss:$8 sps:$4 sm:$0x1e]   ;;  %v6569_v58 = vor.u32 %v6568_v42, %v6564_v54  ;;  %v10692_v52 = vld [vmem:[%s14189_s1 + $0x1c00] ss:$16 sps:$4 sm:$0xff]  }
 0x35a   : >> { %v10773_v54 = vld [vmem:[%s14189_s1 + $0x1da8] ss:$16 sps:$4 sm:$0xff]   ;;  %v10778_v42 = vld [vmem:[%s14189_s1 + $0x1dc4] ss:$16 sps:$4 sm:$0xff]  }
 0x35c   : >> { %6904 = vmatpush1.bf16.msra.mxu0 %v10608_v59  ;;  %6945 = vmatpush1.bf16.msra.mxu1 %v10611_v60  ;;  %v10695_v59 = vld [vmem:[%s14189_s1 + $0x1c08] ss:$16 sps:$4 sm:$0xff]   ;;  %v10700_v60 = vld [vmem:[%s14189_s1 + $0x1c24] ss:$16 sps:$4 sm:$0xff]  }
 0x35d   : >> { %6905 = vmatprep.subr.bf16.mxu0 %v10616_v61  ;;  %6946 = vmatprep.subr.bf16.mxu1 %v10619_v63  ;;  %v10703_v61 = vld [vmem:[%s14189_s1 + $0x1c2c] ss:$16 sps:$4 sm:$0xff]   ;;  %v7060_v63 = vrot.slane %v13768_v57, 1 }
 0x360   : >> { %6906 = vmatpush1.bf16.msra.mxu0 %v10614_v53  ;;  %6947 = vmatpush1.bf16.msra.mxu1 %v10617_v2  ;;  %v10698_v53 = vld [vmem:[%s14189_s1 + $0x1c20] ss:$16 sps:$4 sm:$0xff]   ;;  %v10701_v2 = vld [vmem:[%s14189_s1 + $0x1c28] ss:$16 sps:$4 sm:$0xff]  }
 0x361   : >> { %6907 = vmatprep.subr.bf16.mxu0 %v10622_v3  ;;  %6948 = vmatprep.subr.bf16.mxu1 %v10625_v4  ;;  %v10706_v3 = vld [vmem:[%s14189_s1 + $0x1c44] ss:$16 sps:$4 sm:$0xff]   ;;  %v10709_v4 = vld [vmem:[%s14189_s1 + $0x1c4c] ss:$16 sps:$4 sm:$0xff]  }
 0x364   : >> { %6908 = vmatpush1.bf16.msra.mxu0 %v10620_v5  ;;  %6949 = vmatpush1.bf16.msra.mxu1 %v10623_v6  ;;  %v10704_v5 = vld [vmem:[%s14189_s1 + $0x1c40] ss:$16 sps:$4 sm:$0xff]   ;;  %v10707_v6 = vld [vmem:[%s14189_s1 + $0x1c48] ss:$16 sps:$4 sm:$0xff]  }
 0x365   : >> { %6909 = vmatprep.subr.bf16.mxu0 %v10628_v7  ;;  %6950 = vmatprep.subr.bf16.mxu1 %v10631_v9  ;;  %v10712_v7 = vld [vmem:[%s14189_s1 + $0x1c64] ss:$16 sps:$4 sm:$0xff]   ;;  %v10715_v9 = vld [vmem:[%s14189_s1 + $0x1c6c] ss:$16 sps:$4 sm:$0xff]  }
 0x368   : >> { %6910 = vmatpush1.bf16.msra.mxu0 %v10626_v10  ;;  %6951 = vmatpush1.bf16.msra.mxu1 %v10629_v11  ;;  %v10710_v10 = vld [vmem:[%s14189_s1 + $0x1c60] ss:$16 sps:$4 sm:$0xff]   ;;  %v10713_v11 = vld [vmem:[%s14189_s1 + $0x1c68] ss:$16 sps:$4 sm:$0xff]  }
 0x369   : >> { %6911 = vmatprep.subr.bf16.mxu0 %v10634_v12  ;;  %6952 = vmatprep.subr.bf16.mxu1 %v10637_v13  ;;  %v10718_v12 = vld [vmem:[%s14189_s1 + $0x1c84] ss:$16 sps:$4 sm:$0xff]   ;;  %v10721_v13 = vld [vmem:[%s14189_s1 + $0x1c8c] ss:$16 sps:$4 sm:$0xff]  }
 0x36c   : >> { %6912 = vmatpush1.bf16.msra.mxu0 %v10632_v15  ;;  %6953 = vmatpush1.bf16.msra.mxu1 %v10635_v16  ;;  %v10716_v15 = vld [vmem:[%s14189_s1 + $0x1c80] ss:$16 sps:$4 sm:$0xff]   ;;  %v10719_v16 = vld [vmem:[%s14189_s1 + $0x1c88] ss:$16 sps:$4 sm:$0xff]  }
 0x36d   : >> { %6913 = vmatprep.subr.bf16.mxu0 %v10640_v17  ;;  %6954 = vmatprep.subr.bf16.mxu1 %v10643_v19  ;;  %v10724_v17 = vld [vmem:[%s14189_s1 + $0x1ca4] ss:$16 sps:$4 sm:$0xff]   ;;  %v10727_v19 = vld [vmem:[%s14189_s1 + $0x1cac] ss:$16 sps:$4 sm:$0xff]  }
 0x370   : >> { %6914 = vmatpush1.bf16.msra.mxu0 %v10638_v20  ;;  %6955 = vmatpush1.bf16.msra.mxu1 %v10641_v14  ;;  %v10722_v20 = vld [vmem:[%s14189_s1 + $0x1ca0] ss:$16 sps:$4 sm:$0xff]   ;;  %v10725_v14 = vld [vmem:[%s14189_s1 + $0x1ca8] ss:$16 sps:$4 sm:$0xff]  }
 0x371   : >> { %6915 = vmatprep.subr.bf16.mxu0 %v10646_v8  ;;  %6956 = vmatprep.subr.bf16.mxu1 %v10649_v21  ;;  %v10730_v8 = vld [vmem:[%s14189_s1 + $0x1cc4] ss:$16 sps:$4 sm:$0xff]   ;;  %v10733_v21 = vld [vmem:[%s14189_s1 + $0x1ccc] ss:$16 sps:$4 sm:$0xff]  }
 0x374   : >> { %6916 = vmatpush1.bf16.msra.mxu0 %v10644_v23  ;;  %6957 = vmatpush1.bf16.msra.mxu1 %v10647_v18  ;;  %v10728_v23 = vld [vmem:[%s14189_s1 + $0x1cc0] ss:$16 sps:$4 sm:$0xff]   ;;  %v10731_v18 = vld [vmem:[%s14189_s1 + $0x1cc8] ss:$16 sps:$4 sm:$0xff]  }
 0x375   : >> { %6917 = vmatprep.subr.bf16.mxu0 %v10652_v26  ;;  %6958 = vmatprep.subr.bf16.mxu1 %v10655_v24  ;;  %v10736_v26 = vld [vmem:[%s14189_s1 + $0x1ce4] ss:$16 sps:$4 sm:$0xff]   ;;  %v10739_v24 = vld [vmem:[%s14189_s1 + $0x1cec] ss:$16 sps:$4 sm:$0xff]  }
 0x378   : >> { %6918 = vmatpush1.bf16.msra.mxu0 %v10650_v27  ;;  %6959 = vmatpush1.bf16.msra.mxu1 %v10653_v62  ;;  %v10734_v27 = vld [vmem:[%s14189_s1 + $0x1ce0] ss:$16 sps:$4 sm:$0xff]   ;;  %v10737_v62 = vld [vmem:[%s14189_s1 + $0x1ce8] ss:$16 sps:$4 sm:$0xff]  }
 0x379   : >> { %6919 = vmatprep.subr.bf16.mxu0 %v10658_v29  ;;  %6960 = vmatprep.subr.bf16.mxu1 %v10661_v30  ;;  %v10742_v29 = vld [vmem:[%s14189_s1 + $0x1d04] ss:$16 sps:$4 sm:$0xff]   ;;  %v10745_v30 = vld [vmem:[%s14189_s1 + $0x1d0c] ss:$16 sps:$4 sm:$0xff]  }
 0x37c   : >> { %6920 = vmatpush1.bf16.msra.mxu0 %v10656_v25  ;;  %6961 = vmatpush1.bf16.msra.mxu1 %v10659_v22  ;;  %v10740_v25 = vld [vmem:[%s14189_s1 + $0x1d00] ss:$16 sps:$4 sm:$0xff]   ;;  %v10743_v22 = vld [vmem:[%s14189_s1 + $0x1d08] ss:$16 sps:$4 sm:$0xff]  }
 0x37d   : >> { %6921 = vmatprep.subr.bf16.mxu0 %v10664_v31  ;;  %6962 = vmatprep.subr.bf16.mxu1 %v10667_v32  ;;  %v10748_v31 = vld [vmem:[%s14189_s1 + $0x1d24] ss:$16 sps:$4 sm:$0xff]   ;;  %v10751_v32 = vld [vmem:[%s14189_s1 + $0x1d2c] ss:$16 sps:$4 sm:$0xff]  }
 0x380   : >> { %6922 = vmatpush1.bf16.msra.mxu0 %v10662_v33  ;;  %6963 = vmatpush1.bf16.msra.mxu1 %v10665_v28  ;;  %v10746_v33 = vld [vmem:[%s14189_s1 + $0x1d20] ss:$16 sps:$4 sm:$0xff]   ;;  %v10749_v28 = vld [vmem:[%s14189_s1 + $0x1d28] ss:$16 sps:$4 sm:$0xff]  }
 0x381   : >> { %6923 = vmatprep.subr.bf16.mxu0 %v10670_v34  ;;  %6964 = vmatprep.subr.bf16.mxu1 %v10673_v35  ;;  %v10754_v34 = vld [vmem:[%s14189_s1 + $0x1d44] ss:$16 sps:$4 sm:$0xff]   ;;  %v10757_v35 = vld [vmem:[%s14189_s1 + $0x1d4c] ss:$16 sps:$4 sm:$0xff]  }
 0x384   : >> { %6924 = vmatpush1.bf16.msra.mxu0 %v10668_v36  ;;  %6965 = vmatpush1.bf16.msra.mxu1 %v10671_v37  ;;  %v10752_v36 = vld [vmem:[%s14189_s1 + $0x1d40] ss:$16 sps:$4 sm:$0xff]   ;;  %v10755_v37 = vld [vmem:[%s14189_s1 + $0x1d48] ss:$16 sps:$4 sm:$0xff]  }
 0x385   : >> { %6925 = vmatprep.subr.bf16.mxu0 %v10676_v39  ;;  %6966 = vmatprep.subr.bf16.mxu1 %v10679_v40  ;;  %v10760_v39 = vld [vmem:[%s14189_s1 + $0x1d64] ss:$16 sps:$4 sm:$0xff]   ;;  %v10763_v40 = vld [vmem:[%s14189_s1 + $0x1d6c] ss:$16 sps:$4 sm:$0xff]  }
 0x388   : >> { %6926 = vmatpush1.bf16.msra.mxu0 %v10674_v41  ;;  %6967 = vmatpush1.bf16.msra.mxu1 %v10677_v44  ;;  %v10758_v41 = vld [vmem:[%s14189_s1 + $0x1d60] ss:$16 sps:$4 sm:$0xff]   ;;  %v10761_v44 = vld [vmem:[%s14189_s1 + $0x1d68] ss:$16 sps:$4 sm:$0xff]  }
 0x389   : >> { %6927 = vmatprep.subr.bf16.mxu0 %v10682_v45  ;;  %6968 = vmatprep.subr.bf16.mxu1 %v10685_v47  ;;  %v10766_v45 = vld [vmem:[%s14189_s1 + $0x1d84] ss:$16 sps:$4 sm:$0xff]   ;;  %v10769_v47 = vld [vmem:[%s14189_s1 + $0x1d8c] ss:$16 sps:$4 sm:$0xff]  }
 0x38c   : >> { %6928 = vmatpush1.bf16.msra.mxu0 %v10680_v38  ;;  %6969 = vmatpush1.bf16.msra.mxu1 %v10683_v49  ;;  %v10767_v38 = vld [vmem:[%s14189_s1 + $0x1d88] ss:$16 sps:$4 sm:$0xff]   ;;  %v10772_v49 = vld [vmem:[%s14189_s1 + $0x1da4] ss:$16 sps:$4 sm:$0xff]  }
 0x38d   : >> { %6929 = vmatprep.subr.bf16.mxu0 %v10688_v50  ;;  %6970 = vmatprep.subr.bf16.mxu1 %v10691_v46  ;;  %v10775_v50 = vld [vmem:[%s14189_s1 + $0x1dac] ss:$16 sps:$4 sm:$0xff]   ;;  %v10770_v46 = vld [vmem:[%s14189_s1 + $0x1da0] ss:$16 sps:$4 sm:$0xff]  }
 0x390   : >> { %6930 = vmatpush1.bf16.msra.mxu0 %v10686_v43  ;;  %6971 = vmatpush1.bf16.msra.mxu1 %v10689_v55  ;;  %v10781_v43 = vld [vmem:[%s14189_s1 + $0x1dcc] ss:$16 sps:$4 sm:$0xff]   ;;  %v10776_v55 = vld [vmem:[%s14189_s1 + $0x1dc0] ss:$16 sps:$4 sm:$0xff]  }
 0x391   : >> { %7383 = vmatprep.subr.bf16.mxu0 %v10694_v56  ;;  %7424 = vmatprep.subr.bf16.mxu1 %v10697_v51  ;;  %v10779_v56 = vld [vmem:[%s14189_s1 + $0x1dc8] ss:$16 sps:$4 sm:$0xff]   ;;  %v10784_v51 = vld [vmem:[%s14189_s1 + $0x1de4] ss:$16 sps:$4 sm:$0xff]  }
 0x393   : >> { %6932 = vmatmul.mubr.bf16.vlgmr.msra.gmra.mrb[0].mxu0 %v6569_v58  ;;  %6973 = vmatmul.mubr.bf16.vlgmr.msra.gmra.mrb[0].mxu1 %v6569_v58  ;;  %v10787_v58 = vld [vmem:[%s14189_s1 + $0x1dec] ss:$16 sps:$4 sm:$0xff]  }
 0x394   : >> { %7384 = vmatpush1.bf16.msra.mxu0 %v10692_v52  ;;  %7425 = vmatpush1.bf16.msra.mxu1 %v10695_v59  ;;  %v7542_v52 = vshrl.u32 %v13768_v57, 16  ;;  %v7545_v59 = vshll.u32 %v13768_v57, 16  ;;  %v10796_v57 = vld [vmem:[%s14189_s1 + $0x1e0c] ss:$16 sps:$4 sm:$0xff]  }
 0x395   : >> { %7385 = vmatprep.subr.bf16.mxu0 %v10700_v60  ;;  %7426 = vmatprep.subr.bf16.mxu1 %v10703_v61  ;;  %v13954_v60 = vld [vmem:[%s11097_s5 + $0x30] ss:$8 sps:$4 sm:$0x1e]  }
 0x396   : >> { %7415 = vmatprep.mubr.bf16.mxu0 %v7060_v63  ;;  %7456 = vmatprep.mubr.bf16.mxu1 %v7060_v63  ;;  %v10782_v61 = vld [vmem:[%s14189_s1 + $0x1de0] ss:$16 sps:$4 sm:$0xff]   ;;  %v10785_v63 = vld [vmem:[%s14189_s1 + $0x1de8] ss:$16 sps:$4 sm:$0xff]  }
 0x398   : >> { %7386 = vmatpush1.bf16.msra.mxu0 %v10698_v53  ;;  %7427 = vmatpush1.bf16.msra.mxu1 %v10701_v2  ;;  %v10793_v53 = vld [vmem:[%s14189_s1 + $0x1e04] ss:$16 sps:$4 sm:$0xff]   ;;  %v7544_v2 = vrot.slane %v7542_v52, 1  ;;  %v10874_v52 = vld [vmem:[%s14189_s1 + $0x1fac] ss:$16 sps:$4 sm:$0xff]  }
 0x399   : >> { %7387 = vmatprep.subr.bf16.mxu0 %v10706_v3  ;;  %7428 = vmatprep.subr.bf16.mxu1 %v10709_v4  ;;  %v7547_v3 = vrot.slane %v7545_v59, 2  ;;  %v7059_v4 = vrot.slane %v13954_v60, 1  ;;  %v10869_v59 = vld [vmem:[%s14189_s1 + $0x1fa0] ss:$16 sps:$4 sm:$0xff]  }
 0x39c   : >> { %7388 = vmatpush1.bf16.msra.mxu0 %v10704_v5  ;;  %7429 = vmatpush1.bf16.msra.mxu1 %v10707_v6  ;;  %v10791_v5 = vld [vmem:[%s14189_s1 + $0x1e00] ss:$16 sps:$4 sm:$0xff]   ;;  %v10794_v6 = vld [vmem:[%s14189_s1 + $0x1e08] ss:$16 sps:$4 sm:$0xff]  }
 0x39d   : >> { %7389 = vmatprep.subr.bf16.mxu0 %v10712_v7  ;;  %7430 = vmatprep.subr.bf16.mxu1 %v10715_v9  ;;  %v10799_v7 = vld [vmem:[%s14189_s1 + $0x1e24] ss:$16 sps:$4 sm:$0xff]   ;;  %v10802_v9 = vld [vmem:[%s14189_s1 + $0x1e2c] ss:$16 sps:$4 sm:$0xff]  }
 0x3a0   : >> { %7390 = vmatpush1.bf16.msra.mxu0 %v10710_v10  ;;  %7431 = vmatpush1.bf16.msra.mxu1 %v10713_v11  ;;  %v7548_v10 = vor.u32 %v7547_v3, %v7544_v2  ;;  %v10797_v11 = vld [vmem:[%s14189_s1 + $0x1e20] ss:$16 sps:$4 sm:$0xff]   ;;  %v7537_v2 = vshll.u32 %v13954_v60, 16 }
 0x3a1   : >> { %7391 = vmatprep.subr.bf16.mxu0 %v10718_v12  ;;  %7432 = vmatprep.subr.bf16.mxu1 %v10721_v13  ;;  %v10800_v12 = vld [vmem:[%s14189_s1 + $0x1e28] ss:$16 sps:$4 sm:$0xff]   ;;  %v10805_v13 = vld [vmem:[%s14189_s1 + $0x1e44] ss:$16 sps:$4 sm:$0xff]   ;;  %v10875_v3 = vld [vmem:[%s14189_s1 + $0x1fc0] ss:$16 sps:$4 sm:$0xff]  }
 0x3a4   : >> { %7392 = vmatpush1.bf16.msra.mxu0 %v10716_v15  ;;  %7433 = vmatpush1.bf16.msra.mxu1 %v10719_v16  ;;  %v10808_v15 = vld [vmem:[%s14189_s1 + $0x1e4c] ss:$16 sps:$4 sm:$0xff]   ;;  %v10803_v16 = vld [vmem:[%s14189_s1 + $0x1e40] ss:$16 sps:$4 sm:$0xff]  }
 0x3a5   : >> { %7393 = vmatprep.subr.bf16.mxu0 %v10724_v17  ;;  %7434 = vmatprep.subr.bf16.mxu1 %v10727_v19  ;;  %v10806_v17 = vld [vmem:[%s14189_s1 + $0x1e48] ss:$16 sps:$4 sm:$0xff]   ;;  %v10811_v19 = vld [vmem:[%s14189_s1 + $0x1e64] ss:$16 sps:$4 sm:$0xff]  }
 0x3a8   : >> { %7394 = vmatpush1.bf16.msra.mxu0 %v10722_v20  ;;  %7435 = vmatpush1.bf16.msra.mxu1 %v10725_v14  ;;  %v10814_v20 = vld [vmem:[%s14189_s1 + $0x1e6c] ss:$16 sps:$4 sm:$0xff]   ;;  %v10809_v14 = vld [vmem:[%s14189_s1 + $0x1e60] ss:$16 sps:$4 sm:$0xff]  }
 0x3a9   : >> { %7395 = vmatprep.subr.bf16.mxu0 %v10730_v8  ;;  %7436 = vmatprep.subr.bf16.mxu1 %v10733_v21  ;;  %v10812_v8 = vld [vmem:[%s14189_s1 + $0x1e68] ss:$16 sps:$4 sm:$0xff]   ;;  %v10817_v21 = vld [vmem:[%s14189_s1 + $0x1e84] ss:$16 sps:$4 sm:$0xff]  }
 0x3ac   : >> { %7396 = vmatpush1.bf16.msra.mxu0 %v10728_v23  ;;  %7437 = vmatpush1.bf16.msra.mxu1 %v10731_v18  ;;  %v10820_v23 = vld [vmem:[%s14189_s1 + $0x1e8c] ss:$16 sps:$4 sm:$0xff]   ;;  %v10815_v18 = vld [vmem:[%s14189_s1 + $0x1e80] ss:$16 sps:$4 sm:$0xff]  }
 0x3ad   : >> { %7397 = vmatprep.subr.bf16.mxu0 %v10736_v26  ;;  %7438 = vmatprep.subr.bf16.mxu1 %v10739_v24  ;;  %v10818_v26 = vld [vmem:[%s14189_s1 + $0x1e88] ss:$16 sps:$4 sm:$0xff]   ;;  %v10823_v24 = vld [vmem:[%s14189_s1 + $0x1ea4] ss:$16 sps:$4 sm:$0xff]  }
 0x3b0   : >> { %7398 = vmatpush1.bf16.msra.mxu0 %v10734_v27  ;;  %7439 = vmatpush1.bf16.msra.mxu1 %v10737_v62  ;;  %v10826_v27 = vld [vmem:[%s14189_s1 + $0x1eac] ss:$16 sps:$4 sm:$0xff]   ;;  %v10821_v62 = vld [vmem:[%s14189_s1 + $0x1ea0] ss:$16 sps:$4 sm:$0xff]  }
 0x3b1   : >> { %7399 = vmatprep.subr.bf16.mxu0 %v10742_v29  ;;  %7440 = vmatprep.subr.bf16.mxu1 %v10745_v30  ;;  %v10824_v29 = vld [vmem:[%s14189_s1 + $0x1ea8] ss:$16 sps:$4 sm:$0xff]   ;;  %v10829_v30 = vld [vmem:[%s14189_s1 + $0x1ec4] ss:$16 sps:$4 sm:$0xff]  }
 0x3b4   : >> { %7400 = vmatpush1.bf16.msra.mxu0 %v10740_v25  ;;  %7441 = vmatpush1.bf16.msra.mxu1 %v10743_v22  ;;  %v10832_v25 = vld [vmem:[%s14189_s1 + $0x1ecc] ss:$16 sps:$4 sm:$0xff]   ;;  %v10827_v22 = vld [vmem:[%s14189_s1 + $0x1ec0] ss:$16 sps:$4 sm:$0xff]  }
 0x3b5   : >> { %7401 = vmatprep.subr.bf16.mxu0 %v10748_v31  ;;  %7442 = vmatprep.subr.bf16.mxu1 %v10751_v32  ;;  %v10830_v31 = vld [vmem:[%s14189_s1 + $0x1ec8] ss:$16 sps:$4 sm:$0xff]   ;;  %v10835_v32 = vld [vmem:[%s14189_s1 + $0x1ee4] ss:$16 sps:$4 sm:$0xff]  }
 0x3b8   : >> { %7402 = vmatpush1.bf16.msra.mxu0 %v10746_v33  ;;  %7443 = vmatpush1.bf16.msra.mxu1 %v10749_v28  ;;  %v10838_v33 = vld [vmem:[%s14189_s1 + $0x1eec] ss:$16 sps:$4 sm:$0xff]   ;;  %v10833_v28 = vld [vmem:[%s14189_s1 + $0x1ee0] ss:$16 sps:$4 sm:$0xff]  }
 0x3b9   : >> { %7403 = vmatprep.subr.bf16.mxu0 %v10754_v34  ;;  %7444 = vmatprep.subr.bf16.mxu1 %v10757_v35  ;;  %v10836_v34 = vld [vmem:[%s14189_s1 + $0x1ee8] ss:$16 sps:$4 sm:$0xff]   ;;  %v10841_v35 = vld [vmem:[%s14189_s1 + $0x1f04] ss:$16 sps:$4 sm:$0xff]  }
 0x3bc   : >> { %7404 = vmatpush1.bf16.msra.mxu0 %v10752_v36  ;;  %7445 = vmatpush1.bf16.msra.mxu1 %v10755_v37  ;;  %v10844_v36 = vld [vmem:[%s14189_s1 + $0x1f0c] ss:$16 sps:$4 sm:$0xff]   ;;  %v10839_v37 = vld [vmem:[%s14189_s1 + $0x1f00] ss:$16 sps:$4 sm:$0xff]  }
 0x3bd   : >> { %7405 = vmatprep.subr.bf16.mxu0 %v10760_v39  ;;  %7446 = vmatprep.subr.bf16.mxu1 %v10763_v40  ;;  %v10842_v39 = vld [vmem:[%s14189_s1 + $0x1f08] ss:$16 sps:$4 sm:$0xff]   ;;  %v10847_v40 = vld [vmem:[%s14189_s1 + $0x1f24] ss:$16 sps:$4 sm:$0xff]  }
 0x3c0   : >> { %7406 = vmatpush1.bf16.msra.mxu0 %v10758_v41  ;;  %7447 = vmatpush1.bf16.msra.mxu1 %v10761_v44  ;;  %v10850_v41 = vld [vmem:[%s14189_s1 + $0x1f2c] ss:$16 sps:$4 sm:$0xff]   ;;  %v10845_v44 = vld [vmem:[%s14189_s1 + $0x1f20] ss:$16 sps:$4 sm:$0xff]  }
 0x3c1   : >> { %7407 = vmatprep.subr.bf16.mxu0 %v10766_v45  ;;  %7448 = vmatprep.subr.bf16.mxu1 %v10769_v47  ;;  %v10848_v45 = vld [vmem:[%s14189_s1 + $0x1f28] ss:$16 sps:$4 sm:$0xff]   ;;  %v10853_v47 = vld [vmem:[%s14189_s1 + $0x1f44] ss:$16 sps:$4 sm:$0xff]  }
 0x3c4   : >> { %7408 = vmatpush1.bf16.msra.mxu0 %v10764_v48  ;;  %7449 = vmatpush1.bf16.msra.mxu1 %v10767_v38  ;;  %v10856_v48 = vld [vmem:[%s14189_s1 + $0x1f4c] ss:$16 sps:$4 sm:$0xff]   ;;  %v10851_v38 = vld [vmem:[%s14189_s1 + $0x1f40] ss:$16 sps:$4 sm:$0xff]  }
 0x3c5   : >> { %7409 = vmatprep.subr.bf16.mxu0 %v10772_v49  ;;  %7450 = vmatprep.subr.bf16.mxu1 %v10775_v50  ;;  %v10854_v49 = vld [vmem:[%s14189_s1 + $0x1f48] ss:$16 sps:$4 sm:$0xff]   ;;  %v10859_v50 = vld [vmem:[%s14189_s1 + $0x1f64] ss:$16 sps:$4 sm:$0xff]  }
 0x3c8   : >> { %7410 = vmatpush1.bf16.msra.mxu0 %v10770_v46  ;;  %7451 = vmatpush1.bf16.msra.mxu1 %v10773_v54  ;;  %v10862_v46 = vld [vmem:[%s14189_s1 + $0x1f6c] ss:$16 sps:$4 sm:$0xff]   ;;  %v10857_v54 = vld [vmem:[%s14189_s1 + $0x1f60] ss:$16 sps:$4 sm:$0xff]  }
 0x3c9   : >> { %7411 = vmatprep.subr.bf16.mxu0 %v10778_v42  ;;  %7452 = vmatprep.subr.bf16.mxu1 %v10781_v43  ;;  %v10860_v42 = vld [vmem:[%s14189_s1 + $0x1f68] ss:$16 sps:$4 sm:$0xff]   ;;  %v10865_v43 = vld [vmem:[%s14189_s1 + $0x1f84] ss:$16 sps:$4 sm:$0xff]  }
 0x3cc   : >> { %7412 = vmatpush1.bf16.msra.mxu0 %v10776_v55  ;;  %7453 = vmatpush1.bf16.msra.mxu1 %v10779_v56  ;;  %v10868_v55 = vld [vmem:[%s14189_s1 + $0x1f8c] ss:$16 sps:$4 sm:$0xff]   ;;  %v10863_v56 = vld [vmem:[%s14189_s1 + $0x1f80] ss:$16 sps:$4 sm:$0xff]  }
 0x3cd   : >> { %7413 = vmatprep.subr.bf16.mxu0 %v10784_v51  ;;  %7454 = vmatprep.subr.bf16.mxu1 %v10787_v58  ;;  %v10866_v51 = vld [vmem:[%s14189_s1 + $0x1f88] ss:$16 sps:$4 sm:$0xff]   ;;  %v10871_v58 = vld [vmem:[%s14189_s1 + $0x1fa4] ss:$16 sps:$4 sm:$0xff]  }
 0x3d0   : >> { %7414 = vmatpush1.bf16.msra.mxu0 %v10782_v61  ;;  %7455 = vmatpush1.bf16.msra.mxu1 %v10785_v63  ;;  %v10872_v61 = vld [vmem:[%s14189_s1 + $0x1fa8] ss:$16 sps:$4 sm:$0xff]   ;;  %v10877_v63 = vld [vmem:[%s14189_s1 + $0x1fc4] ss:$16 sps:$4 sm:$0xff]  }
 0x3d1   : >> { %7871 = vmatprep.subr.bf16.mxu0 %v10793_v53  ;;  %7912 = vmatprep.subr.bf16.mxu1 %v10796_v57  ;;  %v10880_v53 = vld [vmem:[%s14189_s1 + $0x1fcc] ss:$16 sps:$4 sm:$0xff]   ;;  %v7534_v57 = vshrl.u32 %v13954_v60, 16 }
 0x3d2   : >> { %v10886_v60 = vld [vmem:[%s14189_s1 + $0x1fec] ss:$16 sps:$4 sm:$0xff]  }
 0x3d3   : >> { %7416 = vmatmul.mubr.bf16.vlgmr.msra.gmra.mrb[0].mxu0 %v7059_v4  ;;  %7457 = vmatmul.mubr.bf16.vlgmr.msra.gmra.mrb[0].mxu1 %v7059_v4  ;;  %v10878_v4 = vld [vmem:[%s14189_s1 + $0x1fc8] ss:$16 sps:$4 sm:$0xff]  }
 0x3d4   : >> { %7872 = vmatpush1.bf16.msra.mxu0 %v10791_v5  ;;  %7913 = vmatpush1.bf16.msra.mxu1 %v10794_v6  ;;  %v10883_v5 = vld [vmem:[%s14189_s1 + $0x1fe4] ss:$16 sps:$4 sm:$0xff]   ;;  %v7536_v6 = vrot.slane %v7534_v57, 1 }
 0x3d5   : >> { %7873 = vmatprep.subr.bf16.mxu0 %v10799_v7  ;;  %7914 = vmatprep.subr.bf16.mxu1 %v10802_v9  ;;  %v7539_v7 = vrot.slane %v7537_v2, 2  ;;  %v10881_v9 = vld [vmem:[%s14189_s1 + $0x1fe0] ss:$16 sps:$4 sm:$0xff]  }
 0x3d6   : >> { %7903 = vmatprep.mubr.bf16.mxu0 %v7548_v10  ;;  %7944 = vmatprep.mubr.bf16.mxu1 %v7548_v10  ;;  %v10884_v10 = vld [vmem:[%s14189_s1 + $0x1fe8] ss:$16 sps:$4 sm:$0xff]  }
 0x3d8   : >> { %7874 = vmatpush1.bf16.msra.mxu0 %v10797_v11  ;;  %7915 = vmatpush1.bf16.msra.mxu1 %v10800_v12  ;;  %v7540_v11 = vor.u32 %v7539_v7, %v7536_v6  ;;  %v7958_v12 = vlaneseq }
 0x3d9   : >> { %7875 = vmatprep.subr.bf16.mxu0 %v10805_v13  ;;  %7916 = vmatprep.subr.bf16.mxu1 %v10808_v15 }
 0x3da   : >> { %v7959_v13 = vshrl.u32 %v7958_v12, 7 }
 0x3dc   : >> { %7876 = vmatpush1.bf16.msra.mxu0 %v10803_v16  ;;  %7917 = vmatpush1.bf16.msra.mxu1 %v10806_v17  ;;  %v7960_v15 = vsub.s32 0, %v7959_v13  ;;  %v7968_v16 = vsub.s32 2, %v7959_v13  ;;  %v7964_v17 = vsub.s32 1, %v7959_v13 }
 0x3dd   : >> { %7877 = vmatprep.subr.bf16.mxu0 %v10811_v19  ;;  %7918 = vmatprep.subr.bf16.mxu1 %v10814_v20  ;;  %v7972_v19 = vsub.s32 3, %v7959_v13 }
 0x3de   : >> { %v7961_v20 = vrot.slane %v10939_v0, %v7960_v15 }
 0x3e0   : >> { %7878 = vmatpush1.bf16.msra.mxu0 %v10809_v14  ;;  %7919 = vmatpush1.bf16.msra.mxu1 %v10812_v8  ;;  %v7969_v14 = vrot.slane %v10939_v0, %v7968_v16  ;;  %v7965_v8 = vrot.slane %v10939_v0, %v7964_v17 }
 0x3e1   : >> { %7879 = vmatprep.subr.bf16.mxu0 %v10817_v21  ;;  %7920 = vmatprep.subr.bf16.mxu1 %v10820_v23  ;;  %v7973_v21 = vrot.slane %v10939_v0, %v7972_v19  ;;  %v7986_v23 = vrot.slane %v10944_v1, %v7960_v15 }
 0x3e4   : >> { %7880 = vmatpush1.bf16.msra.mxu0 %v10815_v18  ;;  %7921 = vmatpush1.bf16.msra.mxu1 %v10818_v26  ;;  %v7994_v18 = vrot.slane %v10944_v1, %v7968_v16 }
 0x3e5   : >> { %7881 = vmatprep.subr.bf16.mxu0 %v10823_v24  ;;  %7922 = vmatprep.subr.bf16.mxu1 %v10826_v27  ;;  %v7990_v27 = vrot.slane %v10944_v1, %v7964_v17 }
 0x3e8   : >> { %7882 = vmatpush1.bf16.msra.mxu0 %v10821_v62  ;;  %7923 = vmatpush1.bf16.msra.mxu1 %v10824_v29  ;;  %v7998_v62 = vrot.slane %v10944_v1, %v7972_v19 }
 0x3e9   : >> { %7883 = vmatprep.subr.bf16.mxu0 %v10829_v30  ;;  %7924 = vmatprep.subr.bf16.mxu1 %v10832_v25 }
 0x3ec   : >> { %7884 = vmatpush1.bf16.msra.mxu0 %v10827_v22  ;;  %7925 = vmatpush1.bf16.msra.mxu1 %v10830_v31 }
 0x3ed   : >> { %7885 = vmatprep.subr.bf16.mxu0 %v10835_v32  ;;  %7926 = vmatprep.subr.bf16.mxu1 %v10838_v33 }
 0x3f0   : >> { %7886 = vmatpush1.bf16.msra.mxu0 %v10833_v28  ;;  %7927 = vmatpush1.bf16.msra.mxu1 %v10836_v34 }
 0x3f1   : >> { %7887 = vmatprep.subr.bf16.mxu0 %v10841_v35  ;;  %7928 = vmatprep.subr.bf16.mxu1 %v10844_v36 }
 0x3f4   : >> { %7888 = vmatpush1.bf16.msra.mxu0 %v10839_v37  ;;  %7929 = vmatpush1.bf16.msra.mxu1 %v10842_v39 }
 0x3f5   : >> { %7889 = vmatprep.subr.bf16.mxu0 %v10847_v40  ;;  %7930 = vmatprep.subr.bf16.mxu1 %v10850_v41 }
 0x3f8   : >> { %7890 = vmatpush1.bf16.msra.mxu0 %v10845_v44  ;;  %7931 = vmatpush1.bf16.msra.mxu1 %v10848_v45 }
 0x3f9   : >> { %7891 = vmatprep.subr.bf16.mxu0 %v10853_v47  ;;  %7932 = vmatprep.subr.bf16.mxu1 %v10856_v48 }
 0x3fc   : >> { %7892 = vmatpush1.bf16.msra.mxu0 %v10851_v38  ;;  %7933 = vmatpush1.bf16.msra.mxu1 %v10854_v49 }
 0x3fd   : >> { %7893 = vmatprep.subr.bf16.mxu0 %v10859_v50  ;;  %7934 = vmatprep.subr.bf16.mxu1 %v10862_v46 }
 0x400   : >> { %7894 = vmatpush1.bf16.msra.mxu0 %v10857_v54  ;;  %7935 = vmatpush1.bf16.msra.mxu1 %v10860_v42  ;;  %v8044_v54 = vld [vmem:[%s8036_s22] sm:$0xff] }
 0x401   : >> { %7895 = vmatprep.subr.bf16.mxu0 %v10865_v43  ;;  %7936 = vmatprep.subr.bf16.mxu1 %v10868_v55  ;;  %v8047_v43 = vld [vmem:[%s8036_s22 + $0x8] sm:$0xff] }
 0x404   : >> { %7896 = vmatpush1.bf16.msra.mxu0 %v10863_v56  ;;  %7937 = vmatpush1.bf16.msra.mxu1 %v10866_v51 }
 0x405   : >> { %7897 = vmatprep.subr.bf16.mxu0 %v10871_v58  ;;  %7938 = vmatprep.subr.bf16.mxu1 %v10874_v52 }
 0x408   : >> { %7898 = vmatpush1.bf16.msra.mxu0 %v10869_v59  ;;  %7939 = vmatpush1.bf16.msra.mxu1 %v10872_v61 }
 0x409   : >> { %7899 = vmatprep.subr.bf16.mxu0 %v10877_v63  ;;  %7940 = vmatprep.subr.bf16.mxu1 %v10880_v53 }
 0x40c   : >> { %7900 = vmatpush1.bf16.msra.mxu0 %v10875_v3  ;;  %7941 = vmatpush1.bf16.msra.mxu1 %v10878_v4 }
 0x40d   : >> { %7901 = vmatprep.subr.bf16.mxu0 %v10883_v5  ;;  %7942 = vmatprep.subr.bf16.mxu1 %v10886_v60 }
 0x410   : >> { %7902 = vmatpush1.bf16.msra.mxu0 %v10881_v9  ;;  %7943 = vmatpush1.bf16.msra.mxu1 %v10884_v10 }
 0x413   : >> { %7904 = vmatmul.mubr.bf16.vlgmr.msra.gmra.mrb[0].mxu0 %v7540_v11  ;;  %7945 = vmatmul.mubr.bf16.vlgmr.msra.gmra.mrb[0].mxu1 %v7540_v11 }
 0x4e6   : >> { %v7905_v26 = vpop.f32.mrb[0].mxu0  ;;  %v7946_v24 = vpop.f32.mrb[0].mxu1 }
 0x4e7   : >> { %v7978_v29 = vmul.f32 %v7961_v20, %v7905_v26  ;;  %v7980_v30 = vmul.f32 %v7969_v14, %v7946_v24  ;;  %v7907_v25 = vpop.f32.mrb[1].mxu0  ;;  %v7948_v22 = vpop.f32.mrb[1].mxu1 }
 0x4e8   : >> { %v7979_v31 = vmul.f32 %v7965_v8, %v7907_v25  ;;  %v7981_v32 = vmul.f32 %v7973_v21, %v7948_v22  ;;  %v7909_v33 = vpop.f32.mrb[2].mxu0  ;;  %v7950_v28 = vpop.f32.mrb[2].mxu1 }
 0x4e9   : >> { %v8003_v34 = vadd.f32 %v7986_v23, %v7978_v29  ;;  %v8005_v35 = vadd.f32 %v7994_v18, %v7980_v30  ;;  %v7910_v36 = vpop.f32.mrb[3].mxu0  ;;  %v7951_v37 = vpop.f32.mrb[3].mxu1 }
 0x4ea   : >> { %v8004_v39 = vadd.f32 %v7990_v27, %v7979_v31  ;;  %v8006_v41 = vadd.f32 %v7998_v62, %v7981_v32 }
 0x4eb   : >> { %vm8007_vm5 = vcmp.gt.f32.partialorder %v8003_v34, 0.0  ;;  %v8011_v44 = vmul.f32 0.2, %v8003_v34  ;;  %vm8009_vm6 = vcmp.gt.f32.partialorder %v8005_v35, 0.0  ;;  %v8013_v45 = vmul.f32 0.2, %v8005_v35 }
 0x4ec   : >> { %vm8008_vm8 = vcmp.gt.f32.partialorder %v8004_v39, 0.0  ;;  %v8012_v48 = vmul.f32 0.2, %v8004_v39  ;;  %vm8010_vm9 = vcmp.gt.f32.partialorder %v8006_v41, 0.0  ;;  %v8014_v38 = vmul.f32 0.2, %v8006_v41 }
 0x4ed   : >> { %v8015_v49 = vsel %vm8007_vm5, %v8003_v34, %v8011_v44  ;;  %v8017_v50 = vsel %vm8009_vm6, %v8005_v35, %v8013_v45  ;;  %204 = sbr.rel (!%p202_p4) target bundleno = 18 (0x12), region = 78 }
 0x4ee   : >> { %v8016_v46 = vsel %vm8008_vm8, %v8004_v39, %v8012_v48  ;;  %v8018_v42 = vsel %vm8010_vm9, %v8006_v41, %v8014_v38 }
 0x4ef   : >> { %v9190_v55 = vpack.c.bf16 %v8016_v46, %v8015_v49  ;;  %v9191_v56 = vpack.c.bf16 %v8018_v42, %v8017_v50 }
 0x4f1   : >> { %v8045_v51 = vsel %vm8043_vm10, %v9190_v55, %v8044_v54  ;;  %v8048_v58 = vsel %vm8043_vm10, %v9191_v56, %v8047_v43 }
 0x4f2   : >> { %8046 = vst [vmem:[%s8036_s22] sm:$0xff] %v8045_v51  ;;  %8049 = vst [vmem:[%s8036_s22 + $0x8] sm:$0xff] %v8048_v58 }
 0x4f4 PF: > { %s14_s15 = sadd.s32 1, %s10897_s15  }
 0x4f5   : > { %p11_p5 = scmp.ge.s32.totalorder %s14_s15, 4  }
 0x4f7   :  { %13 = sbr.rel (!%p11_p5) target bundleno = 1 (0x1), region = 89 }

</bundles_post_ra>
